<compile_context>
chip_gen: v5e
topology: v5e:2x2
jax: 0.10.0
libtpu: 0.0.40
codegen_flags: <defaults>
</compile_context>

<pallas_src>
import functools
import math

import jax
import jax.numpy as jnp
from jax.experimental import pallas as pl
from jax.experimental.pallas import tpu as pltpu


def _layer_norm(x, g, b, eps=1e-5):
    mu = jnp.mean(x, axis=-1, keepdims=True)
    var = jnp.mean((x - mu) ** 2, axis=-1, keepdims=True)
    return (x - mu) * jax.lax.rsqrt(var + eps) * g + b


# ----------------------------------------------------------------------------
# Fused kernel: conv stack + sensor attention + proj1 + encoder + pool + proj
# (one batch element per grid step, everything VMEM resident)
# ----------------------------------------------------------------------------
def _model_kernel(*refs, n_layers, n_heads, ksize, n_ch, n_filt, d_model, pool):
    (x_ref, w1_ref, b1_ref, w2_ref, b2_ref, w3_ref, b3_ref, w4_ref, b4_ref,
     wq_ref, wk_ref, wv_ref, gamma_ref, w1p_ref, b1p_ref, cls_ref) = refs[:16]
    layer_refs = refs[16:16 + 12 * n_layers]
    pw_ref, pb_ref, out_ref, seq_ref = refs[16 + 12 * n_layers:]

    C, F = n_ch, n_filt
    x = x_ref[0]                                               # (T, C)

    # ---- conv layer 1 (cin = 1): per tap one (t, C) @ (C, C*F) matmul ----------
    t_out = x.shape[0] - ksize + 1
    acc = jnp.dot(x[0:t_out], w1_ref[0], preferred_element_type=jnp.float32)
    for dt in range(1, ksize):
        acc = acc + jnp.dot(x[dt:dt + t_out], w1_ref[dt],
                            preferred_element_type=jnp.float32)
    h = jnp.maximum(acc + b1_ref[...], 0.0)                    # (t_out, C*F)

    # ---- conv layers 2..4: per tap one (t, C*F) @ (C*F, C*F) matmul ------------
    for w_ref, b_ref in ((w2_ref, b2_ref), (w3_ref, b3_ref), (w4_ref, b4_ref)):
        t_out = h.shape[0] - ksize + 1
        acc = jnp.dot(h[0:t_out], w_ref[0], preferred_element_type=jnp.float32)
        for dt in range(1, ksize):
            acc = acc + jnp.dot(h[dt:dt + t_out], w_ref[dt],
                                preferred_element_type=jnp.float32)
        h = jnp.maximum(acc + b_ref[...], 0.0)                 # (t_out, C*F)

    # ---- SAGAN sensor attention, all T' timesteps at once ----------------------
    tp = h.shape[0]
    q = jnp.dot(h, wq_ref[...], preferred_element_type=jnp.float32).reshape(tp, C, F)
    k = jnp.dot(h, wk_ref[...], preferred_element_type=jnp.float32).reshape(tp, C, F)
    v = jnp.dot(h, wv_ref[...], preferred_element_type=jnp.float32).reshape(tp, C, F)
    # torch: S = q^T k (C1 x C2), beta = softmax(S, dim=1), o = v @ beta.
    # Carry S^T so the softmax reduction runs on the lane axis.
    st = jnp.einsum('tdf,tcf->tdc', k, q, preferred_element_type=jnp.float32)
    st = st - jnp.max(st, axis=-1, keepdims=True)
    p = jnp.exp(st)
    p = p * pl.reciprocal(jnp.sum(p, axis=-1, keepdims=True), approx=True)
    o = jnp.einsum('tdc,tcf->tdf', p, v, preferred_element_type=jnp.float32)
    refined = gamma_ref[...] * o.reshape(tp, C * F) + h        # (tp, C*F) lane-dense

    # ---- projection1 + cls prepend ---------------------------------------------
    x1 = jnp.dot(refined, w1p_ref[...],
                 preferred_element_type=jnp.float32) + b1p_ref[...]   # (tp, D)
    seq_ref[0:1, :] = cls_ref[...]
    seq_ref[1:, :] = x1
    seq = seq_ref[...]                                         # (S, D), S = tp + 1
    S = seq.shape[0]

    dh = d_model // n_heads
    scale = 1.0 / math.sqrt(dh)
    # TODO(synk): post-LN transformer block (MHA + 4x FFN, ReLU) is assumed.
    for l in range(n_layers):
        (wqkv_ref, bqkv_ref, wo_ref, bo_ref, g1_ref, be1_ref,
         wf1_ref, bf1_ref, wf2_ref, bf2_ref, g2_ref, be2_ref) = \
            layer_refs[12 * l:12 * (l + 1)]

        qkv = jnp.dot(seq, wqkv_ref[...],
                      preferred_element_type=jnp.float32) + bqkv_ref[...]   # (S, 3D)
        qh = qkv[:, 0:d_model].reshape(S, n_heads, dh)
        kh = qkv[:, d_model:2 * d_model].reshape(S, n_heads, dh)
        vh = qkv[:, 2 * d_model:3 * d_model].reshape(S, n_heads, dh)
        # all heads batched in one contraction; single whole-block result
        s = jnp.einsum('shd,thd->hst', qh, kh,
                       preferred_element_type=jnp.float32) * scale
        s = s - jnp.max(s, axis=-1, keepdims=True)
        pr = jnp.exp(s)
        pr = pr * pl.reciprocal(jnp.sum(pr, axis=-1, keepdims=True), approx=True)
        ctx = jnp.einsum('hst,thd->shd', pr, vh,
                         preferred_element_type=jnp.float32).reshape(S, d_model)
        attn = jnp.dot(ctx, wo_ref[...],
                       preferred_element_type=jnp.float32) + bo_ref[...]
        h1 = _layer_norm(seq + attn, g1_ref[...], be1_ref[...])
        ff = jnp.maximum(jnp.dot(h1, wf1_ref[...],
                                 preferred_element_type=jnp.float32) + bf1_ref[...],
                         0.0)
        ff = jnp.dot(ff, wf2_ref[...],
                     preferred_element_type=jnp.float32) + bf2_ref[...]
        seq = _layer_norm(h1 + ff, g2_ref[...], be2_ref[...])

    pooled = jnp.mean(seq, axis=0, keepdims=True) if pool == "mean" else seq[0:1, :]
    out = jnp.dot(pooled, pw_ref[...],
                  preferred_element_type=jnp.float32) + pb_ref[...]
    out_ref[...] = out.reshape(1, 1, -1)


# ----------------------------------------------------------------------------
# Wrapper: host-side weight expansion (pure layout work on tiny arrays) + call
# ----------------------------------------------------------------------------
def model_forward(x, params, cfg):
    B, _, T, C = x.shape
    F = cfg["filter_num"]
    D = cfg["d_model"]
    k = cfg["filter_size"]
    assert C == D
    # TODO(synk): only fe_stride == 1 is implemented in the fused conv formulation.
    assert cfg["fe_stride"] == 1
    CF = C * F
    tp = T - 4 * (k - 1)
    S = tp + 1

    eyeC = jnp.eye(C, dtype=jnp.float32)

    def tile_bias(b):   # b_big[c*F + f] = b[f]
        return jnp.tile(b.reshape(1, F), (1, C)).reshape(1, CF)

    # conv layer 1: torch (F, 1, k, 1) -> per-tap (C, C*F) block weights.
    w1t = params["fe"][0]["w"][:, 0, :, 0]                      # (F, k)
    w1e = jnp.stack([jnp.kron(eyeC, w1t[:, dt][None, :]) for dt in range(k)])
    b1e = tile_bias(params["fe"][0]["b"])
    # conv layers 2..4: torch (F, F, k, 1) -> per-tap block-diagonal (C*F, C*F).
    conv_big = []
    for l in range(1, 4):
        wt = params["fe"][l]["w"][:, :, :, 0]                   # (Fout, Fin, k)
        we = jnp.stack([jnp.kron(eyeC, wt[:, :, dt].T) for dt in range(k)])
        conv_big.append((we, tile_bias(params["fe"][l]["b"])))

    sa = params["sa"]
    wqe = jnp.kron(eyeC, sa["wq"].T)                            # (C*F, C*F)
    wke = jnp.kron(eyeC, sa["wk"].T)
    wve = jnp.kron(eyeC, sa["wv"].T)
    gamma = sa["gamma"]                                         # (1, 1)

    # projection1: torch flatten order is f*C + c; activations are c*F + f.
    w1p = params["proj1_w"].reshape(F, C, D).transpose(1, 0, 2).reshape(CF, D)
    b1p = params["proj1_b"]
    cls_row = params["cls_token"].reshape(1, D)

    layer_args = []
    for blk in params["enc"]:
        m = blk["mha"]
        wqkv = jnp.concatenate([m["wq"], m["wk"], m["wv"]], axis=1)   # (D, 3D)
        bqkv = jnp.concatenate([m["bq"], m["bk"], m["bv"]], axis=1)   # (1, 3D)
        layer_args += [wqkv, bqkv, m["wo"], m["bo"],
                       blk["ln1_g"], blk["ln1_b"],
                       blk["ff1_w"], blk["ff1_b"], blk["ff2_w"], blk["ff2_b"],
                       blk["ln2_g"], blk["ln2_b"]]

    args = [x.reshape(B, T, C), w1e, b1e,
            conv_big[0][0], conv_big[0][1],
            conv_big[1][0], conv_big[1][1],
            conv_big[2][0], conv_big[2][1],
            wqe, wke, wve, gamma, w1p, b1p, cls_row,
            *layer_args, params["proj_w"], params["proj_b"]]

    def rep(a):                         # replicated (VMEM-resident) weight spec
        if a.ndim == 2:
            return pl.BlockSpec(a.shape, lambda b: (0, 0))
        return pl.BlockSpec(a.shape, lambda b: (0, 0, 0))

    in_specs = [pl.BlockSpec((1, T, C), lambda b: (b, 0, 0))]
    in_specs += [rep(a) for a in args[1:]]

    kernel = functools.partial(
        _model_kernel, n_layers=cfg["e_layers"], n_heads=cfg["n_heads"],
        ksize=k, n_ch=C, n_filt=F, d_model=D, pool=cfg["pool"])

    # TODO(synk): for large e_layers/d_model (v7x: 64 MiB VMEM), stack layer weights
    # along a leading axis and add an "arbitrary" grid axis over layers instead of
    # keeping every layer's weights resident; unnecessary at these sizes.
    out = pl.pallas_call(
        kernel,
        grid=(B,),
        in_specs=in_specs,
        out_specs=pl.BlockSpec((1, 1, cfg["c_out"]), lambda b: (b, 0, 0)),
        out_shape=jax.ShapeDtypeStruct((B, 1, cfg["c_out"]), jnp.float32),
        scratch_shapes=[pltpu.VMEM((S, D), jnp.float32)],
        compiler_params=pltpu.CompilerParams(dimension_semantics=("parallel",)),
    )(*args)
    return out.reshape(B, cfg["c_out"])


# ----------------------------------------------------------------------------
# Deterministic parameter init (torch-like layouts)
# ----------------------------------------------------------------------------
def init_params(key, cfg):
    C, F, k = cfg["d_model"], cfg["filter_num"], cfg["filter_size"]
    d_ff = 4 * C
    keys = iter(jax.random.split(key, 64))

    def nrm(shape, scale=0.1):
        return (scale * jax.random.normal(next(keys), shape)).astype(jnp.float32)

    fe, cin = [], 1
    for _ in range(4):
        fe.append({"w": nrm((F, cin, k, 1), 0.3), "b": jnp.zeros((F,), jnp.float32)})
        cin = F

    # SAGAN SelfAttention 1x1-conv weights (F_out, F_in), no bias.
    # torch initializes gamma to 0; a nonzero value is used so the path is exercised.
    sa = {"wq": nrm((F, F)), "wk": nrm((F, F)), "wv": nrm((F, F)),
          "gamma": jnp.full((1, 1), 0.5, jnp.float32)}

    enc = []
    for _ in range(cfg["e_layers"]):
        enc.append({
            "mha": {"wq": nrm((C, C)), "bq": jnp.zeros((1, C), jnp.float32),
                    "wk": nrm((C, C)), "bk": jnp.zeros((1, C), jnp.float32),
                    "wv": nrm((C, C)), "bv": jnp.zeros((1, C), jnp.float32),
                    "wo": nrm((C, C)), "bo": jnp.zeros((1, C), jnp.float32)},
            "ln1_g": jnp.ones((1, C), jnp.float32), "ln1_b": jnp.zeros((1, C), jnp.float32),
            "ff1_w": nrm((C, d_ff)), "ff1_b": jnp.zeros((1, d_ff), jnp.float32),
            "ff2_w": nrm((d_ff, C)), "ff2_b": jnp.zeros((1, C), jnp.float32),
            "ln2_g": jnp.ones((1, C), jnp.float32), "ln2_b": jnp.zeros((1, C), jnp.float32),
        })

    return {
        "fe": fe,
        "sa": sa,
        "cls_token": nrm((1, 1, C), 1.0),                      # torch.randn(1, 1, d_model)
        # math layout: y = flat(F,C) @ proj1_w + proj1_b, rows indexed f*C + c
        "proj1_w": nrm((F * C, C)), "proj1_b": jnp.zeros((1, C), jnp.float32),
        "enc": enc,
        "proj_w": nrm((C, cfg["c_out"])), "proj_b": jnp.zeros((1, cfg["c_out"]), jnp.float32),
    }


# ----------------------------------------------------------------------------
if __name__ == "__main__":
    cfg = dict(d_model=16, filter_num=8, filter_size=3, fe_stride=1,
               n_heads=2, e_layers=2, c_out=4, pool="mean", dropout=0.0,
               activation="relu")

    B, T = 2, 23          # T chosen so the encoder length S = T' + 1 = 16 (tile aligned)
    C = cfg["d_model"]
    key = jax.random.PRNGKey(0)
    k_in, k_par = jax.random.split(key)
    x = jax.random.normal(k_in, (B, 1, T, C), dtype=jnp.float32)   # NCHW-style input

    params = init_params(k_par, cfg)

    out = model_forward(x, params, cfg)
    out = jax.block_until_ready(out)
    assert out.shape == (B, cfg["c_out"]), out.shape
    assert bool(jnp.all(jnp.isfinite(out)))
    print("KERNEL_OK")
</pallas_src>

<mosaic_0001>
module attributes {stable_mosaic.version = 11 : i64} {
  func.func @_model_kernel(%arg0: i32, %arg1: memref<1x23x16xf32, #tpu.memory_space<vmem>>, %arg2: memref<3x16x128xf32, #tpu.memory_space<vmem>>, %arg3: memref<1x128xf32, #tpu.memory_space<vmem>>, %arg4: memref<3x128x128xf32, #tpu.memory_space<vmem>>, %arg5: memref<1x128xf32, #tpu.memory_space<vmem>>, %arg6: memref<3x128x128xf32, #tpu.memory_space<vmem>>, %arg7: memref<1x128xf32, #tpu.memory_space<vmem>>, %arg8: memref<3x128x128xf32, #tpu.memory_space<vmem>>, %arg9: memref<1x128xf32, #tpu.memory_space<vmem>>, %arg10: memref<128x128xf32, #tpu.memory_space<vmem>>, %arg11: memref<128x128xf32, #tpu.memory_space<vmem>>, %arg12: memref<128x128xf32, #tpu.memory_space<vmem>>, %arg13: memref<1x1xf32, #tpu.memory_space<vmem>>, %arg14: memref<128x16xf32, #tpu.memory_space<vmem>>, %arg15: memref<1x16xf32, #tpu.memory_space<vmem>>, %arg16: memref<1x16xf32, #tpu.memory_space<vmem>>, %arg17: memref<16x48xf32, #tpu.memory_space<vmem>>, %arg18: memref<1x48xf32, #tpu.memory_space<vmem>>, %arg19: memref<16x16xf32, #tpu.memory_space<vmem>>, %arg20: memref<1x16xf32, #tpu.memory_space<vmem>>, %arg21: memref<1x16xf32, #tpu.memory_space<vmem>>, %arg22: memref<1x16xf32, #tpu.memory_space<vmem>>, %arg23: memref<16x64xf32, #tpu.memory_space<vmem>>, %arg24: memref<1x64xf32, #tpu.memory_space<vmem>>, %arg25: memref<64x16xf32, #tpu.memory_space<vmem>>, %arg26: memref<1x16xf32, #tpu.memory_space<vmem>>, %arg27: memref<1x16xf32, #tpu.memory_space<vmem>>, %arg28: memref<1x16xf32, #tpu.memory_space<vmem>>, %arg29: memref<16x48xf32, #tpu.memory_space<vmem>>, %arg30: memref<1x48xf32, #tpu.memory_space<vmem>>, %arg31: memref<16x16xf32, #tpu.memory_space<vmem>>, %arg32: memref<1x16xf32, #tpu.memory_space<vmem>>, %arg33: memref<1x16xf32, #tpu.memory_space<vmem>>, %arg34: memref<1x16xf32, #tpu.memory_space<vmem>>, %arg35: memref<16x64xf32, #tpu.memory_space<vmem>>, %arg36: memref<1x64xf32, #tpu.memory_space<vmem>>, %arg37: memref<64x16xf32, #tpu.memory_space<vmem>>, %arg38: memref<1x16xf32, #tpu.memory_space<vmem>>, %arg39: memref<1x16xf32, #tpu.memory_space<vmem>>, %arg40: memref<1x16xf32, #tpu.memory_space<vmem>>, %arg41: memref<16x4xf32, #tpu.memory_space<vmem>>, %arg42: memref<1x4xf32, #tpu.memory_space<vmem>>, %arg43: memref<1x1x4xf32, #tpu.memory_space<vmem>>, %arg44: memref<16x16xf32, #tpu.memory_space<vmem>>) attributes {dimension_semantics = [#tpu.dimension_semantics<parallel>], iteration_bounds = array<i64: 2>, scalar_prefetch = 0 : i64, scratch_operands = 1 : i64, tpu.core_type = #tpu.core_type<tc>, window_params = [{transform_indices = @transform_0, window_bounds = array<i64: 1, 23, 16>}, {pipeline_mode = #tpu.pipeline_mode<synchronous>, transform_indices = @transform_1, window_bounds = array<i64: 3, 16, 128>}, {pipeline_mode = #tpu.pipeline_mode<synchronous>, transform_indices = @transform_2, window_bounds = array<i64: 1, 128>}, {pipeline_mode = #tpu.pipeline_mode<synchronous>, transform_indices = @transform_3, window_bounds = array<i64: 3, 128, 128>}, {pipeline_mode = #tpu.pipeline_mode<synchronous>, transform_indices = @transform_4, window_bounds = array<i64: 1, 128>}, {pipeline_mode = #tpu.pipeline_mode<synchronous>, transform_indices = @transform_5, window_bounds = array<i64: 3, 128, 128>}, {pipeline_mode = #tpu.pipeline_mode<synchronous>, transform_indices = @transform_6, window_bounds = array<i64: 1, 128>}, {pipeline_mode = #tpu.pipeline_mode<synchronous>, transform_indices = @transform_7, window_bounds = array<i64: 3, 128, 128>}, {pipeline_mode = #tpu.pipeline_mode<synchronous>, transform_indices = @transform_8, window_bounds = array<i64: 1, 128>}, {pipeline_mode = #tpu.pipeline_mode<synchronous>, transform_indices = @transform_9, window_bounds = array<i64: 128, 128>}, {pipeline_mode = #tpu.pipeline_mode<synchronous>, transform_indices = @transform_10, window_bounds = array<i64: 128, 128>}, {pipeline_mode = #tpu.pipeline_mode<synchronous>, transform_indices = @transform_11, window_bounds = array<i64: 128, 128>}, {pipeline_mode = #tpu.pipeline_mode<synchronous>, transform_indices = @transform_12, window_bounds = array<i64: 1, 1>}, {pipeline_mode = #tpu.pipeline_mode<synchronous>, transform_indices = @transform_13, window_bounds = array<i64: 128, 16>}, {pipeline_mode = #tpu.pipeline_mode<synchronous>, transform_indices = @transform_14, window_bounds = array<i64: 1, 16>}, {pipeline_mode = #tpu.pipeline_mode<synchronous>, transform_indices = @transform_15, window_bounds = array<i64: 1, 16>}, {pipeline_mode = #tpu.pipeline_mode<synchronous>, transform_indices = @transform_16, window_bounds = array<i64: 16, 48>}, {pipeline_mode = #tpu.pipeline_mode<synchronous>, transform_indices = @transform_17, window_bounds = array<i64: 1, 48>}, {pipeline_mode = #tpu.pipeline_mode<synchronous>, transform_indices = @transform_18, window_bounds = array<i64: 16, 16>}, {pipeline_mode = #tpu.pipeline_mode<synchronous>, transform_indices = @transform_19, window_bounds = array<i64: 1, 16>}, {pipeline_mode = #tpu.pipeline_mode<synchronous>, transform_indices = @transform_20, window_bounds = array<i64: 1, 16>}, {pipeline_mode = #tpu.pipeline_mode<synchronous>, transform_indices = @transform_21, window_bounds = array<i64: 1, 16>}, {pipeline_mode = #tpu.pipeline_mode<synchronous>, transform_indices = @transform_22, window_bounds = array<i64: 16, 64>}, {pipeline_mode = #tpu.pipeline_mode<synchronous>, transform_indices = @transform_23, window_bounds = array<i64: 1, 64>}, {pipeline_mode = #tpu.pipeline_mode<synchronous>, transform_indices = @transform_24, window_bounds = array<i64: 64, 16>}, {pipeline_mode = #tpu.pipeline_mode<synchronous>, transform_indices = @transform_25, window_bounds = array<i64: 1, 16>}, {pipeline_mode = #tpu.pipeline_mode<synchronous>, transform_indices = @transform_26, window_bounds = array<i64: 1, 16>}, {pipeline_mode = #tpu.pipeline_mode<synchronous>, transform_indices = @transform_27, window_bounds = array<i64: 1, 16>}, {pipeline_mode = #tpu.pipeline_mode<synchronous>, transform_indices = @transform_28, window_bounds = array<i64: 16, 48>}, {pipeline_mode = #tpu.pipeline_mode<synchronous>, transform_indices = @transform_29, window_bounds = array<i64: 1, 48>}, {pipeline_mode = #tpu.pipeline_mode<synchronous>, transform_indices = @transform_30, window_bounds = array<i64: 16, 16>}, {pipeline_mode = #tpu.pipeline_mode<synchronous>, transform_indices = @transform_31, window_bounds = array<i64: 1, 16>}, {pipeline_mode = #tpu.pipeline_mode<synchronous>, transform_indices = @transform_32, window_bounds = array<i64: 1, 16>}, {pipeline_mode = #tpu.pipeline_mode<synchronous>, transform_indices = @transform_33, window_bounds = array<i64: 1, 16>}, {pipeline_mode = #tpu.pipeline_mode<synchronous>, transform_indices = @transform_34, window_bounds = array<i64: 16, 64>}, {pipeline_mode = #tpu.pipeline_mode<synchronous>, transform_indices = @transform_35, window_bounds = array<i64: 1, 64>}, {pipeline_mode = #tpu.pipeline_mode<synchronous>, transform_indices = @transform_36, window_bounds = array<i64: 64, 16>}, {pipeline_mode = #tpu.pipeline_mode<synchronous>, transform_indices = @transform_37, window_bounds = array<i64: 1, 16>}, {pipeline_mode = #tpu.pipeline_mode<synchronous>, transform_indices = @transform_38, window_bounds = array<i64: 1, 16>}, {pipeline_mode = #tpu.pipeline_mode<synchronous>, transform_indices = @transform_39, window_bounds = array<i64: 1, 16>}, {pipeline_mode = #tpu.pipeline_mode<synchronous>, transform_indices = @transform_40, window_bounds = array<i64: 16, 4>}, {pipeline_mode = #tpu.pipeline_mode<synchronous>, transform_indices = @transform_41, window_bounds = array<i64: 1, 4>}, {transform_indices = @transform_42, window_bounds = array<i64: 1, 1, 4>}]} {
    %c0 = arith.constant 0 : index
    %c0_0 = arith.constant 0 : index
    %c0_1 = arith.constant 0 : index
    %0 = vector.load %arg1[%c0, %c0_0, %c0_1] : memref<1x23x16xf32, #tpu.memory_space<vmem>>, vector<1x23x16xf32>
    %1 = vector.shape_cast %0 : vector<1x23x16xf32> to vector<23x16xf32>
    %2 = vector.extract_strided_slice %1 {offsets = [0, 0], sizes = [21, 16], strides = [1, 1]} : vector<23x16xf32> to vector<21x16xf32>
    %c0_2 = arith.constant 0 : index
    %c0_3 = arith.constant 0 : index
    %c0_4 = arith.constant 0 : index
    %3 = vector.load %arg2[%c0_2, %c0_3, %c0_4] : memref<3x16x128xf32, #tpu.memory_space<vmem>>, vector<1x16x128xf32>
    %4 = vector.shape_cast %3 : vector<1x16x128xf32> to vector<16x128xf32>
    %cst = arith.constant dense<0.000000e+00> : vector<21x128xf32>
    %5 = tpu.matmul %2, %4, %cst {dimension_numbers = #tpu.dot_dimension_numbers<[1], [0], [0], [1], [0, 0, 1, 1], [], []>} : vector<21x16xf32>, vector<16x128xf32>, vector<21x128xf32> -> vector<21x128xf32>
    %6 = vector.extract_strided_slice %1 {offsets = [1, 0], sizes = [21, 16], strides = [1, 1]} : vector<23x16xf32> to vector<21x16xf32>
    %c1 = arith.constant 1 : index
    %c0_5 = arith.constant 0 : index
    %c0_6 = arith.constant 0 : index
    %7 = vector.load %arg2[%c1, %c0_5, %c0_6] : memref<3x16x128xf32, #tpu.memory_space<vmem>>, vector<1x16x128xf32>
    %8 = vector.shape_cast %7 : vector<1x16x128xf32> to vector<16x128xf32>
    %cst_7 = arith.constant dense<0.000000e+00> : vector<21x128xf32>
    %9 = tpu.matmul %6, %8, %cst_7 {dimension_numbers = #tpu.dot_dimension_numbers<[1], [0], [0], [1], [0, 0, 1, 1], [], []>} : vector<21x16xf32>, vector<16x128xf32>, vector<21x128xf32> -> vector<21x128xf32>
    %10 = arith.addf %5, %9 : vector<21x128xf32>
    %11 = vector.extract_strided_slice %1 {offsets = [2, 0], sizes = [21, 16], strides = [1, 1]} : vector<23x16xf32> to vector<21x16xf32>
    %c2 = arith.constant 2 : index
    %c0_8 = arith.constant 0 : index
    %c0_9 = arith.constant 0 : index
    %12 = vector.load %arg2[%c2, %c0_8, %c0_9] : memref<3x16x128xf32, #tpu.memory_space<vmem>>, vector<1x16x128xf32>
    %13 = vector.shape_cast %12 : vector<1x16x128xf32> to vector<16x128xf32>
    %cst_10 = arith.constant dense<0.000000e+00> : vector<21x128xf32>
    %14 = tpu.matmul %11, %13, %cst_10 {dimension_numbers = #tpu.dot_dimension_numbers<[1], [0], [0], [1], [0, 0, 1, 1], [], []>} : vector<21x16xf32>, vector<16x128xf32>, vector<21x128xf32> -> vector<21x128xf32>
    %15 = arith.addf %10, %14 : vector<21x128xf32>
    %c0_11 = arith.constant 0 : index
    %c0_12 = arith.constant 0 : index
    %16 = vector.load %arg3[%c0_11, %c0_12] : memref<1x128xf32, #tpu.memory_space<vmem>>, vector<1x128xf32>
    %17 = vector.broadcast %16 : vector<1x128xf32> to vector<21x128xf32>
    %18 = arith.addf %15, %17 : vector<21x128xf32>
    %cst_13 = arith.constant 0.000000e+00 : f32
    %19 = vector.broadcast %cst_13 : f32 to vector<21x128xf32>
    %20 = arith.maximumf %18, %19 : vector<21x128xf32>
    %21 = vector.extract_strided_slice %20 {offsets = [0, 0], sizes = [19, 128], strides = [1, 1]} : vector<21x128xf32> to vector<19x128xf32>
    %c0_14 = arith.constant 0 : index
    %c0_15 = arith.constant 0 : index
    %c0_16 = arith.constant 0 : index
    %22 = vector.load %arg4[%c0_14, %c0_15, %c0_16] : memref<3x128x128xf32, #tpu.memory_space<vmem>>, vector<1x128x128xf32>
    %23 = vector.shape_cast %22 : vector<1x128x128xf32> to vector<128x128xf32>
    %cst_17 = arith.constant dense<0.000000e+00> : vector<19x128xf32>
    %24 = tpu.matmul %21, %23, %cst_17 {dimension_numbers = #tpu.dot_dimension_numbers<[1], [0], [0], [1], [0, 0, 1, 1], [], []>} : vector<19x128xf32>, vector<128x128xf32>, vector<19x128xf32> -> vector<19x128xf32>
    %25 = vector.extract_strided_slice %20 {offsets = [1, 0], sizes = [19, 128], strides = [1, 1]} : vector<21x128xf32> to vector<19x128xf32>
    %c1_18 = arith.constant 1 : index
    %c0_19 = arith.constant 0 : index
    %c0_20 = arith.constant 0 : index
    %26 = vector.load %arg4[%c1_18, %c0_19, %c0_20] : memref<3x128x128xf32, #tpu.memory_space<vmem>>, vector<1x128x128xf32>
    %27 = vector.shape_cast %26 : vector<1x128x128xf32> to vector<128x128xf32>
    %cst_21 = arith.constant dense<0.000000e+00> : vector<19x128xf32>
    %28 = tpu.matmul %25, %27, %cst_21 {dimension_numbers = #tpu.dot_dimension_numbers<[1], [0], [0], [1], [0, 0, 1, 1], [], []>} : vector<19x128xf32>, vector<128x128xf32>, vector<19x128xf32> -> vector<19x128xf32>
    %29 = arith.addf %24, %28 : vector<19x128xf32>
    %30 = vector.extract_strided_slice %20 {offsets = [2, 0], sizes = [19, 128], strides = [1, 1]} : vector<21x128xf32> to vector<19x128xf32>
    %c2_22 = arith.constant 2 : index
    %c0_23 = arith.constant 0 : index
    %c0_24 = arith.constant 0 : index
    %31 = vector.load %arg4[%c2_22, %c0_23, %c0_24] : memref<3x128x128xf32, #tpu.memory_space<vmem>>, vector<1x128x128xf32>
    %32 = vector.shape_cast %31 : vector<1x128x128xf32> to vector<128x128xf32>
    %cst_25 = arith.constant dense<0.000000e+00> : vector<19x128xf32>
    %33 = tpu.matmul %30, %32, %cst_25 {dimension_numbers = #tpu.dot_dimension_numbers<[1], [0], [0], [1], [0, 0, 1, 1], [], []>} : vector<19x128xf32>, vector<128x128xf32>, vector<19x128xf32> -> vector<19x128xf32>
    %34 = arith.addf %29, %33 : vector<19x128xf32>
    %c0_26 = arith.constant 0 : index
    %c0_27 = arith.constant 0 : index
    %35 = vector.load %arg5[%c0_26, %c0_27] : memref<1x128xf32, #tpu.memory_space<vmem>>, vector<1x128xf32>
    %36 = vector.broadcast %35 : vector<1x128xf32> to vector<19x128xf32>
    %37 = arith.addf %34, %36 : vector<19x128xf32>
    %cst_28 = arith.constant 0.000000e+00 : f32
    %38 = vector.broadcast %cst_28 : f32 to vector<19x128xf32>
    %39 = arith.maximumf %37, %38 : vector<19x128xf32>
    %40 = vector.extract_strided_slice %39 {offsets = [0, 0], sizes = [17, 128], strides = [1, 1]} : vector<19x128xf32> to vector<17x128xf32>
    %c0_29 = arith.constant 0 : index
    %c0_30 = arith.constant 0 : index
    %c0_31 = arith.constant 0 : index
    %41 = vector.load %arg6[%c0_29, %c0_30, %c0_31] : memref<3x128x128xf32, #tpu.memory_space<vmem>>, vector<1x128x128xf32>
    %42 = vector.shape_cast %41 : vector<1x128x128xf32> to vector<128x128xf32>
    %cst_32 = arith.constant dense<0.000000e+00> : vector<17x128xf32>
    %43 = tpu.matmul %40, %42, %cst_32 {dimension_numbers = #tpu.dot_dimension_numbers<[1], [0], [0], [1], [0, 0, 1, 1], [], []>} : vector<17x128xf32>, vector<128x128xf32>, vector<17x128xf32> -> vector<17x128xf32>
    %44 = vector.extract_strided_slice %39 {offsets = [1, 0], sizes = [17, 128], strides = [1, 1]} : vector<19x128xf32> to vector<17x128xf32>
    %c1_33 = arith.constant 1 : index
    %c0_34 = arith.constant 0 : index
    %c0_35 = arith.constant 0 : index
    %45 = vector.load %arg6[%c1_33, %c0_34, %c0_35] : memref<3x128x128xf32, #tpu.memory_space<vmem>>, vector<1x128x128xf32>
    %46 = vector.shape_cast %45 : vector<1x128x128xf32> to vector<128x128xf32>
    %cst_36 = arith.constant dense<0.000000e+00> : vector<17x128xf32>
    %47 = tpu.matmul %44, %46, %cst_36 {dimension_numbers = #tpu.dot_dimension_numbers<[1], [0], [0], [1], [0, 0, 1, 1], [], []>} : vector<17x128xf32>, vector<128x128xf32>, vector<17x128xf32> -> vector<17x128xf32>
    %48 = arith.addf %43, %47 : vector<17x128xf32>
    %49 = vector.extract_strided_slice %39 {offsets = [2, 0], sizes = [17, 128], strides = [1, 1]} : vector<19x128xf32> to vector<17x128xf32>
    %c2_37 = arith.constant 2 : index
    %c0_38 = arith.constant 0 : index
    %c0_39 = arith.constant 0 : index
    %50 = vector.load %arg6[%c2_37, %c0_38, %c0_39] : memref<3x128x128xf32, #tpu.memory_space<vmem>>, vector<1x128x128xf32>
    %51 = vector.shape_cast %50 : vector<1x128x128xf32> to vector<128x128xf32>
    %cst_40 = arith.constant dense<0.000000e+00> : vector<17x128xf32>
    %52 = tpu.matmul %49, %51, %cst_40 {dimension_numbers = #tpu.dot_dimension_numbers<[1], [0], [0], [1], [0, 0, 1, 1], [], []>} : vector<17x128xf32>, vector<128x128xf32>, vector<17x128xf32> -> vector<17x128xf32>
    %53 = arith.addf %48, %52 : vector<17x128xf32>
    %c0_41 = arith.constant 0 : index
    %c0_42 = arith.constant 0 : index
    %54 = vector.load %arg7[%c0_41, %c0_42] : memref<1x128xf32, #tpu.memory_space<vmem>>, vector<1x128xf32>
    %55 = vector.broadcast %54 : vector<1x128xf32> to vector<17x128xf32>
    %56 = arith.addf %53, %55 : vector<17x128xf32>
    %cst_43 = arith.constant 0.000000e+00 : f32
    %57 = vector.broadcast %cst_43 : f32 to vector<17x128xf32>
    %58 = arith.maximumf %56, %57 : vector<17x128xf32>
    %59 = vector.extract_strided_slice %58 {offsets = [0, 0], sizes = [15, 128], strides = [1, 1]} : vector<17x128xf32> to vector<15x128xf32>
    %c0_44 = arith.constant 0 : index
    %c0_45 = arith.constant 0 : index
    %c0_46 = arith.constant 0 : index
    %60 = vector.load %arg8[%c0_44, %c0_45, %c0_46] : memref<3x128x128xf32, #tpu.memory_space<vmem>>, vector<1x128x128xf32>
    %61 = vector.shape_cast %60 : vector<1x128x128xf32> to vector<128x128xf32>
    %cst_47 = arith.constant dense<0.000000e+00> : vector<15x128xf32>
    %62 = tpu.matmul %59, %61, %cst_47 {dimension_numbers = #tpu.dot_dimension_numbers<[1], [0], [0], [1], [0, 0, 1, 1], [], []>} : vector<15x128xf32>, vector<128x128xf32>, vector<15x128xf32> -> vector<15x128xf32>
    %63 = vector.extract_strided_slice %58 {offsets = [1, 0], sizes = [15, 128], strides = [1, 1]} : vector<17x128xf32> to vector<15x128xf32>
    %c1_48 = arith.constant 1 : index
    %c0_49 = arith.constant 0 : index
    %c0_50 = arith.constant 0 : index
    %64 = vector.load %arg8[%c1_48, %c0_49, %c0_50] : memref<3x128x128xf32, #tpu.memory_space<vmem>>, vector<1x128x128xf32>
    %65 = vector.shape_cast %64 : vector<1x128x128xf32> to vector<128x128xf32>
    %cst_51 = arith.constant dense<0.000000e+00> : vector<15x128xf32>
    %66 = tpu.matmul %63, %65, %cst_51 {dimension_numbers = #tpu.dot_dimension_numbers<[1], [0], [0], [1], [0, 0, 1, 1], [], []>} : vector<15x128xf32>, vector<128x128xf32>, vector<15x128xf32> -> vector<15x128xf32>
    %67 = arith.addf %62, %66 : vector<15x128xf32>
    %68 = vector.extract_strided_slice %58 {offsets = [2, 0], sizes = [15, 128], strides = [1, 1]} : vector<17x128xf32> to vector<15x128xf32>
    %c2_52 = arith.constant 2 : index
    %c0_53 = arith.constant 0 : index
    %c0_54 = arith.constant 0 : index
    %69 = vector.load %arg8[%c2_52, %c0_53, %c0_54] : memref<3x128x128xf32, #tpu.memory_space<vmem>>, vector<1x128x128xf32>
    %70 = vector.shape_cast %69 : vector<1x128x128xf32> to vector<128x128xf32>
    %cst_55 = arith.constant dense<0.000000e+00> : vector<15x128xf32>
    %71 = tpu.matmul %68, %70, %cst_55 {dimension_numbers = #tpu.dot_dimension_numbers<[1], [0], [0], [1], [0, 0, 1, 1], [], []>} : vector<15x128xf32>, vector<128x128xf32>, vector<15x128xf32> -> vector<15x128xf32>
    %72 = arith.addf %67, %71 : vector<15x128xf32>
    %c0_56 = arith.constant 0 : index
    %c0_57 = arith.constant 0 : index
    %73 = vector.load %arg9[%c0_56, %c0_57] : memref<1x128xf32, #tpu.memory_space<vmem>>, vector<1x128xf32>
    %74 = vector.broadcast %73 : vector<1x128xf32> to vector<15x128xf32>
    %75 = arith.addf %72, %74 : vector<15x128xf32>
    %cst_58 = arith.constant 0.000000e+00 : f32
    %76 = vector.broadcast %cst_58 : f32 to vector<15x128xf32>
    %77 = arith.maximumf %75, %76 : vector<15x128xf32>
    %c0_59 = arith.constant 0 : index
    %c0_60 = arith.constant 0 : index
    %78 = vector.load %arg10[%c0_59, %c0_60] : memref<128x128xf32, #tpu.memory_space<vmem>>, vector<128x128xf32>
    %cst_61 = arith.constant dense<0.000000e+00> : vector<15x128xf32>
    %79 = tpu.matmul %77, %78, %cst_61 {dimension_numbers = #tpu.dot_dimension_numbers<[1], [0], [0], [1], [0, 0, 1, 1], [], []>} : vector<15x128xf32>, vector<128x128xf32>, vector<15x128xf32> -> vector<15x128xf32>
    %80 = vector.shape_cast %79 : vector<15x128xf32> to vector<15x16x8xf32>
    %c0_62 = arith.constant 0 : index
    %c0_63 = arith.constant 0 : index
    %81 = vector.load %arg11[%c0_62, %c0_63] : memref<128x128xf32, #tpu.memory_space<vmem>>, vector<128x128xf32>
    %cst_64 = arith.constant dense<0.000000e+00> : vector<15x128xf32>
    %82 = tpu.matmul %77, %81, %cst_64 {dimension_numbers = #tpu.dot_dimension_numbers<[1], [0], [0], [1], [0, 0, 1, 1], [], []>} : vector<15x128xf32>, vector<128x128xf32>, vector<15x128xf32> -> vector<15x128xf32>
    %83 = vector.shape_cast %82 : vector<15x128xf32> to vector<15x16x8xf32>
    %c0_65 = arith.constant 0 : index
    %c0_66 = arith.constant 0 : index
    %84 = vector.load %arg12[%c0_65, %c0_66] : memref<128x128xf32, #tpu.memory_space<vmem>>, vector<128x128xf32>
    %cst_67 = arith.constant dense<0.000000e+00> : vector<15x128xf32>
    %85 = tpu.matmul %77, %84, %cst_67 {dimension_numbers = #tpu.dot_dimension_numbers<[1], [0], [0], [1], [0, 0, 1, 1], [], []>} : vector<15x128xf32>, vector<128x128xf32>, vector<15x128xf32> -> vector<15x128xf32>
    %86 = vector.shape_cast %85 : vector<15x128xf32> to vector<15x16x8xf32>
    "tpu.trace_start"() <{level = 10 : i32, message = "tdf,tcf->tdc"}> : () -> ()
    %cst_68 = arith.constant dense<0.000000e+00> : vector<15x16x16xf32>
    %87 = tpu.matmul %83, %80, %cst_68 {dimension_numbers = #tpu.dot_dimension_numbers<[2], [2], [1], [1], [0, 0, 0, 1, 1, 1], [0], [0]>} : vector<15x16x8xf32>, vector<15x16x8xf32>, vector<15x16x16xf32> -> vector<15x16x16xf32>
    "tpu.trace_stop"() : () -> ()
    %cst_69 = arith.constant dense<0xFF800000> : vector<15x16xf32>
    %88 = vector.multi_reduction <maximumf>, %87, %cst_69 [2] : vector<15x16x16xf32> to vector<15x16xf32>
    %89 = vector.shape_cast %88 : vector<15x16xf32> to vector<15x16x1xf32>
    %90 = vector.broadcast %89 : vector<15x16x1xf32> to vector<15x16x16xf32>
    %91 = arith.subf %87, %90 : vector<15x16x16xf32>
    %92 = math.exp %91 : vector<15x16x16xf32>
    %cst_70 = arith.constant dense<0.000000e+00> : vector<15x16xf32>
    %93 = vector.multi_reduction <add>, %92, %cst_70 [2] : vector<15x16x16xf32> to vector<15x16xf32>
    %94 = vector.shape_cast %93 : vector<15x16xf32> to vector<15x16x1xf32>
    %95 = tpu.reciprocal %94 {approx = true} : vector<15x16x1xf32> -> vector<15x16x1xf32>
    %96 = vector.broadcast %95 : vector<15x16x1xf32> to vector<15x16x16xf32>
    %97 = arith.mulf %92, %96 : vector<15x16x16xf32>
    "tpu.trace_start"() <{level = 10 : i32, message = "tdc,tcf->tdf"}> : () -> ()
    %cst_71 = arith.constant dense<0.000000e+00> : vector<15x16x8xf32>
    %98 = tpu.matmul %97, %86, %cst_71 {dimension_numbers = #tpu.dot_dimension_numbers<[2], [1], [1], [2], [0, 0, 0, 1, 1, 2], [0], [0]>} : vector<15x16x16xf32>, vector<15x16x8xf32>, vector<15x16x8xf32> -> vector<15x16x8xf32>
    "tpu.trace_stop"() : () -> ()
    %c0_72 = arith.constant 0 : index
    %c0_73 = arith.constant 0 : index
    %99 = vector.load %arg13[%c0_72, %c0_73] : memref<1x1xf32, #tpu.memory_space<vmem>>, vector<1x1xf32>
    %100 = vector.shape_cast %98 : vector<15x16x8xf32> to vector<15x128xf32>
    %101 = vector.broadcast %99 : vector<1x1xf32> to vector<15x128xf32>
    %102 = arith.mulf %101, %100 : vector<15x128xf32>
    %103 = arith.addf %102, %77 : vector<15x128xf32>
    %c0_74 = arith.constant 0 : index
    %c0_75 = arith.constant 0 : index
    %104 = vector.load %arg14[%c0_74, %c0_75] : memref<128x16xf32, #tpu.memory_space<vmem>>, vector<128x16xf32>
    %cst_76 = arith.constant dense<0.000000e+00> : vector<15x16xf32>
    %105 = tpu.matmul %103, %104, %cst_76 {dimension_numbers = #tpu.dot_dimension_numbers<[1], [0], [0], [1], [0, 0, 1, 1], [], []>} : vector<15x128xf32>, vector<128x16xf32>, vector<15x16xf32> -> vector<15x16xf32>
    %c0_77 = arith.constant 0 : index
    %c0_78 = arith.constant 0 : index
    %106 = vector.load %arg15[%c0_77, %c0_78] : memref<1x16xf32, #tpu.memory_space<vmem>>, vector<1x16xf32>
    %107 = vector.broadcast %106 : vector<1x16xf32> to vector<15x16xf32>
    %108 = arith.addf %105, %107 : vector<15x16xf32>
    %c0_79 = arith.constant 0 : index
    %c0_80 = arith.constant 0 : index
    %109 = vector.load %arg16[%c0_79, %c0_80] : memref<1x16xf32, #tpu.memory_space<vmem>>, vector<1x16xf32>
    %c0_81 = arith.constant 0 : index
    %c0_82 = arith.constant 0 : index
    %110 = vector.load %arg44[%c0_81, %c0_82] : memref<16x16xf32, #tpu.memory_space<vmem>>, vector<1x16xf32>
    tpu.vector_store %arg44[%c0_81, %c0_82], %109 {strides = array<i32>} : memref<16x16xf32, #tpu.memory_space<vmem>>, vector<1x16xf32>,
    %c1_83 = arith.constant 1 : index
    %c0_84 = arith.constant 0 : index
    %111 = vector.load %arg44[%c1_83, %c0_84] : memref<16x16xf32, #tpu.memory_space<vmem>>, vector<15x16xf32>
    tpu.vector_store %arg44[%c1_83, %c0_84], %108 {strides = array<i32>} : memref<16x16xf32, #tpu.memory_space<vmem>>, vector<15x16xf32>,
    %c0_85 = arith.constant 0 : index
    %c0_86 = arith.constant 0 : index
    %112 = vector.load %arg44[%c0_85, %c0_86] : memref<16x16xf32, #tpu.memory_space<vmem>>, vector<16x16xf32>
    %c0_87 = arith.constant 0 : index
    %c0_88 = arith.constant 0 : index
    %113 = vector.load %arg17[%c0_87, %c0_88] : memref<16x48xf32, #tpu.memory_space<vmem>>, vector<16x48xf32>
    %cst_89 = arith.constant dense<0.000000e+00> : vector<16x48xf32>
    %114 = tpu.matmul %112, %113, %cst_89 {dimension_numbers = #tpu.dot_dimension_numbers<[1], [0], [0], [1], [0, 0, 1, 1], [], []>} : vector<16x16xf32>, vector<16x48xf32>, vector<16x48xf32> -> vector<16x48xf32>
    %c0_90 = arith.constant 0 : index
    %c0_91 = arith.constant 0 : index
    %115 = vector.load %arg18[%c0_90, %c0_91] : memref<1x48xf32, #tpu.memory_space<vmem>>, vector<1x48xf32>
    %116 = vector.broadcast %115 : vector<1x48xf32> to vector<16x48xf32>
    %117 = arith.addf %114, %116 : vector<16x48xf32>
    %118 = vector.extract_strided_slice %117 {offsets = [0, 0], sizes = [16, 16], strides = [1, 1]} : vector<16x48xf32> to vector<16x16xf32>
    %119 = vector.shape_cast %118 : vector<16x16xf32> to vector<16x2x8xf32>
    %120 = vector.extract_strided_slice %117 {offsets = [0, 16], sizes = [16, 16], strides = [1, 1]} : vector<16x48xf32> to vector<16x16xf32>
    %121 = vector.shape_cast %120 : vector<16x16xf32> to vector<16x2x8xf32>
    %122 = vector.extract_strided_slice %117 {offsets = [0, 32], sizes = [16, 16], strides = [1, 1]} : vector<16x48xf32> to vector<16x16xf32>
    %123 = vector.shape_cast %122 : vector<16x16xf32> to vector<16x2x8xf32>
    "tpu.trace_start"() <{level = 10 : i32, message = "shd,thd->hst"}> : () -> ()
    %cst_92 = arith.constant dense<0.000000e+00> : vector<2x16x16xf32>
    %124 = tpu.matmul %119, %121, %cst_92 {dimension_numbers = #tpu.dot_dimension_numbers<[2], [2], [0], [0], [0, 1, 0, 0, 1, 0], [1], [1]>} : vector<16x2x8xf32>, vector<16x2x8xf32>, vector<2x16x16xf32> -> vector<2x16x16xf32>
    "tpu.trace_stop"() : () -> ()
    %cst_93 = arith.constant 0.353553385 : f32
    %125 = vector.broadcast %cst_93 : f32 to vector<2x16x16xf32>
    %126 = arith.mulf %124, %125 : vector<2x16x16xf32>
    %cst_94 = arith.constant dense<0xFF800000> : vector<2x16xf32>
    %127 = vector.multi_reduction <maximumf>, %126, %cst_94 [2] : vector<2x16x16xf32> to vector<2x16xf32>
    %128 = vector.shape_cast %127 : vector<2x16xf32> to vector<2x16x1xf32>
    %129 = vector.broadcast %128 : vector<2x16x1xf32> to vector<2x16x16xf32>
    %130 = arith.subf %126, %129 : vector<2x16x16xf32>
    %131 = math.exp %130 : vector<2x16x16xf32>
    %cst_95 = arith.constant dense<0.000000e+00> : vector<2x16xf32>
    %132 = vector.multi_reduction <add>, %131, %cst_95 [2] : vector<2x16x16xf32> to vector<2x16xf32>
    %133 = vector.shape_cast %132 : vector<2x16xf32> to vector<2x16x1xf32>
    %134 = tpu.reciprocal %133 {approx = true} : vector<2x16x1xf32> -> vector<2x16x1xf32>
    %135 = vector.broadcast %134 : vector<2x16x1xf32> to vector<2x16x16xf32>
    %136 = arith.mulf %131, %135 : vector<2x16x16xf32>
    "tpu.trace_start"() <{level = 10 : i32, message = "hst,thd->shd"}> : () -> ()
    %cst_96 = arith.constant dense<0.000000e+00> : vector<2x8x16xf32>
    %137 = tpu.matmul %123, %136, %cst_96 {dimension_numbers = #tpu.dot_dimension_numbers<[0], [2], [2], [1], [0, 1, 0, 2, 1, 1], [1], [0]>} : vector<16x2x8xf32>, vector<2x16x16xf32>, vector<2x8x16xf32> -> vector<2x8x16xf32>
    %138 = tpu.transpose %137, [2, 0, 1] : vector<2x8x16xf32> -> vector<16x2x8xf32>
    "tpu.trace_stop"() : () -> ()
    %139 = vector.shape_cast %138 : vector<16x2x8xf32> to vector<16x16xf32>
    %c0_97 = arith.constant 0 : index
    %c0_98 = arith.constant 0 : index
    %140 = vector.load %arg19[%c0_97, %c0_98] : memref<16x16xf32, #tpu.memory_space<vmem>>, vector<16x16xf32>
    %cst_99 = arith.constant dense<0.000000e+00> : vector<16x16xf32>
    %141 = tpu.matmul %139, %140, %cst_99 {dimension_numbers = #tpu.dot_dimension_numbers<[1], [0], [0], [1], [0, 0, 1, 1], [], []>} : vector<16x16xf32>, vector<16x16xf32>, vector<16x16xf32> -> vector<16x16xf32>
    %c0_100 = arith.constant 0 : index
    %c0_101 = arith.constant 0 : index
    %142 = vector.load %arg20[%c0_100, %c0_101] : memref<1x16xf32, #tpu.memory_space<vmem>>, vector<1x16xf32>
    %143 = vector.broadcast %142 : vector<1x16xf32> to vector<16x16xf32>
    %144 = arith.addf %141, %143 : vector<16x16xf32>
    %145 = arith.addf %112, %144 : vector<16x16xf32>
    %c0_102 = arith.constant 0 : index
    %c0_103 = arith.constant 0 : index
    %146 = vector.load %arg21[%c0_102, %c0_103] : memref<1x16xf32, #tpu.memory_space<vmem>>, vector<1x16xf32>
    %c0_104 = arith.constant 0 : index
    %c0_105 = arith.constant 0 : index
    %147 = vector.load %arg22[%c0_104, %c0_105] : memref<1x16xf32, #tpu.memory_space<vmem>>, vector<1x16xf32>
    %cst_106 = arith.constant dense<0.000000e+00> : vector<16xf32>
    %148 = vector.multi_reduction <add>, %145, %cst_106 [1] : vector<16x16xf32> to vector<16xf32>
    %149 = vector.shape_cast %148 : vector<16xf32> to vector<16x1xf32>
    %cst_107 = arith.constant 1.600000e+01 : f32
    %150 = vector.broadcast %cst_107 : f32 to vector<16x1xf32>
    %151 = arith.divf %149, %150 : vector<16x1xf32>
    %152 = vector.broadcast %151 : vector<16x1xf32> to vector<16x16xf32>
    %153 = arith.subf %145, %152 : vector<16x16xf32>
    %154 = arith.mulf %153, %153 : vector<16x16xf32>
    %cst_108 = arith.constant dense<0.000000e+00> : vector<16xf32>
    %155 = vector.multi_reduction <add>, %154, %cst_108 [1] : vector<16x16xf32> to vector<16xf32>
    %156 = vector.shape_cast %155 : vector<16xf32> to vector<16x1xf32>
    %cst_109 = arith.constant 1.600000e+01 : f32
    %157 = vector.broadcast %cst_109 : f32 to vector<16x1xf32>
    %158 = arith.divf %156, %157 : vector<16x1xf32>
    %159 = vector.broadcast %151 : vector<16x1xf32> to vector<16x16xf32>
    %160 = arith.subf %145, %159 : vector<16x16xf32>
    %cst_110 = arith.constant 9.99999974E-6 : f32
    %161 = vector.broadcast %cst_110 : f32 to vector<16x1xf32>
    %162 = arith.addf %158, %161 : vector<16x1xf32>
    %163 = math.rsqrt %162 : vector<16x1xf32>
    %164 = vector.broadcast %163 : vector<16x1xf32> to vector<16x16xf32>
    %165 = arith.mulf %160, %164 : vector<16x16xf32>
    %166 = vector.broadcast %146 : vector<1x16xf32> to vector<16x16xf32>
    %167 = arith.mulf %165, %166 : vector<16x16xf32>
    %168 = vector.broadcast %147 : vector<1x16xf32> to vector<16x16xf32>
    %169 = arith.addf %167, %168 : vector<16x16xf32>
    %c0_111 = arith.constant 0 : index
    %c0_112 = arith.constant 0 : index
    %170 = vector.load %arg23[%c0_111, %c0_112] : memref<16x64xf32, #tpu.memory_space<vmem>>, vector<16x64xf32>
    %cst_113 = arith.constant dense<0.000000e+00> : vector<16x64xf32>
    %171 = tpu.matmul %169, %170, %cst_113 {dimension_numbers = #tpu.dot_dimension_numbers<[1], [0], [0], [1], [0, 0, 1, 1], [], []>} : vector<16x16xf32>, vector<16x64xf32>, vector<16x64xf32> -> vector<16x64xf32>
    %c0_114 = arith.constant 0 : index
    %c0_115 = arith.constant 0 : index
    %172 = vector.load %arg24[%c0_114, %c0_115] : memref<1x64xf32, #tpu.memory_space<vmem>>, vector<1x64xf32>
    %173 = vector.broadcast %172 : vector<1x64xf32> to vector<16x64xf32>
    %174 = arith.addf %171, %173 : vector<16x64xf32>
    %cst_116 = arith.constant 0.000000e+00 : f32
    %175 = vector.broadcast %cst_116 : f32 to vector<16x64xf32>
    %176 = arith.maximumf %174, %175 : vector<16x64xf32>
    %c0_117 = arith.constant 0 : index
    %c0_118 = arith.constant 0 : index
    %177 = vector.load %arg25[%c0_117, %c0_118] : memref<64x16xf32, #tpu.memory_space<vmem>>, vector<64x16xf32>
    %cst_119 = arith.constant dense<0.000000e+00> : vector<16x16xf32>
    %178 = tpu.matmul %176, %177, %cst_119 {dimension_numbers = #tpu.dot_dimension_numbers<[1], [0], [0], [1], [0, 0, 1, 1], [], []>} : vector<16x64xf32>, vector<64x16xf32>, vector<16x16xf32> -> vector<16x16xf32>
    %c0_120 = arith.constant 0 : index
    %c0_121 = arith.constant 0 : index
    %179 = vector.load %arg26[%c0_120, %c0_121] : memref<1x16xf32, #tpu.memory_space<vmem>>, vector<1x16xf32>
    %180 = vector.broadcast %179 : vector<1x16xf32> to vector<16x16xf32>
    %181 = arith.addf %178, %180 : vector<16x16xf32>
    %182 = arith.addf %169, %181 : vector<16x16xf32>
    %c0_122 = arith.constant 0 : index
    %c0_123 = arith.constant 0 : index
    %183 = vector.load %arg27[%c0_122, %c0_123] : memref<1x16xf32, #tpu.memory_space<vmem>>, vector<1x16xf32>
    %c0_124 = arith.constant 0 : index
    %c0_125 = arith.constant 0 : index
    %184 = vector.load %arg28[%c0_124, %c0_125] : memref<1x16xf32, #tpu.memory_space<vmem>>, vector<1x16xf32>
    %cst_126 = arith.constant dense<0.000000e+00> : vector<16xf32>
    %185 = vector.multi_reduction <add>, %182, %cst_126 [1] : vector<16x16xf32> to vector<16xf32>
    %186 = vector.shape_cast %185 : vector<16xf32> to vector<16x1xf32>
    %cst_127 = arith.constant 1.600000e+01 : f32
    %187 = vector.broadcast %cst_127 : f32 to vector<16x1xf32>
    %188 = arith.divf %186, %187 : vector<16x1xf32>
    %189 = vector.broadcast %188 : vector<16x1xf32> to vector<16x16xf32>
    %190 = arith.subf %182, %189 : vector<16x16xf32>
    %191 = arith.mulf %190, %190 : vector<16x16xf32>
    %cst_128 = arith.constant dense<0.000000e+00> : vector<16xf32>
    %192 = vector.multi_reduction <add>, %191, %cst_128 [1] : vector<16x16xf32> to vector<16xf32>
    %193 = vector.shape_cast %192 : vector<16xf32> to vector<16x1xf32>
    %cst_129 = arith.constant 1.600000e+01 : f32
    %194 = vector.broadcast %cst_129 : f32 to vector<16x1xf32>
    %195 = arith.divf %193, %194 : vector<16x1xf32>
    %196 = vector.broadcast %188 : vector<16x1xf32> to vector<16x16xf32>
    %197 = arith.subf %182, %196 : vector<16x16xf32>
    %cst_130 = arith.constant 9.99999974E-6 : f32
    %198 = vector.broadcast %cst_130 : f32 to vector<16x1xf32>
    %199 = arith.addf %195, %198 : vector<16x1xf32>
    %200 = math.rsqrt %199 : vector<16x1xf32>
    %201 = vector.broadcast %200 : vector<16x1xf32> to vector<16x16xf32>
    %202 = arith.mulf %197, %201 : vector<16x16xf32>
    %203 = vector.broadcast %183 : vector<1x16xf32> to vector<16x16xf32>
    %204 = arith.mulf %202, %203 : vector<16x16xf32>
    %205 = vector.broadcast %184 : vector<1x16xf32> to vector<16x16xf32>
    %206 = arith.addf %204, %205 : vector<16x16xf32>
    %c0_131 = arith.constant 0 : index
    %c0_132 = arith.constant 0 : index
    %207 = vector.load %arg29[%c0_131, %c0_132] : memref<16x48xf32, #tpu.memory_space<vmem>>, vector<16x48xf32>
    %cst_133 = arith.constant dense<0.000000e+00> : vector<16x48xf32>
    %208 = tpu.matmul %206, %207, %cst_133 {dimension_numbers = #tpu.dot_dimension_numbers<[1], [0], [0], [1], [0, 0, 1, 1], [], []>} : vector<16x16xf32>, vector<16x48xf32>, vector<16x48xf32> -> vector<16x48xf32>
    %c0_134 = arith.constant 0 : index
    %c0_135 = arith.constant 0 : index
    %209 = vector.load %arg30[%c0_134, %c0_135] : memref<1x48xf32, #tpu.memory_space<vmem>>, vector<1x48xf32>
    %210 = vector.broadcast %209 : vector<1x48xf32> to vector<16x48xf32>
    %211 = arith.addf %208, %210 : vector<16x48xf32>
    %212 = vector.extract_strided_slice %211 {offsets = [0, 0], sizes = [16, 16], strides = [1, 1]} : vector<16x48xf32> to vector<16x16xf32>
    %213 = vector.shape_cast %212 : vector<16x16xf32> to vector<16x2x8xf32>
    %214 = vector.extract_strided_slice %211 {offsets = [0, 16], sizes = [16, 16], strides = [1, 1]} : vector<16x48xf32> to vector<16x16xf32>
    %215 = vector.shape_cast %214 : vector<16x16xf32> to vector<16x2x8xf32>
    %216 = vector.extract_strided_slice %211 {offsets = [0, 32], sizes = [16, 16], strides = [1, 1]} : vector<16x48xf32> to vector<16x16xf32>
    %217 = vector.shape_cast %216 : vector<16x16xf32> to vector<16x2x8xf32>
    "tpu.trace_start"() <{level = 10 : i32, message = "shd,thd->hst"}> : () -> ()
    %cst_136 = arith.constant dense<0.000000e+00> : vector<2x16x16xf32>
    %218 = tpu.matmul %213, %215, %cst_136 {dimension_numbers = #tpu.dot_dimension_numbers<[2], [2], [0], [0], [0, 1, 0, 0, 1, 0], [1], [1]>} : vector<16x2x8xf32>, vector<16x2x8xf32>, vector<2x16x16xf32> -> vector<2x16x16xf32>
    "tpu.trace_stop"() : () -> ()
    %cst_137 = arith.constant 0.353553385 : f32
    %219 = vector.broadcast %cst_137 : f32 to vector<2x16x16xf32>
    %220 = arith.mulf %218, %219 : vector<2x16x16xf32>
    %cst_138 = arith.constant dense<0xFF800000> : vector<2x16xf32>
    %221 = vector.multi_reduction <maximumf>, %220, %cst_138 [2] : vector<2x16x16xf32> to vector<2x16xf32>
    %222 = vector.shape_cast %221 : vector<2x16xf32> to vector<2x16x1xf32>
    %223 = vector.broadcast %222 : vector<2x16x1xf32> to vector<2x16x16xf32>
    %224 = arith.subf %220, %223 : vector<2x16x16xf32>
    %225 = math.exp %224 : vector<2x16x16xf32>
    %cst_139 = arith.constant dense<0.000000e+00> : vector<2x16xf32>
    %226 = vector.multi_reduction <add>, %225, %cst_139 [2] : vector<2x16x16xf32> to vector<2x16xf32>
    %227 = vector.shape_cast %226 : vector<2x16xf32> to vector<2x16x1xf32>
    %228 = tpu.reciprocal %227 {approx = true} : vector<2x16x1xf32> -> vector<2x16x1xf32>
    %229 = vector.broadcast %228 : vector<2x16x1xf32> to vector<2x16x16xf32>
    %230 = arith.mulf %225, %229 : vector<2x16x16xf32>
    "tpu.trace_start"() <{level = 10 : i32, message = "hst,thd->shd"}> : () -> ()
    %cst_140 = arith.constant dense<0.000000e+00> : vector<2x8x16xf32>
    %231 = tpu.matmul %217, %230, %cst_140 {dimension_numbers = #tpu.dot_dimension_numbers<[0], [2], [2], [1], [0, 1, 0, 2, 1, 1], [1], [0]>} : vector<16x2x8xf32>, vector<2x16x16xf32>, vector<2x8x16xf32> -> vector<2x8x16xf32>
    %232 = tpu.transpose %231, [2, 0, 1] : vector<2x8x16xf32> -> vector<16x2x8xf32>
    "tpu.trace_stop"() : () -> ()
    %233 = vector.shape_cast %232 : vector<16x2x8xf32> to vector<16x16xf32>
    %c0_141 = arith.constant 0 : index
    %c0_142 = arith.constant 0 : index
    %234 = vector.load %arg31[%c0_141, %c0_142] : memref<16x16xf32, #tpu.memory_space<vmem>>, vector<16x16xf32>
    %cst_143 = arith.constant dense<0.000000e+00> : vector<16x16xf32>
    %235 = tpu.matmul %233, %234, %cst_143 {dimension_numbers = #tpu.dot_dimension_numbers<[1], [0], [0], [1], [0, 0, 1, 1], [], []>} : vector<16x16xf32>, vector<16x16xf32>, vector<16x16xf32> -> vector<16x16xf32>
    %c0_144 = arith.constant 0 : index
    %c0_145 = arith.constant 0 : index
    %236 = vector.load %arg32[%c0_144, %c0_145] : memref<1x16xf32, #tpu.memory_space<vmem>>, vector<1x16xf32>
    %237 = vector.broadcast %236 : vector<1x16xf32> to vector<16x16xf32>
    %238 = arith.addf %235, %237 : vector<16x16xf32>
    %239 = arith.addf %206, %238 : vector<16x16xf32>
    %c0_146 = arith.constant 0 : index
    %c0_147 = arith.constant 0 : index
    %240 = vector.load %arg33[%c0_146, %c0_147] : memref<1x16xf32, #tpu.memory_space<vmem>>, vector<1x16xf32>
    %c0_148 = arith.constant 0 : index
    %c0_149 = arith.constant 0 : index
    %241 = vector.load %arg34[%c0_148, %c0_149] : memref<1x16xf32, #tpu.memory_space<vmem>>, vector<1x16xf32>
    %cst_150 = arith.constant dense<0.000000e+00> : vector<16xf32>
    %242 = vector.multi_reduction <add>, %239, %cst_150 [1] : vector<16x16xf32> to vector<16xf32>
    %243 = vector.shape_cast %242 : vector<16xf32> to vector<16x1xf32>
    %cst_151 = arith.constant 1.600000e+01 : f32
    %244 = vector.broadcast %cst_151 : f32 to vector<16x1xf32>
    %245 = arith.divf %243, %244 : vector<16x1xf32>
    %246 = vector.broadcast %245 : vector<16x1xf32> to vector<16x16xf32>
    %247 = arith.subf %239, %246 : vector<16x16xf32>
    %248 = arith.mulf %247, %247 : vector<16x16xf32>
    %cst_152 = arith.constant dense<0.000000e+00> : vector<16xf32>
    %249 = vector.multi_reduction <add>, %248, %cst_152 [1] : vector<16x16xf32> to vector<16xf32>
    %250 = vector.shape_cast %249 : vector<16xf32> to vector<16x1xf32>
    %cst_153 = arith.constant 1.600000e+01 : f32
    %251 = vector.broadcast %cst_153 : f32 to vector<16x1xf32>
    %252 = arith.divf %250, %251 : vector<16x1xf32>
    %253 = vector.broadcast %245 : vector<16x1xf32> to vector<16x16xf32>
    %254 = arith.subf %239, %253 : vector<16x16xf32>
    %cst_154 = arith.constant 9.99999974E-6 : f32
    %255 = vector.broadcast %cst_154 : f32 to vector<16x1xf32>
    %256 = arith.addf %252, %255 : vector<16x1xf32>
    %257 = math.rsqrt %256 : vector<16x1xf32>
    %258 = vector.broadcast %257 : vector<16x1xf32> to vector<16x16xf32>
    %259 = arith.mulf %254, %258 : vector<16x16xf32>
    %260 = vector.broadcast %240 : vector<1x16xf32> to vector<16x16xf32>
    %261 = arith.mulf %259, %260 : vector<16x16xf32>
    %262 = vector.broadcast %241 : vector<1x16xf32> to vector<16x16xf32>
    %263 = arith.addf %261, %262 : vector<16x16xf32>
    %c0_155 = arith.constant 0 : index
    %c0_156 = arith.constant 0 : index
    %264 = vector.load %arg35[%c0_155, %c0_156] : memref<16x64xf32, #tpu.memory_space<vmem>>, vector<16x64xf32>
    %cst_157 = arith.constant dense<0.000000e+00> : vector<16x64xf32>
    %265 = tpu.matmul %263, %264, %cst_157 {dimension_numbers = #tpu.dot_dimension_numbers<[1], [0], [0], [1], [0, 0, 1, 1], [], []>} : vector<16x16xf32>, vector<16x64xf32>, vector<16x64xf32> -> vector<16x64xf32>
    %c0_158 = arith.constant 0 : index
    %c0_159 = arith.constant 0 : index
    %266 = vector.load %arg36[%c0_158, %c0_159] : memref<1x64xf32, #tpu.memory_space<vmem>>, vector<1x64xf32>
    %267 = vector.broadcast %266 : vector<1x64xf32> to vector<16x64xf32>
    %268 = arith.addf %265, %267 : vector<16x64xf32>
    %cst_160 = arith.constant 0.000000e+00 : f32
    %269 = vector.broadcast %cst_160 : f32 to vector<16x64xf32>
    %270 = arith.maximumf %268, %269 : vector<16x64xf32>
    %c0_161 = arith.constant 0 : index
    %c0_162 = arith.constant 0 : index
    %271 = vector.load %arg37[%c0_161, %c0_162] : memref<64x16xf32, #tpu.memory_space<vmem>>, vector<64x16xf32>
    %cst_163 = arith.constant dense<0.000000e+00> : vector<16x16xf32>
    %272 = tpu.matmul %270, %271, %cst_163 {dimension_numbers = #tpu.dot_dimension_numbers<[1], [0], [0], [1], [0, 0, 1, 1], [], []>} : vector<16x64xf32>, vector<64x16xf32>, vector<16x16xf32> -> vector<16x16xf32>
    %c0_164 = arith.constant 0 : index
    %c0_165 = arith.constant 0 : index
    %273 = vector.load %arg38[%c0_164, %c0_165] : memref<1x16xf32, #tpu.memory_space<vmem>>, vector<1x16xf32>
    %274 = vector.broadcast %273 : vector<1x16xf32> to vector<16x16xf32>
    %275 = arith.addf %272, %274 : vector<16x16xf32>
    %276 = arith.addf %263, %275 : vector<16x16xf32>
    %c0_166 = arith.constant 0 : index
    %c0_167 = arith.constant 0 : index
    %277 = vector.load %arg39[%c0_166, %c0_167] : memref<1x16xf32, #tpu.memory_space<vmem>>, vector<1x16xf32>
    %c0_168 = arith.constant 0 : index
    %c0_169 = arith.constant 0 : index
    %278 = vector.load %arg40[%c0_168, %c0_169] : memref<1x16xf32, #tpu.memory_space<vmem>>, vector<1x16xf32>
    %cst_170 = arith.constant dense<0.000000e+00> : vector<16xf32>
    %279 = vector.multi_reduction <add>, %276, %cst_170 [1] : vector<16x16xf32> to vector<16xf32>
    %280 = vector.shape_cast %279 : vector<16xf32> to vector<16x1xf32>
    %cst_171 = arith.constant 1.600000e+01 : f32
    %281 = vector.broadcast %cst_171 : f32 to vector<16x1xf32>
    %282 = arith.divf %280, %281 : vector<16x1xf32>
    %283 = vector.broadcast %282 : vector<16x1xf32> to vector<16x16xf32>
    %284 = arith.subf %276, %283 : vector<16x16xf32>
    %285 = arith.mulf %284, %284 : vector<16x16xf32>
    %cst_172 = arith.constant dense<0.000000e+00> : vector<16xf32>
    %286 = vector.multi_reduction <add>, %285, %cst_172 [1] : vector<16x16xf32> to vector<16xf32>
    %287 = vector.shape_cast %286 : vector<16xf32> to vector<16x1xf32>
    %cst_173 = arith.constant 1.600000e+01 : f32
    %288 = vector.broadcast %cst_173 : f32 to vector<16x1xf32>
    %289 = arith.divf %287, %288 : vector<16x1xf32>
    %290 = vector.broadcast %282 : vector<16x1xf32> to vector<16x16xf32>
    %291 = arith.subf %276, %290 : vector<16x16xf32>
    %cst_174 = arith.constant 9.99999974E-6 : f32
    %292 = vector.broadcast %cst_174 : f32 to vector<16x1xf32>
    %293 = arith.addf %289, %292 : vector<16x1xf32>
    %294 = math.rsqrt %293 : vector<16x1xf32>
    %295 = vector.broadcast %294 : vector<16x1xf32> to vector<16x16xf32>
    %296 = arith.mulf %291, %295 : vector<16x16xf32>
    %297 = vector.broadcast %277 : vector<1x16xf32> to vector<16x16xf32>
    %298 = arith.mulf %296, %297 : vector<16x16xf32>
    %299 = vector.broadcast %278 : vector<1x16xf32> to vector<16x16xf32>
    %300 = arith.addf %298, %299 : vector<16x16xf32>
    %cst_175 = arith.constant dense<0.000000e+00> : vector<16xf32>
    %301 = vector.multi_reduction <add>, %300, %cst_175 [0] : vector<16x16xf32> to vector<16xf32>
    %302 = vector.shape_cast %301 : vector<16xf32> to vector<1x16xf32>
    %cst_176 = arith.constant 1.600000e+01 : f32
    %303 = vector.broadcast %cst_176 : f32 to vector<1x16xf32>
    %304 = arith.divf %302, %303 : vector<1x16xf32>
    %c0_177 = arith.constant 0 : index
    %c0_178 = arith.constant 0 : index
    %305 = vector.load %arg41[%c0_177, %c0_178] : memref<16x4xf32, #tpu.memory_space<vmem>>, vector<16x4xf32>
    %cst_179 = arith.constant dense<0.000000e+00> : vector<1x4xf32>
    %306 = tpu.matmul %304, %305, %cst_179 {dimension_numbers = #tpu.dot_dimension_numbers<[1], [0], [0], [1], [0, 0, 1, 1], [], []>} : vector<1x16xf32>, vector<16x4xf32>, vector<1x4xf32> -> vector<1x4xf32>
    %c0_180 = arith.constant 0 : index
    %c0_181 = arith.constant 0 : index
    %307 = vector.load %arg42[%c0_180, %c0_181] : memref<1x4xf32, #tpu.memory_space<vmem>>, vector<1x4xf32>
    %308 = arith.addf %306, %307 : vector<1x4xf32>
    %309 = vector.shape_cast %308 : vector<1x4xf32> to vector<1x1x4xf32>
    %c0_182 = arith.constant 0 : index
    %c0_183 = arith.constant 0 : index
    %c0_184 = arith.constant 0 : index
    %310 = vector.load %arg43[%c0_182, %c0_183, %c0_184] : memref<1x1x4xf32, #tpu.memory_space<vmem>>, vector<1x1x4xf32>
    tpu.vector_store %arg43[%c0_182, %c0_183, %c0_184], %309 {strides = array<i32>} : memref<1x1x4xf32, #tpu.memory_space<vmem>>, vector<1x1x4xf32>,
    return
  }
  func.func @transform_0(%arg0: i32) -> (i32, i32, i32) {
    %c0_i32 = arith.constant 0 : i32
    %c0_i32_0 = arith.constant 0 : i32
    %c0_i32_1 = arith.constant 0 : i32
    return %arg0, %c0_i32, %c0_i32_0 : i32, i32, i32
  }
  func.func @transform_1(%arg0: i32) -> (i32, i32, i32) {
    %c0_i32 = arith.constant 0 : i32
    %c0_i32_0 = arith.constant 0 : i32
    %c0_i32_1 = arith.constant 0 : i32
    %c0_i32_2 = arith.constant 0 : i32
    return %c0_i32, %c0_i32_0, %c0_i32_1 : i32, i32, i32
  }
  func.func @transform_2(%arg0: i32) -> (i32, i32) {
    %c0_i32 = arith.constant 0 : i32
    %c0_i32_0 = arith.constant 0 : i32
    %c0_i32_1 = arith.constant 0 : i32
    return %c0_i32, %c0_i32_0 : i32, i32
  }
  func.func @transform_3(%arg0: i32) -> (i32, i32, i32) {
    %c0_i32 = arith.constant 0 : i32
    %c0_i32_0 = arith.constant 0 : i32
    %c0_i32_1 = arith.constant 0 : i32
    %c0_i32_2 = arith.constant 0 : i32
    return %c0_i32, %c0_i32_0, %c0_i32_1 : i32, i32, i32
  }
  func.func @transform_4(%arg0: i32) -> (i32, i32) {
    %c0_i32 = arith.constant 0 : i32
    %c0_i32_0 = arith.constant 0 : i32
    %c0_i32_1 = arith.constant 0 : i32
    return %c0_i32, %c0_i32_0 : i32, i32
  }
  func.func @transform_5(%arg0: i32) -> (i32, i32, i32) {
    %c0_i32 = arith.constant 0 : i32
    %c0_i32_0 = arith.constant 0 : i32
    %c0_i32_1 = arith.constant 0 : i32
    %c0_i32_2 = arith.constant 0 : i32
    return %c0_i32, %c0_i32_0, %c0_i32_1 : i32, i32, i32
  }
  func.func @transform_6(%arg0: i32) -> (i32, i32) {
    %c0_i32 = arith.constant 0 : i32
    %c0_i32_0 = arith.constant 0 : i32
    %c0_i32_1 = arith.constant 0 : i32
    return %c0_i32, %c0_i32_0 : i32, i32
  }
  func.func @transform_7(%arg0: i32) -> (i32, i32, i32) {
    %c0_i32 = arith.constant 0 : i32
    %c0_i32_0 = arith.constant 0 : i32
    %c0_i32_1 = arith.constant 0 : i32
    %c0_i32_2 = arith.constant 0 : i32
    return %c0_i32, %c0_i32_0, %c0_i32_1 : i32, i32, i32
  }
  func.func @transform_8(%arg0: i32) -> (i32, i32) {
    %c0_i32 = arith.constant 0 : i32
    %c0_i32_0 = arith.constant 0 : i32
    %c0_i32_1 = arith.constant 0 : i32
    return %c0_i32, %c0_i32_0 : i32, i32
  }
  func.func @transform_9(%arg0: i32) -> (i32, i32) {
    %c0_i32 = arith.constant 0 : i32
    %c0_i32_0 = arith.constant 0 : i32
    %c0_i32_1 = arith.constant 0 : i32
    return %c0_i32, %c0_i32_0 : i32, i32
  }
  func.func @transform_10(%arg0: i32) -> (i32, i32) {
    %c0_i32 = arith.constant 0 : i32
    %c0_i32_0 = arith.constant 0 : i32
    %c0_i32_1 = arith.constant 0 : i32
    return %c0_i32, %c0_i32_0 : i32, i32
  }
  func.func @transform_11(%arg0: i32) -> (i32, i32) {
    %c0_i32 = arith.constant 0 : i32
    %c0_i32_0 = arith.constant 0 : i32
    %c0_i32_1 = arith.constant 0 : i32
    return %c0_i32, %c0_i32_0 : i32, i32
  }
  func.func @transform_12(%arg0: i32) -> (i32, i32) {
    %c0_i32 = arith.constant 0 : i32
    %c0_i32_0 = arith.constant 0 : i32
    %c0_i32_1 = arith.constant 0 : i32
    return %c0_i32, %c0_i32_0 : i32, i32
  }
  func.func @transform_13(%arg0: i32) -> (i32, i32) {
    %c0_i32 = arith.constant 0 : i32
    %c0_i32_0 = arith.constant 0 : i32
    %c0_i32_1 = arith.constant 0 : i32
    return %c0_i32, %c0_i32_0 : i32, i32
  }
  func.func @transform_14(%arg0: i32) -> (i32, i32) {
    %c0_i32 = arith.constant 0 : i32
    %c0_i32_0 = arith.constant 0 : i32
    %c0_i32_1 = arith.constant 0 : i32
    return %c0_i32, %c0_i32_0 : i32, i32
  }
  func.func @transform_15(%arg0: i32) -> (i32, i32) {
    %c0_i32 = arith.constant 0 : i32
    %c0_i32_0 = arith.constant 0 : i32
    %c0_i32_1 = arith.constant 0 : i32
    return %c0_i32, %c0_i32_0 : i32, i32
  }
  func.func @transform_16(%arg0: i32) -> (i32, i32) {
    %c0_i32 = arith.constant 0 : i32
    %c0_i32_0 = arith.constant 0 : i32
    %c0_i32_1 = arith.constant 0 : i32
    return %c0_i32, %c0_i32_0 : i32, i32
  }
  func.func @transform_17(%arg0: i32) -> (i32, i32) {
    %c0_i32 = arith.constant 0 : i32
    %c0_i32_0 = arith.constant 0 : i32
    %c0_i32_1 = arith.constant 0 : i32
    return %c0_i32, %c0_i32_0 : i32, i32
  }
  func.func @transform_18(%arg0: i32) -> (i32, i32) {
    %c0_i32 = arith.constant 0 : i32
    %c0_i32_0 = arith.constant 0 : i32
    %c0_i32_1 = arith.constant 0 : i32
    return %c0_i32, %c0_i32_0 : i32, i32
  }
  func.func @transform_19(%arg0: i32) -> (i32, i32) {
    %c0_i32 = arith.constant 0 : i32
    %c0_i32_0 = arith.constant 0 : i32
    %c0_i32_1 = arith.constant 0 : i32
    return %c0_i32, %c0_i32_0 : i32, i32
  }
  func.func @transform_20(%arg0: i32) -> (i32, i32) {
    %c0_i32 = arith.constant 0 : i32
    %c0_i32_0 = arith.constant 0 : i32
    %c0_i32_1 = arith.constant 0 : i32
    return %c0_i32, %c0_i32_0 : i32, i32
  }
  func.func @transform_21(%arg0: i32) -> (i32, i32) {
    %c0_i32 = arith.constant 0 : i32
    %c0_i32_0 = arith.constant 0 : i32
    %c0_i32_1 = arith.constant 0 : i32
    return %c0_i32, %c0_i32_0 : i32, i32
  }
  func.func @transform_22(%arg0: i32) -> (i32, i32) {
    %c0_i32 = arith.constant 0 : i32
    %c0_i32_0 = arith.constant 0 : i32
    %c0_i32_1 = arith.constant 0 : i32
    return %c0_i32, %c0_i32_0 : i32, i32
  }
  func.func @transform_23(%arg0: i32) -> (i32, i32) {
    %c0_i32 = arith.constant 0 : i32
    %c0_i32_0 = arith.constant 0 : i32
    %c0_i32_1 = arith.constant 0 : i32
    return %c0_i32, %c0_i32_0 : i32, i32
  }
  func.func @transform_24(%arg0: i32) -> (i32, i32) {
    %c0_i32 = arith.constant 0 : i32
    %c0_i32_0 = arith.constant 0 : i32
    %c0_i32_1 = arith.constant 0 : i32
    return %c0_i32, %c0_i32_0 : i32, i32
  }
  func.func @transform_25(%arg0: i32) -> (i32, i32) {
    %c0_i32 = arith.constant 0 : i32
    %c0_i32_0 = arith.constant 0 : i32
    %c0_i32_1 = arith.constant 0 : i32
    return %c0_i32, %c0_i32_0 : i32, i32
  }
  func.func @transform_26(%arg0: i32) -> (i32, i32) {
    %c0_i32 = arith.constant 0 : i32
    %c0_i32_0 = arith.constant 0 : i32
    %c0_i32_1 = arith.constant 0 : i32
    return %c0_i32, %c0_i32_0 : i32, i32
  }
  func.func @transform_27(%arg0: i32) -> (i32, i32) {
    %c0_i32 = arith.constant 0 : i32
    %c0_i32_0 = arith.constant 0 : i32
    %c0_i32_1 = arith.constant 0 : i32
    return %c0_i32, %c0_i32_0 : i32, i32
  }
  func.func @transform_28(%arg0: i32) -> (i32, i32) {
    %c0_i32 = arith.constant 0 : i32
    %c0_i32_0 = arith.constant 0 : i32
    %c0_i32_1 = arith.constant 0 : i32
    return %c0_i32, %c0_i32_0 : i32, i32
  }
  func.func @transform_29(%arg0: i32) -> (i32, i32) {
    %c0_i32 = arith.constant 0 : i32
    %c0_i32_0 = arith.constant 0 : i32
    %c0_i32_1 = arith.constant 0 : i32
    return %c0_i32, %c0_i32_0 : i32, i32
  }
  func.func @transform_30(%arg0: i32) -> (i32, i32) {
    %c0_i32 = arith.constant 0 : i32
    %c0_i32_0 = arith.constant 0 : i32
    %c0_i32_1 = arith.constant 0 : i32
    return %c0_i32, %c0_i32_0 : i32, i32
  }
  func.func @transform_31(%arg0: i32) -> (i32, i32) {
    %c0_i32 = arith.constant 0 : i32
    %c0_i32_0 = arith.constant 0 : i32
    %c0_i32_1 = arith.constant 0 : i32
    return %c0_i32, %c0_i32_0 : i32, i32
  }
  func.func @transform_32(%arg0: i32) -> (i32, i32) {
    %c0_i32 = arith.constant 0 : i32
    %c0_i32_0 = arith.constant 0 : i32
    %c0_i32_1 = arith.constant 0 : i32
    return %c0_i32, %c0_i32_0 : i32, i32
  }
  func.func @transform_33(%arg0: i32) -> (i32, i32) {
    %c0_i32 = arith.constant 0 : i32
    %c0_i32_0 = arith.constant 0 : i32
    %c0_i32_1 = arith.constant 0 : i32
    return %c0_i32, %c0_i32_0 : i32, i32
  }
  func.func @transform_34(%arg0: i32) -> (i32, i32) {
    %c0_i32 = arith.constant 0 : i32
    %c0_i32_0 = arith.constant 0 : i32
    %c0_i32_1 = arith.constant 0 : i32
    return %c0_i32, %c0_i32_0 : i32, i32
  }
  func.func @transform_35(%arg0: i32) -> (i32, i32) {
    %c0_i32 = arith.constant 0 : i32
    %c0_i32_0 = arith.constant 0 : i32
    %c0_i32_1 = arith.constant 0 : i32
    return %c0_i32, %c0_i32_0 : i32, i32
  }
  func.func @transform_36(%arg0: i32) -> (i32, i32) {
    %c0_i32 = arith.constant 0 : i32
    %c0_i32_0 = arith.constant 0 : i32
    %c0_i32_1 = arith.constant 0 : i32
    return %c0_i32, %c0_i32_0 : i32, i32
  }
  func.func @transform_37(%arg0: i32) -> (i32, i32) {
    %c0_i32 = arith.constant 0 : i32
    %c0_i32_0 = arith.constant 0 : i32
    %c0_i32_1 = arith.constant 0 : i32
    return %c0_i32, %c0_i32_0 : i32, i32
  }
  func.func @transform_38(%arg0: i32) -> (i32, i32) {
    %c0_i32 = arith.constant 0 : i32
    %c0_i32_0 = arith.constant 0 : i32
    %c0_i32_1 = arith.constant 0 : i32
    return %c0_i32, %c0_i32_0 : i32, i32
  }
  func.func @transform_39(%arg0: i32) -> (i32, i32) {
    %c0_i32 = arith.constant 0 : i32
    %c0_i32_0 = arith.constant 0 : i32
    %c0_i32_1 = arith.constant 0 : i32
    return %c0_i32, %c0_i32_0 : i32, i32
  }
  func.func @transform_40(%arg0: i32) -> (i32, i32) {
    %c0_i32 = arith.constant 0 : i32
    %c0_i32_0 = arith.constant 0 : i32
    %c0_i32_1 = arith.constant 0 : i32
    return %c0_i32, %c0_i32_0 : i32, i32
  }
  func.func @transform_41(%arg0: i32) -> (i32, i32) {
    %c0_i32 = arith.constant 0 : i32
    %c0_i32_0 = arith.constant 0 : i32
    %c0_i32_1 = arith.constant 0 : i32
    return %c0_i32, %c0_i32_0 : i32, i32
  }
  func.func @transform_42(%arg0: i32) -> (i32, i32, i32) {
    %c0_i32 = arith.constant 0 : i32
    %c0_i32_0 = arith.constant 0 : i32
    %c0_i32_1 = arith.constant 0 : i32
    return %arg0, %c0_i32, %c0_i32_0 : i32, i32, i32
  }
}

</mosaic_0001>

<bundles_post_ra>
// kernel: tpu_custom_call.1
= control target key start
LH: loop header
LB: loop body
LE: loop exit
PB: predicated region body
PF: predicated region fallthrough
CT: control target
= control target key end

     0   :  { %s8819_s6 = smov 1   ;;  %s8820_s10 = smov 2   ;;  %s11540_s0 = inlined_call_operand.smem [shape: u32[43], index: -1, kind: input, shape index: {}] }
   0x1   :  { %s8902_s5 = sld [smem:[%s11540_s0]]   ;;  %s8821_s14 = smov 3  }
   0x2   :  { %s8907_s9 = sld [smem:[%s11540_s0 + %s8819_s6]]   ;;  %s8822_s18 = smov 4  }
   0x3   :  { %s8912_s13 = sld [smem:[%s11540_s0 + %s8820_s10]]   ;;  %s8823_s22 = smov 5  }
   0x4   :  { %s8917_s17 = sld [smem:[%s11540_s0 + %s8821_s14]]   ;;  %s8824_s26 = smov 6  }
   0x5   :  { %s8922_s21 = sld [smem:[%s11540_s0 + %s8822_s18]]   ;;  %s8825_s30 = smov 7  }
   0x6   :  { %s8927_s25 = sld [smem:[%s11540_s0 + %s8823_s22]]   ;;  %s8826_s4 = smov 8  }
   0x7   :  { %11611 = sst [smem:[#allocation33_spill]] %s8902_s5  ;;  %s8827_s10 = smov 9  }
   0x8   :  { %s8932_s29 = sld [smem:[%s11540_s0 + %s8824_s26]]   ;;  %s8828_s15 = smov 10  }
   0x9   :  { %11612 = sst [smem:[#allocation34_spill]] %s8912_s13  ;;  %s8829_s20 = smov 11  }
   0xa   :  { %s8937_s3 = sld [smem:[%s11540_s0 + %s8825_s30]]   ;;  %s8830_s26 = smov 12  }
   0xb   :  { %11613 = sst [smem:[#allocation35_spill]] %s8922_s21  ;;  %s8831_s1 = smov 13  }
   0xc   :  { %11614 = sst [smem:[#allocation36_spill]] %s8927_s25  ;;  %s8832_s7 = smov 14  }
   0xd   :  { %s8942_s8 = sld [smem:[%s11540_s0 + %s8826_s4]]   ;;  %s8834_s22 = smov 16  }
   0xe   :  { %11615 = sst [smem:[#allocation37_spill]] %s8932_s29  ;;  %s8835_s28 = smov 17  }
   0xf   :  { %s8947_s14 = sld [smem:[%s11540_s0 + %s8827_s10]]  }
  0x10   :  { %11616 = sst [smem:[#allocation38_spill]] %s8937_s3 }
  0x11   :  { %s8952_s19 = sld [smem:[%s11540_s0 + %s8828_s15]]   ;;  %s8833_s15 = smov 15  }
  0x12   :  { %s8957_s24 = sld [smem:[%s11540_s0 + %s8829_s20]]  }
  0x13   :  { %11617 = sst [smem:[#allocation39_spill]] %s8942_s8 }
  0x14   :  { %s7651_s30 = sld [smem:[%s11540_s0 + %s8830_s26]]  }
  0x15   :  { %11618 = sst [smem:[#allocation40_spill]] %s8947_s14 }
  0x16   :  { %s8965_s6 = sld [smem:[%s11540_s0 + %s8831_s1]]   ;;  %s8839_s1 = smov 21  }
  0x17   :  { %11619 = sst [smem:[#allocation41_spill]] %s8952_s19 }
  0x18   :  { %s8970_s12 = sld [smem:[%s11540_s0 + %s8832_s7]]   ;;  %s8836_s7 = smov 18  }
  0x19   :  { %s8975_s20 = sld [smem:[%s11540_s0 + %s8833_s15]]   ;;  %s8837_s15 = smov 19  }
  0x1a   :  { %s8980_s27 = sld [smem:[%s11540_s0 + %s8834_s22]]   ;;  %v90_v0 = vstv %s7651_s30  ;;  %s8838_s22 = smov 20  }
  0x1b   :  { %s8985_s4 = sld [smem:[%s11540_s0 + %s8835_s28]]   ;;  %91 = vst [vmem:[#allocation3] sm:$0x1] %v90_v0  ;;  %s8840_s30 = smov 22  }
  0x1c   :  { %11620 = sst [smem:[#allocation42_spill]] %s8965_s6 }
  0x1d   :  { %s8995_s23 = sld [smem:[%s11540_s0 + %s8837_s15]]   ;;  %s8841_s15 = smov 23  }
  0x1e   :  { %11621 = sst [smem:[#allocation43_spill]] %s8970_s12 }
  0x1f   :  { %11622 = sst [smem:[#allocation44_spill]] %s8975_s20  ;;  %s8842_s20 = smov 24  }
  0x20   :  { %11623 = sst [smem:[#allocation45_spill]] %s8980_s27 }
  0x21   :  { %11624 = sst [smem:[#allocation46_spill]] %s8985_s4  ;;  %s8843_s4 = smov 25  }
  0x22   :  { %s8990_s12 = sld [smem:[%s11540_s0 + %s8836_s7]]  }
  0x23   :  { %11626 = sst [smem:[#allocation48_spill]] %s8995_s23  ;;  %s8845_s23 = smov 27  }
  0x24   :  { %s9000_s28 = sld [smem:[%s11540_s0 + %s8838_s22]]  }
  0x25   :  { %s9005_s7 = sld [smem:[%s11540_s0 + %s8839_s1]]  }
  0x26   :  { %s9010_s16 = sld [smem:[%s11540_s0 + %s8840_s30]]   ;;  %s8844_s30 = smov 26  }
  0x27   :  { %s9020_s27 = sld [smem:[%s11540_s0 + %s8842_s20]]   ;;  %s8846_s20 = smov 28  }
  0x28   :  { %11625 = sst [smem:[#allocation47_spill]] %s8990_s12 }
  0x29   :  { %s9015_s12 = sld [smem:[%s11540_s0 + %s8841_s15]]  }
  0x2a   :  { %s9025_s6 = sld [smem:[%s11540_s0 + %s8843_s4]]   ;;  %s8847_s4 = smov 29  }
  0x2b   :  { %s9035_s8 = sld [smem:[%s11540_s0 + %s8845_s23]]   ;;  %s8849_s23 = smov 31  }
  0x2c   :  { %11627 = sst [smem:[#allocation49_spill]] %s9010_s16 }
  0x2d   :  { %11628 = sst [smem:[#allocation50_spill]] %s9020_s27 }
  0x2e   :  { %s9030_s16 = sld [smem:[%s11540_s0 + %s8844_s30]]   ;;  %s8848_s30 = smov 30  }
  0x2f   :  { %s9040_s27 = sld [smem:[%s11540_s0 + %s8846_s20]]   ;;  %s8850_s20 = smov 32  }
  0x30   :  { %11629 = sst [smem:[#allocation51_spill]] %s9025_s6 }
  0x31   :  { %s9045_s29 = sld [smem:[%s11540_s0 + %s8847_s4]]   ;;  %s8851_s4 = smov 33  }
  0x32   :  { %s9050_s19 = sld [smem:[%s11540_s0 + %s8848_s30]]   ;;  %s8852_s30 = smov 34  }
  0x33   :  { %s9055_s14 = sld [smem:[%s11540_s0 + %s8849_s23]]   ;;  %s8853_s23 = smov 35  }
  0x34   :  { %s9070_s21 = sld [smem:[%s11540_s0 + %s8852_s30]]   ;;  %s8856_s30 = smov 38  }
  0x35   :  { %11630 = sst [smem:[#allocation52_spill]] %s9040_s27 }
  0x36   :  { %s9060_s27 = sld [smem:[%s11540_s0 + %s8850_s20]]   ;;  %s8854_s20 = smov 36  }
  0x37   :  { %11631 = sst [smem:[#allocation53_spill]] %s9045_s29 }
  0x38   :  { %s9065_s29 = sld [smem:[%s11540_s0 + %s8851_s4]]   ;;  %s8855_s4 = smov 37  }
  0x39   :  { %11632 = sst [smem:[#allocation54_spill]] %s9055_s14 }
  0x3a   :  { %s9075_s14 = sld [smem:[%s11540_s0 + %s8853_s23]]   ;;  %s8857_s23 = smov 39  }
  0x3b   :  { %s9090_s13 = sld [smem:[%s11540_s0 + %s8856_s30]]   ;;  %s8860_s30 = smov 42  }
  0x3c   :  { %11633 = sst [smem:[#allocation55_spill]] %s9060_s27 }
  0x3d   :  { %s9080_s27 = sld [smem:[%s11540_s0 + %s8854_s20]]   ;;  %s8858_s20 = smov 40  }
  0x3e   :  { %11634 = sst [smem:[#allocation56_spill]] %s9065_s29 }
  0x3f   :  { %s9085_s29 = sld [smem:[%s11540_s0 + %s8855_s4]]   ;;  %s8859_s4 = smov 41  }
  0x40   :  { %11635 = sst [smem:[#allocation57_spill]] %s9075_s14 }
  0x41   :  { %11638 = sst [smem:[#allocation60_spill]] %s9090_s13 }
  0x42   :  { %s9095_s14 = sld [smem:[%s11540_s0 + %s8857_s23]]  }
  0x43   :  { %11636 = sst [smem:[#allocation58_spill]] %s9080_s27 }
  0x44   :  { %s9100_s27 = sld [smem:[%s11540_s0 + %s8858_s20]]  }
  0x45   :  { %11637 = sst [smem:[#allocation59_spill]] %s9085_s29 }
  0x46   :  { %s9105_s29 = sld [smem:[%s11540_s0 + %s8859_s4]]  }
  0x47   :  { %s9110_s13 = sld [smem:[%s11540_s0 + %s8860_s30]]  }
  0x4c   :  { %11639 = sst [smem:[#allocation61_spill]] %s9105_s29 }
  0x4d   :  { %11640 = sst [smem:[#allocation62_spill]] %s9110_s13 }
  0x4e   :  { %92 = vsyncpa [#allocation5], 0 }
  0x4f   :  { %93 = vsyncpa [#allocation8], 0 }
  0x50   :  { %94 = vsyncpa [#allocation11], 0 }
  0x51   :  { %95 = vsyncpa [#allocation14], 0 }
  0x52   :  { %96 = vsyncpa [#allocation17], 0 }
  0x53   :  { %97 = vsyncpa [#allocation20], 0 }
  0x54   :  { %98 = vsyncpa [#allocation23], 0 }
  0x55   :  { %99 = vsyncpa [#allocation6], 0 }
  0x56   :  { %101 = vsyncpa [#allocation6 + $0x1], 0  ;;  %s9112_s23 = smov 0   ;;  %s9114_s15 = smov 0  }
  0x57   :  { %s9116_s18 = smov 0   ;;  %s9118_s20 = smov 0  }
  0x58 LB: > { %s11641_s6 = sld [smem:[#allocation51_spill]]  ;;  %s9133_s0 = sadd.s32 4294967295, %s8817_s20   ;;  %s8813_s18 = sphi %s9116_s18, %s11747_s18   ;;  %s8809_s15 = sphi %s9114_s15, %s11749_s15   ;;  %s8805_s23 = sphi %s9112_s23, %s11748_s23   ;;  %s8817_s20 = sphi %s9118_s20, %s11745_s20  }
  0x59   : > { %s11642_s3 = sld [smem:[#allocation38_spill]]  ;;  %s7683_s22 = sadd.s32 4294967294, %s8817_s20  }
  0x5a   : > { %s11643_s25 = sld [smem:[#allocation36_spill]]  ;;  %s9137_s26 = sadd.s32 1, %s8817_s20  }
  0x5b   : > { %11644 = sst [smem:[#allocation63_spill]] %s8805_s23  ;;  %s1001_s4 = sadd.s32 1, %s8813_s18 }
  0x5c   : > { %11645 = sst [smem:[#allocation64_spill]] %s8813_s18  ;;  %s998_s1 = ssub.s32 %s8817_s20, %s9137_s26 }
  0x5d   : > { %11646 = sst [smem:[#allocation65_spill]] %s8817_s20  ;;  %p1011_p0 = scmp.ne.s32.totalorder %s8813_s18, %s8809_s15 }
  0x5e   : > { %11647 = sst [smem:[#allocation66_spill]] %s9137_s26  ;;  %p999_p1 = scmp.eq.s32.totalorder %s998_s1, 0 }
  0x5f   : > { %p1012_p2 = scmp.eq.s32.totalorder %s9133_s0, 1  ;;  %p1017_p3 = scmp.ne.s32.totalorder %s8809_s15, %s8805_s23 }
  0x60   : > { %p1018_p4 = scmp.eq.s32.totalorder %s7683_s22, 1  ;;  %p7684_p7 = scmp.ge.s32.totalorder %s8817_s20, 1 }
  0x61   : > { %s9148_s2 = scalar_select %p999_p1, %s8813_s18, %s1001_s4  }
  0x62   : > { %p9150_p5 = por %p1012_p2, %p1011_p0  ;;  %p9154_p6 = por %p1018_p4, %p1017_p3 }
  0x63   : > { %11648 = sst [smem:[#allocation67_spill]] %s9148_s2  ;;  %p1025_p8 = scmp.lt.s32.totalorder %s8817_s20, 3 }
  0x64   : > { %s11649_s30 = scalar_select %p9150_p5, 1, 0 }
  0x65   : > { %s11651_s10 = scalar_select %p9154_p6, 1, 0 }
  0x66   : > { %11650 = sst [smem:[#allocation68_spill]] %s11649_s30  ;;  %p7946_p9 = scmp.eq.s32.totalorder %s9133_s0, 0 }
  0x67   : > { %11652 = sst [smem:[#allocation69_spill]] %s11651_s10  ;;  %p9161_p10 = pnand %p7684_p7, %p1025_p8 }
  0x68   : > { %s1059_s1 = sshll.u32 %s11643_s25, 4  ;;  %s1099_s22 = sshll.u32 %s8957_s24, 4  ;;  %s1060_s1 = int_to_ptr.hbm [resolvable:$true] %s1059_s1  ;;  %s9175_s22 = int_to_ptr.hbm [resolvable:$true] %s1099_s22 }
  0x69   : > { %p7905_p11 = pneg %p9161_p10  ;;  %s8861_s2 = smov [#allocation7]  }
  0x6a   : > { %s1061_s18 = sshll.u32 %s8861_s2, 4  ;;  %s8367_s26 = sshra.s32 %s1060_s1, 4  ;;  %s1062_s18 = int_to_ptr.vmem [resolvable:$true] %s1061_s18  ;;  %s8368_s26 = int_to_ptr.hbm [resolvable:$true] %s8367_s26 }
  0x6b   : > { %p9171_p12 = pnand %p7946_p9, %p7905_p11  ;;  %s8369_s10 = scalar_lea.hbm %s8368_s26, 384 }
  0x6c   : > { %p8370_p13 = scmp.ne.s32.totalorder %s8368_s26, %s8369_s10  ;;  %s8374_s20 = scalar_lea.hbm %s11643_s25, 384 }
  0x6d   : > { %p9179_p0 = pneg %p9171_p12  ;;  %p8375_p3 = scmp.lt.s32.totalorder %s8368_s26, %s11643_s25 }
  0x6e   : > { %p8376_p4 = scmp.lt.s32.totalorder %s8374_s20, %s8369_s10 }
  0x6f   : > { %p8372_p1 = pnand %p9179_p0, %p8370_p13 }
  0x70   : > { %p8377_p7 = por %p8376_p4, %p8375_p3 }
  0x71   : > { %p8373_p2 = pneg %p8372_p1 }
  0x73   : > { %p8378_p8 = pnand %p8377_p7, %p8373_p2 }
  0x75   : > { %8381 = shalt.err (!%p8378_p8)
}
  0x76   : > { %s8862_s2 = smov 128   ;;  %s8863_s30 = smov 8  }
  0x77   : > { %7911 = dma.hbm_to_vmem [thread:$0]  (!%p9171_p12), %s1060_s1, 6144, %s1062_s18, [#allocation8], %s8862_s2, %s8862_s2, %s8863_s30  }
  0x78   : > { %s8864_s29 = smov [#allocation10]   ;;  %s1150_s26 = sshll.u32 %s9005_s7, 4  ;;  %s9193_s26 = int_to_ptr.hbm [resolvable:$true] %s1150_s26 }
  0x79   : > { %s1101_s13 = sshll.u32 %s8864_s29, 4  ;;  %s8397_s20 = sshra.s32 %s9175_s22, 4  ;;  %s1102_s13 = int_to_ptr.vmem [resolvable:$true] %s1101_s13  ;;  %s8398_s20 = int_to_ptr.hbm [resolvable:$true] %s8397_s20 }
  0x7a   : > { %s8399_s10 = scalar_lea.hbm %s8398_s20, 128  ;;  %s8404_s25 = scalar_lea.hbm %s8957_s24, 128 }
  0x7b   : > { %p8400_p11 = scmp.ne.s32.totalorder %s8398_s20, %s8399_s10  ;;  %p8405_p2 = scmp.lt.s32.totalorder %s8398_s20, %s8957_s24 }
  0x7c   : > { %p8406_p3 = scmp.lt.s32.totalorder %s8404_s25, %s8399_s10 }
  0x7d   : > { %p8402_p13 = pnand %p8400_p11, %p9179_p0 }
  0x7e   : > { %p8407_p4 = por %p8406_p3, %p8405_p2 }
  0x7f   : > { %p8403_p1 = pneg %p8402_p13 }
  0x81   : > { %p8408_p7 = pnand %p8407_p4, %p8403_p1 }
  0x83   : > { %8411 = shalt.err (!%p8408_p7)
}
  0x84   : > { %7917 = dma.hbm_to_vmem [thread:$0]  (!%p9171_p12), %s9175_s22, 2048, %s1102_s13, [#allocation11], %s8862_s2, %s8862_s2, %s8863_s30  }
  0x85   : > { %s1180_s29 = sshll.u32 %s11641_s6, 4  ;;  %s8865_s18 = smov [#allocation13]   ;;  %s9207_s29 = int_to_ptr.hbm [resolvable:$true] %s1180_s29 }
  0x86   : > { %s1152_s1 = sshll.u32 %s8865_s18, 4  ;;  %s8427_s25 = sshra.s32 %s9193_s26, 4  ;;  %s1153_s1 = int_to_ptr.vmem [resolvable:$true] %s1152_s1  ;;  %s8428_s25 = int_to_ptr.hbm [resolvable:$true] %s8427_s25 }
  0x87   : > { %s8429_s20 = scalar_lea.hbm %s8428_s25, 1  ;;  %s8434_s10 = scalar_lea.hbm %s9005_s7, 1 }
  0x88   : > { %p8430_p8 = scmp.ne.s32.totalorder %s8428_s25, %s8429_s20  ;;  %p8435_p1 = scmp.lt.s32.totalorder %s8428_s25, %s9005_s7 }
  0x89   : > { %p8436_p2 = scmp.lt.s32.totalorder %s8434_s10, %s8429_s20 }
  0x8a   : > { %p8432_p11 = pnand %p8430_p8, %p9179_p0 }
  0x8b   : > { %p8437_p3 = por %p8436_p2, %p8435_p1 }
  0x8c   : > { %p8433_p13 = pneg %p8432_p11 }
  0x8e   : > { %p8438_p4 = pnand %p8437_p3, %p8433_p13 }
  0x90   : > { %8441 = shalt.err (!%p8438_p4)
}
  0x91   : > { %7923 = dma.hbm_to_vmem [thread:$0]  (!%p9171_p12), %s9193_s26, 16, %s1153_s1, [#allocation14]  }
  0x92   : > { %s8866_s13 = smov [#allocation16]   ;;  %s1204_s18 = sshll.u32 %s9035_s8, 4  ;;  %s9218_s18 = int_to_ptr.hbm [resolvable:$true] %s1204_s18 }
  0x93   : > { %s1182_s22 = sshll.u32 %s8866_s13, 4  ;;  %s8457_s25 = sshra.s32 %s9207_s29, 4  ;;  %s1183_s22 = int_to_ptr.vmem [resolvable:$true] %s1182_s22  ;;  %s8458_s25 = int_to_ptr.hbm [resolvable:$true] %s8457_s25 }
  0x94   : > { %s8459_s20 = scalar_lea.hbm %s8458_s25, 1  ;;  %s8464_s10 = scalar_lea.hbm %s11641_s6, 1 }
  0x95   : > { %p8460_p7 = scmp.ne.s32.totalorder %s8458_s25, %s8459_s20  ;;  %p8465_p13 = scmp.lt.s32.totalorder %s8458_s25, %s11641_s6 }
  0x96   : > { %p8466_p1 = scmp.lt.s32.totalorder %s8464_s10, %s8459_s20 }
  0x97   : > { %p8462_p8 = pnand %p8460_p7, %p9179_p0 }
  0x98   : > { %p8467_p2 = por %p8466_p1, %p8465_p13 }
  0x99   : > { %p8463_p11 = pneg %p8462_p8 }
  0x9b   : > { %p8468_p3 = pnand %p8467_p2, %p8463_p11 }
  0x9d   : > { %8471 = shalt.err (!%p8468_p3)
}
  0x9e   : > { %7929 = dma.hbm_to_vmem [thread:$0]  (!%p9171_p12), %s9207_s29, 16, %s1183_s22, [#allocation17]  }
  0x9f   : > { %s1042_s26 = sshll.u32 %s8917_s17, 4  ;;  %s8867_s1 = smov [#allocation19]   ;;  %s9229_s26 = int_to_ptr.hbm [resolvable:$true] %s1042_s26 }
  0xa0   : > { %s1206_s13 = sshll.u32 %s8867_s1, 4  ;;  %s8487_s25 = sshra.s32 %s9218_s18, 4  ;;  %s1207_s13 = int_to_ptr.vmem [resolvable:$true] %s1206_s13  ;;  %s8488_s25 = int_to_ptr.hbm [resolvable:$true] %s8487_s25 }
  0xa1   : > { %s8489_s20 = scalar_lea.hbm %s8488_s25, 1  ;;  %s8494_s10 = scalar_lea.hbm %s9035_s8, 1 }
  0xa2   : > { %p8490_p4 = scmp.ne.s32.totalorder %s8488_s25, %s8489_s20  ;;  %p8495_p11 = scmp.lt.s32.totalorder %s8488_s25, %s9035_s8 }
  0xa3   : > { %p8496_p13 = scmp.lt.s32.totalorder %s8494_s10, %s8489_s20 }
  0xa4   : > { %p8492_p7 = pnand %p8490_p4, %p9179_p0 }
  0xa5   : > { %p8497_p1 = por %p8496_p13, %p8495_p11 }
  0xa6   : > { %p8493_p8 = pneg %p8492_p7 }
  0xa8   : > { %p8498_p2 = pnand %p8497_p1, %p8493_p8 }
  0xaa   : > { %8501 = shalt.err (!%p8498_p2)
}
  0xab   : > { %7935 = dma.hbm_to_vmem [thread:$0]  (!%p9171_p12), %s9218_s18, 16, %s1207_s13, [#allocation20]  }
  0xac   : > { %s8868_s29 = smov [#allocation4]   ;;  %s1076_s1 = sshll.u32 %s11642_s3, 4  ;;  %s9240_s1 = int_to_ptr.hbm [resolvable:$true] %s1076_s1 }
  0xad   : > { %s1044_s22 = sshll.u32 %s8868_s29, 4  ;;  %s8517_s25 = sshra.s32 %s9229_s26, 4  ;;  %s1045_s22 = int_to_ptr.vmem [resolvable:$true] %s1044_s22  ;;  %s8518_s25 = int_to_ptr.hbm [resolvable:$true] %s8517_s25 }
  0xae   : > { %s8519_s20 = scalar_lea.hbm %s8518_s25, 384  ;;  %s8524_s10 = scalar_lea.hbm %s8917_s17, 384 }
  0xaf   : > { %p8520_p3 = scmp.ne.s32.totalorder %s8518_s25, %s8519_s20  ;;  %p8525_p8 = scmp.lt.s32.totalorder %s8518_s25, %s8917_s17 }
  0xb0   : > { %p8526_p11 = scmp.lt.s32.totalorder %s8524_s10, %s8519_s20 }
  0xb1   : > { %p8522_p4 = pnand %p8520_p3, %p9179_p0 }
  0xb2   : > { %p8527_p13 = por %p8526_p11, %p8525_p8 }
  0xb3   : > { %p8523_p7 = pneg %p8522_p4 }
  0xb5   : > { %p8528_p1 = pnand %p8527_p13, %p8523_p7 }
  0xb7   : > { %8531 = shalt.err (!%p8528_p1)
}
  0xb8   : > { %7908 = dma.hbm_to_vmem [thread:$0]  (!%p9171_p12), %s9229_s26, 6144, %s1045_s22, [#allocation5], %s8862_s2, %s8862_s2, %s8863_s30  }
  0xb9   : > { %s1138_s18 = sshll.u32 %s9000_s28, 4  ;;  %s8869_s13 = smov [#allocation9]   ;;  %s9254_s18 = int_to_ptr.hbm [resolvable:$true] %s1138_s18 }
  0xba   : > { %s1078_s29 = sshll.u32 %s8869_s13, 4  ;;  %s8547_s25 = sshra.s32 %s9240_s1, 4  ;;  %s1079_s29 = int_to_ptr.vmem [resolvable:$true] %s1078_s29  ;;  %s8548_s25 = int_to_ptr.hbm [resolvable:$true] %s8547_s25 }
  0xbb   : > { %s8549_s20 = scalar_lea.hbm %s8548_s25, 384  ;;  %s8554_s10 = scalar_lea.hbm %s11642_s3, 384 }
  0xbc   : > { %p8550_p2 = scmp.ne.s32.totalorder %s8548_s25, %s8549_s20  ;;  %p8555_p7 = scmp.lt.s32.totalorder %s8548_s25, %s11642_s3 }
  0xbd   : > { %p8556_p8 = scmp.lt.s32.totalorder %s8554_s10, %s8549_s20 }
  0xbe   : > { %p8552_p3 = pnand %p8550_p2, %p9179_p0 }
  0xbf   : > { %p8557_p11 = por %p8556_p8, %p8555_p7 }
  0xc0   : > { %p8553_p4 = pneg %p8552_p3 }
  0xc2   : > { %p8558_p13 = pnand %p8557_p11, %p8553_p4 }
  0xc4   : > { %8561 = shalt.err (!%p8558_p13)
}
  0xc5   : > { %7914 = dma.hbm_to_vmem [thread:$0]  (!%p9171_p12), %s9240_s1, 6144, %s1079_s29, [#allocation8], %s8862_s2, %s8862_s2, %s8863_s30  }
  0xc6   : > { %s8870_s26 = smov [#allocation12]   ;;  %s1165_s13 = sshll.u32 %s9015_s12, 4  ;;  %s9268_s13 = int_to_ptr.hbm [resolvable:$true] %s1165_s13 }
  0xc7   : > { %s1140_s22 = sshll.u32 %s8870_s26, 4  ;;  %s8577_s25 = sshra.s32 %s9254_s18, 4  ;;  %s1141_s22 = int_to_ptr.vmem [resolvable:$true] %s1140_s22  ;;  %s8578_s25 = int_to_ptr.hbm [resolvable:$true] %s8577_s25 }
  0xc8   : > { %s8579_s20 = scalar_lea.hbm %s8578_s25, 1  ;;  %s8584_s10 = scalar_lea.hbm %s9000_s28, 1 }
  0xc9   : > { %p8580_p1 = scmp.ne.s32.totalorder %s8578_s25, %s8579_s20  ;;  %p8585_p4 = scmp.lt.s32.totalorder %s8578_s25, %s9000_s28 }
  0xca   : > { %p8586_p7 = scmp.lt.s32.totalorder %s8584_s10, %s8579_s20 }
  0xcb   : > { %p8582_p2 = pnand %p8580_p1, %p9179_p0 }
  0xcc   : > { %p8587_p8 = por %p8586_p7, %p8585_p4 }
  0xcd   : > { %p8583_p3 = pneg %p8582_p2 }
  0xcf   : > { %p8588_p11 = pnand %p8587_p8, %p8583_p3 }
  0xd1   : > { %8591 = shalt.err (!%p8588_p11)
}
  0xd2   : > { %7920 = dma.hbm_to_vmem [thread:$0]  (!%p9171_p12), %s9254_s18, 16, %s1141_s22, [#allocation11]  }
  0xd3   : > { %s1192_s1 = sshll.u32 %s9030_s16, 4  ;;  %s8871_s29 = smov [#allocation15]   ;;  %s9279_s1 = int_to_ptr.hbm [resolvable:$true] %s1192_s1 }
  0xd4   : > { %s1167_s26 = sshll.u32 %s8871_s29, 4  ;;  %s8607_s25 = sshra.s32 %s9268_s13, 4  ;;  %s1168_s26 = int_to_ptr.vmem [resolvable:$true] %s1167_s26  ;;  %s8608_s25 = int_to_ptr.hbm [resolvable:$true] %s8607_s25 }
  0xd5   : > { %s8609_s20 = scalar_lea.hbm %s8608_s25, 1  ;;  %s8614_s10 = scalar_lea.hbm %s9015_s12, 1 }
  0xd6   : > { %p8610_p13 = scmp.ne.s32.totalorder %s8608_s25, %s8609_s20  ;;  %p8615_p3 = scmp.lt.s32.totalorder %s8608_s25, %s9015_s12 }
  0xd7   : > { %p8616_p4 = scmp.lt.s32.totalorder %s8614_s10, %s8609_s20 }
  0xd8   : > { %p8612_p1 = pnand %p8610_p13, %p9179_p0 }
  0xd9   : > { %p8617_p7 = por %p8616_p4, %p8615_p3 }
  0xda   : > { %p8613_p2 = pneg %p8612_p1 }
  0xdc   : > { %p8618_p8 = pnand %p8617_p7, %p8613_p2 }
  0xde   : > { %8621 = shalt.err (!%p8618_p8)
}
  0xdf   : > { %7926 = dma.hbm_to_vmem [thread:$0]  (!%p9171_p12), %s9268_s13, 16, %s1168_s26, [#allocation14]  }
  0xe0   : > { %s8872_s18 = smov [#allocation18]   ;;  %s1221_s29 = sshll.u32 %s9050_s19, 4  ;;  %s9290_s29 = int_to_ptr.hbm [resolvable:$true] %s1221_s29 }
  0xe1   : > { %s1194_s22 = sshll.u32 %s8872_s18, 4  ;;  %s8637_s25 = sshra.s32 %s9279_s1, 4  ;;  %s1195_s22 = int_to_ptr.vmem [resolvable:$true] %s1194_s22  ;;  %s8638_s25 = int_to_ptr.hbm [resolvable:$true] %s8637_s25 }
  0xe2   : > { %s8639_s20 = scalar_lea.hbm %s8638_s25, 1  ;;  %s8644_s10 = scalar_lea.hbm %s9030_s16, 1 }
  0xe3   : > { %p8640_p11 = scmp.ne.s32.totalorder %s8638_s25, %s8639_s20  ;;  %p8645_p2 = scmp.lt.s32.totalorder %s8638_s25, %s9030_s16 }
  0xe4   : > { %p8646_p3 = scmp.lt.s32.totalorder %s8644_s10, %s8639_s20 }
  0xe5   : > { %p8642_p13 = pnand %p8640_p11, %p9179_p0 }
  0xe6   : > { %p8647_p4 = por %p8646_p3, %p8645_p2 }
  0xe7   : > { %p8643_p1 = pneg %p8642_p13 }
  0xe9   : > { %p8648_p7 = pnand %p8647_p4, %p8643_p1 }
  0xeb   : > { %8651 = shalt.err (!%p8648_p7)
}
  0xec   : > { %7932 = dma.hbm_to_vmem [thread:$0]  (!%p9171_p12), %s9279_s1, 16, %s1195_s22, [#allocation17]  }
  0xed   : > { %s1244_s13 = sshll.u32 %s9070_s21, 4  ;;  %s8873_s26 = smov [#allocation21]   ;;  %s9301_s13 = int_to_ptr.hbm [resolvable:$true] %s1244_s13 }
  0xee   : > { %s1223_s18 = sshll.u32 %s8873_s26, 4  ;;  %s8667_s25 = sshra.s32 %s9290_s29, 4  ;;  %s1224_s18 = int_to_ptr.vmem [resolvable:$true] %s1223_s18  ;;  %s8668_s25 = int_to_ptr.hbm [resolvable:$true] %s8667_s25 }
  0xef   : > { %s8669_s20 = scalar_lea.hbm %s8668_s25, 16  ;;  %s8674_s10 = scalar_lea.hbm %s9050_s19, 16 }
  0xf0   : > { %p8670_p8 = scmp.ne.s32.totalorder %s8668_s25, %s8669_s20  ;;  %p8675_p1 = scmp.lt.s32.totalorder %s8668_s25, %s9050_s19 }
  0xf1   : > { %p8676_p2 = scmp.lt.s32.totalorder %s8674_s10, %s8669_s20 }
  0xf2   : > { %p8672_p11 = pnand %p8670_p8, %p9179_p0 }
  0xf3   : > { %p8677_p3 = por %p8676_p2, %p8675_p1 }
  0xf4   : > { %p8673_p13 = pneg %p8672_p11 }
  0xf6   : > { %p8678_p4 = pnand %p8677_p3, %p8673_p13 }
  0xf8   : > { %8681 = shalt.err (!%p8678_p4)
}
  0xf9   : > { %7938 = dma.hbm_to_vmem [thread:$0]  (!%p9171_p12), %s9290_s29, 256, %s1224_s18, [#allocation20], %s8862_s2, %s8862_s2, %s8863_s30  }
  0xfa   : > { %s8874_s1 = smov [#allocation22]   ;;  %s8697_s26 = sshra.s32 %s9301_s13, 4  ;;  %s8698_s26 = int_to_ptr.hbm [resolvable:$true] %s8697_s26 }
  0xfb   : > { %s1246_s22 = sshll.u32 %s8874_s1, 4  ;;  %s8699_s25 = scalar_lea.hbm %s8698_s26, 16  ;;  %s1247_s22 = int_to_ptr.vmem [resolvable:$true] %s1246_s22 }
  0xfc   : > { %p8700_p7 = scmp.ne.s32.totalorder %s8698_s26, %s8699_s25  ;;  %s8704_s20 = scalar_lea.hbm %s9070_s21, 16 }
  0xfd   : > { %p8705_p13 = scmp.lt.s32.totalorder %s8698_s26, %s9070_s21  ;;  %p8706_p1 = scmp.lt.s32.totalorder %s8704_s20, %s8699_s25 }
  0xfe   : > { %p8702_p8 = pnand %p8700_p7, %p9179_p0 }
  0xff   : > { %p8707_p2 = por %p8706_p1, %p8705_p13 }
 0x100   : > { %p8703_p11 = pneg %p8702_p8 }
 0x102   : > { %p8708_p3 = pnand %p8707_p2, %p8703_p11 }
 0x104   : > { %8711 = shalt.err (!%p8708_p3)
}
 0x105   : > { %7941 = dma.hbm_to_vmem [thread:$0]  (!%p9171_p12), %s9301_s13, 256, %s1247_s22, [#allocation23], %s8862_s2, %s8862_s2, %s8863_s30  }
 0x106   : > { %1291 = sbr.rel (%p9161_p10) target bundleno = 6986 (0x1b4a), region = 188 }
 0x10b   : > { %8772 = dma.done.wait (%p7946_p9), [#allocation5], 6144  }
 0x10c   : > { %8774 = vsyncadd (%p7946_p9), [#allocation5], 4294961152 }
 0x10d   : > { %8776 = dma.done.wait (%p7946_p9), [#allocation8], 12288  }
 0x10e   : > { %8778 = vsyncadd (%p7946_p9), [#allocation8], 4294955008 }
 0x10f   : > { %8780 = dma.done.wait (%p7946_p9), [#allocation11], 2064  }
 0x110   : > { %8782 = vsyncadd (%p7946_p9), [#allocation11], 4294965232 }
 0x111   : > { %8784 = dma.done.wait (%p7946_p9), [#allocation14], 32  }
 0x112   : > { %8786 = vsyncadd (%p7946_p9), [#allocation14], 4294967264 }
 0x113   : > { %8788 = dma.done.wait (%p7946_p9), [#allocation17], 32  }
 0x114   : > { %8790 = vsyncadd (%p7946_p9), [#allocation17], 4294967264 }
 0x115   : > { %8792 = dma.done.wait (%p7946_p9), [#allocation20], 272  }
 0x116   : > { %8794 = vsyncadd (%p7946_p9), [#allocation20], 4294967024 }
 0x117   : > { %8796 = dma.done.wait (%p7946_p9), [#allocation23], 256  }
 0x118   : > { %8798 = vsyncadd (%p7946_p9), [#allocation23], 4294967040  ;;  %s11656_s5 = sld [smem:[#allocation33_spill]]  ;;  %p1448_p10 = scmp.lt.s32.totalorder %s9133_s0, 1  ;;  %v7721_v1 = vld [vmem:[%s8907_s9 + $0x28] sm:$0xff]  ;;  %v7720_v2 = vld [vmem:[%s8907_s9 + $0x20] sm:$0xff] }
 0x119   : > { %vm1538_vm0 = vcmask 1045504   ;;  %1564 = vmatpush.msra.mxu2 %v7721_v1  ;;  %v7713_v6 = vld [vmem:[%s8907_s9 + $0x18] sm:$0xff]  ;;  %v1457_v7 = vld [vmem:[%s8907_s9 + $0x8] sm:$0xff]  ;;  %vm1464_vm1 = vcmask 1046528   ;;  %vm1470_vm2 = vcmask 130048   ;;  %v7712_v10 = vld [vmem:[%s8907_s9 + $0x10] sm:$0xff] }
 0x11a   : > { %s1449_s23 = scalar_select %p1448_p10, %s9133_s0, 1  ;;  %1491 = vmatpush.msra.mxu0 %v7713_v6  ;;  %1523 = vmatpush.msra.mxu1 %v1457_v7  ;;  %v1456_v11 = vld [vmem:[%s8907_s9] sm:$0xff]  ;;  %v1604_v14 = vld [vmem:[#allocation4 + $0x78] sm:$0xff]  ;;  %v1601_v27 = vld [vmem:[#allocation4 + $0x60] sm:$0xff]  ;;  %vm2185_vm3 = vcmask 1047556   ;;  %vm3779_vm4 = vcmask 64512  }
 0x11b   : > { %1565 = vmatpush.msra.mxu2 %v7720_v2  ;;  %v1603_v17 = vld [vmem:[#allocation4 + $0x70] sm:$0xff]  ;;  %v1621_v18 = vld [vmem:[#allocation4 + $0xf8] sm:$0xff]  ;;  %v1602_v24 = vld [vmem:[#allocation4 + $0x68] sm:$0xff]  ;;  %s11657_s4 = sld [smem:[#allocation34_spill]]  ;;  %s11582_s1 = smov 72   ;;  %vm5639_vm5 = vcmask 195584  }
 0x11c   : > { %s7854_s30 = smul.u32 24, %s1449_s23  ;;  %1492 = vmatpush.msra.mxu0 %v7712_v10  ;;  %1524 = vmatpush.msra.mxu1 %v1456_v11  ;;  %v1701_v19 = vld [vmem:[#allocation4 + $0x178] sm:$0xff]  ;;  %v1620_v22 = vld [vmem:[#allocation4 + $0xf0] sm:$0xff]  ;;  %v1619_v25 = vld [vmem:[#allocation4 + $0xe8] sm:$0xff]  ;;  %s11658_s2 = sld [smem:[#allocation35_spill]]  ;;  %vm5642_vm6 = vcmask 261120  }
 0x11d   : > { %v1700_v23 = vld [vmem:[#allocation4 + $0x170] sm:$0xff]  ;;  %1633 = vmatpush.msra.mxu3 %v1621_v18  ;;  %v1699_v26 = vld [vmem:[#allocation4 + $0x168] sm:$0xff]  ;;  %v1600_v28 = vld [vmem:[#allocation4 + $0x58] sm:$0xff]  ;;  %s11659_s29 = sld [smem:[#allocation40_spill]]  ;;  %s11560_s22 = smov 24   ;;  %vm5645_vm7 = vcmask 326656  }
 0x11e   : > { %s1452_s11 = scalar_lea.vmem %s11656_s5, %s7854_s30  ;;  %1659 = vmatpush.msrb.mxu0 %v1604_v14  ;;  %1710 = vmatpush.msrb.mxu1 %v1701_v19  ;;  %v1618_v31 = vld [vmem:[#allocation4 + $0xe0] sm:$0xff]  ;;  %v1599_v33 = vld [vmem:[#allocation4 + $0x50] sm:$0xff]  ;;  %v1617_v34 = vld [vmem:[#allocation4 + $0xd8] sm:$0xff]  ;;  %s11660_s13 = sld [smem:[#allocation41_spill]]  ;;  %vm5648_vm8 = vcmask 392192   ;;  %vm5651_vm9 = vcmask 457728  }
 0x11f   : > { %v1453_v3 = vld [vmem:[%s1452_s11] sm:$0xff]  ;;  %v1454_v4 = vld [vmem:[%s1452_s11 + $0x8] sm:$0xff]  ;;  %v1455_v13 = vld [vmem:[%s1452_s11 + $0x10] sm:$0x7f]  ;;  %1634 = vmatpush.msra.mxu3 %v1620_v22  ;;  %s11661_s18 = sld [smem:[#allocation37_spill]]  ;;  %s11576_s26 = smov 8  }
 0x120   : > { %v1539_v5 = vrot.slane %v1453_v3, 2  ;;  %v1465_v8 = vrot.slane %v1453_v3, 1  ;;  %v1540_v9 = vrot.slane %v1454_v4, 2  ;;  %v1466_v12 = vrot.slane %v1454_v4, 1  ;;  %7717 = vmatmul.msk.f32.vlgmr.msra.gmra.mxu1 %vm1470_vm2, %v1453_v3  ;;  %1660 = vmatpush.msrb.mxu0 %v1603_v17  ;;  %v1698_v32 = vld [vmem:[#allocation4 + $0x160] sm:$0xff]  ;;  %v1697_v35 = vld [vmem:[#allocation4 + $0x158] sm:$0xff] }
 0x121   : > { %v1542_v20 = vrot.slane %v1455_v13, 2  ;;  %v1468_v21 = vrot.slane %v1455_v13, 1  ;;  %1711 = vmatpush.msrb.mxu1 %v1700_v23  ;;  %1635 = vmatpush.msra.mxu3 %v1619_v25  ;;  %v1598_v36 = vld [vmem:[#allocation4 + $0x48] sm:$0xff]  ;;  %v1616_v37 = vld [vmem:[#allocation4 + $0xd0] sm:$0xff]  ;;  %v1597_v39 = vld [vmem:[#allocation4 + $0x40] sm:$0xff]  ;;  %s11662_s10 = sld [smem:[#allocation39_spill]] }
 0x122   : > { %v1541_v15 = vsel %vm1538_vm0, %v1539_v5, %v1540_v9  ;;  %v1467_v16 = vsel %vm1464_vm1, %v1465_v8, %v1466_v12  ;;  %1661 = vmatpush.msrb.mxu0 %v1602_v24  ;;  %v1696_v38 = vld [vmem:[#allocation4 + $0x150] sm:$0xff]  ;;  %v1596_v40 = vld [vmem:[#allocation4 + $0x38] sm:$0xff]  ;;  %v1594_v42 = vld [vmem:[#allocation4 + $0x28] sm:$0xff]  ;;  %s11574_s25 = smov 56   ;;  %s11572_s20 = smov 16   ;;  %vm5654_vm10 = vcmask 523264  }
 0x123   : > { %7722 = vmatmul.msk.f32.vlgmr.msra.gmra.mxu2 %vm1470_vm2, %v1541_v15  ;;  %7714 = vmatmul.msk.f32.vlgmr.msra.gmra.mxu0 %vm1470_vm2, %v1467_v16  ;;  %v1543_v29 = vsel %vm1538_vm0, %v1540_v9, %v1542_v20  ;;  %v1469_v30 = vsel %vm1464_vm1, %v1466_v12, %v1468_v21  ;;  %v1595_v41 = vld [vmem:[#allocation4 + $0x30] sm:$0xff]  ;;  %v1593_v43 = vld [vmem:[#allocation4 + $0x20] sm:$0xff]  ;;  %v1615_v44 = vld [vmem:[#allocation4 + $0xc8] sm:$0xff]  ;;  %s11586_s23 = smov 40   ;;  %s11584_s30 = smov 104   ;;  %vm5657_vm11 = vcmask 588800  }
 0x124   : > { %1712 = vmatpush.msrb.mxu1 %v1699_v26  ;;  %1662 = vmatpush.msrb.mxu0 %v1601_v27  ;;  %v1695_v45 = vld [vmem:[#allocation4 + $0x148] sm:$0xff]  ;;  %v1592_v46 = vld [vmem:[#allocation4 + $0x18] sm:$0xff]  ;;  %v1614_v47 = vld [vmem:[#allocation4 + $0xc0] sm:$0xff]  ;;  %s11562_s11 = smov 32   ;;  %s11715_s3 = smov 40   ;;  %vm5660_vm12 = vcmask 654336  }
 0x125   : > { %1636 = vmatpush.msra.mxu3 %v1618_v31  ;;  %v1694_v48 = vld [vmem:[#allocation4 + $0x140] sm:$0xff]  ;;  %v1591_v49 = vld [vmem:[#allocation4 + $0x10] sm:$0xff]  ;;  %v1613_v50 = vld [vmem:[#allocation4 + $0xb8] sm:$0xff]  ;;  %s11716_s5 = smov 104   ;;  %s11717_s6 = smov 64   ;;  %vm5663_vm13 = vcmask 719872  }
 0x126   : > { %1663 = vmatpush.msrb.mxu0 %v1600_v28  ;;  %1713 = vmatpush.msrb.mxu1 %v1698_v32  ;;  %v1693_v51 = vld [vmem:[#allocation4 + $0x138] sm:$0xff]  ;;  %v1590_v52 = vld [vmem:[#allocation4 + $0x8] sm:$0xff]  ;;  %v1612_v53 = vld [vmem:[#allocation4 + $0xb0] sm:$0xff]  ;;  %vm5666_vm14 = vcmask 785408   ;;  %vm5669_vm15 = vcmask 850944  }
 0x127   : > { %1637 = vmatpush.msra.mxu3 %v1617_v34  ;;  %v1692_v54 = vld [vmem:[#allocation4 + $0x130] sm:$0xff]  ;;  %v1589_v55 = vld [vmem:[#allocation4] sm:$0xff]  ;;  %v1611_v56 = vld [vmem:[#allocation4 + $0xa8] sm:$0xff] }
 0x128   : > { %7718 = vmatmul.msk.f32.gmra.mxu1 %vm1470_vm2, %v1454_v4  ;;  %1664 = vmatpush.msrb.mxu0 %v1599_v33  ;;  %v1691_v57 = vld [vmem:[#allocation4 + $0x128] sm:$0xff]  ;;  %v1610_v58 = vld [vmem:[#allocation4 + $0xa0] sm:$0xff]  ;;  %v1609_v60 = vld [vmem:[#allocation4 + $0x98] sm:$0xff] }
 0x129   : > { %1714 = vmatpush.msrb.mxu1 %v1697_v35  ;;  %1638 = vmatpush.msra.mxu3 %v1616_v37  ;;  %v1690_v59 = vld [vmem:[#allocation4 + $0x120] sm:$0xff]  ;;  %v1689_v61 = vld [vmem:[#allocation4 + $0x118] sm:$0xff]  ;;  %v1608_v62 = vld [vmem:[#allocation4 + $0x90] sm:$0xff] }
 0x12a   : > { %1665 = vmatpush.msrb.mxu0 %v1598_v36  ;;  %v1688_v63 = vld [vmem:[#allocation4 + $0x110] sm:$0xff]  ;;  %v1607_v0 = vld [vmem:[#allocation4 + $0x88] sm:$0xff]  ;;  %v1606_v2 = vld [vmem:[#allocation4 + $0x80] sm:$0xff] }
 0x12b   : > { %7723 = vmatmul.msk.f32.gmra.mxu2 %vm1470_vm2, %v1543_v29  ;;  %7715 = vmatmul.msk.f32.gmra.mxu0 %vm1470_vm2, %v1469_v30  ;;  %v1687_v1 = vld [vmem:[#allocation4 + $0x108] sm:$0xff]  ;;  %v1686_v3 = vld [vmem:[#allocation4 + $0x100] sm:$0xff]  ;;  %v1764_v11 = vld [vmem:[#allocation7 + $0x78] sm:$0xff] }
 0x12c   : > { %1715 = vmatpush.msrb.mxu1 %v1696_v38  ;;  %1666 = vmatpush.msrb.mxu0 %v1597_v39  ;;  %v8175_v7 = vld [vmem:[%s11657_s4] ss:$0 sm:$0xff]  ;;  %v1763_v12 = vld [vmem:[#allocation7 + $0x70] sm:$0xff]  ;;  %v1761_v39 = vld [vmem:[#allocation7 + $0x60] sm:$0xff]  ;;  %s11564_s4 = smov 48  }
 0x12d   : > { %1639 = vmatpush.msra.mxu3 %v1615_v44  ;;  %v1762_v15 = vld [vmem:[#allocation7 + $0x68] sm:$0xff] }
 0x12e   : > { %1667 = vmatpush.msrb.mxu0 %v1596_v40  ;;  %1716 = vmatpush.msrb.mxu1 %v1695_v45  ;;  %v1760_v40 = vld [vmem:[#allocation7 + $0x58] sm:$0xff]  ;;  %v1758_v44 = vld [vmem:[#allocation7 + $0x48] sm:$0xff]  ;;  %v1780_v45 = vld [vmem:[#allocation7 + $0xf0] sm:$0xff] }
 0x12f   : > { %1640 = vmatpush.msra.mxu3 %v1614_v47  ;;  %v1757_v47 = vld [vmem:[#allocation7 + $0x40] sm:$0xff] }
 0x130   : > { %7719 = vmatmul.msk.f32.gmra.mxu1 %vm1470_vm2, %v1455_v13  ;;  %1668 = vmatpush.msrb.mxu0 %v1595_v41  ;;  %v1781_v41 = vld [vmem:[#allocation7 + $0xf8] sm:$0xff] }
 0x131   : > { %1717 = vmatpush.msrb.mxu1 %v1694_v48  ;;  %1641 = vmatpush.msra.mxu3 %v1613_v50  ;;  %v1779_v48 = vld [vmem:[#allocation7 + $0xe8] sm:$0xff]  ;;  %v1756_v50 = vld [vmem:[#allocation7 + $0x38] sm:$0xff] }
 0x132   : > { %1669 = vmatpush.msrb.mxu0 %v1594_v42  ;;  %v1861_v42 = vld [vmem:[#allocation7 + $0x178] sm:$0xff]  ;;  %1793 = vmatpush.msrb.mxu2 %v1781_v41 }
 0x133   : > { %7724 = vmatmul.msk.f32.gmra.mxu2 %vm1470_vm2, %v1542_v20  ;;  %7716 = vmatmul.msk.f32.gmra.mxu0 %vm1470_vm2, %v1468_v21 }
 0x134   : > { %1670 = vmatpush.msrb.mxu0 %v1593_v43  ;;  %1718 = vmatpush.msrb.mxu1 %v1693_v51  ;;  %v1759_v43 = vld [vmem:[#allocation7 + $0x50] sm:$0xff]  ;;  %v1778_v51 = vld [vmem:[#allocation7 + $0xe0] sm:$0xff] }
 0x135   : > { %1642 = vmatpush.msra.mxu3 %v1612_v53  ;;  %1794 = vmatpush.msrb.mxu2 %v1780_v45  ;;  %v1755_v53 = vld [vmem:[#allocation7 + $0x30] sm:$0xff] }
 0x136   : > { %1671 = vmatpush.msrb.mxu0 %v1592_v46  ;;  %1719 = vmatpush.msrb.mxu1 %v1692_v54  ;;  %v1860_v46 = vld [vmem:[#allocation7 + $0x170] sm:$0xff]  ;;  %v1777_v54 = vld [vmem:[#allocation7 + $0xd8] sm:$0xff] }
 0x137   : > { %1643 = vmatpush.msra.mxu3 %v1611_v56  ;;  %1795 = vmatpush.msrb.mxu2 %v1779_v48  ;;  %v1754_v56 = vld [vmem:[#allocation7 + $0x28] sm:$0xff] }
 0x138   : > { %1672 = vmatpush.msrb.mxu0 %v1591_v49  ;;  %1720 = vmatpush.msrb.mxu1 %v1691_v57  ;;  %v1859_v49 = vld [vmem:[#allocation7 + $0x168] sm:$0xff]  ;;  %v1776_v57 = vld [vmem:[#allocation7 + $0xd0] sm:$0xff] }
 0x139   : > { %1644 = vmatpush.msra.mxu3 %v1610_v58  ;;  %1796 = vmatpush.msrb.mxu2 %v1778_v51  ;;  %v1856_v58 = vld [vmem:[#allocation7 + $0x150] sm:$0xff] }
 0x13a   : > { %1673 = vmatpush.msrb.mxu0 %v1590_v52  ;;  %1721 = vmatpush.msrb.mxu1 %v1690_v59  ;;  %v1858_v52 = vld [vmem:[#allocation7 + $0x160] sm:$0xff] }
 0x13b   : > { %1645 = vmatpush.msra.mxu3 %v1609_v60  ;;  %1797 = vmatpush.msrb.mxu2 %v1777_v54  ;;  %v1753_v59 = vld [vmem:[#allocation7 + $0x20] sm:$0xff]  ;;  %v1775_v60 = vld [vmem:[#allocation7 + $0xc8] sm:$0xff] }
 0x13c   : > { %1674 = vmatpush.msrb.mxu0 %v1589_v55  ;;  %1722 = vmatpush.msrb.mxu1 %v1689_v61  ;;  %v1857_v55 = vld [vmem:[#allocation7 + $0x158] sm:$0xff]  ;;  %v1855_v61 = vld [vmem:[#allocation7 + $0x148] sm:$0xff] }
 0x13d   : > { %1646 = vmatpush.msra.mxu3 %v1608_v62  ;;  %1798 = vmatpush.msrb.mxu2 %v1776_v57  ;;  %v1752_v62 = vld [vmem:[#allocation7 + $0x18] sm:$0xff] }
 0x13e   : > { %1723 = vmatpush.msrb.mxu1 %v1688_v63  ;;  %1870 = vmatpush.msra.mxu0 %v1861_v42  ;;  %v1774_v63 = vld [vmem:[#allocation7 + $0xc0] sm:$0xff] }
 0x13f   : > { %1647 = vmatpush.msra.mxu3 %v1607_v0  ;;  %1799 = vmatpush.msrb.mxu2 %v1775_v60  ;;  %v1854_v0 = vld [vmem:[#allocation7 + $0x140] sm:$0xff]  ;;  %v1918_v60 = vld [vmem:[#allocation9 + $0x48] sm:$0xff] }
 0x140   : > { %1724 = vmatpush.msrb.mxu1 %v1687_v1  ;;  %1871 = vmatpush.msra.mxu0 %v1860_v46  ;;  %v1751_v1 = vld [vmem:[#allocation7 + $0x10] sm:$0xff] }
 0x141   : > { %1648 = vmatpush.msra.mxu3 %v1606_v2  ;;  %1800 = vmatpush.msrb.mxu2 %v1774_v63  ;;  %v1773_v2 = vld [vmem:[#allocation7 + $0xb8] sm:$0xff]  ;;  %v1917_v63 = vld [vmem:[#allocation9 + $0x40] sm:$0xff] }
 0x142   : > { %1725 = vmatpush.msrb.mxu1 %v1686_v3  ;;  %1872 = vmatpush.msra.mxu0 %v1859_v49  ;;  %v1853_v3 = vld [vmem:[#allocation7 + $0x138] sm:$0xff] }
 0x143   : > { %1819 = vmatpush.msrb.mxu3 %v1764_v11  ;;  %1801 = vmatpush.msrb.mxu2 %v1773_v2  ;;  %v1850_v11 = vld [vmem:[#allocation7 + $0x120] sm:$0xff]  ;;  %v1916_v2 = vld [vmem:[#allocation9 + $0x38] sm:$0xff] }
 0x144   : > { %1873 = vmatpush.msra.mxu0 %v1858_v52 }
 0x145   : > { %1820 = vmatpush.msrb.mxu3 %v1763_v12  ;;  %v1769_v12 = vld [vmem:[#allocation7 + $0x98] sm:$0xff] }
 0x146   : > { %1874 = vmatpush.msra.mxu0 %v1857_v55 }
 0x147   : > { %1821 = vmatpush.msrb.mxu3 %v1762_v15  ;;  %v1848_v15 = vld [vmem:[#allocation7 + $0x110] sm:$0xff] }
 0x148   : > { %1875 = vmatpush.msra.mxu0 %v1856_v58  ;;  %v1941_v58 = vld [vmem:[#allocation9 + $0xf8] sm:$0xff] }
 0x149   : > { %1822 = vmatpush.msrb.mxu3 %v1761_v39  ;;  %1949 = vmatpush.msra.mxu1 %v1941_v58  ;;  %v2639_v58 = vld [vmem:[%s11660_s13 + $0x50] sm:$0xff] }
 0x14a   : > { %1876 = vmatpush.msra.mxu0 %v1855_v61  ;;  %v1940_v61 = vld [vmem:[#allocation9 + $0xf0] sm:$0xff] }
 0x14b   : > { %1823 = vmatpush.msrb.mxu3 %v1760_v40  ;;  %1950 = vmatpush.msra.mxu1 %v1940_v61 }
 0x14c   : > { %1877 = vmatpush.msra.mxu0 %v1854_v0  ;;  %v1939_v0 = vld [vmem:[#allocation9 + $0xe8] sm:$0xff] }
 0x14d   : > { %1824 = vmatpush.msrb.mxu3 %v1759_v43  ;;  %1951 = vmatpush.msra.mxu1 %v1939_v0  ;;  %v2638_v0 = vld [vmem:[%s11660_s13 + $0x48] sm:$0xff] }
 0x14e   : > { %1878 = vmatpush.msra.mxu0 %v1853_v3  ;;  %v1938_v3 = vld [vmem:[#allocation9 + $0xe0] sm:$0xff] }
 0x14f   : > { %1825 = vmatpush.msrb.mxu3 %v1758_v44  ;;  %1952 = vmatpush.msra.mxu1 %v1938_v3 }
 0x151   : > { %1826 = vmatpush.msrb.mxu3 %v1757_v47 }
 0x153   : > { %1827 = vmatpush.msrb.mxu3 %v1756_v50 }
 0x155   : > { %1828 = vmatpush.msrb.mxu3 %v1755_v53 }
 0x157   : > { %1829 = vmatpush.msrb.mxu3 %v1754_v56 }
 0x159   : > { %1830 = vmatpush.msrb.mxu3 %v1753_v59  ;;  %v2011_v59 = vld [vmem:[#allocation9 + $0x178] sm:$0xff] }
 0x15b   : > { %1831 = vmatpush.msrb.mxu3 %v1752_v62  ;;  %v2010_v62 = vld [vmem:[#allocation9 + $0x170] sm:$0xff] }
 0x15d   : > { %1832 = vmatpush.msrb.mxu3 %v1751_v1  ;;  %v2009_v1 = vld [vmem:[#allocation9 + $0x168] sm:$0xff] }
 0x19d   : > { %v1526_v5 = vpop.f32.mrf.mxu1 }
 0x1a0   : > { %v1494_v4 = vpop.f32.mrf.mxu0 }
 0x1a1   : > { %v1527_v6 = vadd.f32 %v1526_v5, %v1494_v4  ;;  %v1750_v4 = vld [vmem:[#allocation7 + $0x8] sm:$0xff]  ;;  %v1772_v5 = vld [vmem:[#allocation7 + $0xb0] sm:$0xff] }
 0x1a2   : > { %1833 = vmatpush.msrb.mxu3 %v1750_v4  ;;  %1802 = vmatpush.msrb.mxu2 %v1772_v5  ;;  %v2008_v4 = vld [vmem:[#allocation9 + $0x160] sm:$0xff]  ;;  %v1915_v5 = vld [vmem:[#allocation9 + $0x30] sm:$0xff] }
 0x1a5   : > { %v1529_v14 = vpop.f32.mrf.mxu1 }
 0x1a6   : > { %v1567_v8 = vpop.f32.mrf.mxu2 }
 0x1a7   : > { %v1576_v9 = vadd.f32 %v1567_v8, %v1527_v6  ;;  %v1852_v6 = vld [vmem:[#allocation7 + $0x130] sm:$0xff]  ;;  %v1771_v8 = vld [vmem:[#allocation7 + $0xa8] sm:$0xff] }
 0x1a8   : > { %v1497_v10 = vpop.f32.mrf.mxu0  ;;  %1879 = vmatpush.msra.mxu0 %v1852_v6  ;;  %1803 = vmatpush.msrb.mxu2 %v1771_v8  ;;  %v1937_v6 = vld [vmem:[#allocation9 + $0xd8] sm:$0xff]  ;;  %v1914_v8 = vld [vmem:[#allocation9 + $0x28] sm:$0xff] }
 0x1a9   : > { %v1583_v13 = vadd.f32 %v8175_v7, %v1576_v9  ;;  %v1530_v16 = vadd.f32 %v1529_v14, %v1497_v10  ;;  %v1851_v9 = vld [vmem:[#allocation7 + $0x128] sm:$0xff]  ;;  %v1770_v10 = vld [vmem:[#allocation7 + $0xa0] sm:$0xff]  ;;  %v1768_v14 = vld [vmem:[#allocation7 + $0x90] sm:$0xff]  ;;  %1953 = vmatpush.msra.mxu1 %v1937_v6 }
 0x1aa   : > { %1880 = vmatpush.msra.mxu0 %v1851_v9  ;;  %1804 = vmatpush.msrb.mxu2 %v1770_v10  ;;  %v1936_v9 = vld [vmem:[#allocation9 + $0xd0] sm:$0xff] }
 0x1ab   : > { %v1586_v17 = vmax.f32 %v1583_v13, 0.0  ;;  %v1849_v13 = vld [vmem:[#allocation7 + $0x118] sm:$0xff]  ;;  %v2006_v10 = vld [vmem:[#allocation9 + $0x150] sm:$0xff]  ;;  %1954 = vmatpush.msra.mxu1 %v1936_v9 }
 0x1ac   : > { %1881 = vmatpush.msra.mxu0 %v1850_v11  ;;  %1805 = vmatpush.msrb.mxu2 %v1769_v12  ;;  %v1913_v11 = vld [vmem:[#allocation9 + $0x20] sm:$0xff]  ;;  %v1935_v12 = vld [vmem:[#allocation9 + $0xc8] sm:$0xff] }
 0x1ad   : > { %1675 = vmatmul.f32.vlgmr.msrb.gmra.mxu0 %v1586_v17  ;;  %v1532_v22 = vpop.f32.mrf.mxu1  ;;  %v1625_v25 = vrot.slane %v1586_v17, 1  ;;  %v1702_v27 = vrot.slane %v1586_v17, 2  ;;  %v1847_v17 = vld [vmem:[#allocation7 + $0x108] sm:$0xff]  ;;  %1955 = vmatpush.msra.mxu1 %v1935_v12 }
 0x1ae   : > { %v1570_v18 = vpop.f32.mrf.mxu2  ;;  %1882 = vmatpush.msra.mxu0 %v1849_v13  ;;  %1806 = vmatpush.msrb.mxu2 %v1768_v14  ;;  %v2005_v13 = vld [vmem:[#allocation9 + $0x148] sm:$0xff]  ;;  %v1912_v14 = vld [vmem:[#allocation9 + $0x18] sm:$0xff] }
 0x1af   : > { %v1577_v19 = vadd.f32 %v1570_v18, %v1530_v16  ;;  %v1767_v16 = vld [vmem:[#allocation7 + $0x88] sm:$0xff]  ;;  %v1766_v18 = vld [vmem:[#allocation7 + $0x80] sm:$0xff] }
 0x1b0   : > { %v1500_v20 = vpop.f32.mrf.mxu0  ;;  %1883 = vmatpush.msra.mxu0 %v1848_v15  ;;  %1807 = vmatpush.msrb.mxu2 %v1767_v16  ;;  %v1934_v15 = vld [vmem:[#allocation9 + $0xc0] sm:$0xff] }
 0x1b1   : > { %v1584_v21 = vadd.f32 %v8175_v7, %v1577_v19  ;;  %v1533_v23 = vadd.f32 %v1532_v22, %v1500_v20  ;;  %v1846_v19 = vld [vmem:[#allocation7 + $0x100] sm:$0xff]  ;;  %1956 = vmatpush.msra.mxu1 %v1934_v15 }
 0x1b2   : > { %1884 = vmatpush.msra.mxu0 %v1847_v17  ;;  %1808 = vmatpush.msrb.mxu2 %v1766_v18  ;;  %v2004_v16 = vld [vmem:[#allocation9 + $0x140] sm:$0xff]  ;;  %v1911_v17 = vld [vmem:[#allocation9 + $0x10] sm:$0xff]  ;;  %v1933_v18 = vld [vmem:[#allocation9 + $0xb8] sm:$0xff] }
 0x1b3   : > { %v1587_v24 = vmax.f32 %v1584_v21, 0.0  ;;  %1957 = vmatpush.msra.mxu1 %v1933_v18 }
 0x1b4   : > { %1885 = vmatpush.msra.mxu0 %v1846_v19  ;;  %v2003_v19 = vld [vmem:[#allocation9 + $0x138] sm:$0xff] }
 0x1b5   : > { %1678 = vmatmul.f32.gmra.mxu0 %v1587_v24  ;;  %v1626_v26 = vrot.slane %v1587_v24, 1  ;;  %v1703_v28 = vrot.slane %v1587_v24, 2  ;;  %v8176_v24 = vld [vmem:[%s11658_s2] ss:$0 sm:$0xff]  ;;  %s11588_s2 = smov 64  }
 0x1b6   : > { %v1573_v29 = vpop.f32.mrf.mxu2 }
 0x1b7   : > { %v1578_v30 = vadd.f32 %v1573_v29, %v1533_v23  ;;  %v1627_v31 = vsel %vm1464_vm1, %v1625_v25, %v1626_v26  ;;  %v1704_v32 = vsel %vm1538_vm0, %v1702_v27, %v1703_v28  ;;  %v1923_v27 = vld [vmem:[#allocation9 + $0x70] sm:$0xff] }
 0x1b8   : > { %1649 = vmatmul.f32.vlgmr.msra.gmra.mxu3 %v1627_v31  ;;  %1726 = vmatmul.f32.vlgmr.msrb.gmra.mxu1 %v1704_v32 }
 0x1b9   : > { %v1585_v33 = vadd.f32 %v8175_v7, %v1578_v30  ;;  %v1749_v7 = vld [vmem:[#allocation7] sm:$0xff]  ;;  %v1922_v30 = vld [vmem:[#allocation9 + $0x68] sm:$0xff] }
 0x1ba   : > { %1834 = vmatpush.msrb.mxu3 %v1749_v7  ;;  %v2007_v7 = vld [vmem:[#allocation9 + $0x158] sm:$0xff] }
 0x1bb   : > { %v1588_v34 = vmax.f32 %v1585_v33, 0.0 }
 0x1bc   : > { %2020 = vmatpush.msra.mxu3 %v2011_v59 }
 0x1bd   : > { %1681 = vmatmul.f32.gmra.mxu0 %v1588_v34  ;;  %v1628_v35 = vrot.slane %v1588_v34, 1  ;;  %v1705_v36 = vrot.slane %v1588_v34, 2  ;;  %v1921_v34 = vld [vmem:[#allocation9 + $0x60] sm:$0xff] }
 0x1be   : > { %2021 = vmatpush.msra.mxu3 %v2010_v62  ;;  %v2062_v62 = vld [vmem:[%s11659_s29 + $0x48] sm:$0xff] }
 0x1bf   : > { %v1629_v37 = vsel %vm1464_vm1, %v1626_v26, %v1628_v35  ;;  %v1706_v38 = vsel %vm1538_vm0, %v1703_v28, %v1705_v36  ;;  %v1924_v26 = vld [vmem:[#allocation9 + $0x78] sm:$0xff] }
 0x1c0   : > { %1652 = vmatmul.f32.gmra.mxu3 %v1629_v37  ;;  %1729 = vmatmul.f32.gmra.mxu1 %v1706_v38  ;;  %v1919_v38 = vld [vmem:[#allocation9 + $0x50] sm:$0xff] }
 0x1c1   : > { %1972 = vmatpush.msra.mxu2 %v1924_v26  ;;  %2022 = vmatpush.msra.mxu3 %v2009_v1  ;;  %v1930_v26 = vld [vmem:[#allocation9 + $0xa0] sm:$0xff]  ;;  %v3213_v1 = vld [vmem:[#allocation10 + $0x48] sm:$0xff] }
 0x1c3   : > { %1973 = vmatpush.msra.mxu2 %v1923_v27  ;;  %2023 = vmatpush.msra.mxu3 %v2008_v4  ;;  %v2000_v27 = vld [vmem:[#allocation9 + $0x120] sm:$0xff] }
 0x1c5   : > { %1974 = vmatpush.msra.mxu2 %v1922_v30  ;;  %2024 = vmatpush.msra.mxu3 %v2007_v7  ;;  %v1928_v30 = vld [vmem:[#allocation9 + $0x90] sm:$0xff] }
 0x1c7   : > { %1975 = vmatpush.msra.mxu2 %v1921_v34  ;;  %2025 = vmatpush.msra.mxu3 %v2006_v10  ;;  %v1926_v34 = vld [vmem:[#allocation9 + $0x80] sm:$0xff] }
 0x1c8   : > { %1655 = vmatmul.f32.gmra.mxu3 %v1628_v35  ;;  %1732 = vmatmul.f32.gmra.mxu1 %v1705_v36  ;;  %v1920_v36 = vld [vmem:[#allocation9 + $0x58] sm:$0xff] }
 0x1c9   : > { %1976 = vmatpush.msra.mxu2 %v1920_v36  ;;  %2026 = vmatpush.msra.mxu3 %v2005_v13 }
 0x1cb   : > { %1977 = vmatpush.msra.mxu2 %v1919_v38  ;;  %2027 = vmatpush.msra.mxu3 %v2004_v16  ;;  %v2644_v38 = vld [vmem:[%s11660_s13 + $0x78] sm:$0xff] }
 0x1cd   : > { %1978 = vmatpush.msra.mxu2 %v1918_v60  ;;  %2028 = vmatpush.msra.mxu3 %v2003_v19  ;;  %v3214_v60 = vld [vmem:[#allocation10 + $0x50] sm:$0xff] }
 0x1cf   : > { %1979 = vmatpush.msra.mxu2 %v1917_v63 }
 0x1d1   : > { %1980 = vmatpush.msra.mxu2 %v1916_v2 }
 0x1d3   : > { %1981 = vmatpush.msra.mxu2 %v1915_v5 }
 0x1d5   : > { %1982 = vmatpush.msra.mxu2 %v1914_v8 }
 0x1d7   : > { %1983 = vmatpush.msra.mxu2 %v1913_v11 }
 0x1d9   : > { %1984 = vmatpush.msra.mxu2 %v1912_v14 }
 0x1db   : > { %1985 = vmatpush.msra.mxu2 %v1911_v17 }
 0x22a   : > { %v1676_v20 = vpop.f32.mrf.mxu0 }
 0x232   : > { %v1679_v29 = vpop.f32.mrf.mxu0 }
 0x235   : > { %v1727_v21 = vpop.f32.mrf.mxu1 }
 0x23a   : > { %v1682_v41 = vpop.f32.mrf.mxu0 }
 0x23b   : > { %v1650_v22 = vpop.f32.mrf.mxu3 }
 0x23c   : > { %v1677_v23 = vadd.f32 %v1676_v20, %v1650_v22  ;;  %v1910_v20 = vld [vmem:[#allocation9 + $0x8] sm:$0xff]  ;;  %v2002_v22 = vld [vmem:[#allocation9 + $0x130] sm:$0xff] }
 0x23d   : > { %v1730_v32 = vpop.f32.mrf.mxu1  ;;  %1986 = vmatpush.msra.mxu2 %v1910_v20  ;;  %2029 = vmatpush.msra.mxu3 %v2002_v22 }
 0x23e   : > { %v1736_v25 = vadd.f32 %v1727_v21, %v1677_v23  ;;  %v1932_v21 = vld [vmem:[#allocation9 + $0xb0] sm:$0xff]  ;;  %v1909_v23 = vld [vmem:[#allocation9] sm:$0xff] }
 0x23f   : > { %1958 = vmatpush.msra.mxu1 %v1932_v21  ;;  %1987 = vmatpush.msra.mxu2 %v1909_v23  ;;  %v2061_v23 = vld [vmem:[%s11659_s29 + $0x40] sm:$0xff] }
 0x240   : > { %v1743_v28 = vadd.f32 %v8176_v24, %v1736_v25  ;;  %v2001_v25 = vld [vmem:[#allocation9 + $0x128] sm:$0xff] }
 0x241   : > { %2030 = vmatpush.msra.mxu3 %v2001_v25  ;;  %v3212_v25 = vld [vmem:[#allocation10 + $0x40] sm:$0xff] }
 0x242   : > { %v1746_v31 = vmax.f32 %v1743_v28, 0.0  ;;  %v1929_v28 = vld [vmem:[#allocation9 + $0x98] sm:$0xff] }
 0x243   : > { %v1653_v33 = vpop.f32.mrf.mxu3  ;;  %2031 = vmatpush.msra.mxu3 %v2000_v27  ;;  %v2636_v27 = vld [vmem:[%s11660_s13 + $0x38] sm:$0xff] }
 0x244   : > { %v1680_v35 = vadd.f32 %v1679_v29, %v1653_v33  ;;  %1835 = vmatmul.f32.vlgmr.msrb.gmra.mxu3 %v1746_v31  ;;  %v1785_v43 = vrot.slane %v1746_v31, 1  ;;  %v1862_v46 = vrot.slane %v1746_v31, 2  ;;  %v1999_v29 = vld [vmem:[#allocation9 + $0x118] sm:$0xff]  ;;  %v1998_v31 = vld [vmem:[#allocation9 + $0x110] sm:$0xff]  ;;  %v1997_v33 = vld [vmem:[#allocation9 + $0x108] sm:$0xff] }
 0x245   : > { %v1733_v48 = vpop.f32.mrf.mxu1  ;;  %2032 = vmatpush.msra.mxu3 %v1999_v29  ;;  %v2059_v29 = vld [vmem:[%s11659_s29 + $0x30] sm:$0xff] }
 0x246   : > { %v1737_v37 = vadd.f32 %v1730_v32, %v1680_v35  ;;  %v1927_v32 = vld [vmem:[#allocation9 + $0x88] sm:$0xff]  ;;  %v1996_v35 = vld [vmem:[#allocation9 + $0x100] sm:$0xff] }
 0x247   : > { %2033 = vmatpush.msra.mxu3 %v1998_v31  ;;  %v3210_v31 = vld [vmem:[#allocation10 + $0x30] sm:$0xff] }
 0x248   : > { %v1744_v39 = vadd.f32 %v8176_v24, %v1737_v37  ;;  %v2068_v37 = vld [vmem:[%s11659_s29 + $0x78] sm:$0xff] }
 0x249   : > { %2034 = vmatpush.msra.mxu3 %v1997_v33  ;;  %2069 = vmatpush.msrb.mxu0 %v2068_v37  ;;  %v2634_v33 = vld [vmem:[%s11660_s13 + $0x28] sm:$0xff]  ;;  %v3208_v37 = vld [vmem:[#allocation10 + $0x20] sm:$0xff] }
 0x24a   : > { %v1747_v40 = vmax.f32 %v1744_v39, 0.0  ;;  %v3219_v39 = vld [vmem:[#allocation10 + $0x78] sm:$0xff] }
 0x24b   : > { %v1656_v42 = vpop.f32.mrf.mxu3  ;;  %2035 = vmatpush.msra.mxu3 %v1996_v35  ;;  %v2057_v35 = vld [vmem:[%s11659_s29 + $0x20] sm:$0xff] }
 0x24c   : > { %v1683_v44 = vadd.f32 %v1682_v41, %v1656_v42  ;;  %1838 = vmatmul.f32.gmra.mxu3 %v1747_v40  ;;  %v1786_v45 = vrot.slane %v1747_v40, 1  ;;  %v1863_v47 = vrot.slane %v1747_v40, 2  ;;  %v2067_v40 = vld [vmem:[%s11659_s29 + $0x70] sm:$0xff]  ;;  %v3218_v42 = vld [vmem:[#allocation10 + $0x70] sm:$0xff] }
 0x24d   : > { %v2643_v41 = vld [vmem:[%s11660_s13 + $0x70] sm:$0xff]  ;;  %2070 = vmatpush.msrb.mxu0 %v2067_v40 }
 0x24e   : > { %v1738_v49 = vadd.f32 %v1733_v48, %v1683_v44  ;;  %v1787_v50 = vsel %vm1464_vm1, %v1785_v43, %v1786_v45  ;;  %v1864_v51 = vsel %vm1538_vm0, %v1862_v46, %v1863_v47  ;;  %v2066_v44 = vld [vmem:[%s11659_s29 + $0x68] sm:$0xff]  ;;  %v3217_v46 = vld [vmem:[#allocation10 + $0x68] sm:$0xff] }
 0x24f   : > { %1809 = vmatmul.f32.vlgmr.msrb.gmra.mxu2 %v1787_v50  ;;  %1886 = vmatmul.f32.vlgmr.msra.gmra.mxu0 %v1864_v51  ;;  %v2065_v48 = vld [vmem:[%s11659_s29 + $0x60] sm:$0xff]  ;;  %v3207_v40 = vld [vmem:[#allocation10 + $0x18] sm:$0xff] }
 0x250   : > { %v1745_v52 = vadd.f32 %v8176_v24, %v1738_v49  ;;  %v1931_v24 = vld [vmem:[#allocation9 + $0xa8] sm:$0xff]  ;;  %3220 = vmatpush.msrb.mxu2 %v3219_v39  ;;  %2071 = vmatpush.msrb.mxu0 %v2066_v44  ;;  %v2054_v44 = vld [vmem:[%s11659_s29 + $0x8] sm:$0xff] }
 0x251   : > { %1959 = vmatpush.msra.mxu1 %v1931_v24  ;;  %v2641_v49 = vld [vmem:[%s11660_s13 + $0x60] sm:$0xff]  ;;  %v2632_v39 = vld [vmem:[%s11660_s13 + $0x18] sm:$0xff] }
 0x252   : > { %v1748_v53 = vmax.f32 %v1745_v52, 0.0  ;;  %3221 = vmatpush.msrb.mxu2 %v3218_v42  ;;  %v8177_v51 = vld [vmem:[%s11661_s18] ss:$0 sm:$0xff]  ;;  %v3216_v52 = vld [vmem:[#allocation10 + $0x60] sm:$0xff]  ;;  %2072 = vmatpush.msrb.mxu0 %v2065_v48  ;;  %s11578_s18 = smov 80  }
 0x253   : > { %1960 = vmatpush.msra.mxu1 %v1930_v26  ;;  %v2637_v24 = vld [vmem:[%s11660_s13 + $0x40] sm:$0xff]  ;;  %v2060_v26 = vld [vmem:[%s11659_s29 + $0x38] sm:$0xff]  ;;  %v2631_v42 = vld [vmem:[%s11660_s13 + $0x10] sm:$0xff] }
 0x254   : > { %1841 = vmatmul.f32.gmra.mxu3 %v1748_v53  ;;  %v1788_v54 = vrot.slane %v1748_v53, 1  ;;  %v1865_v55 = vrot.slane %v1748_v53, 2  ;;  %3222 = vmatpush.msrb.mxu2 %v3217_v46  ;;  %v2064_v53 = vld [vmem:[%s11659_s29 + $0x58] sm:$0xff]  ;;  %v2629_v48 = vld [vmem:[%s11660_s13] sm:$0xff] }
 0x255   : > { %1961 = vmatpush.msra.mxu1 %v1929_v28  ;;  %2073 = vmatpush.msrb.mxu0 %v2064_v53  ;;  %v3211_v28 = vld [vmem:[#allocation10 + $0x38] sm:$0xff]  ;;  %v3205_v46 = vld [vmem:[#allocation10 + $0x8] sm:$0xff] }
 0x256   : > { %v1789_v56 = vsel %vm1464_vm1, %v1786_v45, %v1788_v54  ;;  %v1866_v57 = vsel %vm1538_vm0, %v1863_v47, %v1865_v55  ;;  %v2642_v45 = vld [vmem:[%s11660_s13 + $0x68] sm:$0xff]  ;;  %3223 = vmatpush.msrb.mxu2 %v3216_v52  ;;  %v8178_v53 = vld [vmem:[%s11662_s10] ss:$0 sm:$0xff]  ;;  %s11570_s10 = smov 88  }
 0x257   : > { %1812 = vmatmul.f32.gmra.mxu2 %v1789_v56  ;;  %1889 = vmatmul.f32.gmra.mxu0 %v1866_v57  ;;  %v3215_v56 = vld [vmem:[#allocation10 + $0x58] sm:$0xff] }
 0x258   : > { %1962 = vmatpush.msra.mxu1 %v1928_v30  ;;  %v2063_v57 = vld [vmem:[%s11659_s29 + $0x50] sm:$0xff]  ;;  %3224 = vmatpush.msrb.mxu2 %v3215_v56 }
 0x259   : > { %2074 = vmatpush.msrb.mxu0 %v2063_v57  ;;  %v2635_v30 = vld [vmem:[%s11660_s13 + $0x30] sm:$0xff] }
 0x25a   : > { %1963 = vmatpush.msra.mxu1 %v1927_v32  ;;  %3225 = vmatpush.msrb.mxu2 %v3214_v60  ;;  %v2058_v32 = vld [vmem:[%s11659_s29 + $0x28] sm:$0xff] }
 0x25b   : > { %2075 = vmatpush.msrb.mxu0 %v2062_v62 }
 0x25c   : > { %1964 = vmatpush.msra.mxu1 %v1926_v34  ;;  %3226 = vmatpush.msrb.mxu2 %v3213_v1  ;;  %v3209_v34 = vld [vmem:[#allocation10 + $0x28] sm:$0xff] }
 0x25d   : > { %2076 = vmatpush.msrb.mxu0 %v2061_v23 }
 0x25e   : > { %2645 = vmatpush.msrb.mxu1 %v2644_v38  ;;  %3227 = vmatpush.msrb.mxu2 %v3212_v25  ;;  %v2056_v38 = vld [vmem:[%s11659_s29 + $0x18] sm:$0xff] }
 0x25f   : > { %1815 = vmatmul.f32.gmra.mxu2 %v1788_v54  ;;  %1892 = vmatmul.f32.gmra.mxu0 %v1865_v55  ;;  %v2640_v54 = vld [vmem:[%s11660_s13 + $0x58] sm:$0xff] }
 0x260   : > { %2646 = vmatpush.msrb.mxu1 %v2643_v41  ;;  %2077 = vmatpush.msrb.mxu0 %v2060_v26  ;;  %v2055_v41 = vld [vmem:[%s11659_s29 + $0x10] sm:$0xff] }
 0x261   : > { %3228 = vmatpush.msrb.mxu2 %v3211_v28 }
 0x262   : > { %2647 = vmatpush.msrb.mxu1 %v2642_v45  ;;  %2078 = vmatpush.msrb.mxu0 %v2059_v29  ;;  %v2630_v45 = vld [vmem:[%s11660_s13 + $0x8] sm:$0xff] }
 0x263   : > { %3229 = vmatpush.msrb.mxu2 %v3210_v31 }
 0x264   : > { %2648 = vmatpush.msrb.mxu1 %v2641_v49  ;;  %2079 = vmatpush.msrb.mxu0 %v2058_v32  ;;  %v3204_v49 = vld [vmem:[#allocation10] sm:$0xff] }
 0x265   : > { %3230 = vmatpush.msrb.mxu2 %v3209_v34 }
 0x266   : > { %2649 = vmatpush.msrb.mxu1 %v2640_v54  ;;  %2080 = vmatpush.msrb.mxu0 %v2057_v35 }
 0x267   : > { %3231 = vmatpush.msrb.mxu2 %v3208_v37 }
 0x268   : > { %2650 = vmatpush.msrb.mxu1 %v2639_v58  ;;  %2081 = vmatpush.msrb.mxu0 %v2056_v38 }
 0x269   : > { %3232 = vmatpush.msrb.mxu2 %v3207_v40 }
 0x26a   : > { %2651 = vmatpush.msrb.mxu1 %v2638_v0  ;;  %2082 = vmatpush.msrb.mxu0 %v2055_v41 }
 0x26c   : > { %2652 = vmatpush.msrb.mxu1 %v2637_v24  ;;  %2083 = vmatpush.msrb.mxu0 %v2054_v44 }
 0x26e   : > { %2653 = vmatpush.msrb.mxu1 %v2636_v27 }
 0x270   : > { %2654 = vmatpush.msrb.mxu1 %v2635_v30 }
 0x272   : > { %2655 = vmatpush.msrb.mxu1 %v2634_v33 }
 0x2c7   : > { %v1836_v36 = vpop.f32.mrf.mxu3 }
 0x2cc   : > { %v1887_v43 = vpop.f32.mrf.mxu0 }
 0x2cf   : > { %v1839_v61 = vpop.f32.mrf.mxu3 }
 0x2d2   : > { %v1810_v47 = vpop.f32.mrf.mxu2 }
 0x2d3   : > { %v1837_v50 = vadd.f32 %v1836_v36, %v1810_v47  ;;  %v2633_v36 = vld [vmem:[%s11660_s13 + $0x20] sm:$0xff] }
 0x2d4   : > { %v1890_v2 = vpop.f32.mrf.mxu0  ;;  %2656 = vmatpush.msrb.mxu1 %v2633_v36  ;;  %v2053_v47 = vld [vmem:[%s11659_s29] sm:$0xff] }
 0x2d5   : > { %v1896_v55 = vadd.f32 %v1887_v43, %v1837_v50  ;;  %v3206_v43 = vld [vmem:[#allocation10 + $0x10] sm:$0xff]  ;;  %2084 = vmatpush.msrb.mxu0 %v2053_v47 }
 0x2d6   : > { %2657 = vmatpush.msrb.mxu1 %v2632_v39  ;;  %3233 = vmatpush.msrb.mxu2 %v3206_v43 }
 0x2d7   : > { %v1903_v59 = vadd.f32 %v8177_v51, %v1896_v55  ;;  %v1842_v8 = vpop.f32.mrf.mxu3 }
 0x2d8   : > { %2658 = vmatpush.msrb.mxu1 %v2631_v42  ;;  %3234 = vmatpush.msrb.mxu2 %v3205_v46 }
 0x2d9   : > { %v1906_v63 = vmax.f32 %v1903_v59, 0.0 }
 0x2da   : > { %v1813_v3 = vpop.f32.mrf.mxu2  ;;  %2659 = vmatpush.msrb.mxu1 %v2630_v45  ;;  %3235 = vmatpush.msrb.mxu2 %v3204_v49 }
 0x2db   : > { %v1840_v4 = vadd.f32 %v1839_v61, %v1813_v3  ;;  %1988 = vmatmul.f32.vlgmr.msra.gmra.mxu2 %v1906_v63  ;;  %v1944_v10 = vrot.slane %v1906_v63, 1  ;;  %v2013_v13 = vrot.slane %v1906_v63, 2 }
 0x2dc   : > { %v1893_v15 = vpop.f32.mrf.mxu0  ;;  %2660 = vmatpush.msrb.mxu1 %v2629_v48 }
 0x2dd   : > { %v1897_v5 = vadd.f32 %v1890_v2, %v1840_v4 }
 0x2df   : > { %v1904_v6 = vadd.f32 %v8177_v51, %v1897_v5 }
 0x2e1   : > { %v1907_v7 = vmax.f32 %v1904_v6, 0.0 }
 0x2e2   : > { %v1816_v9 = vpop.f32.mrf.mxu2 }
 0x2e3   : > { %v1843_v11 = vadd.f32 %v1842_v8, %v1816_v9  ;;  %1991 = vmatmul.f32.gmra.mxu2 %v1907_v7  ;;  %v1945_v12 = vrot.slane %v1907_v7, 1  ;;  %v2014_v14 = vrot.slane %v1907_v7, 2 }
 0x2e5   : > { %v1898_v16 = vadd.f32 %v1893_v15, %v1843_v11  ;;  %v1946_v17 = vsel %vm1464_vm1, %v1944_v10, %v1945_v12  ;;  %v2015_v18 = vsel %vm1538_vm0, %v2013_v13, %v2014_v14  ;;  %v8890_v11 = vmov 1983009808  }
 0x2e6   : > { %1965 = vmatmul.f32.vlgmr.msra.gmra.mxu1 %v1946_v17  ;;  %2036 = vmatmul.f32.vlgmr.msra.gmra.mxu3 %v2015_v18  ;;  %vm5675_vm1 = vcmask 982016  }
 0x2e7   : > { %v1905_v19 = vadd.f32 %v8177_v51, %v1898_v16 }
 0x2e9   : > { %v1908_v20 = vmax.f32 %v1905_v19, 0.0 }
 0x2eb   : > { %v2016_v21 = vrot.slane %v1908_v20, 2  ;;  %v8891_v20 = vmov 1934713408  }
 0x2ed   : > { %v2017_v22 = vsel %vm1538_vm0, %v2014_v14, %v2016_v21  ;;  %v2238_v21 = vunpack.c.l.s4 %v8891_v20  ;;  %vm5672_vm0 = vcmask 916480  }
 0x2ee   : > { %1968 = vmatmul.f32.gmra.mxu1 %v1945_v12  ;;  %2039 = vmatmul.f32.gmra.mxu3 %v2017_v22  ;;  %v2190_v12 = vunpack.c.l.s4 %v8890_v11 }
 0x2ef   : > { %v9561_v28 = vunpack.c.0.s8 %v2238_v21 }
 0x2f0   : > { %v9546_v17 = vunpack.c.0.s8 %v2190_v12 }
 0x35e   : > { %v1989_v51 = vpop.f32.mrf.mxu2 }
 0x363   : > { %v1966_v50 = vpop.f32.mrf.mxu1 }
 0x364   : > { %v1990_v52 = vadd.f32 %v1989_v51, %v1966_v50 }
 0x366   : > { %v1992_v59 = vpop.f32.mrf.mxu2 }
 0x369   : > { %v2037_v54 = vpop.f32.mrf.mxu3 }
 0x36a   : > { %v2043_v55 = vadd.f32 %v2037_v54, %v1990_v52 }
 0x36b   : > { %v1969_v57 = vpop.f32.mrf.mxu1 }
 0x36c   : > { %v2049_v56 = vadd.f32 %v8178_v53, %v2043_v55  ;;  %v1993_v60 = vadd.f32 %v1992_v59, %v1969_v57 }
 0x36e   : > { %v9424_v58 = vmax.f32 %v2049_v56, 0.0 }
 0x370   : > { %11663 = vst [vmem:[#allocation70_spill] sm:$0xff] %v9424_v58  ;;  %2085 = vmatmul.f32.vlgmr.msrb.gmra.mxu0 %v9424_v58  ;;  %2661 = vmatmul.f32.vlgmr.msrb.gmra.mxu1 %v9424_v58 }
 0x371   : > { %3236 = vmatmul.f32.vlgmr.msrb.gmra.mxu2 %v9424_v58  ;;  %v2040_v61 = vpop.f32.mrf.mxu3 }
 0x372   : > { %v2044_v62 = vadd.f32 %v2040_v61, %v1993_v60 }
 0x374   : > { %v2050_v63 = vadd.f32 %v8178_v53, %v2044_v62 }
 0x376   : > { %v9429_v0 = vmax.f32 %v2050_v63, 0.0 }
 0x378   : > { %11664 = vst [vmem:[#allocation71_spill] sm:$0xff] %v9429_v0  ;;  %2088 = vmatmul.f32.gmra.mxu0 %v9429_v0  ;;  %2664 = vmatmul.f32.gmra.mxu1 %v9429_v0 }
 0x379   : > { %3239 = vmatmul.f32.gmra.mxu2 %v9429_v0 }
 0x3ed   : > { %v9434_v1 = vpop.f32.mrf.mxu0  ;;  %v9460_v2 = vpop.f32.mrf.mxu1 }
 0x3ee   : > { %2130 = vrot.lane.b32.xlu2 %v9434_v1, %s11582_s1  ;;  %2166 = vrot.lane.b32.xlu1 %v9434_v1, %s11560_s22  ;;  %s11566_s22 = smov 112  }
 0x3ef   : > { %2178 = vrot.lane.b32.xlu0 %v9434_v1, %s11576_s26 }
 0x3f4   : > { %v9585_v52 = vpop.f32.mrf.mxu2 }
 0x3f5   : > { %v9498_v3 = vpop.f32.mrf.mxu0  ;;  %v9530_v7 = vpop.f32.mrf.mxu1 }
 0x3f6   : > { %2142 = vrot.lane.b32.xlu2 %v9434_v1, %s11574_s25  ;;  %2172 = vrot.lane.b32.xlu1 %v9434_v1, %s11572_s20 }
 0x3f7   : > { %2154 = vrot.lane.b32.xlu0 %v9434_v1, %s11586_s23 }
 0x3fe   : > { %2106 = vrot.lane.b32.xlu2 %v9434_v1, %s11584_s30  ;;  %2160 = vrot.lane.b32.xlu1 %v9434_v1, %s11562_s11  ;;  %s11568_s11 = smov 120  }
 0x3ff   : > { %2148 = vrot.lane.b32.xlu0 %v9434_v1, %s11564_s4  ;;  %s11580_s4 = smov 96  }
 0x406   : > { %2136 = vrot.lane.b32.xlu2 %v9434_v1, %s11588_s2  ;;  %2124 = vrot.lane.b32.xlu1 %v9434_v1, %s11578_s18 }
 0x407   : > { %2118 = vrot.lane.b32.xlu0 %v9434_v1, %s11570_s10 }
 0x40e   : > { %2100 = vrot.lane.b32.xlu2 %v9434_v1, %s11566_s22  ;;  %2094 = vrot.lane.b32.xlu1 %v9434_v1, %s11568_s11 }
 0x40f   : > { %2706 = vrot.lane.b32.xlu0 %v9460_v2, %s11582_s1 }
 0x416   : > { %2694 = vrot.lane.b32.xlu2 %v9460_v2, %s11570_s10  ;;  %2682 = vrot.lane.b32.xlu1 %v9460_v2, %s11584_s30  ;;  %s11667_s10 = smov 48  }
 0x417   : > { %2112 = vrot.lane.b32.xlu0 %v9434_v1, %s11580_s4 }
 0x41e   : > { %2676 = vrot.lane.b32.xlu2 %v9460_v2, %s11566_s22  ;;  %2670 = vrot.lane.b32.xlu1 %v9460_v2, %s11568_s11  ;;  %s11665_s22 = smov 24   ;;  %s11666_s11 = smov 32  }
 0x41f   : > { %2700 = vrot.lane.b32.xlu0 %v9460_v2, %s11578_s18 }
 0x426   : > { %2730 = vrot.lane.b32.xlu2 %v9460_v2, %s11586_s23  ;;  %2754 = vrot.lane.b32.xlu1 %v9460_v2, %s11576_s26 }
 0x427   : > { %2688 = vrot.lane.b32.xlu0 %v9460_v2, %s11580_s4 }
 0x42e   : > { %2718 = vrot.lane.b32.xlu2 %v9460_v2, %s11574_s25  ;;  %2748 = vrot.lane.b32.xlu1 %v9460_v2, %s11572_s20 }
 0x42f   : > { %2742 = vrot.lane.b32.xlu0 %v9460_v2, %s11665_s22 }
 0x436   : > { %2712 = vrot.lane.b32.xlu2 %v9460_v2, %s11588_s2  ;;  %2736 = vrot.lane.b32.xlu1 %v9460_v2, %s11666_s11 }
 0x437   : > { %2724 = vrot.lane.b32.xlu0 %v9460_v2, %s11667_s10 }
 0x43e   : > { %2168 = vrot.lane.b32.xlu2 %v9498_v3, %s11665_s22  ;;  %2156 = vrot.lane.b32.xlu1 %v9498_v3, %s11586_s23 }
 0x43f   : > { %2180 = vrot.lane.b32.xlu0 %v9498_v3, %s11576_s26  ;;  %s11670_s26 = smov 120  }
 0x446   : > { %2144 = vrot.lane.b32.xlu2 %v9498_v3, %s11574_s25  ;;  %2132 = vrot.lane.b32.xlu1 %v9498_v3, %s11582_s1  ;;  %s11669_s25 = smov 112  }
 0x447   : > { %2174 = vrot.lane.b32.xlu0 %v9498_v3, %s11572_s20  ;;  %s11668_s20 = smov 88  }
 0x448   : > { %v9512_v4 = vpop.permute.xlu2 %2130 }
 0x44e   : > { %2108 = vrot.lane.b32.xlu2 %v9498_v3, %s11584_s30  ;;  %2162 = vrot.lane.b32.xlu1 %v9498_v3, %s11666_s11 }
 0x44f   : > { %2150 = vrot.lane.b32.xlu0 %v9498_v3, %s11667_s10 }
 0x450   : > { %v9520_v5 = vpop.permute.xlu2 %2142 }
 0x451   : > { %v2311_v43 = vrot.slane %v9520_v5, 4 }
 0x456   : > { %2138 = vrot.lane.b32.xlu2 %v9498_v3, %s11588_s2  ;;  %2126 = vrot.lane.b32.xlu1 %v9498_v3, %s11578_s18 }
 0x457   : > { %2120 = vrot.lane.b32.xlu0 %v9498_v3, %s11668_s20 }
 0x458   : > { %v9528_v6 = vpop.permute.xlu2 %2106 }
 0x459   : > { %v2197_v20 = vrot.slane %v9528_v6, 4 }
 0x45e   : > { %2102 = vrot.lane.b32.xlu2 %v9498_v3, %s11669_s25  ;;  %2096 = vrot.lane.b32.xlu1 %v9498_v3, %s11670_s26 }
 0x45f   : > { %2708 = vrot.lane.b32.xlu0 %v9530_v7, %s11582_s1  ;;  %s11673_s1 = smov 16  }
 0x460   : > { %v2137_v8 = vpop.permute.xlu2 %2136  ;;  %v2167_v9 = vpop.permute.xlu1 %2166 }
 0x461   : > { %v2179_v10 = vpop.permute.xlu0 %2178  ;;  %v2299_v40 = vrot.slane %v2137_v8, 4  ;;  %v2335_v41 = vrot.slane %v2167_v9, 4 }
 0x462   : > { %v2333_v13 = vrot.slane %v2179_v10, 4 }
 0x463   : > { %v2336_v57 = vsel %vm2185_vm3, %v2179_v10, %v2335_v41 }
 0x464   : > { %v2334_v19 = vsel %vm2185_vm3, %v2333_v13, %v2167_v9  ;;  %v9597_v9 = vperm.slane %v2336_v57, %v9546_v17 }
 0x465   : > { %v2340_v22 = vperm.slane %v2334_v19, %v9546_v17  ;;  %v2221_v19 = vrot.slane %v9512_v4, 4 }
 0x466   : > { %2696 = vrot.lane.b32.xlu2 %v9530_v7, %s11668_s20  ;;  %2684 = vrot.lane.b32.xlu1 %v9530_v7, %s11584_s30 }
 0x467   : > { %2114 = vrot.lane.b32.xlu0 %v9498_v3, %s11580_s4  ;;  %v2369_v31 = vrot.slane %v2340_v22, 4 }
 0x468   : > { %v9544_v14 = vpop.permute.xlu2 %2100  ;;  %v2173_v15 = vpop.permute.xlu1 %2172 }
 0x469   : > { %v2155_v16 = vpop.permute.xlu0 %2154  ;;  %v2321_v24 = vrot.slane %v2173_v15, 4  ;;  %v2184_v59 = vrot.slane %v9544_v14, 4 }
 0x46a   : > { %v2309_v18 = vrot.slane %v2155_v16, 4  ;;  %v2312_v53 = vsel %vm2185_vm3, %v2155_v16, %v2311_v43  ;;  %v2187_v16 = vrot.slane %v9434_v1, 4 }
 0x46b   : > { %v2186_v13 = vsel %vm2185_vm3, %v2184_v59, %v9434_v1 }
 0x46c   : > { %v2310_v23 = vsel %vm2185_vm3, %v2309_v18, %v9520_v5  ;;  %v2320_v5 = vperm.slane %v2312_v53, %v9546_v17  ;;  %v2188_v1 = vsel %vm2185_vm3, %v9544_v14, %v2187_v16 }
 0x46d   : > { %v2316_v27 = vperm.slane %v2310_v23, %v9546_v17 }
 0x46e   : > { %2678 = vrot.lane.b32.xlu2 %v9530_v7, %s11669_s25  ;;  %2672 = vrot.lane.b32.xlu1 %v9530_v7, %s11670_s26 }
 0x46f   : > { %2702 = vrot.lane.b32.xlu0 %v9530_v7, %s11578_s18  ;;  %v2345_v37 = vrot.slane %v2316_v27, 4  ;;  %s11671_s18 = smov 8  }
 0x470   : > { %v9558_v25 = vpop.permute.xlu2 %2694  ;;  %v2161_v26 = vpop.permute.xlu1 %2160 }
 0x471   : > { %v2322_v29 = vsel %vm2185_vm3, %v2321_v24, %v2161_v26  ;;  %v2149_v30 = vpop.permute.xlu0 %2148  ;;  %v2323_v54 = vrot.slane %v2161_v26, 4 }
 0x472   : > { %v2328_v32 = vperm.slane %v2322_v29, %v9546_v17  ;;  %v2297_v33 = vrot.slane %v2149_v30, 4  ;;  %v2300_v47 = vsel %vm2185_vm3, %v2149_v30, %v2299_v40  ;;  %v2381_v29 = vrot.slane %v9597_v9, 4 }
 0x473   : > { %v2308_v61 = vperm.slane %v2300_v47, %v9546_v17  ;;  %v2324_v11 = vsel %vm2185_vm3, %v2173_v15, %v2323_v54  ;;  %v2192_v30 = vperm.slane %v2186_v13, %v9546_v17 }
 0x474   : > { %v2370_v34 = vsel %vm2185_vm3, %v2369_v31, %v2328_v32  ;;  %v2371_v35 = vrot.slane %v2328_v32, 4  ;;  %v2298_v36 = vsel %vm2185_vm3, %v2297_v33, %v2137_v8  ;;  %v2332_v23 = vperm.slane %v2324_v11, %v9546_v17 }
 0x475   : > { %v2376_v38 = vperm.slane %v2370_v34, %v9561_v28  ;;  %v2304_v39 = vperm.slane %v2298_v36, %v9546_v17  ;;  %v2359_v15 = vrot.slane %v2308_v61, 4 }
 0x476   : > { %v2372_v42 = vsel %vm2185_vm3, %v2340_v22, %v2371_v35  ;;  %2732 = vrot.lane.b32.xlu2 %v9530_v7, %s11586_s23  ;;  %2756 = vrot.lane.b32.xlu1 %v9530_v7, %s11671_s18  ;;  %v2357_v22 = vrot.slane %v2320_v5, 4 }
 0x477   : > { %v2347_v44 = vrot.slane %v2304_v39, 4  ;;  %2690 = vrot.lane.b32.xlu0 %v9530_v7, %s11580_s4  ;;  %v2346_v45 = vsel %vm2185_vm3, %v2345_v37, %v2304_v39  ;;  %v2380_v46 = vperm.slane %v2372_v42, %v9561_v28  ;;  %v2393_v51 = vrot.slane %v2376_v38, 4  ;;  %s11672_s4 = smov 56   ;;  %v9631_v37 = vpop.f32.mrf.mxu2 }
 0x478   : > { %v9580_v48 = vpop.permute.xlu2 %2676  ;;  %v9582_v49 = vpop.permute.xlu1 %2124  ;;  %v2352_v50 = vperm.slane %v2346_v45, %v9561_v28  ;;  %v2358_v33 = vsel %vm2185_vm3, %v2357_v22, %v2308_v61  ;;  %v2360_v39 = vsel %vm2185_vm3, %v2320_v5, %v2359_v15  ;;  %v2235_v45 = vrot.slane %v2192_v30, 4 }
 0x479   : > { %v2119_v55 = vpop.permute.xlu0 %2118  ;;  %v2348_v56 = vsel %vm2185_vm3, %v2316_v27, %v2347_v44  ;;  %v2397_v8 = vrot.slane %v2380_v46, 4  ;;  %v2760_v34 = vrot.slane %v9580_v48, 4  ;;  %v2382_v44 = vsel %vm2185_vm3, %v2381_v29, %v2332_v23 }
 0x47a   : > { %v2394_v60 = vsel %vm2185_vm3, %v2393_v51, %v2352_v50  ;;  %v2395_v62 = vrot.slane %v2352_v50, 4  ;;  %v2356_v63 = vperm.slane %v2348_v56, %v9561_v28  ;;  %v2223_v24 = vrot.slane %v2119_v55, 4 }
 0x47b   : > { %7725 = vmatpush.xpose.msk.msrb.mxu3 %vm3779_vm4, %v2394_v60  ;;  %v2222_v35 = vsel %vm2185_vm3, %v2221_v19, %v2119_v55  ;;  %v9642_v47 = vperm.slane %v2358_v33, %v9561_v28  ;;  %v9646_v51 = vperm.slane %v2360_v39, %v9561_v28  ;;  %v2388_v56 = vperm.slane %v2382_v44, %v9561_v28 }
 0x47c   : > { %v2396_v10 = vsel %vm2185_vm3, %v2376_v38, %v2395_v62  ;;  %v2399_v12 = vrot.slane %v2356_v63, 4  ;;  %v2398_v18 = vsel %vm2185_vm3, %v2397_v8, %v2356_v63  ;;  %v2196_v38 = vperm.slane %v2188_v1, %v9546_v17 }
 0x47d   : > { %7729 = vmatpush.xpose.msk.msra.mxu0 %vm3779_vm4, %v2396_v10  ;;  %7733 = vmatpush.xpose.msk.msra.mxu1 %vm3779_vm4, %v2398_v18  ;;  %v2224_v41 = vsel %vm2185_vm3, %v9512_v4, %v2223_v24  ;;  %v2228_v50 = vperm.slane %v2222_v35, %v9546_v17  ;;  %v9654_v4 = vpack.i.bf16 %v9631_v37, %v9585_v52  ;;  %v2209_v59 = vrot.slane %v9582_v49, 4 }
 0x47e   : > { %2720 = vrot.lane.b32.xlu2 %v9530_v7, %s11672_s4  ;;  %v2400_v21 = vsel %vm2185_vm3, %v2380_v46, %v2399_v12  ;;  %2750 = vrot.lane.b32.xlu1 %v9530_v7, %s11673_s1  ;;  %v2383_v46 = vrot.slane %v2332_v23, 4  ;;  %v2232_v53 = vperm.slane %v2224_v41, %v9546_v17  ;;  %v2247_v57 = vrot.slane %v2196_v38, 4 }
 0x47f   : > { %7737 = vmatpush.xpose.msk.msra.mxu2 %vm3779_vm4, %v2400_v21  ;;  %2744 = vrot.lane.b32.xlu0 %v9530_v7, %s11665_s22  ;;  %v2257_v5 = vrot.slane %v2228_v50, 4  ;;  %v2403_v11 = vrot.slane %v9642_v47, 4  ;;  %v2401_v15 = vrot.slane %v2388_v56, 4  ;;  %v2407_v21 = vrot.slane %v9646_v51, 4 }
 0x480   : > { %v9620_v26 = vpop.permute.xlu2 %2730  ;;  %v2095_v27 = vpop.permute.xlu1 %2094  ;;  %v2384_v10 = vsel %vm2185_vm3, %v9597_v9, %v2383_v46  ;;  %v2269_v19 = vrot.slane %v2232_v53, 4 }
 0x481   : > { %v2198_v31 = vsel %vm2185_vm3, %v2197_v20, %v2095_v27  ;;  %v2199_v32 = vrot.slane %v2095_v27, 4  ;;  %v9625_v14 = vpop.permute.xlu0 %2706  ;;  %v2392_v9 = vperm.slane %v2384_v10, %v9561_v28 }
 0x482   : > { %v2204_v36 = vperm.slane %v2198_v31, %v9546_v17  ;;  %v2796_v1 = vrot.slane %v9625_v14, 4 }
 0x483   : > { %v2200_v40 = vsel %vm2185_vm3, %v9528_v6, %v2199_v32  ;;  %v2761_v6 = vsel %vm2185_vm3, %v2760_v34, %v9460_v2 }
 0x484   : > { %v2208_v42 = vperm.slane %v2200_v40, %v9546_v17  ;;  %v2233_v43 = vrot.slane %v2204_v36, 4  ;;  %v2236_v54 = vsel %vm2185_vm3, %v2204_v36, %v2235_v45  ;;  %v9670_v63 = vperm.slane %v2761_v6, %v9546_v17 }
 0x485   : > { %v2244_v18 = vperm.slane %v2236_v54, %v9561_v28  ;;  %v2405_v6 = vrot.slane %v2392_v9, 4 }
 0x486   : > { %2714 = vrot.lane.b32.xlu2 %v9530_v7, %s11588_s2  ;;  %2738 = vrot.lane.b32.xlu1 %v9530_v7, %s11666_s11  ;;  %v2234_v55 = vsel %vm2185_vm3, %v2233_v43, %v2192_v30  ;;  %v2245_v60 = vrot.slane %v2208_v42, 4  ;;  %v2248_v30 = vsel %vm2185_vm3, %v2208_v42, %v2247_v57 }
 0x487   : > { %2726 = vrot.lane.b32.xlu0 %v9530_v7, %s11667_s10  ;;  %v2240_v16 = vperm.slane %v2234_v55, %v9561_v28 }
 0x488   : > { %v9665_v61 = vpop.permute.xlu2 %2718  ;;  %v9667_v62 = vpop.permute.xlu1 %2682  ;;  %v2246_v23 = vsel %vm2185_vm3, %v2245_v60, %v2196_v38  ;;  %v2256_v60 = vperm.slane %v2248_v30, %v9561_v28 }
 0x489   : > { %v2113_v8 = vpop.permute.xlu0 %2112  ;;  %v2772_v31 = vrot.slane %v9667_v62, 4  ;;  %v2283_v33 = vrot.slane %v2240_v16, 4  ;;  %v2252_v36 = vperm.slane %v2246_v23, %v9561_v28 }
 0x48a   : > { %v2210_v12 = vsel %vm2185_vm3, %v2209_v59, %v2113_v8  ;;  %v2211_v13 = vrot.slane %v2113_v8, 4 }
 0x48b   : > { %v2216_v20 = vperm.slane %v2210_v12, %v9546_v17  ;;  %v2291_v8 = vrot.slane %v2252_v36, 4 }
 0x48c   : > { %v2212_v22 = vsel %vm2185_vm3, %v9582_v49, %v2211_v13  ;;  %v2287_v49 = vrot.slane %v2244_v18, 4 }
 0x48d   : > { %v2220_v24 = vperm.slane %v2212_v22, %v9546_v17  ;;  %v2259_v27 = vrot.slane %v2216_v20, 4  ;;  %v2258_v29 = vsel %vm2185_vm3, %v2257_v5, %v2216_v20  ;;  %v2408_v5 = vsel %vm2185_vm3, %v2392_v9, %v2407_v21 }
 0x48e   : > { %8090 = vrot.lane.b32.xlu2 %v9654_v4, %s11584_s30  ;;  %v2264_v32 = vperm.slane %v2258_v29, %v9561_v28  ;;  %8085 = vrot.lane.b32.xlu1 %v9654_v4, %s11671_s18  ;;  %v2295_v20 = vrot.slane %v2256_v60, 4  ;;  %v2810_v21 = vrot.slane %v9670_v63, 4  ;;  %s11674_s30 = smov 72  }
 0x48f   : > { %v2271_v34 = vrot.slane %v2220_v24, 4  ;;  %v2260_v35 = vsel %vm2185_vm3, %v2228_v50, %v2259_v27  ;;  %v2270_v38 = vsel %vm2185_vm3, %v2269_v19, %v2220_v24  ;;  %8080 = vrot.lane.b32.xlu0 %v9654_v4, %s11586_s23  ;;  %v2404_v50 = vsel %vm2185_vm3, %v2388_v56, %v2403_v11  ;;  %s11675_s23 = smov 96  }
 0x490   : > { %v9699_v39 = vpop.permute.xlu2 %2712  ;;  %v9701_v40 = vpop.permute.xlu1 %2670  ;;  %v2284_v41 = vsel %vm2185_vm3, %v2264_v32, %v2283_v33  ;;  %v2281_v42 = vrot.slane %v2264_v32, 4  ;;  %v2268_v43 = vperm.slane %v2260_v35, %v9561_v28  ;;  %v2276_v44 = vperm.slane %v2270_v38, %v9561_v28 }
 0x491   : > { %v2773_v45 = vsel %vm2185_vm3, %v2772_v31, %v9701_v40  ;;  %7730 = vmatpush.xpose.msk.msra.mxu0 %vm3779_vm4, %v2284_v41  ;;  %v9709_v46 = vpop.permute.xlu0 %2700  ;;  %v2272_v54 = vsel %vm2185_vm3, %v2232_v53, %v2271_v34  ;;  %v2402_v56 = vsel %vm2185_vm3, %v2401_v15, %v9642_v47  ;;  %v2797_v11 = vsel %vm2185_vm3, %v2796_v1, %v9558_v25 }
 0x492   : > { %v2779_v55 = vperm.slane %v2773_v45, %v9546_v17  ;;  %v2282_v57 = vsel %vm2185_vm3, %v2281_v42, %v2240_v16  ;;  %v2288_v59 = vsel %vm2185_vm3, %v2268_v43, %v2287_v49  ;;  %v2285_v53 = vrot.slane %v2268_v43, 4 }
 0x493   : > { %7726 = vmatpush.xpose.msk.msrb.mxu3 %vm3779_vm4, %v2282_v57  ;;  %7738 = vmatpush.xpose.msk.msra.mxu2 %vm3779_vm4, %v2288_v59  ;;  %v2289_v12 = vrot.slane %v2276_v44, 4  ;;  %v2280_v13 = vperm.slane %v2272_v54, %v9561_v28  ;;  %v2292_v19 = vsel %vm2185_vm3, %v2276_v44, %v2291_v8  ;;  %v2406_v47 = vsel %vm2185_vm3, %v2405_v6, %v9646_v51 }
 0x494   : > { %v2808_v10 = vrot.slane %v2779_v55, 4  ;;  %v2286_v16 = vsel %vm2185_vm3, %v2285_v53, %v2244_v18  ;;  %v2803_v1 = vperm.slane %v2797_v11, %v9546_v17  ;;  %v2784_v18 = vrot.slane %v9709_v46, 4 }
 0x495   : > { %7745 = vmatpush.xpose.msk.msrb.mxu0 %vm3779_vm4, %v2404_v50  ;;  %7734 = vmatpush.xpose.msk.msra.mxu1 %vm3779_vm4, %v2286_v16  ;;  %v2293_v15 = vrot.slane %v2280_v13, 4  ;;  %v2290_v51 = vsel %vm2185_vm3, %v2289_v12, %v2252_v36  ;;  %v2296_v9 = vsel %vm2185_vm3, %v2280_v13, %v2295_v20  ;;  %v2811_v24 = vsel %vm2185_vm3, %v2779_v55, %v2810_v21 }
 0x496   : > { %v2809_v22 = vsel %vm2185_vm3, %v2808_v10, %v9670_v63  ;;  %8105 = vrot.lane.b32.xlu2 %v9654_v4, %s11674_s30  ;;  %8100 = vrot.lane.b32.xlu1 %v9654_v4, %s11667_s10  ;;  %v2832_v32 = vrot.slane %v2803_v1, 4  ;;  %v2819_v49 = vperm.slane %v2811_v24, %v9561_v28  ;;  %v2798_v57 = vrot.slane %v9558_v25, 4 }
 0x497   : > { %7741 = vmatpush.xpose.msk.msra.mxu3 %vm3779_vm4, %v2402_v56  ;;  %7753 = vmatpush.xpose.msk.msrb.mxu2 %vm3779_vm4, %v2408_v5  ;;  %v2815_v29 = vperm.slane %v2809_v22, %v9561_v28  ;;  %v2294_v31 = vsel %vm2185_vm3, %v2293_v15, %v2256_v60  ;;  %v2884_v8 = vrot.slane %v9620_v26, 4  ;;  %v2774_v10 = vrot.slane %v9701_v40, 4 }
 0x498   : > { %8095 = vrot.lane.b32.xlu0 %v9654_v4, %s11672_s4  ;;  %v9748_v23 = vpop.permute.xlu1 %2754  ;;  %v9750_v63 = vpop.permute.xlu2 %2168  ;;  %v2862_v6 = vrot.slane %v2819_v49, 4  ;;  %v2799_v11 = vsel %vm2185_vm3, %v9625_v14, %v2798_v57  ;;  %v2762_v25 = vrot.slane %v9460_v2, 4  ;;  %v2886_v14 = vrot.slane %v9665_v61, 4 }
 0x499   : > { %7746 = vmatpush.xpose.msk.msrb.mxu0 %vm3779_vm4, %v2292_v19  ;;  %7749 = vmatpush.xpose.msk.msrb.mxu1 %vm3779_vm4, %v2406_v47  ;;  %v2689_v27 = vpop.permute.xlu0 %2688  ;;  %v2858_v38 = vrot.slane %v2815_v29, 4  ;;  %v2908_v54 = vrot.slane %v9748_v23, 4  ;;  %v2885_v13 = vsel %vm2185_vm3, %v2884_v8, %v9665_v61  ;;  %v2807_v47 = vperm.slane %v2799_v11, %v9546_v17 }
 0x49a   : > { %v2785_v30 = vsel %vm2185_vm3, %v2784_v18, %v2689_v27  ;;  %v2786_v59 = vrot.slane %v2689_v27, 4  ;;  %v2763_v2 = vsel %vm2185_vm3, %v9580_v48, %v2762_v25  ;;  %v2775_v20 = vsel %vm2185_vm3, %v9667_v62, %v2774_v10 }
 0x49b   : > { %7742 = vmatpush.xpose.msk.msra.mxu3 %vm3779_vm4, %v2290_v51  ;;  %7754 = vmatpush.xpose.msk.msrb.mxu2 %vm3779_vm4, %v2296_v9  ;;  %v2791_v33 = vperm.slane %v2785_v30, %v9546_v17  ;;  %v2891_v21 = vperm.slane %v2885_v13, %v9546_v17  ;;  %v2771_v62 = vperm.slane %v2763_v2, %v9546_v17  ;;  %v2844_v24 = vrot.slane %v2807_v47, 4 }
 0x49c   : > { %v2787_v16 = vsel %vm2185_vm3, %v9709_v46, %v2786_v59  ;;  %v2887_v27 = vsel %vm2185_vm3, %v9620_v26, %v2886_v14 }
 0x49d   : > { %7750 = vmatpush.xpose.msk.msrb.mxu1 %vm3779_vm4, %v2294_v31  ;;  %v2833_v34 = vsel %vm2185_vm3, %v2832_v32, %v2791_v33  ;;  %v2834_v35 = vrot.slane %v2791_v33, 4  ;;  %v2795_v61 = vperm.slane %v2787_v16, %v9546_v17  ;;  %v2822_v11 = vrot.slane %v2771_v62, 4 }
 0x49e   : > { %v2839_v36 = vperm.slane %v2833_v34, %v9561_v28  ;;  %8115 = vrot.lane.b32.xlu2 %v9654_v4, %s11673_s1  ;;  %8110 = vrot.lane.b32.xlu1 %v9654_v4, %s11665_s22  ;;  %v2895_v25 = vperm.slane %v2887_v27, %v9546_v17 }
 0x49f   : > { %v2835_v41 = vsel %vm2185_vm3, %v2803_v1, %v2834_v35 }
 0x4a0   : > { %8135 = vrot.lane.b32.xlu0 %v9654_v4, %s11668_s20  ;;  %v9770_v42 = vpop.permute.xlu1 %2748  ;;  %v2859_v43 = vsel %vm2185_vm3, %v2839_v36, %v2858_v38  ;;  %v9773_v44 = vpop.permute.xlu2 %2144  ;;  %v2856_v45 = vrot.slane %v2839_v36, 4  ;;  %v2843_v50 = vperm.slane %v2835_v41, %v9561_v28  ;;  %v2845_v36 = vsel %vm2185_vm3, %v2844_v24, %v2795_v61 }
 0x4a1   : > { %v2743_v55 = vpop.permute.xlu0 %2742  ;;  %7731 = vmatmul.msk.f32.vlgmr.msra.gmra.mxu0 %vm3779_vm4, %v2859_v43  ;;  %v2896_v40 = vrot.slane %v9770_v42, 4  ;;  %v2874_v38 = vrot.slane %v9699_v39, 4  ;;  %v2846_v41 = vrot.slane %v2795_v61, 4 }
 0x4a2   : > { %v2857_v60 = vsel %vm2185_vm3, %v2856_v45, %v2815_v29  ;;  %v2863_v56 = vsel %vm2185_vm3, %v2843_v50, %v2862_v6  ;;  %v2909_v5 = vsel %vm2185_vm3, %v2908_v54, %v2743_v55  ;;  %v2860_v53 = vrot.slane %v2843_v50, 4 }
 0x4a3   : > { %7727 = vmatmul.msk.f32.vlgmr.msrb.gmra.mxu3 %vm3779_vm4, %v2857_v60  ;;  %7739 = vmatmul.msk.f32.vlgmr.msra.gmra.mxu2 %vm3779_vm4, %v2863_v56  ;;  %v2915_v19 = vperm.slane %v2909_v5, %v9546_v17  ;;  %v2910_v18 = vrot.slane %v2743_v55, 4  ;;  %v2783_v29 = vperm.slane %v2775_v20, %v9546_v17  ;;  %v2851_v60 = vperm.slane %v2845_v36, %v9561_v28 }
 0x4a4   : > { %v2861_v12 = vsel %vm2185_vm3, %v2860_v53, %v2819_v49  ;;  %v2920_v49 = vrot.slane %v2891_v21, 4  ;;  %v2847_v10 = vsel %vm2185_vm3, %v2807_v47, %v2846_v41 }
 0x4a5   : > { %7735 = vmatmul.msk.f32.vlgmr.msra.gmra.mxu1 %vm3779_vm4, %v2861_v12  ;;  %v2944_v51 = vrot.slane %v2915_v19, 4  ;;  %v2911_v26 = vsel %vm2185_vm3, %v9748_v23, %v2910_v18  ;;  %v2820_v45 = vrot.slane %v2783_v29, 4  ;;  %v2864_v2 = vrot.slane %v2851_v60, 4 }
 0x4a6   : > { %8120 = vrot.lane.b32.xlu2 %v9654_v4, %s11670_s26  ;;  %v2919_v56 = vperm.slane %v2911_v26, %v9546_v17  ;;  %v2855_v47 = vperm.slane %v2847_v10, %v9561_v28 }
 0x4a8   : > { %8150 = vrot.lane.b32.xlu0 %v9654_v4, %s11675_s23  ;;  %v2737_v46 = vpop.permute.xlu1 %2736  ;;  %v9807_v15 = vpop.permute.xlu2 %2108  ;;  %v2956_v20 = vrot.slane %v2919_v56, 4 }
 0x4a9   : > { %v2897_v1 = vsel %vm2185_vm3, %v2896_v40, %v2737_v46  ;;  %v2725_v22 = vpop.permute.xlu0 %2724  ;;  %v2898_v30 = vrot.slane %v2737_v46, 4  ;;  %v2821_v40 = vsel %vm2185_vm3, %v2820_v45, %v2771_v62  ;;  %v2932_v62 = vrot.slane %v2895_v25, 4 }
 0x4aa   : > { %v2903_v48 = vperm.slane %v2897_v1, %v9546_v17  ;;  %v2872_v9 = vrot.slane %v2725_v22, 4  ;;  %v2875_v5 = vsel %vm2185_vm3, %v2725_v22, %v2874_v38  ;;  %v2823_v22 = vsel %vm2185_vm3, %v2783_v29, %v2822_v11 }
 0x4ab   : > { %v2899_v55 = vsel %vm2185_vm3, %v9770_v42, %v2898_v30 }
 0x4ac   : > { %v2945_v31 = vsel %vm2185_vm3, %v2944_v51, %v2903_v48  ;;  %v2946_v32 = vrot.slane %v2903_v48, 4  ;;  %v2873_v33 = vsel %vm2185_vm3, %v2872_v9, %v9699_v39  ;;  %v2907_v12 = vperm.slane %v2899_v55, %v9546_v17 }
 0x4ad   : > { %v2879_v34 = vperm.slane %v2873_v33, %v9546_v17  ;;  %v2951_v35 = vperm.slane %v2945_v31, %v9561_v28  ;;  %v2827_v48 = vperm.slane %v2821_v40, %v9561_v28  ;;  %v2868_v33 = vrot.slane %v2855_v47, 4 }
 0x4ae   : > { %v2947_v43 = vsel %vm2185_vm3, %v2915_v19, %v2946_v32  ;;  %8125 = vrot.lane.b32.xlu2 %v9654_v4, %s11669_s25  ;;  %v2883_v19 = vperm.slane %v2875_v5, %v9546_v17  ;;  %v2958_v18 = vrot.slane %v2907_v12, 4  ;;  %v2957_v9 = vsel %vm2185_vm3, %v2956_v20, %v2907_v12 }
 0x4af   : > { %v2922_v50 = vrot.slane %v2879_v34, 4  ;;  %v2921_v6 = vsel %vm2185_vm3, %v2920_v49, %v2879_v34  ;;  %v2968_v54 = vrot.slane %v2951_v35, 4  ;;  %v2955_v23 = vperm.slane %v2947_v43, %v9561_v28 }
 0x4b0   : > { %v9832_v57 = vpop.permute.xlu2 %2138  ;;  %v9834_v39 = vpop.permute.xlu1 %2156  ;;  %v2927_v59 = vperm.slane %v2921_v6, %v9561_v28  ;;  %v2934_v24 = vrot.slane %v2883_v19, 4  ;;  %v2865_v31 = vsel %vm2185_vm3, %v2864_v2, %v2827_v48  ;;  %v2831_v32 = vperm.slane %v2823_v22, %v9561_v28 }
 0x4b1   : > { %v9841_v53 = vpop.permute.xlu0 %2180  ;;  %v2923_v8 = vsel %vm2185_vm3, %v2891_v21, %v2922_v50  ;;  %v2972_v14 = vrot.slane %v2955_v23, 4  ;;  %v2531_v49 = vrot.slane %v9834_v39, 4  ;;  %v2963_v36 = vperm.slane %v2957_v9, %v9561_v28 }
 0x4b2   : > { %v2969_v42 = vsel %vm2185_vm3, %v2968_v54, %v2927_v59  ;;  %v2970_v13 = vrot.slane %v2927_v59, 4  ;;  %v2931_v16 = vperm.slane %v2923_v8, %v9561_v28  ;;  %v2555_v61 = vrot.slane %v9841_v53, 4 }
 0x4b3   : > { %7728 = vmatmul.msk.f32.gmra.mxu3 %vm3779_vm4, %v2969_v42  ;;  %v2866_v38 = vrot.slane %v2827_v48, 4  ;;  %v2959_v41 = vsel %vm2185_vm3, %v2919_v56, %v2958_v18  ;;  %v2935_v26 = vsel %vm2185_vm3, %v2895_v25, %v2934_v24  ;;  %v2870_v50 = vrot.slane %v2831_v32, 4 }
 0x4b4   : > { %v2971_v46 = vsel %vm2185_vm3, %v2951_v35, %v2970_v13  ;;  %v2974_v21 = vrot.slane %v2931_v16, 4  ;;  %v2973_v1 = vsel %vm2185_vm3, %v2972_v14, %v2931_v16  ;;  %v2556_v34 = vsel %vm2185_vm3, %v2555_v61, %v9750_v63 }
 0x4b5   : > { %7732 = vmatmul.msk.f32.gmra.mxu0 %vm3779_vm4, %v2971_v46  ;;  %7736 = vmatmul.msk.f32.gmra.mxu1 %vm3779_vm4, %v2973_v1  ;;  %v2933_v35 = vsel %vm2185_vm3, %v2932_v62, %v2883_v19  ;;  %v2562_v43 = vperm.slane %v2556_v34, %v9546_v17  ;;  %v2867_v45 = vsel %vm2185_vm3, %v2851_v60, %v2866_v38  ;;  %v2976_v59 = vrot.slane %v2963_v36, 4 }
 0x4b6   : > { %v2975_v51 = vsel %vm2185_vm3, %v2955_v23, %v2974_v21  ;;  %8130 = vrot.lane.b32.xlu2 %v9654_v4, %s11588_s2  ;;  %v2939_v6 = vperm.slane %v2933_v35, %v9561_v28  ;;  %v2532_v54 = vsel %vm2185_vm3, %v2531_v49, %v9773_v44  ;;  %v2869_v55 = vsel %vm2185_vm3, %v2868_v33, %v2831_v32  ;;  %s11676_s2 = smov 80  }
 0x4b7   : > { %7740 = vmatmul.msk.f32.gmra.mxu2 %vm3779_vm4, %v2975_v51  ;;  %v2967_v23 = vperm.slane %v2959_v41, %v9561_v28  ;;  %v2871_v5 = vsel %vm2185_vm3, %v2855_v47, %v2870_v50  ;;  %v2943_v60 = vperm.slane %v2935_v26, %v9561_v28  ;;  %v2538_v42 = vperm.slane %v2532_v54, %v9546_v17 }
 0x4b8   : > { %v9865_v27 = vpop.permute.xlu2 %2102  ;;  %v9867_v30 = vpop.permute.xlu1 %2132  ;;  %v2591_v10 = vrot.slane %v2562_v43, 4  ;;  %v2978_v13 = vrot.slane %v2939_v6, 4  ;;  %v2977_v14 = vsel %vm2185_vm3, %v2976_v59, %v2939_v6  ;;  %v2557_v18 = vrot.slane %v9750_v63, 4 }
 0x4b9   : > { %v9869_v29 = vpop.permute.xlu0 %2174  ;;  %v2980_v40 = vrot.slane %v2967_v23, 4  ;;  %v2982_v2 = vrot.slane %v2943_v60, 4  ;;  %v2567_v47 = vrot.slane %v2538_v42, 4  ;;  %v2533_v9 = vrot.slane %v9773_v44, 4 }
 0x4ba   : > { %v2543_v56 = vrot.slane %v9869_v29, 4  ;;  %v2979_v22 = vsel %vm2185_vm3, %v2963_v36, %v2978_v13  ;;  %v2521_v35 = vrot.slane %v9832_v57, 4  ;;  %v2558_v26 = vsel %vm2185_vm3, %v9841_v53, %v2557_v18 }
 0x4bb   : > { %7743 = vmatmul.msk.f32.vlgmr.msra.gmra.mxu3 %vm3779_vm4, %v2865_v31  ;;  %v2981_v48 = vsel %vm2185_vm3, %v2980_v40, %v2943_v60  ;;  %v2983_v24 = vsel %vm2185_vm3, %v2967_v23, %v2982_v2  ;;  %v2534_v36 = vsel %vm2185_vm3, %v9834_v39, %v2533_v9 }
 0x4bc   : > { %v2542_v6 = vperm.slane %v2534_v36, %v9546_v17 }
 0x4bd   : > { %7747 = vmatmul.msk.f32.vlgmr.msrb.gmra.mxu0 %vm3779_vm4, %v2867_v45  ;;  %7751 = vmatmul.msk.f32.vlgmr.msrb.gmra.mxu1 %vm3779_vm4, %v2869_v55  ;;  %v2566_v55 = vperm.slane %v2558_v26, %v9546_v17 }
 0x4be   : > { %8140 = vrot.lane.b32.xlu2 %v9654_v4, %s11676_s2 }
 0x4bf   : > { %7755 = vmatmul.msk.f32.vlgmr.msrb.gmra.mxu2 %vm3779_vm4, %v2871_v5 }
 0x4c0   : > { %v9896_v8 = vpop.permute.xlu2 %2696  ;;  %v2163_v11 = vpop.permute.xlu1 %2162 }
 0x4c1   : > { %v2544_v25 = vsel %vm2185_vm3, %v2543_v56, %v2163_v11  ;;  %v2151_v12 = vpop.permute.xlu0 %2150  ;;  %v2545_v32 = vrot.slane %v2163_v11, 4  ;;  %v2411_v56 = vrot.slane %v9498_v3, 4  ;;  %v2421_v11 = vrot.slane %v9807_v15, 4 }
 0x4c2   : > { %v2550_v16 = vperm.slane %v2544_v25, %v9546_v17  ;;  %v2519_v19 = vrot.slane %v2151_v12, 4  ;;  %v2522_v45 = vsel %vm2185_vm3, %v2151_v12, %v2521_v35 }
 0x4c3   : > { %7744 = vmatmul.msk.f32.gmra.mxu3 %vm3779_vm4, %v2977_v14  ;;  %v2546_v39 = vsel %vm2185_vm3, %v9869_v29, %v2545_v32  ;;  %v2530_v5 = vperm.slane %v2522_v45, %v9546_v17  ;;  %v2412_v25 = vsel %vm2185_vm3, %v9865_v27, %v2411_v56 }
 0x4c4   : > { %v2592_v20 = vsel %vm2185_vm3, %v2591_v10, %v2550_v16  ;;  %v2593_v46 = vrot.slane %v2550_v16, 4  ;;  %v2520_v21 = vsel %vm2185_vm3, %v2519_v19, %v9832_v57  ;;  %v2554_v29 = vperm.slane %v2546_v39, %v9546_v17 }
 0x4c5   : > { %v2598_v61 = vperm.slane %v2592_v20, %v9561_v28  ;;  %v2526_v1 = vperm.slane %v2520_v21, %v9546_v17  ;;  %7748 = vmatmul.msk.f32.gmra.mxu0 %vm3779_vm4, %v2979_v22  ;;  %7752 = vmatmul.msk.f32.gmra.mxu1 %vm3779_vm4, %v2981_v48  ;;  %v2579_v10 = vrot.slane %v2542_v6, 4  ;;  %v2603_v16 = vrot.slane %v2566_v55, 4 }
 0x4c6   : > { %v2594_v51 = vsel %vm2185_vm3, %v2562_v43, %v2593_v46  ;;  %8145 = vrot.lane.b32.xlu2 %v9654_v4, %s11666_s11  ;;  %v2409_v4 = vrot.slane %v9865_v27, 4  ;;  %v2445_v20 = vrot.slane %v9867_v30, 4  ;;  %v9965_v21 = vperm.slane %v2412_v25, %v9546_v17 }
 0x4c7   : > { %v2569_v62 = vrot.slane %v2526_v1, 4  ;;  %v2568_v31 = vsel %vm2185_vm3, %v2567_v47, %v2526_v1  ;;  %v2602_v63 = vperm.slane %v2594_v51, %v9561_v28  ;;  %7756 = vmatmul.msk.f32.gmra.mxu2 %vm3779_vm4, %v2983_v24  ;;  %v2615_v34 = vrot.slane %v2598_v61, 4 }
 0x4c8   : > { %v9921_v33 = vpop.permute.xlu2 %2678  ;;  %v9923_v49 = vpop.permute.xlu1 %2126  ;;  %v2574_v44 = vperm.slane %v2568_v31, %v9561_v28  ;;  %v2410_v53 = vsel %vm2185_vm3, %v2409_v4, %v9498_v3  ;;  %v2580_v46 = vsel %vm2185_vm3, %v2579_v10, %v2530_v5  ;;  %v2605_v48 = vrot.slane %v2554_v29, 4 }
 0x4c9   : > { %v2121_v38 = vpop.permute.xlu0 %2120  ;;  %v2570_v41 = vsel %vm2185_vm3, %v2538_v42, %v2569_v62  ;;  %v2619_v54 = vrot.slane %v2602_v63, 4  ;;  %v2416_v3 = vperm.slane %v2410_v53, %v9546_v17  ;;  %v2581_v9 = vrot.slane %v2530_v5, 4 }
 0x4ca   : > { %v2616_v43 = vsel %vm2185_vm3, %v2615_v34, %v2574_v44  ;;  %v2617_v50 = vrot.slane %v2574_v44, 4  ;;  %v2578_v57 = vperm.slane %v2570_v41, %v9561_v28  ;;  %v2447_v19 = vrot.slane %v2121_v38, 4 }
 0x4cb   : > { %7757 = vmatpush.xpose.msk.msrb.mxu3 %vm3779_vm4, %v2616_v43  ;;  %v2459_v1 = vrot.slane %v2416_v3, 4  ;;  %v2446_v22 = vsel %vm2185_vm3, %v2445_v20, %v2121_v38  ;;  %v2586_v62 = vperm.slane %v2580_v46, %v9561_v28  ;;  %v2433_v34 = vrot.slane %v9923_v49, 4 }
 0x4cc   : > { %v2618_v59 = vsel %vm2185_vm3, %v2598_v61, %v2617_v50  ;;  %v2621_v23 = vrot.slane %v2578_v57, 4  ;;  %v2620_v60 = vsel %vm2185_vm3, %v2619_v54, %v2578_v57  ;;  %v2604_v61 = vsel %vm2185_vm3, %v2603_v16, %v2554_v29 }
 0x4cd   : > { %7761 = vmatpush.xpose.msk.msra.mxu0 %vm3779_vm4, %v2618_v59  ;;  %7765 = vmatpush.xpose.msk.msra.mxu1 %vm3779_vm4, %v2620_v60  ;;  %v2448_v24 = vsel %vm2185_vm3, %v9867_v30, %v2447_v19  ;;  %v2610_v31 = vperm.slane %v2604_v61, %v9561_v28  ;;  %v2452_v32 = vperm.slane %v2446_v22, %v9546_v17  ;;  %v2471_v30 = vrot.slane %v9965_v21, 4 }
 0x4ce   : > { %v2622_v42 = vsel %vm2185_vm3, %v2602_v63, %v2621_v23  ;;  %v2456_v35 = vperm.slane %v2448_v24, %v9546_v17  ;;  %v9991_v41 = vsel %vm2185_vm3, %v2542_v6, %v2581_v9  ;;  %v2625_v43 = vrot.slane %v2586_v62, 4 }
 0x4cf   : > { %7769 = vmatpush.xpose.msk.msra.mxu2 %vm3779_vm4, %v2622_v42  ;;  %v2606_v45 = vsel %vm2185_vm3, %v2566_v55, %v2605_v48  ;;  %v2481_v59 = vrot.slane %v2452_v32, 4  ;;  %v2623_v56 = vrot.slane %v2610_v31, 4 }
 0x4d0   : > { %v9956_v12 = vpop.permute.xlu2 %2732  ;;  %v2097_v13 = vpop.permute.xlu1 %2096  ;;  %v2493_v6 = vrot.slane %v2456_v35, 4  ;;  %v2614_v60 = vperm.slane %v2606_v45, %v9561_v28  ;;  %v2626_v48 = vsel %vm2185_vm3, %v2610_v31, %v2625_v43  ;;  %v2590_v43 = vperm.slane %v9991_v41, %v9561_v28 }
 0x4d1   : > { %v2422_v14 = vsel %vm2185_vm3, %v2421_v11, %v2097_v13  ;;  %v2423_v40 = vrot.slane %v2097_v13, 4  ;;  %v9959_v2 = vpop.permute.xlu0 %2708 }
 0x4d2   : > { %v2428_v27 = vperm.slane %v2422_v14, %v9546_v17  ;;  %v3020_v11 = vrot.slane %v9959_v2, 4 }
 0x4d3   : > { %v2424_v47 = vsel %vm2185_vm3, %v9807_v15, %v2423_v40  ;;  %v2984_v15 = vrot.slane %v9921_v33, 4 }
 0x4d4   : > { %v9972_v18 = vperm.slane %v2424_v47, %v9546_v17  ;;  %v2457_v51 = vrot.slane %v2428_v27, 4  ;;  %v2460_v63 = vsel %vm2185_vm3, %v2428_v27, %v2459_v1 }
 0x4d5   : > { %v2468_v54 = vperm.slane %v2460_v63, %v9561_v28  ;;  %v2985_v53 = vsel %vm2185_vm3, %v2984_v15, %v9530_v7  ;;  %v2627_v63 = vrot.slane %v2614_v60, 4 }
 0x4d6   : > { %v2458_v44 = vsel %vm2185_vm3, %v2457_v51, %v2416_v3  ;;  %v2469_v36 = vrot.slane %v9972_v18, 4  ;;  %v2991_v1 = vperm.slane %v2985_v53, %v9546_v17 }
 0x4d7   : > { %v2464_v39 = vperm.slane %v2458_v44, %v9561_v28  ;;  %v2511_v16 = vrot.slane %v2468_v54, 4  ;;  %v2624_v44 = vsel %vm2185_vm3, %v2623_v56, %v2586_v62  ;;  %v2472_v62 = vsel %vm2185_vm3, %v9972_v18, %v2471_v30 }
 0x4d8   : > { %v9985_v4 = vpop.permute.xlu2 %2720  ;;  %v9987_v38 = vpop.permute.xlu1 %2684  ;;  %v2470_v55 = vsel %vm2185_vm3, %v2469_v36, %v9965_v21 }
 0x4d9   : > { %v2115_v26 = vpop.permute.xlu0 %2114  ;;  %v2996_v25 = vrot.slane %v9987_v38, 4  ;;  %v2507_v13 = vrot.slane %v2464_v39, 4  ;;  %v2476_v14 = vperm.slane %v2470_v55, %v9561_v28 }
 0x4da   : > { %v2434_v50 = vsel %vm2185_vm3, %v2433_v34, %v2115_v26  ;;  %v2435_v57 = vrot.slane %v2115_v26, 4 }
 0x4db   : > { %v2440_v23 = vperm.slane %v2434_v50, %v9546_v17  ;;  %v2515_v36 = vrot.slane %v2476_v14, 4 }
 0x4dc   : > { %v2436_v5 = vsel %vm2185_vm3, %v9923_v49, %v2435_v57 }
 0x4dd   : > { %v2444_v29 = vperm.slane %v2436_v5, %v9546_v17  ;;  %v2483_v42 = vrot.slane %v2440_v23, 4  ;;  %v2482_v10 = vsel %vm2185_vm3, %v2481_v59, %v2440_v23  ;;  %v3034_v23 = vrot.slane %v2991_v1, 4 }
 0x4de   : > { %v2488_v3 = vperm.slane %v2482_v10, %v9561_v28 }
 0x4df   : > { %v2495_v19 = vrot.slane %v2444_v29, 4  ;;  %v2484_v49 = vsel %vm2185_vm3, %v2452_v32, %v2483_v42  ;;  %v2494_v40 = vsel %vm2185_vm3, %v2493_v6, %v2444_v29  ;;  %v2480_v6 = vperm.slane %v2472_v62, %v9561_v28 }
 0x4e0   : > { %v10013_v20 = vpop.permute.xlu2 %2714  ;;  %v10015_v46 = vpop.permute.xlu1 %2672  ;;  %v2508_v27 = vsel %vm2185_vm3, %v2488_v3, %v2507_v13  ;;  %v2505_v21 = vrot.slane %v2488_v3, 4  ;;  %v2492_v47 = vperm.slane %v2484_v49, %v9561_v28  ;;  %v2500_v61 = vperm.slane %v2494_v40, %v9561_v28 }
 0x4e1   : > { %v2997_v22 = vsel %vm2185_vm3, %v2996_v25, %v10015_v46  ;;  %7762 = vmatpush.xpose.msk.msra.mxu0 %vm3779_vm4, %v2508_v27  ;;  %v10024_v51 = vpop.permute.xlu0 %2702  ;;  %v2496_v9 = vsel %vm2185_vm3, %v2456_v35, %v2495_v19  ;;  %v3021_v35 = vsel %vm2185_vm3, %v3020_v11, %v9896_v8 }
 0x4e2   : > { %v3003_v24 = vperm.slane %v2997_v22, %v9546_v17  ;;  %v2506_v15 = vsel %vm2185_vm3, %v2505_v21, %v2464_v39  ;;  %v2512_v32 = vsel %vm2185_vm3, %v2492_v47, %v2511_v16  ;;  %v2509_v34 = vrot.slane %v2492_v47, 4 }
 0x4e3   : > { %7758 = vmatpush.xpose.msk.msrb.mxu3 %vm3779_vm4, %v2506_v15  ;;  %7770 = vmatpush.xpose.msk.msra.mxu2 %vm3779_vm4, %v2512_v32  ;;  %v2513_v31 = vrot.slane %v2500_v61, 4  ;;  %v2504_v45 = vperm.slane %v2496_v9, %v9561_v28  ;;  %v2516_v57 = vsel %vm2185_vm3, %v2500_v61, %v2515_v36  ;;  %v2628_v39 = vsel %vm2185_vm3, %v2627_v63, %v2590_v43 }
 0x4e4   : > { %v3032_v26 = vrot.slane %v3003_v24, 4  ;;  %v2510_v50 = vsel %vm2185_vm3, %v2509_v34, %v2468_v54  ;;  %v3027_v59 = vperm.slane %v3021_v35, %v9546_v17  ;;  %v3008_v56 = vrot.slane %v10024_v51, 4 }
 0x4e5   : > { %7777 = vmatpush.xpose.msk.msrb.mxu0 %vm3779_vm4, %v2626_v48  ;;  %7766 = vmatpush.xpose.msk.msra.mxu1 %vm3779_vm4, %v2510_v50  ;;  %v2517_v53 = vrot.slane %v2504_v45, 4  ;;  %v2514_v54 = vsel %vm2185_vm3, %v2513_v31, %v2476_v14  ;;  %v3035_v55 = vsel %vm2185_vm3, %v3003_v24, %v3034_v23  ;;  %v3022_v9 = vrot.slane %v9896_v8, 4 }
 0x4e6   : > { %v3033_v41 = vsel %vm2185_vm3, %v3032_v26, %v2991_v1  ;;  %v3056_v42 = vrot.slane %v3027_v59, 4  ;;  %v3043_v25 = vperm.slane %v3035_v55, %v9561_v28  ;;  %v3106_v63 = vrot.slane %v9956_v12, 4 }
 0x4e7   : > { %7773 = vmatpush.xpose.msk.msra.mxu3 %vm3779_vm4, %v2624_v44  ;;  %v3039_v60 = vperm.slane %v3033_v41, %v9561_v28  ;;  %v2518_v29 = vsel %vm2185_vm3, %v2517_v53, %v2480_v6  ;;  %v3023_v44 = vsel %vm2185_vm3, %v9959_v2, %v3022_v9  ;;  %v2998_v31 = vrot.slane %v10015_v46, 4 }
 0x4e8   : > { %v10054_v18 = vpop.permute.xlu2 %8090  ;;  %v10056_v30 = vpop.permute.xlu1 %2756  ;;  %v3086_v61 = vrot.slane %v3043_v25, 4  ;;  %v3107_v8 = vsel %vm2185_vm3, %v3106_v63, %v9985_v4  ;;  %v3031_v26 = vperm.slane %v3023_v44, %v9546_v17  ;;  %v2986_v23 = vrot.slane %v9530_v7, 4 }
 0x4e9   : > { %7778 = vmatpush.xpose.msk.msrb.mxu0 %vm3779_vm4, %v2516_v57  ;;  %7781 = vmatpush.xpose.msk.msrb.mxu1 %vm3779_vm4, %v2628_v39  ;;  %v2691_v5 = vpop.permute.xlu0 %2690  ;;  %v3082_v19 = vrot.slane %v3039_v60, 4  ;;  %v3130_v1 = vrot.slane %v10056_v30, 4  ;;  %v3113_v57 = vperm.slane %v3107_v8, %v9546_v17  ;;  %v2999_v46 = vsel %vm2185_vm3, %v9987_v38, %v2998_v31 }
 0x4ea   : > { %v3009_v11 = vsel %vm2185_vm3, %v3008_v56, %v2691_v5  ;;  %v3010_v34 = vrot.slane %v2691_v5, 4  ;;  %v3068_v56 = vrot.slane %v3031_v26, 4  ;;  %v2987_v7 = vsel %vm2185_vm3, %v9921_v33, %v2986_v23 }
 0x4eb   : > { %7774 = vmatpush.xpose.msk.msra.mxu3 %vm3779_vm4, %v2514_v54  ;;  %v3015_v10 = vperm.slane %v3009_v11, %v9546_v17  ;;  %v3142_v11 = vrot.slane %v3113_v57, 4 }
 0x4ec   : > { %v3011_v45 = vsel %vm2185_vm3, %v10024_v51, %v3010_v34  ;;  %v3108_v51 = vrot.slane %v9985_v4, 4 }
 0x4ed   : > { %7782 = vmatpush.xpose.msk.msrb.mxu1 %vm3779_vm4, %v2518_v29  ;;  %v3057_v3 = vsel %vm2185_vm3, %v3056_v42, %v3015_v10  ;;  %v3058_v13 = vrot.slane %v3015_v10, 4  ;;  %v3019_v6 = vperm.slane %v3011_v45, %v9546_v17  ;;  %v3007_v29 = vperm.slane %v2999_v46, %v9546_v17 }
 0x4ee   : > { %v3063_v16 = vperm.slane %v3057_v3, %v9561_v28  ;;  %v3109_v33 = vsel %vm2185_vm3, %v9956_v12, %v3108_v51 }
 0x4ef   : > { %v3059_v49 = vsel %vm2185_vm3, %v3027_v59, %v3058_v13  ;;  %v3069_v13 = vsel %vm2185_vm3, %v3068_v56, %v3019_v6  ;;  %v10139_v63 = vperm.slane %v3109_v33, %v9546_v17 }
 0x4f0   : > { %v3083_v14 = vsel %vm2185_vm3, %v3063_v16, %v3082_v19  ;;  %v3080_v40 = vrot.slane %v3063_v16, 4  ;;  %v3067_v27 = vperm.slane %v3059_v49, %v9561_v28  ;;  %v10071_v21 = vpop.permute.xlu2 %8105  ;;  %v2751_v47 = vpop.permute.xlu1 %2750  ;;  %v3075_v9 = vperm.slane %v3069_v13, %v9561_v28 }
 0x4f1   : > { %7763 = vmatmul.msk.f32.vlgmr.msra.gmra.mxu0 %vm3779_vm4, %v3083_v14  ;;  %v2745_v22 = vpop.permute.xlu0 %2744  ;;  %v3118_v43 = vrot.slane %v2751_v47, 4 }
 0x4f2   : > { %v3081_v48 = vsel %vm2185_vm3, %v3080_v40, %v3039_v60  ;;  %v3087_v24 = vsel %vm2185_vm3, %v3067_v27, %v3086_v61  ;;  %v3084_v15 = vrot.slane %v3067_v27, 4  ;;  %v3131_v32 = vsel %vm2185_vm3, %v3130_v1, %v2745_v22 }
 0x4f3   : > { %7759 = vmatmul.msk.f32.vlgmr.msrb.gmra.mxu3 %vm3779_vm4, %v3081_v48  ;;  %7771 = vmatmul.msk.f32.vlgmr.msra.gmra.mxu2 %vm3779_vm4, %v3087_v24  ;;  %v3137_v35 = vperm.slane %v3131_v32, %v9546_v17  ;;  %v3132_v53 = vrot.slane %v2745_v22, 4  ;;  %v2995_v40 = vperm.slane %v2987_v7, %v9546_v17  ;;  %v3044_v27 = vrot.slane %v3007_v29, 4 }
 0x4f4   : > { %v3085_v36 = vsel %vm2185_vm3, %v3084_v15, %v3043_v25  ;;  %v3070_v22 = vrot.slane %v3019_v6, 4 }
 0x4f5   : > { %7767 = vmatmul.msk.f32.vlgmr.msra.gmra.mxu1 %vm3779_vm4, %v3085_v36  ;;  %v3166_v59 = vrot.slane %v3137_v35, 4  ;;  %v3133_v4 = vsel %vm2185_vm3, %v10056_v30, %v3132_v53  ;;  %v3045_v34 = vsel %vm2185_vm3, %v3044_v27, %v2995_v40  ;;  %v3088_v36 = vrot.slane %v3075_v9, 4 }
 0x4f6   : > { %v10124_v30 = vperm.slane %v3133_v4, %v9546_v17  ;;  %v3071_v31 = vsel %vm2185_vm3, %v3031_v26, %v3070_v22  ;;  %v3154_v26 = vrot.slane %v10139_v63, 4  ;;  %v3046_v56 = vrot.slane %v2995_v40, 4 }
 0x4f7   : > { %v3079_v53 = vperm.slane %v3071_v31, %v9561_v28 }
 0x4f8   : > { %v10093_v50 = vpop.permute.xlu2 %8115  ;;  %v2739_v2 = vpop.permute.xlu1 %2738  ;;  %v3178_v44 = vrot.slane %v10124_v30, 4 }
 0x4f9   : > { %v3119_v62 = vsel %vm2185_vm3, %v3118_v43, %v2739_v2  ;;  %v2727_v39 = vpop.permute.xlu0 %2726  ;;  %v3120_v5 = vrot.slane %v2739_v2, 4 }
 0x4fa   : > { %v3125_v41 = vperm.slane %v3119_v62, %v9546_v17  ;;  %v3094_v54 = vrot.slane %v2727_v39, 4 }
 0x4fb   : > { %v3121_v16 = vsel %vm2185_vm3, %v2751_v47, %v3120_v5  ;;  %v3096_v47 = vrot.slane %v10013_v20, 4 }
 0x4fc   : > { %v3167_v55 = vsel %vm2185_vm3, %v3166_v59, %v3125_v41  ;;  %v3168_v60 = vrot.slane %v3125_v41, 4  ;;  %v3095_v38 = vsel %vm2185_vm3, %v3094_v54, %v10013_v20  ;;  %v10134_v24 = vperm.slane %v3121_v16, %v9546_v17 }
 0x4fd   : > { %v3101_v42 = vperm.slane %v3095_v38, %v9546_v17  ;;  %v3173_v10 = vperm.slane %v3167_v55, %v9561_v28  ;;  %v3097_v20 = vsel %vm2185_vm3, %v2727_v39, %v3096_v47  ;;  %v3051_v39 = vperm.slane %v3045_v34, %v9561_v28 }
 0x4fe   : > { %v3169_v14 = vsel %vm2185_vm3, %v3137_v35, %v3168_v60  ;;  %v3179_v45 = vsel %vm2185_vm3, %v3178_v44, %v10134_v24  ;;  %v10150_v2 = vperm.slane %v3097_v20, %v9546_v17  ;;  %v3047_v38 = vsel %vm2185_vm3, %v3007_v29, %v3046_v56 }
 0x4ff   : > { %v3143_v25 = vsel %vm2185_vm3, %v3142_v11, %v3101_v42  ;;  %v3190_v3 = vrot.slane %v3173_v10, 4  ;;  %v3144_v15 = vrot.slane %v3101_v42, 4  ;;  %v3177_v32 = vperm.slane %v3169_v14, %v9561_v28 }
 0x500   : > { %v10116_v19 = vpop.permute.xlu2 %8120  ;;  %v3149_v49 = vperm.slane %v3143_v25, %v9561_v28  ;;  %v10126_v61 = vpop.permute.xlu1 %8085  ;;  %v3089_v54 = vsel %vm2185_vm3, %v3088_v36, %v3051_v39  ;;  %v3185_v23 = vperm.slane %v3179_v45, %v9561_v28  ;;  %v3155_v5 = vsel %vm2185_vm3, %v3154_v26, %v10150_v2 }
 0x501   : > { %v10128_v1 = vpop.permute.xlu0 %8080  ;;  %v3145_v35 = vsel %vm2185_vm3, %v3113_v57, %v3144_v15  ;;  %v3194_v43 = vrot.slane %v3177_v32, 4  ;;  %v8122_v55 = vunpack.i.l.bf16 %v10116_v19  ;;  %v3090_v60 = vrot.slane %v3051_v39, 4 }
 0x502   : > { %v3191_v48 = vsel %vm2185_vm3, %v3190_v3, %v3149_v49  ;;  %v3192_v12 = vrot.slane %v3149_v49, 4  ;;  %v3153_v46 = vperm.slane %v3145_v35, %v9561_v28  ;;  %v8092_v11 = vunpack.i.l.bf16 %v10054_v18 }
 0x503   : > { %7760 = vmatmul.msk.f32.gmra.mxu3 %vm3779_vm4, %v3191_v48  ;;  %v3092_v42 = vrot.slane %v3079_v53, 4  ;;  %v3091_v4 = vsel %vm2185_vm3, %v3075_v9, %v3090_v60  ;;  %v3161_v25 = vperm.slane %v3155_v5, %v9561_v28  ;;  %v3055_v3 = vperm.slane %v3047_v38, %v9561_v28 }
 0x504   : > { %v3193_v8 = vsel %vm2185_vm3, %v3173_v10, %v3192_v12  ;;  %v3195_v57 = vsel %vm2185_vm3, %v3194_v43, %v3153_v46  ;;  %v3196_v59 = vrot.slane %v3153_v46, 4  ;;  %v3198_v10 = vrot.slane %v3185_v23, 4 }
 0x505   : > { %7764 = vmatmul.msk.f32.gmra.mxu0 %vm3779_vm4, %v3193_v8  ;;  %7768 = vmatmul.msk.f32.gmra.mxu1 %vm3779_vm4, %v3195_v57  ;;  %v3349_v16 = vrot.slane %v8122_v55, 4  ;;  %v3347_v49 = vrot.slane %v8092_v11, 4  ;;  %v3180_v29 = vrot.slane %v10134_v24, 4  ;;  %v3093_v14 = vsel %vm2185_vm3, %v3092_v42, %v3055_v3 }
 0x506   : > { %v3197_v6 = vsel %vm2185_vm3, %v3177_v32, %v3196_v59  ;;  %v3199_v40 = vsel %vm2185_vm3, %v3198_v10, %v3161_v25  ;;  %v3200_v47 = vrot.slane %v3161_v25, 4  ;;  %v3156_v22 = vrot.slane %v10150_v2, 4 }
 0x507   : > { %7772 = vmatmul.msk.f32.gmra.mxu2 %vm3779_vm4, %v3197_v6  ;;  %v3348_v48 = vsel %vm2185_vm3, %v3347_v49, %v8122_v55  ;;  %v3337_v9 = vrot.slane %v9585_v52, 4  ;;  %v8107_v24 = vunpack.i.l.bf16 %v10071_v21  ;;  %v3350_v12 = vsel %vm2185_vm3, %v8092_v11, %v3349_v16 }
 0x508   : > { %v10154_v62 = vpop.permute.xlu2 %8125  ;;  %v10165_v51 = vpop.permute.xlu1 %8100  ;;  %v8082_v32 = vunpack.i.l.bf16 %v10128_v1  ;;  %v8117_v20 = vunpack.i.l.bf16 %v10093_v50  ;;  %v8087_v34 = vunpack.i.l.bf16 %v10126_v61  ;;  %v3181_v31 = vsel %vm2185_vm3, %v10124_v30, %v3180_v29 }
 0x509   : > { %v8127_v7 = vunpack.i.l.bf16 %v10154_v62  ;;  %v10204_v8 = vperm.slane %v3348_v48, %v9546_v17  ;;  %v3201_v45 = vsel %vm2185_vm3, %v3185_v23, %v3200_v47  ;;  %v10210_v2 = vperm.slane %v3350_v12, %v9546_v17 }
 0x50a   : > { %v10160_v41 = vpop.permute.xlu0 %8095  ;;  %v3157_v30 = vsel %vm2185_vm3, %v10139_v63, %v3156_v22  ;;  %v3459_v53 = vrot.slane %v8082_v32, 4  ;;  %v8102_v57 = vunpack.i.l.bf16 %v10165_v51  ;;  %v3189_v59 = vperm.slane %v3181_v31, %v9561_v28 }
 0x50b   : > { %7775 = vmatmul.msk.f32.vlgmr.msra.gmra.mxu3 %vm3779_vm4, %v3089_v54  ;;  %v3335_v33 = vrot.slane %v8127_v7, 4  ;;  %v8097_v27 = vunpack.i.l.bf16 %v10160_v41  ;;  %v3338_v36 = vsel %vm2185_vm3, %v8127_v7, %v3337_v9  ;;  %v3371_v54 = vrot.slane %v8107_v24, 4 }
 0x50c   : > { %v3471_v23 = vrot.slane %v8117_v20, 4  ;;  %v3383_v63 = vrot.slane %v10204_v8, 4  ;;  %v3483_v6 = vrot.slane %v8087_v34, 4  ;;  %v3395_v60 = vrot.slane %v10210_v2, 4 }
 0x50d   : > { %7779 = vmatmul.msk.f32.vlgmr.msrb.gmra.mxu0 %vm3779_vm4, %v3091_v4  ;;  %7783 = vmatmul.msk.f32.vlgmr.msrb.gmra.mxu1 %vm3779_vm4, %v3093_v14  ;;  %v3336_v35 = vsel %vm2185_vm3, %v3335_v33, %v9585_v52  ;;  %v3461_v43 = vrot.slane %v8097_v27, 4  ;;  %v10220_v52 = vperm.slane %v3338_v36, %v9546_v17  ;;  %v3460_v5 = vsel %vm2185_vm3, %v3459_v53, %v8097_v27 }
 0x50e   : > { %v10229_v56 = vperm.slane %v3336_v35, %v9546_v17  ;;  %v3165_v42 = vperm.slane %v3157_v30, %v9561_v28  ;;  %v3447_v7 = vrot.slane %v8102_v57, 4  ;;  %v3202_v25 = vrot.slane %v3189_v59, 4 }
 0x50f   : > { %v3462_v55 = vsel %vm2185_vm3, %v8082_v32, %v3461_v43  ;;  %v3397_v10 = vrot.slane %v10220_v52, 4  ;;  %v10240_v16 = vperm.slane %v3460_v5, %v9546_v17  ;;  %v10256_v22 = vsel %vm2185_vm3, %v3395_v60, %v10220_v52 }
 0x510   : > { %v10180_v13 = vpop.permute.xlu2 %8130  ;;  %v10196_v44 = vpop.permute.xlu1 %8110  ;;  %v3385_v3 = vrot.slane %v10229_v56, 4  ;;  %v10243_v49 = vperm.slane %v3462_v55, %v9546_v17  ;;  %v3203_v27 = vsel %vm2185_vm3, %v3202_v25, %v3165_v42  ;;  %v3384_v47 = vsel %vm2185_vm3, %v3383_v63, %v10229_v56 }
 0x511   : > { %v8132_v46 = vunpack.i.l.bf16 %v10180_v13  ;;  %v8112_v39 = vunpack.i.l.bf16 %v10196_v44  ;;  %v11688_v0 = vunpack.i.h.bf16 %v10180_v13 }
 0x512   : > { %v10191_v15 = vpop.permute.xlu0 %8135  ;;  %v3507_v30 = vrot.slane %v10243_v49, 4 }
 0x513   : > { %7776 = vmatmul.msk.f32.gmra.mxu3 %vm3779_vm4, %v3199_v40  ;;  %v3449_v38 = vrot.slane %v8132_v46, 4  ;;  %v3485_v11 = vrot.slane %v8112_v39, 4  ;;  %v8137_v4 = vunpack.i.l.bf16 %v10191_v15  ;;  %v3448_v33 = vsel %vm2185_vm3, %v3447_v7, %v8132_v46 }
 0x514   : > { %v3484_v9 = vsel %vm2185_vm3, %v3483_v6, %v8112_v39  ;;  %v3495_v46 = vrot.slane %v10240_v16, 4  ;;  %v3454_v39 = vperm.slane %v3448_v33, %v9546_v17 }
 0x515   : > { %7780 = vmatmul.msk.f32.gmra.mxu0 %vm3779_vm4, %v3201_v45  ;;  %v3450_v48 = vsel %vm2185_vm3, %v8102_v57, %v3449_v38  ;;  %v3486_v12 = vsel %vm2185_vm3, %v8087_v34, %v3485_v11  ;;  %7784 = vmatmul.msk.f32.gmra.mxu1 %vm3779_vm4, %v3203_v27  ;;  %v3372_v31 = vsel %vm2185_vm3, %v3371_v54, %v8137_v4  ;;  %v3373_v35 = vrot.slane %v8137_v4, 4 }
 0x516   : > { %v10273_v53 = vperm.slane %v3450_v48, %v9546_v17  ;;  %v3490_v57 = vperm.slane %v3484_v9, %v9546_v17  ;;  %v10278_v63 = vperm.slane %v3486_v12, %v9546_v17  ;;  %v3378_v6 = vperm.slane %v3372_v31, %v9546_v17 }
 0x517   : > { %v3374_v60 = vsel %vm2185_vm3, %v8107_v24, %v3373_v35  ;;  %v3497_v4 = vrot.slane %v3454_v39, 4  ;;  %v3496_v24 = vsel %vm2185_vm3, %v3495_v46, %v3454_v39 }
 0x518   : > { %v10217_v26 = vpop.permute.xlu2 %8140  ;;  %v3519_v27 = vrot.slane %v3490_v57, 4  ;;  %v3531_v12 = vrot.slane %v10278_v63, 4  ;;  %v3407_v31 = vrot.slane %v3378_v6, 4 }
 0x519   : > { %v8142_v29 = vunpack.i.l.bf16 %v10217_v26 }
 0x51a   : > { %v10246_v14 = vpop.permute.xlu0 %8150 }
 0x51b   : > { %v3359_v32 = vrot.slane %v8142_v29, 4  ;;  %v8152_v43 = vunpack.i.l.bf16 %v10246_v14 }
 0x51d   : > { %v3360_v59 = vsel %vm2185_vm3, %v3359_v32, %v8152_v43  ;;  %v3361_v54 = vrot.slane %v8152_v43, 4  ;;  %v10303_v32 = vperm.slane %v3374_v60, %v9546_v17  ;;  %v3498_v60 = vsel %vm2185_vm3, %v10240_v16, %v3497_v4 }
 0x51e   : > { %v10248_v40 = vpop.f32.mrf.mxu0  ;;  %v3366_v11 = vperm.slane %v3360_v59, %v9546_v17 }
 0x51f   : > { %v4311_v45 = vsel %vm1470_vm2, %v10248_v40, -inf  ;;  %v3362_v38 = vsel %vm2185_vm3, %v8142_v29, %v3361_v54  ;;  %v3509_v29 = vrot.slane %v10273_v53, 4  ;;  %v3390_v54 = vperm.slane %v3384_v47, %v9561_v28 }
 0x520   : > { %v10262_v36 = vpop.permute.xlu2 %8145  ;;  %4312 = vmax.xlane.f32.xlu0 %v4311_v45  ;;  %v10291_v25 = vperm.slane %v3362_v38, %v9546_v17  ;;  %v3502_v45 = vperm.slane %v3496_v24, %v9561_v28  ;;  %v3508_v47 = vsel %vm2185_vm3, %v3507_v30, %v10273_v53  ;;  %v3386_v30 = vsel %vm2185_vm3, %v10204_v8, %v3385_v3 }
 0x521   : > { %v8147_v34 = vunpack.i.l.bf16 %v10262_v36 }
 0x522   : > { %v10288_v7 = vpop.f32.mrf.mxu1  ;;  %v3421_v39 = vrot.slane %v10291_v25, 4 }
 0x523   : > { %v3472_v5 = vsel %vm2185_vm3, %v3471_v23, %v8147_v34  ;;  %v3473_v55 = vrot.slane %v8147_v34, 4  ;;  %v4317_v35 = vsel %vm1470_vm2, %v10288_v7, -inf }
 0x524   : > { %v3478_v42 = vperm.slane %v3472_v5, %v9546_v17  ;;  %4318 = vmax.xlane.f32.xlu2 %v4317_v35  ;;  %v3545_v5 = vrot.slane %v3502_v45, 4 }
 0x525   : > { %v3474_v23 = vsel %vm2185_vm3, %v8117_v20, %v3473_v55  ;;  %v3409_v20 = vrot.slane %v3366_v11, 4  ;;  %v3408_v55 = vsel %vm2185_vm3, %v3407_v31, %v3366_v11 }
 0x526   : > { %v10296_v33 = vpop.f32.mrf.mxu3  ;;  %v3482_v48 = vperm.slane %v3474_v23, %v9546_v17  ;;  %v3521_v9 = vrot.slane %v3478_v42, 4  ;;  %v3520_v46 = vsel %vm2185_vm3, %v3519_v27, %v3478_v42  ;;  %v3414_v24 = vperm.slane %v3408_v55, %v9561_v28  ;;  %v10325_v31 = vpop.f32.mrf.mxu2 }
 0x527   : > { %v4305_v43 = vsel %vm1470_vm2, %v10296_v33, -inf  ;;  %v3526_v59 = vperm.slane %v3520_v46, %v9561_v28  ;;  %v3433_v42 = vrot.slane %v3390_v54, 4  ;;  %v3506_v27 = vperm.slane %v3498_v60, %v9561_v28 }
 0x528   : > { %v3533_v34 = vrot.slane %v3482_v48, 4  ;;  %4306 = vmax.xlane.f32.xlu1 %v4305_v43  ;;  %v3522_v38 = vsel %vm2185_vm3, %v3490_v57, %v3521_v9  ;;  %v3532_v11 = vsel %vm2185_vm3, %v3531_v12, %v3482_v48  ;;  %v3514_v9 = vperm.slane %v3508_v47, %v9561_v28 }
 0x529   : > { %v3543_v23 = vrot.slane %v3526_v59, 4  ;;  %v3546_v35 = vsel %vm2185_vm3, %v3526_v59, %v3545_v5  ;;  %v3530_v43 = vperm.slane %v3522_v38, %v9561_v28  ;;  %v3434_v57 = vsel %vm2185_vm3, %v3414_v24, %v3433_v42 }
 0x52a   : > { %4684 = vmatpush.msrb.mxu3 %v3546_v35  ;;  %v3549_v4 = vrot.slane %v3506_v27, 4  ;;  %v3538_v46 = vperm.slane %v3532_v11, %v9561_v28  ;;  %v3431_v59 = vrot.slane %v3414_v24, 4  ;;  %v3553_v48 = vrot.slane %v3514_v9, 4 }
 0x52b   : > { %v3544_v16 = vsel %vm2185_vm3, %v3543_v23, %v3502_v45  ;;  %v3547_v5 = vrot.slane %v3530_v43, 4  ;;  %v3394_v12 = vperm.slane %v3386_v30, %v9561_v28  ;;  %v3410_v45 = vsel %vm2185_vm3, %v3378_v6, %v3409_v20 }
 0x52c   : > { %4655 = vmatpush.msrb.mxu2 %v3544_v16  ;;  %4685 = vmatpush.msrb.mxu3 %v3434_v57  ;;  %v3550_v53 = vsel %vm2185_vm3, %v3530_v43, %v3549_v4  ;;  %v3432_v55 = vsel %vm2185_vm3, %v3431_v59, %v3390_v54  ;;  %v3418_v38 = vperm.slane %v3410_v45, %v9561_v28  ;;  %v4323_v56 = vsel %vm1470_vm2, %v10325_v31, -inf }
 0x52d   : > { %4742 = vmatpush.msra.mxu1 %v3550_v53  ;;  %v3548_v60 = vsel %vm2185_vm3, %v3547_v5, %v3506_v27  ;;  %v3554_v8 = vsel %vm2185_vm3, %v3538_v46, %v3553_v48  ;;  %v3437_v3 = vrot.slane %v3394_v12, 4  ;;  %v3551_v23 = vrot.slane %v3538_v46, 4 }
 0x52e   : > { %4656 = vmatpush.msrb.mxu2 %v3432_v55  ;;  %4713 = vmatpush.msra.mxu0 %v3548_v60  ;;  %v3402_v24 = vperm.slane %v10256_v22, %v9561_v28  ;;  %v3419_v20 = vrot.slane %v10303_v32, 4  ;;  %v3510_v54 = vsel %vm2185_vm3, %v10243_v49, %v3509_v29  ;;  %v3534_v42 = vsel %vm2185_vm3, %v10278_v63, %v3533_v34 }
 0x52f   : > { %4800 = vmatpush.msra.mxu3 %v3554_v8  ;;  %v3435_v27 = vrot.slane %v3418_v38, 4  ;;  %v3438_v35 = vsel %vm2185_vm3, %v3418_v38, %v3437_v3  ;;  %v3552_v43 = vsel %vm2185_vm3, %v3551_v23, %v3514_v9  ;;  %v3518_v22 = vperm.slane %v3510_v54, %v9561_v28 }
 0x530   : > { %4324 = vmax.xlane.f32.xlu1 %v4323_v56  ;;  %v3441_v47 = vrot.slane %v3402_v24, 4  ;;  %4743 = vmatpush.msra.mxu1 %v3438_v35  ;;  %v3420_v11 = vsel %vm2185_vm3, %v3419_v20, %v10291_v25  ;;  %v3542_v16 = vperm.slane %v3534_v42, %v9561_v28  ;;  %v3398_v4 = vsel %vm2185_vm3, %v10210_v2, %v3397_v10 }
 0x531   : > { %4771 = vmatpush.msra.mxu2 %v3552_v43  ;;  %v3436_v49 = vsel %vm2185_vm3, %v3435_v27, %v3394_v12  ;;  %v3426_v34 = vperm.slane %v3420_v11, %v9561_v28  ;;  %v3557_v57 = vrot.slane %v3518_v22, 4  ;;  %v3422_v9 = vsel %vm2185_vm3, %v10303_v32, %v3421_v39 }
 0x532   : > { %v10346_v6 = vpop.f32.mrf.mxu0  ;;  %4714 = vmatpush.msra.mxu0 %v3436_v49  ;;  %v10373_v46 = vpop.f32.mrf.mxu1  ;;  %v3555_v59 = vrot.slane %v3542_v16, 4  ;;  %v3406_v5 = vperm.slane %v3398_v4, %v9561_v28  ;;  %v3430_v30 = vperm.slane %v3422_v9, %v9561_v28 }
 0x533   : > { %v4314_v63 = vsel %vm1470_vm2, %v10346_v6, -inf  ;;  %v3442_v53 = vsel %vm2185_vm3, %v3426_v34, %v3441_v47  ;;  %v3558_v52 = vsel %vm2185_vm3, %v3542_v16, %v3557_v57  ;;  %v3439_v48 = vrot.slane %v3426_v34, 4 }
 0x534   : > { %4315 = vmax.xlane.f32.xlu2 %v4314_v63  ;;  %4801 = vmatpush.msra.mxu3 %v3442_v53  ;;  %v3556_v10 = vsel %vm2185_vm3, %v3555_v59, %v3518_v22  ;;  %v3445_v25 = vrot.slane %v3406_v5, 4  ;;  %v3443_v32 = vrot.slane %v3430_v30, 4  ;;  %v4320_v12 = vsel %vm1470_vm2, %v10373_v46, -inf }
 0x535   : > { %4858 = vmatpush.msrb.mxu1 %v3558_v52  ;;  %v3440_v39 = vsel %vm2185_vm3, %v3439_v48, %v3402_v24  ;;  %4829 = vmatpush.msrb.mxu0 %v3556_v10 }
 0x536   : > { %v10362_v29 = vpop.f32.mrf.mxu3  ;;  %4772 = vmatpush.msra.mxu2 %v3440_v39  ;;  %v3446_v55 = vsel %vm2185_vm3, %v3430_v30, %v3445_v25  ;;  %v3444_v60 = vsel %vm2185_vm3, %v3443_v32, %v3406_v5 }
 0x537   : > { %v4308_v2 = vsel %vm1470_vm2, %v10362_v29, -inf  ;;  %4859 = vmatpush.msrb.mxu1 %v3446_v55  ;;  %4830 = vmatpush.msrb.mxu0 %v3444_v60 }
 0x538   : > { %4309 = vmax.xlane.f32.xlu0 %v4308_v2  ;;  %4321 = vmax.xlane.f32.xlu1 %v4320_v12 }
 0x53a   : > { %v10385_v45 = vpop.f32.mrf.mxu2  ;;  %v10395_v3 = vpop.f32.mrf.mxu0 }
 0x53b   : > { %v4326_v38 = vsel %vm1470_vm2, %v10385_v45, -inf  ;;  %v4335_v24 = vsel %vm1470_vm2, %v10395_v3, -inf  ;;  %v10407_v27 = vpop.f32.mrf.mxu1 }
 0x53c   : > { %4327 = vmax.xlane.f32.xlu2 %v4326_v38  ;;  %v4341_v43 = vsel %vm1470_vm2, %v10407_v27, -inf }
 0x53e   : > { %v10391_v56 = vpop.f32.mrf.mxu3 }
 0x53f   : > { %v4329_v8 = vsel %vm1470_vm2, %v10391_v56, -inf }
 0x540   : > { %4330 = vmax.xlane.f32.xlu0 %v4329_v8 }
 0x542   : > { %v10397_v23 = vpop.f32.mrf.mxu2  ;;  %v10413_v47 = vpop.f32.mrf.mxu0 }
 0x543   : > { %v4347_v42 = vsel %vm1470_vm2, %v10397_v23, -inf  ;;  %v4338_v11 = vsel %vm1470_vm2, %v10413_v47, -inf  ;;  %v10419_v16 = vpop.f32.mrf.mxu1 }
 0x544   : > { %4336 = vmax.xlane.f32.xlu2 %v4335_v24  ;;  %v4344_v49 = vsel %vm1470_vm2, %v10419_v16, -inf }
 0x546   : > { %v10401_v20 = vpop.f32.mrf.mxu3 }
 0x547   : > { %v4332_v54 = vsel %vm1470_vm2, %v10401_v20, -inf }
 0x548   : > { %4333 = vmax.xlane.f32.xlu1 %v4332_v54  ;;  %4348 = vmax.xlane.f32.xlu0 %v4347_v42 }
 0x54a   : > { %v10409_v35 = vpop.f32.mrf.mxu2 }
 0x54b   : > { %v4350_v22 = vsel %vm1470_vm2, %v10409_v35, -inf }
 0x54c   : > { %4342 = vmax.xlane.f32.xlu2 %v4341_v43 }
 0x550   : > { %4351 = vmax.xlane.f32.xlu1 %v4350_v22  ;;  %4339 = vmax.xlane.f32.xlu0 %v4338_v11 }
 0x558   : > { %4345 = vmax.xlane.f32.xlu0 %v4344_v49 }
 0x56e   : > { %v10423_v63 = vpop.f32.mrf.mxu0 }
 0x56f   : > { %v4359_v34 = vsel %vm1470_vm2, %v10423_v63, -inf }
 0x570   : > { %4360 = vmax.xlane.f32.xlu1 %v4359_v34 }
 0x572   : > { %v10427_v57 = vpop.f32.mrf.mxu1 }
 0x573   : > { %v4365_v59 = vsel %vm1470_vm2, %v10427_v57, -inf }
 0x576   : > { %v10429_v4 = vpop.f32.mrf.mxu3  ;;  %v10435_v5 = vpop.f32.mrf.mxu2 }
 0x577   : > { %v4353_v9 = vsel %vm1470_vm2, %v10429_v4, -inf  ;;  %v4371_v30 = vsel %vm1470_vm2, %v10435_v5, -inf }
 0x578   : > { %4354 = vmax.xlane.f32.xlu2 %v4353_v9  ;;  %4366 = vmax.xlane.f32.xlu1 %v4365_v59 }
 0x580   : > { %4372 = vmax.xlane.f32.xlu1 %v4371_v30 }
 0x582   : > { %v10439_v53 = vpop.f32.mrf.mxu0  ;;  %v10447_v10 = vpop.f32.mrf.mxu1 }
 0x583   : > { %v4362_v52 = vsel %vm1470_vm2, %v10439_v53, -inf  ;;  %v4368_v32 = vsel %vm1470_vm2, %v10447_v10, -inf }
 0x584   : > { %4363 = vmax.xlane.f32.xlu2 %v4362_v52 }
 0x586   : > { %v10443_v48 = vpop.f32.mrf.mxu3 }
 0x587   : > { %v4356_v2 = vsel %vm1470_vm2, %v10443_v48, -inf }
 0x588   : > { %4357 = vmax.xlane.f32.xlu0 %v4356_v2 }
 0x58a   : > { %v10449_v25 = vpop.f32.mrf.mxu0  ;;  %v10455_v12 = vpop.f32.mrf.mxu2 }
 0x58b   : > { %v4383_v39 = vsel %vm1470_vm2, %v10449_v25, -inf  ;;  %v4374_v55 = vsel %vm1470_vm2, %v10455_v12, -inf  ;;  %v10459_v38 = vpop.f32.mrf.mxu1 }
 0x58c   : > { %4369 = vmax.xlane.f32.xlu2 %v4368_v32  ;;  %4375 = vmax.xlane.f32.xlu1 %v4374_v55  ;;  %v4389_v54 = vsel %vm1470_vm2, %v10459_v38, -inf }
 0x58e   : > { %v10464_v43 = vpop.f32.mrf.mxu3 }
 0x58f   : > { %v4377_v9 = vsel %vm1470_vm2, %v10464_v43, -inf }
 0x590   : > { %4384 = vmax.xlane.f32.xlu0 %v4383_v39 }
 0x592   : > { %v10473_v59 = vpop.f32.mrf.mxu0 }
 0x593   : > { %v4313_v60 = vpop.xlane.xlu0 %4312 }
 0x594   : > { %v4397_v8 = vsub.f32 %v10248_v40, %v4313_v60  ;;  %4390 = vmax.xlane.f32.xlu1 %v4389_v54  ;;  %v10482_v60 = vpop.f32.mrf.mxu1 }
 0x596   : > { %v4429_v24 = vmul.f32 1.442695, %v4397_v8 }
 0x597   : > { %v4319_v34 = vpop.xlane.xlu2 %4318 }
 0x598   : > { %8197 = vpow2.f32 %v4429_v24  ;;  %v4399_v24 = vsub.f32 %v10288_v7, %v4319_v34 }
 0x59b   : > { %v4307_v42 = vpop.xlane.xlu1 %4306 }
 0x59c   : > { %v4395_v22 = vsub.f32 %v10296_v33, %v4307_v42  ;;  %4378 = vmax.xlane.f32.xlu1 %v4377_v9  ;;  %v4386_v33 = vsel %vm1470_vm2, %v10473_v59, -inf }
 0x59e   : > { %v10467_v11 = vpop.eup %8197  ;;  %v4425_v49 = vmul.f32 1.442695, %v4395_v22  ;;  %v4392_v22 = vsel %vm1470_vm2, %v10482_v60, -inf }
 0x59f   : > { %v4491_v40 = vsel %vm1470_vm2, %v10467_v11, 0.0 }
 0x5a0   : > { %8199 = vpow2.f32 %v4425_v49  ;;  %4492 = vadd.xlane.f32.xlu2 %v4491_v40  ;;  %v4433_v40 = vmul.f32 1.442695, %v4399_v24 }
 0x5a3   : > { %v4325_v42 = vpop.xlane.xlu1 %4324 }
 0x5a4   : > { %4387 = vmax.xlane.f32.xlu1 %v4386_v33  ;;  %v4401_v34 = vsub.f32 %v10325_v31, %v4325_v42 }
 0x5a6   : > { %v10475_v30 = vpop.eup %8199 }
 0x5a7   : > { %v4316_v52 = vpop.xlane.xlu2 %4315  ;;  %v4485_v2 = vsel %vm1470_vm2, %v10475_v30, 0.0 }
 0x5a8   : > { %v4398_v32 = vsub.f32 %v10346_v6, %v4316_v52  ;;  %4486 = vadd.xlane.f32.xlu0 %v4485_v2  ;;  %v10493_v2 = vpop.f32.mrf.mxu3 }
 0x5aa   : > { %v4431_v39 = vmul.f32 1.442695, %v4398_v32 }
 0x5ab   : > { %v4310_v55 = vpop.xlane.xlu0 %4309  ;;  %v4322_v24 = vpop.xlane.xlu1 %4321 }
 0x5ac   : > { %8201 = vpow2.f32 %v4431_v39  ;;  %v4396_v8 = vsub.f32 %v10362_v29, %v4310_v55  ;;  %4393 = vmax.xlane.f32.xlu1 %v4392_v22  ;;  %v4437_v22 = vmul.f32 1.442695, %v4401_v34 }
 0x5ae   : > { %v4427_v54 = vmul.f32 1.442695, %v4396_v8 }
 0x5af   : > { %v4328_v49 = vpop.xlane.xlu2 %4327 }
 0x5b0   : > { %v4402_v9 = vsub.f32 %v10385_v45, %v4328_v49  ;;  %8203 = vpow2.f32 %v4427_v54  ;;  %v4380_v45 = vsel %vm1470_vm2, %v10493_v2, -inf }
 0x5b2   : > { %v10489_v6 = vpop.eup %8201  ;;  %v4439_v33 = vmul.f32 1.442695, %v4402_v9 }
 0x5b3   : > { %v4331_v52 = vpop.xlane.xlu0 %4330  ;;  %v4494_v29 = vsel %vm1470_vm2, %v10489_v6, 0.0 }
 0x5b4   : > { %8205 = vpow2.f32 %v4439_v33  ;;  %v4403_v7 = vsub.f32 %v10391_v56, %v4331_v52  ;;  %4495 = vadd.xlane.f32.xlu2 %v4494_v29  ;;  %4381 = vmax.xlane.f32.xlu1 %v4380_v45 }
 0x5b5   : > { %8207 = vpow2.f32 %v4433_v40 }
 0x5b6   : > { %v4441_v32 = vmul.f32 1.442695, %v4403_v7  ;;  %v10499_v55 = vpop.eup %8203 }
 0x5b7   : > { %v4337_v39 = vpop.xlane.xlu2 %4336  ;;  %v4488_v31 = vsel %vm1470_vm2, %v10499_v55, 0.0 }
 0x5b8   : > { %v4405_v8 = vsub.f32 %v10395_v3, %v4337_v39  ;;  %8209 = vpow2.f32 %v4441_v32  ;;  %v4400_v3 = vsub.f32 %v10373_v46, %v4322_v24 }
 0x5ba   : > { %v10502_v54 = vpop.eup %8205  ;;  %v4445_v56 = vmul.f32 1.442695, %v4405_v8  ;;  %v4435_v39 = vmul.f32 1.442695, %v4400_v3 }
 0x5bb   : > { %v4349_v49 = vpop.xlane.xlu0 %4348  ;;  %v4506_v42 = vsel %vm1470_vm2, %v10502_v54, 0.0  ;;  %v10508_v9 = vpop.eup %8207 }
 0x5bc   : > { %8211 = vpow2.f32 %v4445_v56  ;;  %v4409_v40 = vsub.f32 %v10397_v23, %v4349_v49  ;;  %4489 = vadd.xlane.f32.xlu2 %v4488_v31  ;;  %4507 = vadd.xlane.f32.xlu0 %v4506_v42  ;;  %v4497_v52 = vsel %vm1470_vm2, %v10508_v9, 0.0  ;;  %v4334_v32 = vpop.xlane.xlu1 %4333 }
 0x5bd   : > { %8213 = vpow2.f32 %v4437_v22  ;;  %4498 = vadd.xlane.f32.xlu1 %v4497_v52 }
 0x5be   : > { %v4453_v33 = vmul.f32 1.442695, %v4409_v40  ;;  %v10514_v7 = vpop.eup %8209 }
 0x5bf   : > { %v4343_v29 = vpop.xlane.xlu2 %4342  ;;  %v4509_v46 = vsel %vm1470_vm2, %v10514_v7, 0.0 }
 0x5c0   : > { %v4407_v34 = vsub.f32 %v10407_v27, %v4343_v29  ;;  %8215 = vpow2.f32 %v4453_v33  ;;  %v4404_v27 = vsub.f32 %v10401_v20, %v4334_v32 }
 0x5c2   : > { %v10517_v45 = vpop.eup %8211  ;;  %v4449_v23 = vmul.f32 1.442695, %v4407_v34  ;;  %v4443_v3 = vmul.f32 1.442695, %v4404_v27 }
 0x5c3   : > { %v4340_v8 = vpop.xlane.xlu0 %4339  ;;  %v4515_v24 = vsel %vm1470_vm2, %v10517_v45, 0.0  ;;  %v10523_v22 = vpop.eup %8213 }
 0x5c4   : > { %8217 = vpow2.f32 %v4449_v23  ;;  %v4406_v56 = vsub.f32 %v10413_v47, %v4340_v8  ;;  %4510 = vadd.xlane.f32.xlu2 %v4509_v46  ;;  %4516 = vadd.xlane.f32.xlu0 %v4515_v24  ;;  %v4503_v31 = vsel %vm1470_vm2, %v10523_v22, 0.0  ;;  %v4352_v33 = vpop.xlane.xlu1 %4351 }
 0x5c5   : > { %8219 = vpow2.f32 %v4435_v39  ;;  %4504 = vadd.xlane.f32.xlu1 %v4503_v31  ;;  %v4410_v32 = vsub.f32 %v10409_v35, %v4352_v33 }
 0x5c6   : > { %v4447_v49 = vmul.f32 1.442695, %v4406_v56  ;;  %v10529_v42 = vpop.eup %8215 }
 0x5c7   : > { %v4527_v47 = vsel %vm1470_vm2, %v10529_v42, 0.0  ;;  %v4455_v46 = vmul.f32 1.442695, %v4410_v32 }
 0x5c8   : > { %8221 = vpow2.f32 %v4447_v49 }
 0x5c9   : > { %8223 = vpow2.f32 %v4443_v3 }
 0x5ca   : > { %v10531_v40 = vpop.eup %8217 }
 0x5cb   : > { %v4346_v52 = vpop.xlane.xlu0 %4345  ;;  %v4521_v29 = vsel %vm1470_vm2, %v10531_v40, 0.0  ;;  %v10537_v20 = vpop.eup %8219 }
 0x5cc   : > { %v4408_v34 = vsub.f32 %v10419_v16, %v4346_v52  ;;  %4528 = vadd.xlane.f32.xlu2 %v4527_v47  ;;  %4522 = vadd.xlane.f32.xlu0 %v4521_v29  ;;  %v4500_v23 = vsel %vm1470_vm2, %v10537_v20, 0.0 }
 0x5cd   : > { %4501 = vadd.xlane.f32.xlu1 %v4500_v23 }
 0x5ce   : > { %v4451_v39 = vmul.f32 1.442695, %v4408_v34  ;;  %v10543_v8 = vpop.eup %8221 }
 0x5cf   : > { %v4518_v24 = vsel %vm1470_vm2, %v10543_v8, 0.0  ;;  %v10547_v56 = vpop.eup %8223 }
 0x5d0   : > { %8225 = vpow2.f32 %v4451_v39  ;;  %v4512_v16 = vsel %vm1470_vm2, %v10547_v56, 0.0 }
 0x5d1   : > { %8227 = vpow2.f32 %v4455_v46 }
 0x5d4   : > { %4519 = vadd.xlane.f32.xlu2 %v4518_v24 }
 0x5d5   : > { %4513 = vadd.xlane.f32.xlu1 %v4512_v16 }
 0x5d6   : > { %v10551_v35 = vpop.eup %8225 }
 0x5d7   : > { %v4524_v27 = vsel %vm1470_vm2, %v10551_v35, 0.0  ;;  %v10555_v49 = vpop.eup %8227 }
 0x5d8   : > { %v4530_v31 = vsel %vm1470_vm2, %v10555_v49, 0.0 }
 0x5dc   : > { %4525 = vadd.xlane.f32.xlu2 %v4524_v27 }
 0x5dd   : > { %4531 = vadd.xlane.f32.xlu1 %v4530_v31 }
 0x5e3   : > { %v4361_v3 = vpop.xlane.xlu1 %4360 }
 0x5e4   : > { %v4413_v33 = vsub.f32 %v10423_v63, %v4361_v3 }
 0x5e6   : > { %v4461_v52 = vmul.f32 1.442695, %v4413_v33 }
 0x5e8   : > { %8229 = vpow2.f32 %v4461_v52 }
 0x5eb   : > { %v4355_v47 = vpop.xlane.xlu2 %4354  ;;  %v4367_v29 = vpop.xlane.xlu1 %4366 }
 0x5ec   : > { %v4411_v34 = vsub.f32 %v10429_v4, %v4355_v47  ;;  %v4415_v32 = vsub.f32 %v10427_v57, %v4367_v29 }
 0x5ee   : > { %v10562_v39 = vpop.eup %8229  ;;  %v4457_v23 = vmul.f32 1.442695, %v4411_v34  ;;  %v4465_v46 = vmul.f32 1.442695, %v4415_v32 }
 0x5ef   : > { %v4539_v24 = vsel %vm1470_vm2, %v10562_v39, 0.0 }
 0x5f0   : > { %8231 = vpow2.f32 %v4457_v23  ;;  %4540 = vadd.xlane.f32.xlu1 %v4539_v24 }
 0x5f1   : > { %8233 = vpow2.f32 %v4465_v46 }
 0x5f3   : > { %v4373_v52 = vpop.xlane.xlu1 %4372 }
 0x5f6   : > { %v10566_v16 = vpop.eup %8231 }
 0x5f7   : > { %v10568_v63 = vpop.eup %8233  ;;  %v4533_v27 = vsel %vm1470_vm2, %v10566_v16, 0.0  ;;  %v4364_v4 = vpop.xlane.xlu2 %4363 }
 0x5f8   : > { %11677 = vst [vmem:[#allocation72_spill] sm:$0xff] %v10568_v63  ;;  %4534 = vadd.xlane.f32.xlu0 %v4533_v27  ;;  %v4545_v57 = vsel %vm1470_vm2, %v10568_v63, 0.0  ;;  %v4414_v31 = vsub.f32 %v10439_v53, %v4364_v4  ;;  %v4417_v27 = vsub.f32 %v10435_v5, %v4373_v52  ;;  %v11683_v52 = vunpack.i.h.bf16 %v10160_v41 }
 0x5f9   : > { %4546 = vadd.xlane.f32.xlu1 %v4545_v57 }
 0x5fa   : > { %v4463_v47 = vmul.f32 1.442695, %v4414_v31  ;;  %v11591_v31 = vunpack.i.h.bf16 %v10071_v21 }
 0x5fb   : > { %v4358_v3 = vpop.xlane.xlu0 %4357 }
 0x5fc   : > { %v4412_v33 = vsub.f32 %v10443_v48, %v4358_v3  ;;  %8235 = vpow2.f32 %v4463_v47  ;;  %v11590_v48 = vunpack.i.h.bf16 %v10054_v18  ;;  %v11595_v47 = vunpack.i.h.bf16 %v10154_v62 }
 0x5fe   : > { %v4459_v29 = vmul.f32 1.442695, %v4412_v33  ;;  %v11594_v33 = vunpack.i.h.bf16 %v10116_v19 }
 0x5ff   : > { %v4370_v34 = vpop.xlane.xlu2 %4369  ;;  %v10581_v57 = vpop.xlane.xlu1 %4375 }
 0x600   : > { %8237 = vpow2.f32 %v4459_v29  ;;  %v4416_v32 = vsub.f32 %v10447_v10, %v4370_v34 }
 0x602   : > { %v10578_v24 = vpop.eup %8235  ;;  %v4467_v53 = vmul.f32 1.442695, %v4416_v32  ;;  %v4469_v32 = vmul.f32 1.442695, %v4417_v27 }
 0x603   : > { %v4385_v23 = vpop.xlane.xlu0 %4384  ;;  %11678 = vst [vmem:[#allocation73_spill] sm:$0xff] %v10578_v24  ;;  %v4542_v10 = vsel %vm1470_vm2, %v10578_v24, 0.0 }
 0x604   : > { %v4421_v46 = vsub.f32 %v10449_v25, %v4385_v23  ;;  %v11592_v25 = vunpack.i.h.bf16 %v10128_v1  ;;  %8239 = vpow2.f32 %v4467_v53  ;;  %4543 = vadd.xlane.f32.xlu0 %v4542_v10  ;;  %v3571_v23 = vrot.slane %v11590_v48, 4 }
 0x605   : > { %v3595_v10 = vrot.slane %v11591_v31, 4  ;;  %v3559_v53 = vrot.slane %v11595_v47, 4 }
 0x606   : > { %v10583_v4 = vpop.eup %8237  ;;  %v4477_v3 = vmul.f32 1.442695, %v4421_v46  ;;  %v3681_v29 = vrot.slane %v11592_v25, 4  ;;  %v3572_v27 = vsel %vm2185_vm3, %v3571_v23, %v11594_v33  ;;  %v11681_v46 = vunpack.i.h.bf16 %v10165_v51 }
 0x607   : > { %11679 = vst [vmem:[#allocation74_spill] sm:$0xff] %v10583_v4  ;;  %v4536_v5 = vsel %vm1470_vm2, %v10583_v4, 0.0  ;;  %v4391_v23 = vpop.xlane.xlu1 %4390 }
 0x608   : > { %8241 = vpow2.f32 %v4477_v3  ;;  %4537 = vadd.xlane.f32.xlu2 %v4536_v5  ;;  %v11680_v5 = vunpack.i.h.bf16 %v10126_v61  ;;  %v3669_v31 = vrot.slane %v11681_v46, 4  ;;  %v3682_v25 = vsel %vm2185_vm3, %v3681_v29, %v11683_v52 }
 0x609   : > { %8243 = vpow2.f32 %v4469_v32  ;;  %v11686_v46 = vunpack.i.h.bf16 %v10217_v26  ;;  %v4423_v4 = vsub.f32 %v10459_v38, %v4391_v23  ;;  %v11687_v29 = vunpack.i.h.bf16 %v10093_v50 }
 0x60a   : > { %v3705_v48 = vrot.slane %v11680_v5, 4  ;;  %v10616_v34 = vpop.eup %8239  ;;  %v11685_v5 = vunpack.i.h.bf16 %v10196_v44  ;;  %v10636_v32 = vperm.slane %v3572_v27, %v9546_v17  ;;  %v3670_v24 = vsel %vm2185_vm3, %v3669_v31, %v11688_v0 }
 0x60b   : > { %11682 = vst [vmem:[#allocation75_spill] sm:$0xff] %v10616_v34  ;;  %v3583_v58 = vrot.slane %v11686_v46, 4  ;;  %v4548_v52 = vsel %vm1470_vm2, %v10616_v34, 0.0  ;;  %v3693_v3 = vrot.slane %v11687_v29, 4  ;;  %v3560_v38 = vsel %vm2185_vm3, %v3559_v53, %v9631_v37 }
 0x60c   : > { %v3706_v47 = vsel %vm2185_vm3, %v3705_v48, %v11685_v5  ;;  %4549 = vadd.xlane.f32.xlu0 %v4548_v52  ;;  %v10646_v23 = vperm.slane %v3682_v25, %v9546_v17  ;;  %v11599_v5 = vunpack.i.h.bf16 %v10246_v14  ;;  %v4481_v46 = vmul.f32 1.442695, %v4423_v4 }
 0x60d   : > { %v10650_v27 = vperm.slane %v3706_v47, %v9546_v17  ;;  %v11689_v29 = vunpack.i.h.bf16 %v10191_v15  ;;  %v11690_v31 = vunpack.i.h.bf16 %v10262_v36  ;;  %v4418_v53 = vsub.f32 %v10455_v12, %v10581_v57 }
 0x60e   : > { %v10623_v33 = vpop.eup %8241  ;;  %v10661_v25 = vperm.slane %v3670_v24, %v9546_v17  ;;  %v3584_v4 = vsel %vm2185_vm3, %v3583_v58, %v11599_v5  ;;  %8245 = vpow2.f32 %v4481_v46  ;;  %v3607_v24 = vrot.slane %v10636_v32, 4 }
 0x60f   : > { %11684 = vst [vmem:[#allocation76_spill] sm:$0xff] %v10623_v33  ;;  %v4563_v48 = vsel %vm1470_vm2, %v10623_v33, 0.0  ;;  %v3596_v0 = vsel %vm2185_vm3, %v3595_v10, %v11689_v29  ;;  %v3694_v52 = vsel %vm2185_vm3, %v3693_v3, %v11690_v31  ;;  %v10666_v47 = vpop.eup %8243  ;;  %v3717_v10 = vrot.slane %v10646_v23, 4  ;;  %v4379_v29 = vpop.xlane.xlu1 %4378 }
 0x610   : > { %4564 = vadd.xlane.f32.xlu2 %v4563_v48  ;;  %11691 = vst [vmem:[#allocation77_spill] sm:$0xff] %v10666_v47  ;;  %v10669_v48 = vperm.slane %v3560_v38, %v9546_v17  ;;  %v10673_v3 = vperm.slane %v3596_v0, %v9546_v17  ;;  %v10676_v12 = vperm.slane %v3694_v52, %v9546_v17  ;;  %v3741_v57 = vrot.slane %v10650_v27, 4 }
 0x611   : > { %v10681_v58 = vperm.slane %v3584_v4, %v9546_v17  ;;  %v4471_v46 = vmul.f32 1.442695, %v4418_v53  ;;  %v4419_v38 = vsub.f32 %v10464_v43, %v4379_v29  ;;  %v4551_v0 = vsel %vm1470_vm2, %v10666_v47, 0.0 }
 0x612   : > { %v3718_v52 = vsel %vm2185_vm3, %v3717_v10, %v10661_v25  ;;  %v3631_v33 = vrot.slane %v10673_v3, 4  ;;  %v3742_v53 = vsel %vm2185_vm3, %v3741_v57, %v10676_v12  ;;  %v3608_v4 = vsel %vm2185_vm3, %v3607_v24, %v10669_v48 }
 0x613   : > { %v4493_v31 = vpop.xlane.xlu2 %4492  ;;  %v4473_v34 = vmul.f32 1.442695, %v4419_v38  ;;  %v3724_v29 = vperm.slane %v3718_v52, %v9561_v28  ;;  %v3614_v38 = vperm.slane %v3608_v4, %v9561_v28 }
 0x614   : > { %8247 = vrcp.f32 %v4493_v31  ;;  %4552 = vadd.xlane.f32.xlu0 %v4551_v0  ;;  %v10688_v5 = vpop.eup %8245  ;;  %v3632_v10 = vsel %vm2185_vm3, %v3631_v33, %v10681_v58  ;;  %v3748_v31 = vperm.slane %v3742_v53, %v9561_v28 }
 0x615   : > { %11692 = vst [vmem:[#allocation78_spill] sm:$0xff] %v10688_v5  ;;  %8249 = vpow2.f32 %v4471_v46  ;;  %v4569_v43 = vsel %vm1470_vm2, %v10688_v5, 0.0  ;;  %v3767_v46 = vrot.slane %v3724_v29, 4  ;;  %v3638_v63 = vperm.slane %v3632_v10, %v9561_v28 }
 0x616   : > { %8251 = vpow2.f32 %v4473_v34  ;;  %v3657_v52 = vrot.slane %v3614_v38, 4 }
 0x617   : > { %v4388_v47 = vpop.xlane.xlu1 %4387  ;;  %v3768_v33 = vsel %vm2185_vm3, %v3748_v31, %v3767_v46 }
 0x618   : > { %4570 = vadd.xlane.f32.xlu2 %v4569_v43  ;;  %v4422_v5 = vsub.f32 %v10473_v59, %v4388_v47  ;;  %v3658_v43 = vsel %vm2185_vm3, %v3638_v63, %v3657_v52  ;;  %v3765_v47 = vrot.slane %v3748_v31, 4 }
 0x61a   : > { %v8248_v0 = vpop.eup %8247  ;;  %v4479_v4 = vmul.f32 1.442695, %v4422_v5  ;;  %v3766_v46 = vsel %vm2185_vm3, %v3765_v47, %v3724_v29 }
 0x61b   : > { %v4607_v57 = vmul.f32 %v8248_v0, %v10467_v11  ;;  %v4487_v24 = vpop.xlane.xlu0 %4486  ;;  %v10705_v34 = vpop.eup %8249 }
 0x61c   : > { %8253 = vrcp.f32 %v4487_v24  ;;  %v10709_v53 = vpop.eup %8251  ;;  %v4554_v59 = vsel %vm1470_vm2, %v10705_v34, 0.0  ;;  %v3655_v24 = vrot.slane %v3638_v63, 4  ;;  %v11694_v63 = vunpack.i.h.bf16 %v10160_v41 }
 0x61d   : > { %7787 = vmatmul.msk.f32.vlgmr.msrb.gmra.mxu3 %vm1470_vm2, %v4607_v57  ;;  %v4557_v11 = vsel %vm1470_vm2, %v10709_v53, 0.0  ;;  %8255 = vpow2.f32 %v4479_v4  ;;  %v11699_v41 = vunpack.i.h.bf16 %v10246_v14 }
 0x61e   : > { %4916 = vmatpush.msrb.mxu3 %v3768_v33  ;;  %4558 = vadd.xlane.f32.xlu1 %v4557_v11  ;;  %v3656_v31 = vsel %vm2185_vm3, %v3655_v24, %v3614_v38  ;;  %v3683_v29 = vrot.slane %v11694_v63, 4  ;;  %v11697_v38 = vunpack.i.h.bf16 %v10180_v13 }
 0x61f   : > { %v4394_v57 = vpop.xlane.xlu1 %4393 }
 0x620   : > { %4917 = vmatpush.msrb.mxu3 %v3658_v43  ;;  %4555 = vadd.xlane.f32.xlu2 %v4554_v59  ;;  %v4424_v5 = vsub.f32 %v10482_v60, %v4394_v57  ;;  %v11695_v43 = vunpack.i.h.bf16 %v10191_v15  ;;  %v3671_v24 = vrot.slane %v11697_v38, 4  ;;  %v3743_v15 = vrot.slane %v10676_v12, 4 }
 0x621   : > { %v3633_v12 = vrot.slane %v10681_v58, 4 }
 0x622   : > { %v8254_v10 = vpop.eup %8253  ;;  %v4483_v52 = vmul.f32 1.442695, %v4424_v5  ;;  %v3597_v59 = vrot.slane %v11695_v43, 4  ;;  %v11703_v43 = vunpack.i.h.bf16 %v10093_v50  ;;  %v11705_v50 = vunpack.i.h.bf16 %v10217_v26 }
 0x623   : > { %v4605_v0 = vmul.f32 %v8254_v10, %v10475_v30  ;;  %v10720_v33 = vpop.eup %8255  ;;  %v11693_v30 = vunpack.i.h.bf16 %v10196_v44  ;;  %v11696_v10 = vunpack.i.h.bf16 %v10262_v36  ;;  %v11698_v44 = vunpack.i.h.bf16 %v10126_v61 }
 0x624   : > { %v4566_v4 = vsel %vm1470_vm2, %v10720_v33, 0.0  ;;  %8257 = vpow2.f32 %v4483_v52  ;;  %v3585_v52 = vrot.slane %v11699_v41, 4  ;;  %v11700_v36 = vunpack.i.h.bf16 %v10116_v19 }
 0x625   : > { %7785 = vmatmul.msk.f32.vlgmr.msrb.gmra.mxu2 %vm1470_vm2, %v4605_v0  ;;  %v3707_v60 = vrot.slane %v11693_v30, 4  ;;  %v3695_v0 = vrot.slane %v11696_v10, 4  ;;  %v11702_v30 = vunpack.i.h.bf16 %v10071_v21  ;;  %v3561_v21 = vrot.slane %v9631_v37, 4 }
 0x626   : > { %4887 = vmatpush.msrb.mxu2 %v3766_v46  ;;  %4567 = vadd.xlane.f32.xlu1 %v4566_v4  ;;  %v3586_v10 = vsel %vm2185_vm3, %v11705_v50, %v3585_v52  ;;  %v3744_v37 = vsel %vm2185_vm3, %v10650_v27, %v3743_v15  ;;  %v11707_v26 = vunpack.i.h.bf16 %v10154_v62  ;;  %v3634_v27 = vsel %vm2185_vm3, %v10673_v3, %v3633_v12 }
 0x627   : > { %v4496_v11 = vpop.xlane.xlu2 %4495  ;;  %v4382_v47 = vpop.xlane.xlu1 %4381  ;;  %v3708_v46 = vsel %vm2185_vm3, %v11698_v44, %v3707_v60  ;;  %v3598_v61 = vsel %vm2185_vm3, %v11702_v30, %v3597_v59  ;;  %v3696_v19 = vsel %vm2185_vm3, %v11703_v43, %v3695_v0  ;;  %v3719_v44 = vrot.slane %v10661_v25, 4 }
 0x628   : > { %4888 = vmatpush.msrb.mxu2 %v3656_v31  ;;  %8259 = vrcp.f32 %v4496_v11  ;;  %v4420_v57 = vsub.f32 %v10493_v2, %v4382_v47  ;;  %v3573_v31 = vrot.slane %v11700_v36, 4  ;;  %v11701_v2 = vunpack.i.h.bf16 %v10128_v1 }
 0x629   : > { %v11704_v47 = vunpack.i.h.bf16 %v10165_v51  ;;  %v10784_v51 = vperm.slane %v3696_v19, %v9546_v17  ;;  %v10797_v41 = vperm.slane %v3586_v10, %v9546_v17  ;;  %v10800_v52 = vperm.slane %v3744_v37, %v9561_v28 }
 0x62a   : > { %v10736_v5 = vpop.eup %8257  ;;  %v4475_v4 = vmul.f32 1.442695, %v4420_v57  ;;  %v3684_v13 = vsel %vm2185_vm3, %v11701_v2, %v3683_v29  ;;  %v10763_v29 = vperm.slane %v3708_v46, %v9546_v17  ;;  %v10781_v57 = vperm.slane %v3598_v61, %v9546_v17 }
 0x62b   : > { %v4572_v60 = vsel %vm1470_vm2, %v10736_v5, 0.0  ;;  %v10766_v59 = vperm.slane %v3684_v13, %v9546_v17  ;;  %v3672_v58 = vsel %vm2185_vm3, %v11704_v47, %v3671_v24  ;;  %v3562_v24 = vsel %vm2185_vm3, %v11707_v26, %v3561_v21 }
 0x62c   : > { %8261 = vpow2.f32 %v4475_v4  ;;  %v3753_v46 = vrot.slane %v10763_v29, 4  ;;  %v3609_v3 = vrot.slane %v10669_v48, 4  ;;  %v10813_v13 = vperm.slane %v3634_v27, %v9561_v28 }
 0x62d   : > { %v3729_v25 = vrot.slane %v10766_v59, 4  ;;  %v10818_v61 = vperm.slane %v3562_v24, %v9546_v17 }
 0x62e   : > { %v8260_v11 = vpop.eup %8259  ;;  %4573 = vadd.xlane.f32.xlu1 %v4572_v60  ;;  %v3754_v30 = vsel %vm2185_vm3, %v3753_v46, %v10784_v51  ;;  %v3720_v60 = vsel %vm2185_vm3, %v10646_v23, %v3719_v44  ;;  %v3659_v50 = vrot.slane %v10813_v13, 4 }
 0x62f   : > { %v4490_v14 = vpop.xlane.xlu2 %4489  ;;  %v10754_v63 = vpop.xlane.xlu0 %4507  ;;  %v4608_v1 = vmul.f32 %v8260_v11, %v10489_v6  ;;  %v11706_v6 = vunpack.i.h.bf16 %v10054_v18  ;;  %v10793_v18 = vperm.slane %v3672_v58, %v9546_v17  ;;  %v3643_v11 = vrot.slane %v10781_v57, 4 }
 0x630   : > { %8263 = vrcp.f32 %v4490_v14  ;;  %v4499_v38 = vpop.xlane.xlu1 %4498  ;;  %v3769_v14 = vrot.slane %v10800_v52, 4  ;;  %v3728_v58 = vperm.slane %v3720_v60, %v9561_v28 }
 0x631   : > { %7788 = vmatmul.msk.f32.gmra.mxu3 %vm1470_vm2, %v4608_v1  ;;  %v3574_v0 = vsel %vm2185_vm3, %v11706_v6, %v3573_v31  ;;  %8265 = vrcp.f32 %v4499_v38  ;;  %v3730_v12 = vsel %vm2185_vm3, %v3729_v25, %v10793_v18  ;;  %v3644_v43 = vsel %vm2185_vm3, %v3643_v11, %v10797_v41 }
 0x632   : > { %v10802_v62 = vpop.eup %8261  ;;  %v10805_v15 = vperm.slane %v3574_v0, %v9546_v17  ;;  %v3610_v1 = vsel %vm2185_vm3, %v10636_v32, %v3609_v3  ;;  %v3736_v10 = vperm.slane %v3730_v12, %v9561_v28  ;;  %v3650_v6 = vperm.slane %v3644_v43, %v9561_v28 }
 0x633   : > { %v4560_v36 = vsel %vm1470_vm2, %v10802_v62, 0.0  ;;  %v3770_v32 = vsel %vm2185_vm3, %v3769_v14, %v3728_v58  ;;  %v3618_v0 = vperm.slane %v3610_v1, %v9561_v28  ;;  %v3755_v12 = vrot.slane %v10784_v51, 4 }
 0x634   : > { %4561 = vadd.xlane.f32.xlu0 %v4560_v36  ;;  %v3619_v21 = vrot.slane %v10805_v15, 4  ;;  %v3775_v3 = vrot.slane %v3736_v10, 4 }
 0x635   : > { %v3660_v44 = vsel %vm2185_vm3, %v3659_v50, %v3618_v0  ;;  %v3661_v60 = vrot.slane %v3618_v0, 4 }
 0x636   : > { %v8264_v4 = vpop.eup %8263  ;;  %v3620_v37 = vsel %vm2185_vm3, %v3619_v21, %v10818_v61 }
 0x637   : > { %v4511_v31 = vpop.xlane.xlu2 %4510  ;;  %v4517_v2 = vpop.xlane.xlu0 %4516  ;;  %v4606_v48 = vmul.f32 %v8264_v4, %v10499_v55  ;;  %v3760_v55 = vperm.slane %v3754_v30, %v9561_v28  ;;  %v3626_v46 = vperm.slane %v3620_v37, %v9561_v28  ;;  %v3663_v4 = vrot.slane %v3650_v6, 4 }
 0x638   : > { %8267 = vrcp.f32 %v4511_v31  ;;  %v8266_v19 = vpop.eup %8265  ;;  %v4505_v47 = vpop.xlane.xlu1 %4504  ;;  %v3771_v30 = vrot.slane %v3728_v58, 4  ;;  %v3662_v43 = vsel %vm2185_vm3, %v10813_v13, %v3661_v60  ;;  %v3731_v58 = vrot.slane %v10793_v18, 4 }
 0x639   : > { %8269 = vrcp.f32 %v4517_v2  ;;  %7786 = vmatmul.msk.f32.gmra.mxu2 %vm1470_vm2, %v4606_v48  ;;  %v4609_v23 = vmul.f32 %v8266_v19, %v10508_v9  ;;  %v3773_v38 = vrot.slane %v3760_v55, 4  ;;  %v3664_v48 = vsel %vm2185_vm3, %v3663_v4, %v3626_v46 }
 0x63a   : > { %8271 = vrcp.f32 %v4505_v47  ;;  %v3732_v18 = vsel %vm2185_vm3, %v10766_v59, %v3731_v58 }
 0x63b   : > { %7789 = vmatmul.msk.f32.vlgmr.msra.gmra.mxu0 %vm1470_vm2, %v4609_v23  ;;  %8273 = vrcp.f32 %v10754_v63  ;;  %v3774_v36 = vsel %vm2185_vm3, %v3773_v38, %v3736_v10  ;;  %v3772_v63 = vsel %vm2185_vm3, %v10800_v52, %v3771_v30  ;;  %v3756_v52 = vsel %vm2185_vm3, %v10763_v29, %v3755_v12  ;;  %v11710_v12 = vld [vmem:[#allocation74_spill] sm:$0xff] }
 0x63c   : > { %4945 = vmatpush.msra.mxu0 %v3770_v32  ;;  %v3621_v29 = vrot.slane %v10818_v61, 4  ;;  %v3740_v38 = vperm.slane %v3732_v18, %v9561_v28 }
 0x63e   : > { %v8268_v9 = vpop.eup %8267  ;;  %4946 = vmatpush.msra.mxu0 %v3660_v44  ;;  %v3622_v0 = vsel %vm2185_vm3, %v10805_v15, %v3621_v29 }
 0x63f   : > { %v8270_v26 = vpop.eup %8269  ;;  %v4613_v24 = vmul.f32 %v8268_v9, %v10514_v7  ;;  %v4529_v27 = vpop.xlane.xlu2 %4528  ;;  %v3776_v7 = vsel %vm2185_vm3, %v3760_v55, %v3775_v3  ;;  %v3645_v55 = vrot.slane %v10797_v41, 4  ;;  %v3764_v41 = vperm.slane %v3756_v52, %v9561_v28 }
 0x640   : > { %v4615_v25 = vmul.f32 %v8270_v26, %v10517_v45  ;;  %v8272_v11 = vpop.eup %8271  ;;  %v4502_v2 = vpop.xlane.xlu1 %4501  ;;  %v3665_v45 = vrot.slane %v3626_v46, 4  ;;  %v3630_v44 = vperm.slane %v3622_v0, %v9561_v28 }
 0x641   : > { %7793 = vmatmul.msk.f32.vlgmr.msra.gmra.mxu2 %vm1470_vm2, %v4613_v24  ;;  %v4611_v31 = vmul.f32 %v8272_v11, %v10523_v22  ;;  %8275 = vrcp.f32 %v4502_v2  ;;  %v4523_v22 = vpop.xlane.xlu0 %4522  ;;  %v8274_v1 = vpop.eup %8273  ;;  %v3646_v13 = vsel %vm2185_vm3, %v10781_v57, %v3645_v55 }
 0x642   : > { %7795 = vmatmul.msk.f32.vlgmr.msra.gmra.mxu3 %vm1470_vm2, %v4615_v25  ;;  %5003 = vmatpush.msra.mxu2 %v3774_v36  ;;  %v3666_v14 = vsel %vm2185_vm3, %v3650_v6, %v3665_v45  ;;  %v4612_v47 = vmul.f32 %v8274_v1, %v10502_v54  ;;  %v3654_v54 = vperm.slane %v3646_v13, %v9561_v28  ;;  %v3777_v6 = vrot.slane %v3764_v41, 4  ;;  %v11711_v1 = vld [vmem:[#allocation75_spill] sm:$0xff]  ;;  %v11714_v41 = vld [vmem:[#allocation78_spill] sm:$0xff] }
 0x643   : > { %5032 = vmatpush.msra.mxu3 %v3776_v7  ;;  %7791 = vmatmul.msk.f32.vlgmr.msra.gmra.mxu1 %vm1470_vm2, %v4611_v31 }
 0x644   : > { %5004 = vmatpush.msra.mxu2 %v3664_v48  ;;  %4974 = vmatpush.msra.mxu1 %v3772_v63  ;;  %v3667_v26 = vrot.slane %v3654_v54, 4  ;;  %v3778_v59 = vsel %vm2185_vm3, %v3777_v6, %v3740_v38  ;;  %v11709_v63 = vld [vmem:[#allocation73_spill] sm:$0xff]  ;;  %v8179_v38 = vld [vmem:[#allocation3] ss:$0 sm:$0xff] }
 0x645   : > { %5033 = vmatpush.msra.mxu3 %v3666_v14 }
 0x646   : > { %4975 = vmatpush.msra.mxu1 %v3662_v43 }
 0x647   : > { %v4520_v19 = vpop.xlane.xlu2 %4519  ;;  %v8276_v21 = vpop.eup %8275 }
 0x648   : > { %8277 = vrcp.f32 %v4520_v19  ;;  %v4514_v23 = vpop.xlane.xlu1 %4513  ;;  %v4610_v51 = vmul.f32 %v8276_v21, %v10537_v20  ;;  %v11712_v21 = vld [vmem:[#allocation76_spill] sm:$0xff] }
 0x649   : > { %8279 = vrcp.f32 %v4523_v22 }
 0x64a   : > { %8281 = vrcp.f32 %v4529_v27  ;;  %7790 = vmatmul.msk.f32.gmra.mxu0 %vm1470_vm2, %v4610_v51 }
 0x64b   : > { %8283 = vrcp.f32 %v4514_v23  ;;  %7792 = vmatmul.msk.f32.gmra.mxu1 %vm1470_vm2, %v4612_v47  ;;  %v11713_v47 = vld [vmem:[#allocation77_spill] sm:$0xff] }
 0x64e   : > { %v8278_v50 = vpop.eup %8277 }
 0x64f   : > { %v4526_v10 = vpop.xlane.xlu2 %4525  ;;  %v4616_v20 = vmul.f32 %v8278_v50, %v10543_v8  ;;  %v8280_v37 = vpop.eup %8279 }
 0x650   : > { %8285 = vrcp.f32 %v4526_v10  ;;  %v8282_v57 = vpop.eup %8281  ;;  %v4617_v61 = vmul.f32 %v8280_v37, %v10531_v40  ;;  %v4532_v9 = vpop.xlane.xlu1 %4531  ;;  %v3668_v40 = vsel %vm2185_vm3, %v3667_v26, %v3630_v44  ;;  %v8892_v26 = vmov 0  }
 0x651   : > { %7796 = vmatmul.msk.f32.gmra.mxu3 %vm1470_vm2, %v4616_v20  ;;  %v8284_v32 = vpop.eup %8283  ;;  %v4619_v24 = vmul.f32 %v8282_v57, %v10529_v42  ;;  %8287 = vrcp.f32 %v4532_v9  ;;  %8154 = vset.pattern.permute.xlu2 %v8892_v26 }
 0x652   : > { %v4614_v8 = vmul.f32 %v8284_v32, %v10547_v56  ;;  %7797 = vmatmul.msk.f32.vlgmr.msrb.gmra.mxu0 %vm1470_vm2, %v4617_v61  ;;  %5681 = vperm.xlu2 %8154, %v8179_v38  }
 0x653   : > { %7799 = vmatmul.msk.f32.vlgmr.msrb.gmra.mxu1 %vm1470_vm2, %v4619_v24  ;;  %5061 = vmatpush.msrb.mxu0 %v3778_v59 }
 0x654   : > { %7794 = vmatmul.msk.f32.gmra.mxu2 %vm1470_vm2, %v4614_v8 }
 0x655   : > { %5062 = vmatpush.msrb.mxu0 %v3668_v40 }
 0x656   : > { %v8286_v15 = vpop.eup %8285 }
 0x657   : > { %v4618_v56 = vmul.f32 %v8286_v15, %v10551_v35  ;;  %v8288_v27 = vpop.eup %8287 }
 0x658   : > { %v4620_v42 = vmul.f32 %v8288_v27, %v10555_v49  ;;  %v11708_v49 = vld [vmem:[#allocation72_spill] sm:$0xff] }
 0x65a   : > { %7798 = vmatmul.msk.f32.gmra.mxu0 %vm1470_vm2, %v4618_v56 }
 0x65b   : > { %7800 = vmatmul.msk.f32.gmra.mxu1 %vm1470_vm2, %v4620_v42 }
 0x663   : > { %v4541_v46 = vpop.xlane.xlu1 %4540 }
 0x664   : > { %8289 = vrcp.f32 %v4541_v46 }
 0x66a   : > { %v8290_v25 = vpop.eup %8289 }
 0x66b   : > { %v4623_v3 = vmul.f32 %v8290_v25, %v10562_v39  ;;  %v4535_v4 = vpop.xlane.xlu0 %4534 }
 0x66c   : > { %8291 = vrcp.f32 %v4535_v4  ;;  %v4547_v11 = vpop.xlane.xlu1 %4546 }
 0x66d   : > { %8293 = vrcp.f32 %v4547_v11  ;;  %7803 = vmatmul.msk.f32.vlgmr.msrb.gmra.mxu3 %vm1470_vm2, %v4623_v3 }
 0x672   : > { %v8292_v36 = vpop.eup %8291 }
 0x673   : > { %v8294_v35 = vpop.eup %8293  ;;  %v4621_v7 = vmul.f32 %v8292_v36, %v10566_v16 }
 0x674   : > { %v4625_v31 = vmul.f32 %v8294_v35, %v11708_v49 }
 0x675   : > { %7801 = vmatmul.msk.f32.vlgmr.msrb.gmra.mxu2 %vm1470_vm2, %v4621_v7 }
 0x676   : > { %7805 = vmatmul.msk.f32.vlgmr.msra.gmra.mxu0 %vm1470_vm2, %v4625_v31 }
 0x677   : > { %v4544_v2 = vpop.xlane.xlu0 %4543 }
 0x678   : > { %8295 = vrcp.f32 %v4544_v2 }
 0x67b   : > { %v4538_v30 = vpop.xlane.xlu2 %4537 }
 0x67c   : > { %8297 = vrcp.f32 %v4538_v30 }
 0x67e   : > { %v8296_v39 = vpop.eup %8295 }
 0x67f   : > { %v4550_v48 = vpop.xlane.xlu0 %4549  ;;  %v4624_v60 = vmul.f32 %v8296_v39, %v11709_v63 }
 0x680   : > { %8299 = vrcp.f32 %v4550_v48 }
 0x681   : > { %7804 = vmatmul.msk.f32.gmra.mxu3 %vm1470_vm2, %v4624_v60 }
 0x682   : > { %v8298_v45 = vpop.eup %8297 }
 0x683   : > { %v4565_v14 = vpop.xlane.xlu2 %4564  ;;  %v4622_v22 = vmul.f32 %v8298_v45, %v11710_v12 }
 0x684   : > { %8301 = vrcp.f32 %v4565_v14 }
 0x685   : > { %7802 = vmatmul.msk.f32.gmra.mxu2 %vm1470_vm2, %v4622_v22 }
 0x686   : > { %v8300_v16 = vpop.eup %8299 }
 0x687   : > { %v4553_v19 = vpop.xlane.xlu0 %4552  ;;  %v4626_v55 = vmul.f32 %v8300_v16, %v11711_v1 }
 0x688   : > { %8303 = vrcp.f32 %v4553_v19 }
 0x689   : > { %7806 = vmatmul.msk.f32.gmra.mxu0 %vm1470_vm2, %v4626_v55 }
 0x68a   : > { %v8302_v43 = vpop.eup %8301 }
 0x68b   : > { %v4631_v52 = vmul.f32 %v8302_v43, %v11712_v21  ;;  %v4571_v23 = vpop.xlane.xlu2 %4570 }
 0x68c   : > { %8305 = vrcp.f32 %v4571_v23 }
 0x68d   : > { %7811 = vmatmul.msk.f32.vlgmr.msra.gmra.mxu3 %vm1470_vm2, %v4631_v52 }
 0x68e   : > { %v8304_v51 = vpop.eup %8303 }
 0x68f   : > { %v4627_v58 = vmul.f32 %v8304_v51, %v11713_v47 }
 0x691   : > { %7807 = vmatmul.msk.f32.vlgmr.msra.gmra.mxu1 %vm1470_vm2, %v4627_v58  ;;  %v4559_v29 = vpop.xlane.xlu1 %4558 }
 0x692   : > { %v8306_v13 = vpop.eup %8305  ;;  %8307 = vrcp.f32 %v4559_v29 }
 0x693   : > { %v4633_v50 = vmul.f32 %v8306_v13, %v11714_v41  ;;  %v4556_v10 = vpop.xlane.xlu2 %4555 }
 0x694   : > { %8309 = vrcp.f32 %v4556_v10 }
 0x695   : > { %7813 = vmatmul.msk.f32.vlgmr.msrb.gmra.mxu0 %vm1470_vm2, %v4633_v50 }
 0x698   : > { %v8308_v20 = vpop.eup %8307 }
 0x699   : > { %v4629_v37 = vmul.f32 %v8308_v20, %v10709_v53  ;;  %v4568_v18 = vpop.xlane.xlu1 %4567 }
 0x69a   : > { %v8310_v54 = vpop.eup %8309  ;;  %8311 = vrcp.f32 %v4568_v18 }
 0x69b   : > { %v4628_v57 = vmul.f32 %v8310_v54, %v10705_v34  ;;  %7809 = vmatmul.msk.f32.vlgmr.msra.gmra.mxu2 %vm1470_vm2, %v4629_v37 }
 0x69d   : > { %7808 = vmatmul.msk.f32.gmra.mxu1 %vm1470_vm2, %v4628_v57 }
 0x6a0   : > { %v8312_v6 = vpop.eup %8311  ;;  %v4687_v24 = vpop.f32.mrf.mxu3 }
 0x6a1   : > { %v4574_v32 = vpop.xlane.xlu1 %4573  ;;  %v4632_v0 = vmul.f32 %v8312_v6, %v10720_v33  ;;  %v5085_v3 = vrot.slane %v4687_v24, 4 }
 0x6a2   : > { %8313 = vrcp.f32 %v4574_v32 }
 0x6a3   : > { %7812 = vmatmul.msk.f32.gmra.mxu3 %vm1470_vm2, %v4632_v0 }
 0x6a7   : > { %v4562_v9 = vpop.xlane.xlu0 %4561 }
 0x6a8   : > { %v8314_v61 = vpop.eup %8313  ;;  %8315 = vrcp.f32 %v4562_v9  ;;  %v4658_v33 = vpop.f32.mrf.mxu2 }
 0x6a9   : > { %v4634_v8 = vmul.f32 %v8314_v61, %v10736_v5  ;;  %v5073_v27 = vrot.slane %v4658_v33, 4 }
 0x6ab   : > { %7814 = vmatmul.msk.f32.gmra.mxu0 %vm1470_vm2, %v4634_v8 }
 0x6ae   : > { %v8316_v53 = vpop.eup %8315 }
 0x6af   : > { %v4630_v34 = vmul.f32 %v8316_v53, %v10802_v62 }
 0x6b1   : > { %7810 = vmatmul.msk.f32.gmra.mxu2 %vm1470_vm2, %v4630_v34 }
 0x6b4   : > { %v4690_v5 = vpop.f32.mrf.mxu3 }
 0x6b5   : > { %v5307_v21 = vrot.slane %v4690_v5, 4 }
 0x6b8   : > { %v4716_v59 = vpop.f32.mrf.mxu0 }
 0x6b9   : > { %v5071_v40 = vrot.slane %v4716_v59, 4  ;;  %v5074_v4 = vsel %vm2185_vm3, %v4716_v59, %v5073_v27 }
 0x6ba   : > { %v5082_v31 = vperm.slane %v5074_v4, %v9546_v17 }
 0x6bb   : > { %v5072_v42 = vsel %vm2185_vm3, %v5071_v40, %v4658_v33 }
 0x6bc   : > { %v10923_v15 = vpop.f32.mrf.mxu2  ;;  %v5078_v11 = vperm.slane %v5072_v42, %v9546_v17  ;;  %v5133_v60 = vrot.slane %v5082_v31, 4 }
 0x6bd   : > { %v5295_v29 = vrot.slane %v10923_v15, 4 }
 0x6be   : > { %v5121_v2 = vrot.slane %v5078_v11, 4 }
 0x6c0   : > { %v4745_v44 = vpop.f32.mrf.mxu1 }
 0x6c1   : > { %v5083_v56 = vrot.slane %v4745_v44, 4  ;;  %v5086_v35 = vsel %vm2185_vm3, %v4745_v44, %v5085_v3 }
 0x6c2   : > { %v5094_v30 = vperm.slane %v5086_v35, %v9546_v17 }
 0x6c3   : > { %v5084_v62 = vsel %vm2185_vm3, %v5083_v56, %v4687_v24 }
 0x6c4   : > { %v5090_v36 = vperm.slane %v5084_v62, %v9546_v17  ;;  %v4774_v7 = vpop.f32.mrf.mxu2  ;;  %v5131_v52 = vrot.slane %v5094_v30, 4  ;;  %v5134_v47 = vsel %vm2185_vm3, %v5094_v30, %v5133_v60 }
 0x6c5   : > { %v4803_v49 = vpop.f32.mrf.mxu3  ;;  %v5097_v45 = vrot.slane %v4774_v7, 4  ;;  %v5142_v61 = vperm.slane %v5134_v47, %v9561_v28 }
 0x6c6   : > { %v5119_v39 = vrot.slane %v5090_v36, 4  ;;  %v5109_v48 = vrot.slane %v4803_v49, 4  ;;  %v5122_v16 = vsel %vm2185_vm3, %v5090_v36, %v5121_v2  ;;  %v5132_v9 = vsel %vm2185_vm3, %v5131_v52, %v5082_v31 }
 0x6c7   : > { %v10927_v46 = vpop.f32.mrf.mxu0  ;;  %v5130_v50 = vperm.slane %v5122_v16, %v9561_v28  ;;  %v5138_v60 = vperm.slane %v5132_v9, %v9561_v28 }
 0x6c8   : > { %v4748_v25 = vpop.f32.mrf.mxu1  ;;  %v5120_v51 = vsel %vm2185_vm3, %v5119_v39, %v5078_v11  ;;  %v5293_v8 = vrot.slane %v10927_v46, 4 }
 0x6c9   : > { %v5305_v43 = vrot.slane %v4748_v25, 4  ;;  %v5308_v10 = vsel %vm2185_vm3, %v4748_v25, %v5307_v21  ;;  %v10951_v6 = vperm.slane %v5120_v51, %v9561_v28  ;;  %v5173_v33 = vrot.slane %v5130_v50, 4 }
 0x6ca   : > { %v10957_v53 = vperm.slane %v5308_v10, %v9546_v17  ;;  %v5294_v35 = vsel %vm2185_vm3, %v5293_v8, %v10923_v15  ;;  %v5296_v15 = vsel %vm2185_vm3, %v10927_v46, %v5295_v29 }
 0x6cb   : > { %v5306_v37 = vsel %vm2185_vm3, %v5305_v43, %v4690_v5  ;;  %v5169_v62 = vrot.slane %v10951_v6, 4 }
 0x6cc   : > { %v10961_v24 = vperm.slane %v5306_v37, %v9546_v17 }
 0x6cf   : > { %v4832_v63 = vpop.f32.mrf.mxu0 }
 0x6d0   : > { %v5095_v14 = vrot.slane %v4832_v63, 4  ;;  %v5098_v12 = vsel %vm2185_vm3, %v4832_v63, %v5097_v45  ;;  %v4861_v22 = vpop.f32.mrf.mxu1 }
 0x6d1   : > { %v5106_v19 = vperm.slane %v5098_v12, %v9546_v17  ;;  %v5107_v1 = vrot.slane %v4861_v22, 4  ;;  %v5110_v55 = vsel %vm2185_vm3, %v4861_v22, %v5109_v48  ;;  %v5341_v48 = vrot.slane %v10961_v24, 4 }
 0x6d2   : > { %v5096_v23 = vsel %vm2185_vm3, %v5095_v14, %v4774_v7  ;;  %v5118_v54 = vperm.slane %v5110_v55, %v9546_v17  ;;  %v5300_v12 = vperm.slane %v5294_v35, %v9546_v17  ;;  %v5353_v22 = vrot.slane %v10957_v53, 4 }
 0x6d3   : > { %v5102_v58 = vperm.slane %v5096_v23, %v9546_v17  ;;  %v5108_v13 = vsel %vm2185_vm3, %v5107_v1, %v4803_v49  ;;  %v5157_v57 = vrot.slane %v5106_v19, 4  ;;  %v5181_v1 = vrot.slane %v5142_v61, 4 }
 0x6d4   : > { %v4806_v41 = vpop.f32.mrf.mxu3  ;;  %v5114_v20 = vperm.slane %v5108_v13, %v9546_v17  ;;  %v5155_v59 = vrot.slane %v5118_v54, 4  ;;  %v5177_v23 = vrot.slane %v5138_v60, 4  ;;  %v5342_v51 = vsel %vm2185_vm3, %v5341_v48, %v5300_v12 }
 0x6d5   : > { %v5145_v18 = vrot.slane %v5102_v58, 4  ;;  %v5331_v0 = vrot.slane %v4806_v41, 4  ;;  %v5158_v25 = vsel %vm2185_vm3, %v5118_v54, %v5157_v57  ;;  %v5348_v10 = vperm.slane %v5342_v51, %v9561_v28 }
 0x6d6   : > { %v5143_v32 = vrot.slane %v5114_v20, 4  ;;  %v5166_v39 = vperm.slane %v5158_v25, %v9561_v28  ;;  %v5156_v45 = vsel %vm2185_vm3, %v5155_v59, %v5106_v19  ;;  %v5304_v19 = vperm.slane %v5296_v15, %v9546_v17 }
 0x6d7   : > { %v4835_v34 = vpop.f32.mrf.mxu0  ;;  %v5146_v38 = vsel %vm2185_vm3, %v5114_v20, %v5145_v18  ;;  %v4777_v44 = vpop.f32.mrf.mxu2  ;;  %v5162_v43 = vperm.slane %v5156_v45, %v9561_v28 }
 0x6d8   : > { %v4864_v5 = vpop.f32.mrf.mxu1  ;;  %v5154_v40 = vperm.slane %v5146_v38, %v9561_v28  ;;  %v5144_v56 = vsel %vm2185_vm3, %v5143_v32, %v5102_v58  ;;  %v5317_v3 = vrot.slane %v4835_v34, 4  ;;  %v5319_v7 = vrot.slane %v4777_v44, 4 }
 0x6d9   : > { %v5329_v27 = vrot.slane %v4864_v5, 4  ;;  %v10966_v42 = vperm.slane %v5144_v56, %v9561_v28  ;;  %v5332_v4 = vsel %vm2185_vm3, %v4864_v5, %v5331_v0  ;;  %v5179_v55 = vrot.slane %v5166_v39, 4 }
 0x6da   : > { %v5174_v11 = vsel %vm2185_vm3, %v5154_v40, %v5173_v33  ;;  %v5171_v36 = vrot.slane %v5154_v40, 4  ;;  %v5340_v63 = vperm.slane %v5332_v4, %v9546_v17  ;;  %v5318_v14 = vsel %vm2185_vm3, %v5317_v3, %v4777_v44 }
 0x6db   : > { %v5330_v49 = vsel %vm2185_vm3, %v5329_v27, %v4806_v41  ;;  %5533 = vrot.lane.b32.xlu1 %v5174_v11, %s11665_s22  ;;  %v5170_v31 = vsel %vm2185_vm3, %v10966_v42, %v5169_v62  ;;  %v5320_v46 = vsel %vm2185_vm3, %v4835_v34, %v5319_v7  ;;  %v5324_v21 = vperm.slane %v5318_v14, %v9546_v17 }
 0x6dc   : > { %v5336_v2 = vperm.slane %v5330_v49, %v9546_v17  ;;  %5517 = vrot.lane.b32.xlu0 %v5170_v31, %s11671_s18  ;;  %v5172_v30 = vsel %vm2185_vm3, %v5171_v36, %v5130_v50  ;;  %v5377_v52 = vrot.slane %v5340_v63, 4  ;;  %v5182_v47 = vsel %vm2185_vm3, %v5166_v39, %v5181_v1 }
 0x6dd   : > { %5525 = vrot.lane.b32.xlu2 %v5172_v30, %s11673_s1  ;;  %v5354_v58 = vsel %vm2185_vm3, %v5353_v22, %v5304_v19  ;;  %v5328_v13 = vperm.slane %v5320_v46, %v9546_v17  ;;  %v5178_v41 = vsel %vm2185_vm3, %v5162_v43, %v5177_v23  ;;  %v5180_v29 = vsel %vm2185_vm3, %v5179_v55, %v5142_v61 }
 0x6de   : > { %v5365_v16 = vrot.slane %v5336_v2, 4  ;;  %v5367_v20 = vrot.slane %v5324_v21, 4  ;;  %v5360_v18 = vperm.slane %v5354_v58, %v9561_v28  ;;  %v5175_v57 = vrot.slane %v5162_v43, 4 }
 0x6df   : > { %v5378_v54 = vsel %vm2185_vm3, %v5377_v52, %v5328_v13  ;;  %v5391_v32 = vrot.slane %v5348_v10, 4  ;;  %v5343_v34 = vrot.slane %v5300_v12, 4  ;;  %v5355_v44 = vrot.slane %v5304_v19, 4 }
 0x6e0   : > { %v5366_v50 = vsel %vm2185_vm3, %v5365_v16, %v5324_v21  ;;  %v5384_v0 = vperm.slane %v5378_v54, %v9561_v28  ;;  %v5368_v9 = vsel %vm2185_vm3, %v5336_v2, %v5367_v20  ;;  %v5399_v61 = vrot.slane %v5360_v18, 4 }
 0x6e1   : > { %v5372_v37 = vperm.slane %v5366_v50, %v9561_v28  ;;  %v5176_v38 = vsel %vm2185_vm3, %v5175_v57, %v5138_v60  ;;  %v5376_v59 = vperm.slane %v5368_v9, %v9561_v28  ;;  %v5167_v5 = vrot.slane %v10966_v42, 4 }
 0x6e2   : > { %v5400_v33 = vsel %vm2185_vm3, %v5384_v0, %v5399_v61  ;;  %v5397_v40 = vrot.slane %v5384_v0, 4  ;;  %v5379_v56 = vrot.slane %v5328_v13, 4  ;;  %v5344_v62 = vsel %vm2185_vm3, %v10961_v24, %v5343_v34 }
 0x6e3   : > { %5565 = vrot.lane.b32.xlu1 %v5182_v47, %s11672_s4  ;;  %v5392_v8 = vsel %vm2185_vm3, %v5372_v37, %v5391_v32  ;;  %v5389_v27 = vrot.slane %v5372_v37, 4  ;;  %v5393_v25 = vrot.slane %v5376_v59, 4  ;;  %v5356_v3 = vsel %vm2185_vm3, %v10957_v53, %v5355_v44 }
 0x6e4   : > { %5549 = vrot.lane.b32.xlu0 %v5178_v41, %s11715_s3  ;;  %v5398_v4 = vsel %vm2185_vm3, %v5397_v40, %v5360_v18  ;;  %v5352_v11 = vperm.slane %v5344_v62, %v9561_v28  ;;  %v11028_v36 = vsel %vm2185_vm3, %v5167_v5, %v10951_v6  ;;  %v5380_v42 = vsel %vm2185_vm3, %v5340_v63, %v5379_v56 }
 0x6e5   : > { %5557 = vrot.lane.b32.xlu2 %v5180_v29, %s11667_s10  ;;  %v5390_v35 = vsel %vm2185_vm3, %v5389_v27, %v5348_v10  ;;  %v5364_v24 = vperm.slane %v5356_v3, %v9561_v28  ;;  %v5388_v7 = vperm.slane %v5380_v42, %v9561_v28 }
 0x6e6   : > { %v5394_v53 = vsel %vm2185_vm3, %v5393_v25, %v5352_v11  ;;  %v5395_v31 = vrot.slane %v5352_v11, 4 }
 0x6e7   : > { %v5403_v49 = vrot.slane %v5364_v24, 4  ;;  %v5401_v30 = vrot.slane %v5388_v7, 4 }
 0x6e8   : > { %v5396_v2 = vsel %vm2185_vm3, %v5376_v59, %v5395_v31 }
 0x6e9   : > { %v5404_v6 = vsel %vm2185_vm3, %v5388_v7, %v5403_v49  ;;  %v5402_v45 = vsel %vm2185_vm3, %v5401_v30, %v5364_v24 }
 0x6eb   : > { %5581 = vrot.lane.b32.xlu1 %v5392_v8, %s11674_s30 }
 0x6ec   : > { %5541 = vrot.lane.b32.xlu0 %v5176_v38, %s11666_s11 }
 0x6ed   : > { %5613 = vrot.lane.b32.xlu2 %v5400_v33, %s11716_s5 }
 0x6f0   : > { %v4919_v39 = vpop.f32.mrf.mxu3 }
 0x6f1   : > { %v5197_v12 = vrot.slane %v4919_v39, 4 }
 0x6f3   : > { %5605 = vrot.lane.b32.xlu1 %v5398_v4, %s11675_s23  ;;  %v4948_v15 = vpop.f32.mrf.mxu0 }
 0x6f4   : > { %5573 = vrot.lane.b32.xlu0 %v5390_v35, %s11717_s6  ;;  %v5183_v43 = vrot.slane %v4948_v15, 4 }
 0x6f5   : > { %5589 = vrot.lane.b32.xlu2 %v5394_v53, %s11676_s2 }
 0x6f8   : > { %v4890_v60 = vpop.f32.mrf.mxu2 }
 0x6f9   : > { %v5185_v46 = vrot.slane %v4890_v60, 4  ;;  %v5184_v1 = vsel %vm2185_vm3, %v5183_v43, %v4890_v60 }
 0x6fa   : > { %v5190_v47 = vperm.slane %v5184_v1, %v9546_v17 }
 0x6fb   : > { %5629 = vrot.lane.b32.xlu1 %v5404_v6, %s11670_s26  ;;  %v5186_v51 = vsel %vm2185_vm3, %v4948_v15, %v5185_v46 }
 0x6fc   : > { %5597 = vrot.lane.b32.xlu0 %v5396_v2, %s11668_s20  ;;  %v5194_v50 = vperm.slane %v5186_v51, %v9546_v17  ;;  %v5231_v10 = vrot.slane %v5190_v47, 4 }
 0x704   : > { %5621 = vrot.lane.b32.xlu0 %v5402_v45, %s11669_s25  ;;  %v11044_v48 = vpop.f32.mrf.mxu3  ;;  %v5243_v45 = vrot.slane %v5194_v50, 4 }
 0x706   : > { %v11048_v19 = vpop.f32.mrf.mxu0 }
 0x707   : > { %v5405_v15 = vrot.slane %v11048_v19, 4 }
 0x708   : > { %v11053_v23 = vpop.f32.mrf.mxu2 }
 0x709   : > { %v5406_v43 = vsel %vm2185_vm3, %v5405_v15, %v11053_v23 }
 0x70a   : > { %v5412_v51 = vperm.slane %v5406_v43, %v9546_v17 }
 0x70e   : > { %v4977_v63 = vpop.f32.mrf.mxu1 }
 0x70f   : > { %v5195_v14 = vrot.slane %v4977_v63, 4  ;;  %v5198_v16 = vsel %vm2185_vm3, %v4977_v63, %v5197_v12 }
 0x710   : > { %v5206_v21 = vperm.slane %v5198_v16, %v9546_v17  ;;  %v5035_v52 = vpop.f32.mrf.mxu3 }
 0x711   : > { %v5196_v22 = vsel %vm2185_vm3, %v5195_v14, %v4919_v39  ;;  %v5219_v58 = vrot.slane %v5035_v52, 4  ;;  %v5224_v54 = vperm.slane %v5035_v52, %v9546_v17 }
 0x712   : > { %v5202_v55 = vperm.slane %v5196_v22, %v9546_v17  ;;  %v5241_v41 = vrot.slane %v5206_v21, 4  ;;  %v5064_v29 = vpop.f32.mrf.mxu0  ;;  %v5244_v12 = vsel %vm2185_vm3, %v5206_v21, %v5243_v45 }
 0x713   : > { %v5220_v20 = vsel %vm2185_vm3, 0.0, %v5219_v58  ;;  %v5207_v57 = vrot.slane %v5064_v29, 4  ;;  %v5253_v33 = vrot.slane %v5224_v54, 4  ;;  %v5252_v52 = vperm.slane %v5244_v12, %v9561_v28 }
 0x714   : > { %v5229_v13 = vrot.slane %v5202_v55, 4  ;;  %v5242_v18 = vsel %vm2185_vm3, %v5241_v41, %v5194_v50  ;;  %v5232_v32 = vsel %vm2185_vm3, %v5202_v55, %v5231_v10  ;;  %v5228_v0 = vperm.slane %v5220_v20, %v9546_v17 }
 0x715   : > { %v5248_v38 = vperm.slane %v5242_v18, %v9561_v28  ;;  %v5240_v44 = vperm.slane %v5232_v32, %v9561_v28  ;;  %v5419_v41 = vrot.slane %v11044_v48, 4  ;;  %v5407_v50 = vrot.slane %v11053_v23, 4 }
 0x716   : > { %v5230_v37 = vsel %vm2185_vm3, %v5229_v13, %v5190_v47  ;;  %v5265_v40 = vrot.slane %v5228_v0, 4  ;;  %v5453_v10 = vrot.slane %v5412_v51, 4 }
 0x717   : > { %v11066_v34 = vperm.slane %v5230_v37, %v9561_v28  ;;  %v5287_v11 = vrot.slane %v5248_v38, 4  ;;  %v5283_v53 = vrot.slane %v5240_v44, 4 }
 0x719   : > { %v5279_v4 = vrot.slane %v11066_v34, 4 }
 0x71a   : > { %v4980_v56 = vpop.f32.mrf.mxu1 }
 0x71b   : > { %v5417_v7 = vrot.slane %v4980_v56, 4  ;;  %v5420_v37 = vsel %vm2185_vm3, %v4980_v56, %v5419_v41 }
 0x71d   : > { %v5418_v60 = vsel %vm2185_vm3, %v5417_v7, %v11044_v48  ;;  %v5408_v48 = vsel %vm2185_vm3, %v11048_v19, %v5407_v50 }
 0x71e   : > { %v5006_v9 = vpop.f32.mrf.mxu2  ;;  %v5424_v46 = vperm.slane %v5418_v60, %v9546_v17  ;;  %v5416_v19 = vperm.slane %v5408_v48, %v9546_v17 }
 0x71f   : > { %v5208_v8 = vsel %vm2185_vm3, %v5207_v57, %v5006_v9  ;;  %v5209_v61 = vrot.slane %v5006_v9, 4 }
 0x720   : > { %v5214_v59 = vperm.slane %v5208_v8, %v9546_v17  ;;  %v5451_v13 = vrot.slane %v5424_v46, 4  ;;  %v5454_v9 = vsel %vm2185_vm3, %v5424_v46, %v5453_v10  ;;  %v5465_v12 = vrot.slane %v5416_v19, 4 }
 0x721   : > { %v5210_v5 = vsel %vm2185_vm3, %v5064_v29, %v5209_v61  ;;  %v5428_v61 = vperm.slane %v5420_v37, %v9546_v17  ;;  %v5462_v56 = vperm.slane %v5454_v9, %v9561_v28 }
 0x722   : > { %v5218_v27 = vperm.slane %v5210_v5, %v9546_v17  ;;  %v5254_v62 = vsel %vm2185_vm3, %v5253_v33, %v5214_v59  ;;  %v5255_v25 = vrot.slane %v5214_v59, 4  ;;  %v5452_v57 = vsel %vm2185_vm3, %v5451_v13, %v5412_v51  ;;  %v11156_v13 = vpop.permute.xlu2 %5681 }
 0x723   : > { %v11075_v3 = vperm.slane %v5254_v62, %v9561_v28  ;;  %v5458_v59 = vperm.slane %v5452_v57, %v9561_v28 }
 0x724   : > { %v5267_v42 = vrot.slane %v5218_v27, 4  ;;  %v5266_v35 = vsel %vm2185_vm3, %v5265_v40, %v5218_v27  ;;  %v5256_v24 = vsel %vm2185_vm3, %v5224_v54, %v5255_v25  ;;  %v5291_v54 = vrot.slane %v5252_v52, 4 }
 0x725   : > { %v5280_v49 = vsel %vm2185_vm3, %v11075_v3, %v5279_v4  ;;  %v5272_v31 = vperm.slane %v5266_v35, %v9561_v28  ;;  %v5264_v6 = vperm.slane %v5256_v24, %v9561_v28  ;;  %v5501_v24 = vrot.slane %v5458_v59, 4 }
 0x726   : > { %5519 = vrot.lane.b32.xlu2 %v5280_v49, %s11671_s18  ;;  %v5268_v2 = vsel %vm2185_vm3, %v5228_v0, %v5267_v42  ;;  %v5038_v1 = vpop.f32.mrf.mxu3  ;;  %v5463_v42 = vrot.slane %v5428_v61, 4 }
 0x727   : > { %v5288_v30 = vsel %vm2185_vm3, %v5272_v31, %v5287_v11  ;;  %v5284_v39 = vsel %vm2185_vm3, %v5264_v6, %v5283_v53  ;;  %v5276_v63 = vperm.slane %v5268_v2, %v9561_v28  ;;  %v5285_v14 = vrot.slane %v5272_v31, 4 }
 0x728   : > { %5551 = vrot.lane.b32.xlu0 %v5288_v30, %s11715_s3  ;;  %5535 = vrot.lane.b32.xlu1 %v5284_v39, %s11665_s22  ;;  %v5281_v16 = vrot.slane %v5264_v6, 4  ;;  %v5441_v47 = vrot.slane %v5038_v1, 4  ;;  %v5067_v29 = vpop.f32.mrf.mxu0  ;;  %s11718_s3 = sld [smem:[#allocation42_spill]]  ;;  %v5446_v18 = vperm.slane %v5038_v1, %v9546_v17  ;;  %v5277_v53 = vrot.slane %v11075_v3, 4 }
 0x729   : > { %v5289_v22 = vrot.slane %v5276_v63, 4  ;;  %v5286_v55 = vsel %vm2185_vm3, %v5285_v14, %v5248_v38  ;;  %v5429_v32 = vrot.slane %v5067_v29, 4  ;;  %v5292_v0 = vsel %vm2185_vm3, %v5276_v63, %v5291_v54  ;;  %s11724_s22 = sld [smem:[#allocation46_spill]] }
 0x72a   : > { %v5282_v21 = vsel %vm2185_vm3, %v5281_v16, %v5240_v44  ;;  %v5442_v20 = vsel %vm2185_vm3, 0.0, %v5441_v47  ;;  %v5475_v5 = vrot.slane %v5446_v18, 4  ;;  %v5505_v31 = vrot.slane %v5462_v56, 4 }
 0x72b   : > { %v5290_v58 = vsel %vm2185_vm3, %v5289_v22, %v5252_v52  ;;  %v5450_v23 = vperm.slane %v5442_v20, %v9546_v17  ;;  %v11139_v3 = vsel %vm2185_vm3, %v5277_v53, %v11066_v34  ;;  %v5464_v22 = vsel %vm2185_vm3, %v5463_v42, %v5416_v19 }
 0x72c   : > { %v5466_v34 = vsel %vm2185_vm3, %v5428_v61, %v5465_v12  ;;  %v5470_v1 = vperm.slane %v5464_v22, %v9561_v28 }
 0x72d   : > { %v5487_v62 = vrot.slane %v5450_v23, 4 }
 0x72e   : > { %5543 = vrot.lane.b32.xlu2 %v5286_v55, %s11666_s11  ;;  %v5703_v44 = vld [vmem:[%s11718_s3 + $0x78] sm:$0xff]  ;;  %v5702_v43 = vld [vmem:[%s11718_s3 + $0x70] sm:$0xff]  ;;  %v5701_v46 = vld [vmem:[%s11718_s3 + $0x68] sm:$0xff]  ;;  %s11727_s11 = sld [smem:[#allocation48_spill]] }
 0x72f   : > { %5708 = vmatpush.msrb.mxu1 %v5703_v44  ;;  %v5700_v51 = vld [vmem:[%s11718_s3 + $0x60] sm:$0xff]  ;;  %v5697_v10 = vld [vmem:[%s11718_s3 + $0x48] sm:$0xff]  ;;  %v5695_v57 = vld [vmem:[%s11718_s3 + $0x38] sm:$0xff] }
 0x730   : > { %5559 = vrot.lane.b32.xlu1 %v5290_v58, %s11667_s10  ;;  %5527 = vrot.lane.b32.xlu0 %v5282_v21, %s11673_s1  ;;  %v5474_v58 = vperm.slane %v5466_v34, %v9561_v28  ;;  %v5699_v21 = vld [vmem:[%s11718_s3 + $0x58] sm:$0xff]  ;;  %v5696_v54 = vld [vmem:[%s11718_s3 + $0x40] sm:$0xff]  ;;  %s11722_s1 = sld [smem:[#allocation43_spill]] }
 0x731   : > { %5709 = vmatpush.msrb.mxu1 %v5702_v43  ;;  %v5692_v61 = vld [vmem:[%s11718_s3 + $0x20] sm:$0xff]  ;;  %v5689_v19 = vld [vmem:[%s11718_s3 + $0x8] sm:$0xff]  ;;  %s11730_s10 = sld [smem:[#allocation52_spill]] }
 0x732   : > { %v5513_v20 = vrot.slane %v5474_v58, 4 }
 0x733   : > { %5710 = vmatpush.msrb.mxu1 %v5701_v46 }
 0x734   : > { %v5009_v8 = vpop.f32.mrf.mxu2 }
 0x735   : > { %v5430_v38 = vsel %vm2185_vm3, %v5429_v32, %v5009_v8  ;;  %v5431_v33 = vrot.slane %v5009_v8, 4  ;;  %5711 = vmatpush.msrb.mxu1 %v5700_v51  ;;  %v5693_v8 = vld [vmem:[%s11718_s3 + $0x28] sm:$0xff] }
 0x736   : > { %5567 = vrot.lane.b32.xlu2 %v5292_v0, %s11672_s4  ;;  %v5436_v40 = vperm.slane %v5430_v38, %v9546_v17  ;;  %v5691_v38 = vld [vmem:[%s11718_s3 + $0x18] sm:$0xff]  ;;  %s11728_s4 = sld [smem:[#allocation49_spill]] }
 0x737   : > { %v5432_v27 = vsel %vm2185_vm3, %v5067_v29, %v5431_v33  ;;  %5712 = vmatpush.msrb.mxu1 %v5699_v21  ;;  %v5698_v29 = vld [vmem:[%s11718_s3 + $0x50] sm:$0xff]  ;;  %v5526_v48 = vpop.permute.xlu2 %5525 }
 0x738   : > { %v5440_v25 = vperm.slane %v5432_v27, %v9546_v17  ;;  %v5476_v4 = vsel %vm2185_vm3, %v5475_v5, %v5436_v40  ;;  %v5477_v11 = vrot.slane %v5436_v40, 4  ;;  %v5688_v27 = vld [vmem:[%s11718_s3] sm:$0xff] }
 0x739   : > { %v5482_v35 = vperm.slane %v5476_v4, %v9561_v28  ;;  %5713 = vmatpush.msrb.mxu1 %v5698_v29 }
 0x73a   : > { %v5489_v7 = vrot.slane %v5440_v25, 4  ;;  %v5478_v49 = vsel %vm2185_vm3, %v5446_v18, %v5477_v11  ;;  %v5488_v6 = vsel %vm2185_vm3, %v5487_v62, %v5440_v25  ;;  %v5509_v18 = vrot.slane %v5470_v1, 4 }
 0x73b   : > { %v5502_v2 = vsel %vm2185_vm3, %v5482_v35, %v5501_v24  ;;  %v5486_v30 = vperm.slane %v5478_v49, %v9561_v28  ;;  %v5499_v39 = vrot.slane %v5482_v35, 4  ;;  %v5494_v45 = vperm.slane %v5488_v6, %v9561_v28  ;;  %5714 = vmatpush.msrb.mxu1 %v5697_v10 }
 0x73c   : > { %5583 = vrot.lane.b32.xlu1 %v5502_v2, %s11674_s30  ;;  %v5490_v15 = vsel %vm2185_vm3, %v5450_v23, %v5489_v7  ;;  %v5694_v23 = vld [vmem:[%s11718_s3 + $0x30] sm:$0xff] }
 0x73d   : > { %v5506_v63 = vsel %vm2185_vm3, %v5486_v30, %v5505_v31  ;;  %v5500_v60 = vsel %vm2185_vm3, %v5499_v39, %v5458_v59  ;;  %v5498_v14 = vperm.slane %v5490_v15, %v9561_v28  ;;  %v5507_v16 = vrot.slane %v5494_v45, 4  ;;  %5715 = vmatpush.msrb.mxu1 %v5696_v54 }
 0x73e   : > { %5599 = vrot.lane.b32.xlu2 %v5506_v63, %s11668_s20  ;;  %5575 = vrot.lane.b32.xlu0 %v5500_v60, %s11717_s6  ;;  %v5503_v52 = vrot.slane %v5486_v30, 4  ;;  %v5510_v0 = vsel %vm2185_vm3, %v5494_v45, %v5509_v18  ;;  %s11721_s6 = sld [smem:[#allocation44_spill]] }
 0x73f   : > { %v5511_v55 = vrot.slane %v5498_v14, 4  ;;  %v5508_v47 = vsel %vm2185_vm3, %v5507_v16, %v5470_v1  ;;  %v5514_v37 = vsel %vm2185_vm3, %v5498_v14, %v5513_v20  ;;  %5716 = vmatpush.msrb.mxu1 %v5695_v57  ;;  %v5558_v5 = vpop.permute.xlu2 %5557  ;;  %v11719_v16 = vld [vmem:[#allocation70_spill] sm:$0xff]  ;;  %s11725_s20 = sld [smem:[#allocation47_spill]] }
 0x740   : > { %v5504_v50 = vsel %vm2185_vm3, %v5503_v52, %v5462_v56  ;;  %v5690_v56 = vld [vmem:[%s11718_s3 + $0x10] sm:$0xff] }
 0x741   : > { %v5512_v41 = vsel %vm2185_vm3, %v5511_v55, %v5474_v58  ;;  %5717 = vmatpush.msrb.mxu1 %v5694_v23 }
 0x743   : > { %5718 = vmatpush.msrb.mxu1 %v5693_v8 }
 0x744   : > { %5607 = vrot.lane.b32.xlu1 %v5508_v47, %s11675_s23 }
 0x745   : > { %5719 = vmatpush.msrb.mxu1 %v5692_v61  ;;  %s11726_s30 = smov %s11725_s20 }
 0x746   : > { %5623 = vrot.lane.b32.xlu2 %v5512_v41, %s11669_s25  ;;  %5591 = vrot.lane.b32.xlu0 %v5504_v50, %s11676_s2  ;;  %s11729_s2 = sld [smem:[#allocation50_spill]] }
 0x747   : > { %5720 = vmatpush.msrb.mxu1 %v5691_v38  ;;  %v5614_v42 = vpop.permute.xlu2 %5613 }
 0x749   : > { %5721 = vmatpush.msrb.mxu1 %v5690_v56 }
 0x74b   : > { %5722 = vmatpush.msrb.mxu1 %v5689_v19 }
 0x74c   : > { %5631 = vrot.lane.b32.xlu1 %v5514_v37, %s11670_s26 }
 0x74d   : > { %v5534_v9 = vpop.permute.xlu1 %5533  ;;  %5723 = vmatpush.msrb.mxu1 %v5688_v27 }
 0x74e   : > { %v5518_v32 = vpop.permute.xlu0 %5517  ;;  %5615 = vrot.lane.b32.xlu0 %v5510_v0, %s11716_s5  ;;  %s11720_s5 = sld [smem:[#allocation45_spill]] }
 0x74f   : > { %v5635_v59 = vsel %vm3779_vm4, %v11028_v36, %v5518_v32  ;;  %v5590_v6 = vpop.permute.xlu2 %5589 }
 0x750   : > { %v5637_v40 = vsel %vm1470_vm2, %v5635_v59, %v5526_v48 }
 0x751   : > { %v5640_v62 = vsel %vm5639_vm5, %v5637_v40, %v5534_v9  ;;  %v11723_v40 = vld [vmem:[#allocation71_spill] sm:$0xff] }
 0x754   : > { %v5740_v19 = vld [vmem:[%s11720_s5 + $0x8] sm:$0xff]  ;;  %v5739_v27 = vld [vmem:[%s11720_s5] sm:$0xff] }
 0x755   : > { %v5566_v44 = vpop.permute.xlu1 %5565  ;;  %5765 = vmatpush.msrb.mxu2 %v5740_v19 }
 0x756   : > { %v5550_v33 = vpop.permute.xlu0 %5549 }
 0x757   : > { %5766 = vmatpush.msrb.mxu2 %v5739_v27 }
 0x75d   : > { %v5582_v11 = vpop.permute.xlu1 %5581 }
 0x75e   : > { %v5542_v25 = vpop.permute.xlu0 %5541 }
 0x75f   : > { %v5643_v4 = vsel %vm5642_vm6, %v5640_v62, %v5542_v25  ;;  %v5731_v62 = vld [vmem:[%s11721_s6] sm:$0x1]  ;;  %s11731_s6 = sld [smem:[#allocation53_spill]] }
 0x760   : > { %v5646_v36 = vsel %vm5645_vm7, %v5643_v4, %v5550_v33  ;;  %v8180_v25 = vld [vmem:[%s11722_s1] ss:$0 sm:$0xff]  ;;  %s11736_s1 = sld [smem:[#allocation57_spill]] }
 0x761   : > { %v5649_v35 = vsel %vm5648_vm8, %v5646_v36, %v5558_v5 }
 0x762   : > { %v5652_v53 = vsel %vm5651_vm9, %v5649_v35, %v5566_v44 }
 0x765   : > { %v5606_v31 = vpop.permute.xlu1 %5605 }
 0x766   : > { %v5574_v24 = vpop.permute.xlu0 %5573 }
 0x767   : > { %v5655_v7 = vsel %vm5654_vm10, %v5652_v53, %v5574_v24  ;;  %v8181_v24 = vld [vmem:[%s11724_s22] ss:$0 sm:$0xff]  ;;  %s11737_s22 = sld [smem:[#allocation59_spill]] }
 0x768   : > { %v5658_v49 = vsel %vm5657_vm11, %v5655_v7, %v5582_v11 }
 0x769   : > { %v5661_v30 = vsel %vm5660_vm12, %v5658_v49, %v5590_v6 }
 0x76d   : > { %v5630_v60 = vpop.permute.xlu1 %5629 }
 0x76e   : > { %v5598_v2 = vpop.permute.xlu0 %5597 }
 0x76f   : > { %v5664_v39 = vsel %vm5663_vm13, %v5661_v30, %v5598_v2 }
 0x770   : > { %v5667_v45 = vsel %vm5666_vm14, %v5664_v39, %v5606_v31 }
 0x771   : > { %v5670_v63 = vsel %vm5669_vm15, %v5667_v45, %v5614_v42 }
 0x776   : > { %v5622_v15 = vpop.permute.xlu0 %5621 }
 0x777   : > { %v5673_v14 = vsel %vm5672_vm0, %v5670_v63, %v5622_v15 }
 0x778   : > { %v5676_v12 = vsel %vm5675_vm1, %v5673_v14, %v5630_v60 }
 0x779   : > { %v5684_v22 = vmul.f32 %v11156_v13, %v5676_v12 }
 0x77b   : > { %v5686_v43 = vadd.f32 %v5684_v22, %v11719_v16 }
 0x77d   : > { %5724 = vmatmul.f32.vlgmr.msrb.gmra.mxu1 %v5686_v43 }
 0x780   : > { %v5520_v34 = vpop.permute.xlu2 %5519 }
 0x781   : > { %v5636_v52 = vsel %vm3779_vm4, %v11139_v3, %v5520_v34 }
 0x788   : > { %v5544_v51 = vpop.permute.xlu2 %5543 }
 0x790   : > { %v5568_v29 = vpop.permute.xlu2 %5567 }
 0x798   : > { %v5600_v3 = vpop.permute.xlu2 %5599 }
 0x79a   : > { %v5552_v46 = vpop.permute.xlu0 %5551  ;;  %v5536_v1 = vpop.permute.xlu1 %5535 }
 0x7a0   : > { %v5624_v61 = vpop.permute.xlu2 %5623 }
 0x7a2   : > { %v5528_v55 = vpop.permute.xlu0 %5527  ;;  %v5560_v58 = vpop.permute.xlu1 %5559 }
 0x7a3   : > { %v5638_v47 = vsel %vm1470_vm2, %v5636_v52, %v5528_v55 }
 0x7a4   : > { %v5641_v21 = vsel %vm5639_vm5, %v5638_v47, %v5536_v1  ;;  %vm5732_vm5 = vcmask 122880  }
 0x7a5   : > { %v5644_v41 = vsel %vm5642_vm6, %v5641_v21, %v5544_v51  ;;  %5733 = vst.msk [vmem:[#allocation2] sm:$0x1] %vm5732_vm5, %v5731_v62  ;;  %vm5735_vm6 = vcmask 129024  }
 0x7a6   : > { %v5647_v10 = vsel %vm5645_vm7, %v5644_v41, %v5552_v46 }
 0x7a7   : > { %v5650_v54 = vsel %vm5648_vm8, %v5647_v10, %v5560_v58 }
 0x7a8   : > { %v5653_v37 = vsel %vm5651_vm9, %v5650_v54, %v5568_v29 }
 0x7ae   : > { %v5584_v50 = vpop.permute.xlu1 %5583 }
 0x7b0   : > { %v5576_v20 = vpop.permute.xlu0 %5575 }
 0x7b1   : > { %v5656_v18 = vsel %vm5654_vm10, %v5653_v37, %v5576_v20 }
 0x7b2   : > { %v5659_v0 = vsel %vm5657_vm11, %v5656_v18, %v5584_v50 }
 0x7b6   : > { %v5608_v57 = vpop.permute.xlu1 %5607 }
 0x7b8   : > { %v5592_v32 = vpop.permute.xlu0 %5591 }
 0x7b9   : > { %v5662_v9 = vsel %vm5660_vm12, %v5659_v0, %v5592_v32 }
 0x7ba   : > { %v5665_v48 = vsel %vm5663_vm13, %v5662_v9, %v5600_v3 }
 0x7bb   : > { %v5668_v8 = vsel %vm5666_vm14, %v5665_v48, %v5608_v57 }
 0x7be   : > { %v5632_v33 = vpop.permute.xlu1 %5631 }
 0x7c0   : > { %v5616_v23 = vpop.permute.xlu0 %5615 }
 0x7c1   : > { %v5671_v38 = vsel %vm5669_vm15, %v5668_v8, %v5616_v23 }
 0x7c2   : > { %v5674_v59 = vsel %vm5672_vm0, %v5671_v38, %v5624_v61 }
 0x7c3   : > { %v5677_v44 = vsel %vm5675_vm1, %v5674_v59, %v5632_v33 }
 0x7c4   : > { %v5685_v5 = vmul.f32 %v11156_v13, %v5677_v44 }
 0x7c6   : > { %v5687_v56 = vadd.f32 %v5685_v5, %v11723_v40 }
 0x7c8   : > { %5727 = vmatmul.f32.gmra.mxu1 %v5687_v56 }
 0x7fa   : > { %v5725_v4 = vpop.f32.mrf.mxu1 }
 0x7fb   : > { %v5726_v36 = vadd.f32 %v8180_v25, %v5725_v4 }
 0x7fd   : > { %5734 = vst.msk [vmem:[#allocation2 + $0x1] sm:$0xff] %vm1470_vm2, %v5726_v36 }
 0x804   : > { %v11218_v11 = vld [vmem:[#allocation2] sm:$0xff] }
 0x805   : > { %7815 = vmatmul.msk.f32.vlgmr.msrb.gmra.mxu2 %vm1470_vm2, %v11218_v11 }
 0x845   : > { %v5728_v13 = vpop.f32.mrf.mxu1 }
 0x846   : > { %v5729_v42 = vadd.f32 %v8180_v25, %v5728_v13 }
 0x848   : > { %5736 = vst.msk [vmem:[#allocation2 + $0x9] sm:$0x7f] %vm5735_vm6, %v5729_v42 }
 0x84f   : > { %v11222_v35 = vld [vmem:[#allocation2 + $0x8] sm:$0xff] }
 0x850   : > { %7816 = vmatmul.msk.f32.gmra.mxu2 %vm1470_vm2, %v11222_v35 }
 0x888   : > { %v5768_v53 = vpop.f32.mrf.mxu2 }
 0x889   : > { %v5769_v7 = vadd.f32 %v8181_v24, %v5768_v53 }
 0x88b   : > { %5780 = vrot.lane.b32.xlu1 %v5769_v7, %s11669_s25  ;;  %5776 = vrot.lane.b32.xlu0 %v5769_v7, %s11670_s26 }
 0x8d3   : > { %v5771_v49 = vpop.f32.mrf.mxu2 }
 0x8d4   : > { %v5772_v31 = vadd.f32 %v8181_v24, %v5771_v49 }
 0x8d6   : > { %5782 = vrot.lane.b32.xlu0 %v5772_v31, %s11669_s25  ;;  %5778 = vrot.lane.b32.xlu2 %v5772_v31, %s11670_s26 }
 0x8fd   : > { %v5777_v6 = vpop.permute.xlu0 %5776  ;;  %v5781_v2 = vpop.permute.xlu1 %5780 }
 0x8fe   : > { %5784 = vrot.lane.b32.xlu2 %v5777_v6, %s11669_s25  ;;  %5792 = vxpose.xlu0.b32.start [1/2] (short) (narrow) %v5781_v2, 8 }
 0x930   : > { %v5779_v30 = vpop.permute.xlu2 %5778 }
 0x931   : > { %5786 = vrot.lane.b32.xlu1 %v5779_v30, %s11669_s25 }
 0x939   : > { %5958 = vrot.lane.b32.xlu1 %v5769_v7, %s11675_s23 }
 0x948   : > { %v5783_v39 = vpop.permute.xlu0 %5782 }
 0x949   : > { %5793 = vxpose.xlu0.b32.end [2/2] (short) (narrow) %v5783_v39, 8 }
 0x958   : > { %v5785_v45 = vpop.permute.xlu2 %5784 }
 0x959   : > { %5824 = vxpose.xlu2.b32.start [1/2] (short) (narrow) %v5785_v45, 8 }
 0x9a3   : > { %v5787_v15 = vpop.permute.xlu1 %5786 }
 0x9a4   : > { %5825 = vxpose.xlu2.b32.end [2/2] (short) (narrow) %v5787_v15, 8 }
 0x9ab   : > { %v5959_v58 = vpop.permute.xlu1 %5958 }
 0x9e5   : > { %v5808_v63 = vpop.trf.xlu0 }
 0x9e6   : > { %5875 = vmatpush.msrb.mxu3 %v5808_v63 }
 0x9e7   : > { %7817 = vmatmul.msk.f32.vlgmr.msrb.gmra.mxu3 %vm3779_vm4, %v5769_v7 }
 0x9ef   : > { %7818 = vmatmul.msk.f32.gmra.mxu3 %vm3779_vm4, %v5772_v31 }
 0xa35   : > { %v5840_v60 = vpop.trf.xlu2 }
 0xa36   : > { %5902 = vmatpush.msra.mxu0 %v5840_v60 }
 0xa37   : > { %7819 = vmatmul.msk.f32.vlgmr.msra.gmra.mxu0 %vm3779_vm4, %v5777_v6 }
 0xa3f   : > { %7820 = vmatmul.msk.f32.gmra.mxu0 %vm3779_vm4, %v5779_v30 }
 0xa6a   : > { %v5877_v14 = vpop.f32.mrf.mxu3 }
 0xa6b   : > { %v5910_v12 = vmul.f32 0.35355338, %v5877_v14 }
 0xa6d   : > { %v5914_v22 = vsel %vm1470_vm2, %v5910_v12, -inf }
 0xa6e   : > { %5915 = vmax.xlane.f32.xlu0 %v5914_v22  ;;  %v6347_v22 = vld [vmem:[%s11725_s20 + $0x8] sm:$0xff]  ;;  %s11738_s20 = sld [smem:[#allocation60_spill]] }
 0xa6f   : > { %6372 = vmatpush.msra.mxu3 %v6347_v22 }
 0xa72   : > { %v5880_v16 = vpop.f32.mrf.mxu3 }
 0xa73   : > { %v5911_v43 = vmul.f32 0.35355338, %v5880_v16 }
 0xa75   : > { %v5917_v46 = vsel %vm1470_vm2, %v5911_v43, -inf }
 0xa76   : > { %5918 = vmax.xlane.f32.xlu1 %v5917_v46 }
 0xa82   : > { %5962 = vrot.lane.b32.xlu0 %v5777_v6, %s11675_s23 }
 0xab4   : > { %v5904_v34 = vpop.f32.mrf.mxu0 }
 0xab5   : > { %v5912_v1 = vmul.f32 0.35355338, %v5904_v34 }
 0xab7   : > { %v5920_v55 = vsel %vm1470_vm2, %v5912_v1, -inf }
 0xab8   : > { %5921 = vmax.xlane.f32.xlu2 %v5920_v55 }
 0xabc   : > { %v5907_v52 = vpop.f32.mrf.mxu0 }
 0xabd   : > { %v5913_v51 = vmul.f32 0.35355338, %v5907_v52 }
 0xabf   : > { %v5923_v47 = vsel %vm1470_vm2, %v5913_v51, -inf }
 0xac0   : > { %5924 = vmax.xlane.f32.xlu1 %v5923_v47 }
 0xad0   : > { %5964 = vrot.lane.b32.xlu2 %v5779_v30, %s11675_s23 }
 0xad9   : > { %5960 = vrot.lane.b32.xlu1 %v5772_v31, %s11675_s23 }
 0xae1   : > { %v5916_v21 = vpop.xlane.xlu0 %5915 }
 0xae2   : > { %v5926_v41 = vsub.f32 %v5910_v12, %v5916_v21 }
 0xae4   : > { %v5930_v50 = vmul.f32 1.442695, %v5926_v41 }
 0xae6   : > { %8317 = vpow2.f32 %v5930_v50 }
 0xae9   : > { %v5919_v29 = vpop.xlane.xlu1 %5918 }
 0xaea   : > { %v5927_v10 = vsub.f32 %v5911_v43, %v5919_v29 }
 0xaec   : > { %v5932_v20 = vmul.f32 1.442695, %v5927_v10  ;;  %v8318_v54 = vpop.eup %8317 }
 0xaed   : > { %v5938_v37 = vsel %vm1470_vm2, %v8318_v54, 0.0 }
 0xaee   : > { %8319 = vpow2.f32 %v5932_v20 }
 0xaf4   : > { %v8320_v18 = vpop.eup %8319  ;;  %v5963_v44 = vpop.permute.xlu0 %5962 }
 0xaf5   : > { %v5941_v3 = vsel %vm1470_vm2, %v8320_v18, 0.0 }
 0xb03   : > { %5939 = vadd.xlane.f32.xlu1 %v5938_v37 }
 0xb0b   : > { %5942 = vadd.xlane.f32.xlu1 %v5941_v3 }
 0xb2b   : > { %v5922_v57 = vpop.xlane.xlu2 %5921 }
 0xb2c   : > { %v5928_v32 = vsub.f32 %v5912_v1, %v5922_v57 }
 0xb2e   : > { %v5934_v0 = vmul.f32 1.442695, %v5928_v32 }
 0xb30   : > { %8321 = vpow2.f32 %v5934_v0 }
 0xb33   : > { %v5925_v9 = vpop.xlane.xlu1 %5924  ;;  %v5965_v5 = vpop.permute.xlu2 %5964 }
 0xb34   : > { %v5929_v48 = vsub.f32 %v5913_v51, %v5925_v9 }
 0xb36   : > { %v8322_v23 = vpop.eup %8321  ;;  %v5936_v8 = vmul.f32 1.442695, %v5929_v48 }
 0xb37   : > { %v5944_v61 = vsel %vm1470_vm2, %v8322_v23, 0.0 }
 0xb38   : > { %8323 = vpow2.f32 %v5936_v8  ;;  %5945 = vadd.xlane.f32.xlu0 %v5944_v61 }
 0xb3e   : > { %v8324_v38 = vpop.eup %8323 }
 0xb3f   : > { %v5947_v33 = vsel %vm1470_vm2, %v8324_v38, 0.0 }
 0xb40   : > { %5948 = vadd.xlane.f32.xlu2 %v5947_v33 }
 0xb45   : > { %5970 = vxpose.xlu1.b32.start [1/2] (short) (narrow) %v5959_v58, 8 }
 0xb4b   : > { %v5961_v59 = vpop.permute.xlu1 %5960 }
 0xb4d   : > { %5971 = vxpose.xlu1.b32.end [2/2] (short) (narrow) %v5961_v59, 8 }
 0xb69   : > { %6002 = vxpose.xlu2.b32.start [1/2] (short) (narrow) %v5963_v44, 8 }
 0xb71   : > { %6003 = vxpose.xlu2.b32.end [2/2] (short) (narrow) %v5965_v5, 8 }
 0xb76   : > { %v5940_v40 = vpop.xlane.xlu1 %5939 }
 0xb7e   : > { %v5943_v56 = vpop.xlane.xlu1 %5942 }
 0xb7f   : > { %8325 = vrcp.f32 %v5943_v56 }
 0xb80   : > { %8327 = vrcp.f32 %v5940_v40 }
 0xb85   : > { %v8326_v19 = vpop.eup %8325 }
 0xb86   : > { %v5955_v27 = vmul.f32 %v8326_v19, %v8320_v18  ;;  %v8328_v62 = vpop.eup %8327 }
 0xb87   : > { %v5954_v25 = vmul.f32 %v8328_v62, %v8318_v54 }
 0xb88   : > { %7821 = vmatpush.xpose.msk.msra.mxu2 %vm1470_vm2, %v5955_v27 }
 0xb8c   : > { %7822 = vmatpush.xpose.msk.msra.mxu2 %vm1470_vm2, %v5954_v25 }
 0xbab   : > { %v5946_v4 = vpop.xlane.xlu0 %5945 }
 0xbb3   : > { %v5949_v36 = vpop.xlane.xlu2 %5948 }
 0xbb4   : > { %8329 = vrcp.f32 %v5949_v36 }
 0xbb5   : > { %8331 = vrcp.f32 %v5946_v4 }
 0xbba   : > { %v8330_v13 = vpop.eup %8329 }
 0xbbb   : > { %v5957_v42 = vmul.f32 %v8330_v13, %v8324_v38  ;;  %v8332_v24 = vpop.eup %8331 }
 0xbbc   : > { %v5956_v53 = vmul.f32 %v8332_v24, %v8322_v23 }
 0xbbd   : > { %7824 = vmatpush.xpose.msk.msrb.mxu2 %vm1470_vm2, %v5957_v42 }
 0xbc1   : > { %7825 = vmatpush.xpose.msk.msrb.mxu2 %vm1470_vm2, %v5956_v53 }
 0xbe9   : > { %v5986_v7 = vpop.trf.xlu1 }
 0xbea   : > { %7823 = vmatmul.msk.f32.vlgmr.msra.gmra.mxu2 %vm1470_vm2, %v5986_v7 }
 0xc02   : > { %v6018_v49 = vpop.trf.xlu2 }
 0xc03   : > { %7826 = vmatmul.msk.f32.vlgmr.msrb.gmra.mxu2 %vm1470_vm2, %v6018_v49 }
 0xc6d   : > { %v6060_v31 = vpop.f32.mrf.mxu2 }
 0xc6e   : > { %6092 = vxpose.xlu0.b32.start.end [1/1] (short) (narrow) %v6060_v31, 16 }
 0xc86   : > { %v6089_v6 = vpop.f32.mrf.mxu2 }
 0xc87   : > { %6124 = vxpose.xlu2.b32.start.end [1/1] (short) (narrow) %v6089_v6, 16 }
 0xd12   : > { %v6108_v2 = vpop.trf.xlu0 }
 0xd13   : > { %v6156_v30 = vrot.slane %v6108_v2, 4  ;;  %v6161_v45 = vperm.slane %v6108_v2, %v9546_v17 }
 0xd15   : > { %v6157_v39 = vsel %vm2185_vm3, 0.0, %v6156_v30  ;;  %v6178_v14 = vrot.slane %v6161_v45, 4 }
 0xd16   : > { %v6165_v63 = vperm.slane %v6157_v39, %v9546_v17 }
 0xd18   : > { %v6190_v46 = vrot.slane %v6165_v63, 4 }
 0xd1a   : > { %v6109_v15 = vpop.trf.xlu0 }
 0xd1b   : > { %v6208_v60 = vrot.slane %v6109_v15, 4  ;;  %v6213_v21 = vperm.slane %v6109_v15, %v9546_v17 }
 0xd1d   : > { %v6209_v34 = vsel %vm2185_vm3, 0.0, %v6208_v60  ;;  %v6230_v23 = vrot.slane %v6213_v21, 4 }
 0xd1e   : > { %v6217_v41 = vperm.slane %v6209_v34, %v9546_v17 }
 0xd20   : > { %v6140_v12 = vpop.trf.xlu2  ;;  %v6242_v61 = vrot.slane %v6217_v41, 4 }
 0xd21   : > { %v6166_v16 = vrot.slane %v6140_v12, 4  ;;  %v6171_v43 = vperm.slane %v6140_v12, %v9546_v17 }
 0xd23   : > { %v6167_v1 = vsel %vm2185_vm3, 0.0, %v6166_v16  ;;  %v6176_v55 = vrot.slane %v6171_v43, 4  ;;  %v6179_v52 = vsel %vm2185_vm3, %v6171_v43, %v6178_v14 }
 0xd24   : > { %v6175_v51 = vperm.slane %v6167_v1, %v9546_v17  ;;  %v6187_v47 = vperm.slane %v6179_v52, %v9561_v28 }
 0xd25   : > { %v6177_v58 = vsel %vm2185_vm3, %v6176_v55, %v6161_v45 }
 0xd26   : > { %v6183_v50 = vperm.slane %v6177_v58, %v9561_v28  ;;  %v6188_v29 = vrot.slane %v6175_v51, 4  ;;  %v6191_v10 = vsel %vm2185_vm3, %v6175_v51, %v6190_v46  ;;  %v6202_v20 = vrot.slane %v6187_v47, 4 }
 0xd27   : > { %v6199_v54 = vperm.slane %v6191_v10, %v9561_v28 }
 0xd28   : > { %v6189_v37 = vsel %vm2185_vm3, %v6188_v29, %v6165_v63  ;;  %v6200_v18 = vrot.slane %v6183_v50, 4  ;;  %v6203_v3 = vsel %vm2185_vm3, 0.0, %v6202_v20  ;;  %v6260_v57 = vsel %vm2185_vm3, %v6202_v20, %v6183_v50  ;;  %v6141_v32 = vpop.trf.xlu2 }
 0xd29   : > { %v6195_v0 = vperm.slane %v6189_v37, %v9561_v28  ;;  %v6206_v9 = vrot.slane %v6199_v54, 4  ;;  %v6265_v48 = vrot.slane %v6203_v3, 4  ;;  %v6218_v38 = vrot.slane %v6141_v32, 4 }
 0xd2a   : > { %v6201_v8 = vsel %vm2185_vm3, 0.0, %v6200_v18  ;;  %v6223_v33 = vperm.slane %v6141_v32, %v9546_v17  ;;  %v6264_v5 = vperm.slane %v6260_v57, %v9546_v17 }
 0xd2b   : > { %v6204_v59 = vrot.slane %v6195_v0, 4  ;;  %v6207_v44 = vsel %vm2185_vm3, 0.0, %v6206_v9  ;;  %v6266_v40 = vsel %vm2185_vm3, %v6265_v48, %v6201_v8  ;;  %v6219_v27 = vsel %vm2185_vm3, 0.0, %v6218_v38 }
 0xd2c   : > { %v6270_v56 = vperm.slane %v6266_v40, %v9546_v17  ;;  %v6276_v19 = vrot.slane %v6207_v44, 4  ;;  %v6228_v62 = vrot.slane %v6223_v33, 4  ;;  %v6227_v4 = vperm.slane %v6219_v27, %v9546_v17 }
 0xd2d   : > { %v6205_v25 = vsel %vm2185_vm3, 0.0, %v6204_v59  ;;  %v6231_v36 = vsel %vm2185_vm3, %v6223_v33, %v6230_v23  ;;  %v6271_v13 = vsel %vm2185_vm3, %v6206_v9, %v6195_v0 }
 0xd2e   : > { %v6229_v42 = vsel %vm2185_vm3, %v6228_v62, %v6213_v21  ;;  %v6239_v24 = vperm.slane %v6231_v36, %v9561_v28  ;;  %v6277_v53 = vsel %vm2185_vm3, %v6276_v19, %v6205_v25  ;;  %v6282_v7 = vrot.slane %v6270_v56, 4  ;;  %v8182_v62 = vld [vmem:[%s11727_s11] ss:$0 sm:$0xff]  ;;  %s11739_s11 = sld [smem:[#allocation62_spill]] }
 0xd2f   : > { %v6235_v49 = vperm.slane %v6229_v42, %v9561_v28  ;;  %v6240_v31 = vrot.slane %v6227_v4, 4  ;;  %v6243_v6 = vsel %vm2185_vm3, %v6227_v4, %v6242_v61  ;;  %v6281_v2 = vperm.slane %v6277_v53, %v9546_v17 }
 0xd30   : > { %v6251_v30 = vperm.slane %v6243_v6, %v9561_v28  ;;  %v6254_v39 = vrot.slane %v6239_v24, 4  ;;  %v6275_v45 = vperm.slane %v6271_v13, %v9546_v17  ;;  %v6283_v15 = vsel %vm2185_vm3, %v6282_v7, %v6264_v5  ;;  %v6346_v5 = vld [vmem:[%s11726_s30] sm:$0xff] }
 0xd31   : > { %v6241_v63 = vsel %vm2185_vm3, %v6240_v31, %v6217_v41  ;;  %v6252_v60 = vrot.slane %v6235_v49, 4  ;;  %v6287_v14 = vperm.slane %v6283_v15, %v9561_v28  ;;  %v6288_v12 = vrot.slane %v6281_v2, 4  ;;  %6373 = vmatpush.msra.mxu3 %v6346_v5 }
 0xd32   : > { %v6247_v22 = vperm.slane %v6241_v63, %v9561_v28  ;;  %v6255_v16 = vsel %vm2185_vm3, 0.0, %v6254_v39  ;;  %v6258_v43 = vrot.slane %v6251_v30, 4  ;;  %v6298_v58 = vsel %vm2185_vm3, %v6254_v39, %v6235_v49 }
 0xd33   : > { %v6253_v46 = vsel %vm2185_vm3, 0.0, %v6252_v60  ;;  %v6303_v34 = vrot.slane %v6255_v16, 4  ;;  %v6289_v1 = vsel %vm2185_vm3, %v6288_v12, %v6275_v45  ;;  %v6296_v47 = vrot.slane %v6287_v14, 4 }
 0xd34   : > { %v6256_v55 = vrot.slane %v6247_v22, 4  ;;  %v6259_v52 = vsel %vm2185_vm3, 0.0, %v6258_v43  ;;  %v6293_v51 = vperm.slane %v6289_v1, %v9561_v28  ;;  %v6309_v20 = vsel %vm2185_vm3, %v6258_v43, %v6247_v22 }
 0xd35   : > { %v6304_v21 = vsel %vm2185_vm3, %v6303_v34, %v6253_v46  ;;  %v6314_v41 = vrot.slane %v6259_v52, 4  ;;  %v6302_v18 = vperm.slane %v6298_v58, %v9546_v17  ;;  %v6313_v0 = vperm.slane %v6309_v20, %v9546_v17  ;;  %v6447_v46 = vld [vmem:[%s11728_s4 + $0x8] sm:$0xff]  ;;  %v6446_v34 = vld [vmem:[%s11728_s4] sm:$0xff]  ;;  %v8184_v20 = vld [vmem:[#allocation13] ss:$0 sm:$0xff] }
 0xd36   : > { %v6257_v50 = vsel %vm2185_vm3, 0.0, %v6256_v55  ;;  %v6308_v29 = vperm.slane %v6304_v21, %v9546_v17  ;;  %v6297_v10 = vsel %vm2185_vm3, %v6293_v51, %v6296_v47  ;;  %v6294_v37 = vrot.slane %v6293_v51, 4  ;;  %6472 = vmatpush.msrb.mxu0 %v6447_v46 }
 0xd37   : > { %6338 = vrot.lane.b32.xlu2 %v6297_v10, %s11671_s18  ;;  %v6315_v54 = vsel %vm2185_vm3, %v6314_v41, %v6257_v50  ;;  %v8893_v49 = vmov 16.0  }
 0xd38   : > { %v6319_v3 = vperm.slane %v6315_v54, %v9546_v17  ;;  %v6320_v57 = vrot.slane %v6308_v29, 4  ;;  %v6295_v32 = vsel %vm2185_vm3, %v6294_v37, %v6287_v14  ;;  %8333 = vrcp.f32 %v8893_v49  ;;  %6473 = vmatpush.msrb.mxu0 %v6446_v34  ;;  %v8183_v29 = vld [vmem:[#allocation12] ss:$0 sm:$0xff] }
 0xd3a   : > { %v6321_v9 = vsel %vm2185_vm3, %v6320_v57, %v6302_v18  ;;  %v6326_v48 = vrot.slane %v6319_v3, 4  ;;  %v6490_v3 = vld [vmem:[%s11729_s2 + $0x38] sm:$0xff]  ;;  %v6489_v57 = vld [vmem:[%s11729_s2 + $0x30] sm:$0xff] }
 0xd3b   : > { %v6325_v23 = vperm.slane %v6321_v9, %v9561_v28  ;;  %6509 = vmatpush.msra.mxu1 %v6490_v3  ;;  %v8188_v3 = vld [vmem:[#allocation19] ss:$0 sm:$0xff] }
 0xd3c   : > { %v6327_v8 = vsel %vm2185_vm3, %v6326_v48, %v6313_v0  ;;  %v6487_v48 = vld [vmem:[%s11729_s2 + $0x20] sm:$0xff] }
 0xd3d   : > { %v6331_v61 = vperm.slane %v6327_v8, %v9561_v28  ;;  %v6334_v38 = vrot.slane %v6325_v23, 4  ;;  %6510 = vmatpush.msra.mxu1 %v6489_v57  ;;  %v6486_v8 = vld [vmem:[%s11729_s2 + $0x18] sm:$0xff] }
 0xd3e   : > { %v8334_v31 = vpop.eup %8333 }
 0xd3f   : > { %v6335_v33 = vsel %vm2185_vm3, %v6331_v61, %v6334_v38  ;;  %v6332_v59 = vrot.slane %v6331_v61, 4  ;;  %v6392_v6 = vmul.f32 16.0, %v8334_v31  ;;  %vm6396_vm7 = vweird.f32 %v8334_v31 }
 0xd40   : > { %6340 = vrot.lane.b32.xlu1 %v6335_v33, %s11671_s18 }
 0xd41   : > { %v6333_v44 = vsel %vm2185_vm3, %v6332_v59, %v6325_v23  ;;  %v6393_v2 = vsub.f32 1.0, %v6392_v6 }
 0xd43   : > { %v6394_v30 = vmul.f32 %v8334_v31, %v6393_v2 }
 0xd45   : > { %v6395_v39 = vadd.f32 %v8334_v31, %v6394_v30 }
 0xd91   : > { %v6339_v40 = vpop.permute.xlu2 %6338 }
 0xd92   : > { %v6344_v56 = vsel %vm3779_vm4, %v6295_v32, %v6339_v40  ;;  %v6488_v32 = vld [vmem:[%s11729_s2 + $0x28] sm:$0xff] }
 0xd93   : > { %7827 = vmatmul.msk.f32.vlgmr.msra.gmra.mxu3 %vm1470_vm2, %v6344_v56  ;;  %6511 = vmatpush.msra.mxu1 %v6488_v32 }
 0xd95   : > { %6512 = vmatpush.msra.mxu1 %v6487_v48 }
 0xd97   : > { %6513 = vmatpush.msra.mxu1 %v6486_v8 }
 0xdb2   : > { %v6341_v19 = vpop.permute.xlu1 %6340 }
 0xdb3   : > { %v6345_v27 = vsel %vm3779_vm4, %v6333_v44, %v6341_v19 }
 0xdb4   : > { %7828 = vmatmul.msk.f32.gmra.mxu3 %vm1470_vm2, %v6345_v27 }
 0xe16   : > { %v6375_v25 = vpop.f32.mrf.mxu3 }
 0xe17   : > { %v6376_v4 = vadd.f32 %v8182_v62, %v6375_v25  ;;  %v6484_v25 = vld [vmem:[%s11729_s2 + $0x8] sm:$0xff] }
 0xe19   : > { %v6381_v36 = vadd.f32 %v6376_v4, %v11218_v11  ;;  %v11332_v11 = vsel %vm6396_vm7, %v8334_v31, %v6395_v39  ;;  %v6483_v4 = vld [vmem:[%s11729_s2] sm:$0xff]  ;;  %v8186_v31 = vld [vmem:[#allocation16] ss:$0 sm:$0xff] }
 0xe1b   : > { %v6385_v13 = vsel %vm1470_vm2, %v6381_v36, 0.0 }
 0xe1c   : > { %6386 = vadd.xlane.f32.xlu0 %v6385_v13 }
 0xe37   : > { %v6378_v42 = vpop.f32.mrf.mxu3 }
 0xe38   : > { %v6379_v24 = vadd.f32 %v8182_v62, %v6378_v42  ;;  %v6485_v62 = vld [vmem:[%s11729_s2 + $0x10] sm:$0xff] }
 0xe39   : > { %6514 = vmatpush.msra.mxu1 %v6485_v62 }
 0xe3a   : > { %v6382_v53 = vadd.f32 %v6379_v24, %v11222_v35 }
 0xe3b   : > { %6515 = vmatpush.msra.mxu1 %v6484_v25 }
 0xe3c   : > { %v6388_v7 = vsel %vm1470_vm2, %v6382_v53, 0.0 }
 0xe3d   : > { %6389 = vadd.xlane.f32.xlu1 %v6388_v7  ;;  %6516 = vmatpush.msra.mxu1 %v6483_v4 }
 0xe8f   : > { %v6387_v45 = vpop.xlane.xlu0 %6386 }
 0xe90   : > { %v6398_v15 = vmul.f32 %v11332_v11, %v6387_v45 }
 0xe92   : > { %v6400_v63 = vsub.f32 %v6381_v36, %v6398_v15  ;;  %v8185_v36 = vld [vmem:[#allocation15] ss:$0 sm:$0xff] }
 0xe94   : > { %v6402_v35 = vmul.f32 %v6400_v63, %v6400_v63 }
 0xe96   : > { %v6404_v60 = vsel %vm1470_vm2, %v6402_v35, 0.0 }
 0xe97   : > { %6405 = vadd.xlane.f32.xlu2 %v6404_v60 }
 0xeb0   : > { %v6390_v14 = vpop.xlane.xlu1 %6389 }
 0xeb1   : > { %v6399_v12 = vmul.f32 %v11332_v11, %v6390_v14 }
 0xeb3   : > { %v6401_v22 = vsub.f32 %v6382_v53, %v6399_v12 }
 0xeb5   : > { %v6403_v16 = vmul.f32 %v6401_v22, %v6401_v22 }
 0xeb7   : > { %v6407_v43 = vsel %vm1470_vm2, %v6403_v16, 0.0 }
 0xeb8   : > { %6408 = vadd.xlane.f32.xlu0 %v6407_v43 }
 0xf0a   : > { %v6406_v1 = vpop.xlane.xlu2 %6405 }
 0xf0b   : > { %v6410_v55 = vmul.f32 %v6406_v1, %v11332_v11 }
 0xf0d   : > { %v6412_v52 = vadd.f32 1e-05, %v6410_v55 }
 0xf0f   : > { %8335 = vrsqrt.f32 %v6412_v52  ;;  %vm6420_vm9 = vweird.f32 %v6412_v52 }
 0xf15   : > { %v8336_v51 = vpop.eup %8335 }
 0xf16   : > { %v6415_v47 = vmul.f32 %v8336_v51, %v6412_v52  ;;  %vm6421_vm8 = vweird.f32 %v8336_v51  ;;  %v6583_v52 = vld [vmem:[%s11730_s10 + $0x8] sm:$0xff] }
 0xf17   : > { %vm6422_vm11 = vmor %vm6420_vm9, %vm6421_vm8  ;;  %6608 = vmatpush.msra.mxu2 %v6583_v52 }
 0xf18   : > { %v6416_v58 = vmul.f32 %v8336_v51, %v6415_v47 }
 0xf1a   : > { %v6417_v21 = vmul.f32 0.5, %v6416_v58 }
 0xf1c   : > { %v6418_v41 = vsub.f32 1.5, %v6417_v21 }
 0xf1e   : > { %v6419_v50 = vmul.f32 %v8336_v51, %v6418_v41 }
 0xf20   : > { %v6423_v10 = vsel %vm6422_vm11, %v8336_v51, %v6419_v50  ;;  %v6582_v51 = vld [vmem:[%s11730_s10] sm:$0xff] }
 0xf21   : > { %v6434_v54 = vmul.f32 %v6423_v10, %v6400_v63  ;;  %6609 = vmatpush.msra.mxu2 %v6582_v51 }
 0xf23   : > { %v6439_v37 = vmul.f32 %v8183_v29, %v6434_v54 }
 0xf25   : > { %v6444_v18 = vadd.f32 %v8184_v20, %v6439_v37  ;;  %v8187_v37 = vld [vmem:[#allocation18] ss:$0 sm:$0xff] }
 0xf27   : > { %7829 = vmatmul.msk.f32.vlgmr.msrb.gmra.mxu0 %vm1470_vm2, %v6444_v18 }
 0xf2b   : > { %v6409_v0 = vpop.xlane.xlu0 %6408 }
 0xf2c   : > { %v6411_v9 = vmul.f32 %v6409_v0, %v11332_v11 }
 0xf2e   : > { %v6413_v23 = vadd.f32 1e-05, %v6411_v9 }
 0xf30   : > { %8337 = vrsqrt.f32 %v6413_v23  ;;  %vm6430_vm13 = vweird.f32 %v6413_v23 }
 0xf36   : > { %v8338_v61 = vpop.eup %8337 }
 0xf37   : > { %v6425_v38 = vmul.f32 %v8338_v61, %v6413_v23  ;;  %vm6431_vm12 = vweird.f32 %v8338_v61 }
 0xf38   : > { %vm6432_vm14 = vmor %vm6430_vm13, %vm6431_vm12 }
 0xf39   : > { %v6426_v33 = vmul.f32 %v8338_v61, %v6425_v38 }
 0xf3b   : > { %v6427_v59 = vmul.f32 0.5, %v6426_v33 }
 0xf3d   : > { %v6428_v44 = vsub.f32 1.5, %v6427_v59 }
 0xf3f   : > { %v6429_v5 = vmul.f32 %v8338_v61, %v6428_v44 }
 0xf41   : > { %v6433_v40 = vsel %vm6432_vm14, %v8338_v61, %v6429_v5 }
 0xf42   : > { %v6435_v56 = vmul.f32 %v6433_v40, %v6401_v22 }
 0xf44   : > { %v6440_v19 = vmul.f32 %v8183_v29, %v6435_v56 }
 0xf46   : > { %v6445_v27 = vadd.f32 %v8184_v20, %v6440_v19 }
 0xf48   : > { %7830 = vmatmul.msk.f32.gmra.mxu0 %vm1470_vm2, %v6445_v27 }
 0xfa4   : > { %v6475_v13 = vpop.f32.mrf.mxu0 }
 0xfa5   : > { %v6476_v42 = vadd.f32 %v8185_v36, %v6475_v13 }
 0xfa7   : > { %v6481_v24 = vmax.f32 %v6476_v42, 0.0 }
 0xfa9   : > { %7831 = vmatmul.msk.f32.vlgmr.msra.gmra.mxu1 %vm5654_vm10, %v6481_v24 }
 0xfc5   : > { %v6478_v53 = vpop.f32.mrf.mxu0 }
 0xfc6   : > { %v6479_v7 = vadd.f32 %v8185_v36, %v6478_v53 }
 0xfc8   : > { %v6482_v49 = vmax.f32 %v6479_v7, 0.0 }
 0xfca   : > { %7832 = vmatmul.msk.f32.gmra.mxu1 %vm5654_vm10, %v6482_v49 }
0x1026   : > { %v6518_v6 = vpop.f32.mrf.mxu1 }
0x1027   : > { %v6519_v2 = vadd.f32 %v8186_v31, %v6518_v6 }
0x1029   : > { %v6524_v30 = vadd.f32 %v6519_v2, %v6444_v18 }
0x102b   : > { %v6528_v39 = vsel %vm1470_vm2, %v6524_v30, 0.0 }
0x102c   : > { %6529 = vadd.xlane.f32.xlu1 %v6528_v39 }
0x1047   : > { %v6521_v45 = vpop.f32.mrf.mxu1 }
0x1048   : > { %v6522_v15 = vadd.f32 %v8186_v31, %v6521_v45 }
0x104a   : > { %v6525_v63 = vadd.f32 %v6522_v15, %v6445_v27  ;;  %v8189_v27 = vld [vmem:[%s11731_s6] ss:$0 sm:$0xff]  ;;  %s11740_s6 = sld [smem:[#allocation61_spill]] }
0x104c   : > { %v6531_v35 = vsel %vm1470_vm2, %v6525_v63, 0.0 }
0x104d   : > { %6532 = vadd.xlane.f32.xlu0 %v6531_v35 }
0x109f   : > { %v6530_v60 = vpop.xlane.xlu1 %6529 }
0x10a0   : > { %v6534_v14 = vmul.f32 %v6530_v60, %v11332_v11 }
0x10a2   : > { %v6536_v12 = vsub.f32 %v6524_v30, %v6534_v14 }
0x10a4   : > { %v6538_v22 = vmul.f32 %v6536_v12, %v6536_v12 }
0x10a6   : > { %v6540_v16 = vsel %vm1470_vm2, %v6538_v22, 0.0 }
0x10a7   : > { %6541 = vadd.xlane.f32.xlu1 %v6540_v16 }
0x10c0   : > { %v6533_v43 = vpop.xlane.xlu0 %6532 }
0x10c1   : > { %v6535_v46 = vmul.f32 %v6533_v43, %v11332_v11 }
0x10c3   : > { %v6537_v34 = vsub.f32 %v6525_v63, %v6535_v46 }
0x10c5   : > { %v6539_v1 = vmul.f32 %v6537_v34, %v6537_v34 }
0x10c7   : > { %v6543_v55 = vsel %vm1470_vm2, %v6539_v1, 0.0 }
0x10c8   : > { %6544 = vadd.xlane.f32.xlu0 %v6543_v55 }
0x111a   : > { %v6542_v47 = vpop.xlane.xlu1 %6541 }
0x111b   : > { %v6546_v58 = vmul.f32 %v6542_v47, %v11332_v11 }
0x111d   : > { %v6548_v21 = vadd.f32 1e-05, %v6546_v58 }
0x111f   : > { %8339 = vrsqrt.f32 %v6548_v21  ;;  %vm6556_vm0 = vweird.f32 %v6548_v21 }
0x1125   : > { %v8340_v41 = vpop.eup %8339 }
0x1126   : > { %v6551_v50 = vmul.f32 %v8340_v41, %v6548_v21  ;;  %vm6557_vm15 = vweird.f32 %v8340_v41 }
0x1127   : > { %vm6558_vm1 = vmor %vm6556_vm0, %vm6557_vm15 }
0x1128   : > { %v6552_v29 = vmul.f32 %v8340_v41, %v6551_v50 }
0x112a   : > { %v6553_v10 = vmul.f32 0.5, %v6552_v29 }
0x112c   : > { %v6554_v20 = vsub.f32 1.5, %v6553_v10 }
0x112e   : > { %v6555_v54 = vmul.f32 %v8340_v41, %v6554_v20 }
0x1130   : > { %v6559_v18 = vsel %vm6558_vm1, %v8340_v41, %v6555_v54 }
0x1131   : > { %v6570_v57 = vmul.f32 %v6559_v18, %v6536_v12 }
0x1133   : > { %v6575_v32 = vmul.f32 %v8187_v37, %v6570_v57 }
0x1135   : > { %v11363_v0 = vadd.f32 %v8188_v3, %v6575_v32 }
0x1137   : > { %7833 = vmatmul.msk.f32.vlgmr.msra.gmra.mxu2 %vm1470_vm2, %v11363_v0 }
0x113b   : > { %v6545_v9 = vpop.xlane.xlu0 %6544 }
0x113c   : > { %v6547_v48 = vmul.f32 %v6545_v9, %v11332_v11 }
0x113e   : > { %v6549_v23 = vadd.f32 1e-05, %v6547_v48 }
0x1140   : > { %8341 = vrsqrt.f32 %v6549_v23  ;;  %vm6566_vm6 = vweird.f32 %v6549_v23 }
0x1146   : > { %v8342_v8 = vpop.eup %8341 }
0x1147   : > { %v6561_v61 = vmul.f32 %v8342_v8, %v6549_v23  ;;  %vm6567_vm5 = vweird.f32 %v8342_v8 }
0x1148   : > { %vm6568_vm7 = vmor %vm6566_vm6, %vm6567_vm5  ;;  %vm7454_vm5 = vcmask 24576  }
0x1149   : > { %v6562_v38 = vmul.f32 %v8342_v8, %v6561_v61 }
0x114b   : > { %v6563_v33 = vmul.f32 0.5, %v6562_v38 }
0x114d   : > { %v6564_v59 = vsub.f32 1.5, %v6563_v33 }
0x114f   : > { %v6565_v44 = vmul.f32 %v8342_v8, %v6564_v59 }
0x1151   : > { %v6569_v5 = vsel %vm6568_vm7, %v8342_v8, %v6565_v44 }
0x1152   : > { %v6571_v40 = vmul.f32 %v6569_v5, %v6537_v34 }
0x1154   : > { %v6576_v56 = vmul.f32 %v8187_v37, %v6571_v40 }
0x1156   : > { %v11368_v19 = vadd.f32 %v8188_v3, %v6576_v56 }
0x1158   : > { %7834 = vmatmul.msk.f32.gmra.mxu2 %vm1470_vm2, %v11368_v19 }
0x11ba   : > { %v6611_v62 = vpop.f32.mrf.mxu2 }
0x11bb   : > { %v6612_v25 = vadd.f32 %v8189_v27, %v6611_v62 }
0x11bd   : > { %6619 = vrot.lane.b32.xlu2 %v6612_v25, %s11670_s26 }
0x11db   : > { %v6614_v4 = vpop.f32.mrf.mxu2 }
0x11dc   : > { %v6615_v36 = vadd.f32 %v8189_v27, %v6614_v4 }
0x11de   : > { %6621 = vrot.lane.b32.xlu1 %v6615_v36, %s11670_s26  ;;  %s11732_s26 = sld [smem:[#allocation54_spill]] }
0x1217   : > { %v6620_v13 = vpop.permute.xlu2 %6619 }
0x1218   : > { %v8155_v42 = vpack.i.bf16 %v6620_v13, %v6612_v25 }
0x121a   : > { %8156 = vrot.lane.b32.xlu0 %v8155_v42, %s11669_s25 }
0x1250   : > { %v6622_v24 = vpop.permute.xlu1 %6621 }
0x1251   : > { %v8160_v53 = vpack.i.bf16 %v6622_v24, %v6615_v36 }
0x1253   : > { %8161 = vrot.lane.b32.xlu0 %v8160_v53, %s11669_s25  ;;  %s11733_s25 = sld [smem:[#allocation58_spill]] }
0x125b   : > { %6805 = vrot.lane.b32.xlu0 %v6620_v13, %s11675_s23 }
0x128c   : > { %v8157_v7 = vpop.permute.xlu0 %8156 }
0x128d   : > { %8166 = vxpose.xlu2.b32.start [1/2] (short) (narrow) %v8157_v7, 8 }
0x12c5   : > { %v8162_v49 = vpop.permute.xlu0 %8161 }
0x12c6   : > { %8168 = vxpose.xlu2.b32.end [2/2] (short) (narrow) %v8162_v49, 8 }
0x12cd   : > { %v6806_v34 = vpop.permute.xlu0 %6805 }
0x1357   : > { %v8169_v31 = vpop.trf.xlu2 }
0x1358   : > { %v8173_v6 = vunpack.i.h.bf16 %v8169_v31  ;;  %v8170_v2 = vunpack.i.l.bf16 %v8169_v31 }
0x135a   : > { %6718 = vmatpush.msrb.mxu3 %v8170_v2  ;;  %6745 = vmatpush.msra.mxu0 %v8173_v6 }
0x135b   : > { %7835 = vmatmul.msk.f32.vlgmr.msrb.gmra.mxu3 %vm3779_vm4, %v6612_v25  ;;  %7837 = vmatmul.msk.f32.vlgmr.msra.gmra.mxu0 %vm3779_vm4, %v6620_v13 }
0x1363   : > { %7836 = vmatmul.msk.f32.gmra.mxu3 %vm3779_vm4, %v6615_v36  ;;  %7838 = vmatmul.msk.f32.gmra.mxu0 %vm3779_vm4, %v6622_v24 }
0x13d8   : > { %v6747_v30 = vpop.f32.mrf.mxu0 }
0x13d9   : > { %v6755_v39 = vmul.f32 0.35355338, %v6747_v30 }
0x13db   : > { %v6763_v45 = vsel %vm1470_vm2, %v6755_v39, -inf }
0x13dc   : > { %6764 = vmax.xlane.f32.xlu1 %v6763_v45 }
0x13de   : > { %v6720_v15 = vpop.f32.mrf.mxu3 }
0x13df   : > { %v6753_v63 = vmul.f32 0.35355338, %v6720_v15 }
0x13e0   : > { %v6750_v35 = vpop.f32.mrf.mxu0 }
0x13e1   : > { %v6756_v60 = vmul.f32 0.35355338, %v6750_v35  ;;  %v6757_v14 = vsel %vm1470_vm2, %v6753_v63, -inf }
0x13e2   : > { %6758 = vmax.xlane.f32.xlu2 %v6757_v14 }
0x13e3   : > { %v6766_v12 = vsel %vm1470_vm2, %v6756_v60, -inf }
0x13e4   : > { %6767 = vmax.xlane.f32.xlu1 %v6766_v12 }
0x13e6   : > { %v6723_v22 = vpop.f32.mrf.mxu3 }
0x13e7   : > { %v6754_v16 = vmul.f32 0.35355338, %v6723_v22 }
0x13e9   : > { %v6760_v43 = vsel %vm1470_vm2, %v6754_v16, -inf }
0x13ea   : > { %6761 = vmax.xlane.f32.xlu0 %v6760_v43 }
0x13fd   : > { %6807 = vrot.lane.b32.xlu1 %v6622_v24, %s11675_s23 }
0x13fe   : > { %6801 = vrot.lane.b32.xlu0 %v6612_v25, %s11675_s23 }
0x1406   : > { %6803 = vrot.lane.b32.xlu0 %v6615_v36, %s11675_s23  ;;  %s11734_s23 = sld [smem:[#allocation55_spill]] }
0x144f   : > { %v6765_v46 = vpop.xlane.xlu1 %6764 }
0x1450   : > { %v6771_v52 = vsub.f32 %v6755_v39, %v6765_v46 }
0x1452   : > { %v6777_v47 = vmul.f32 1.442695, %v6771_v52 }
0x1455   : > { %v6759_v1 = vpop.xlane.xlu2 %6758 }
0x1456   : > { %v6769_v55 = vsub.f32 %v6753_v63, %v6759_v1 }
0x1457   : > { %v6768_v58 = vpop.xlane.xlu1 %6767 }
0x1458   : > { %v6773_v51 = vmul.f32 1.442695, %v6769_v55  ;;  %v6772_v29 = vsub.f32 %v6756_v60, %v6768_v58 }
0x145a   : > { %8343 = vpow2.f32 %v6773_v51  ;;  %v6779_v54 = vmul.f32 1.442695, %v6772_v29 }
0x145b   : > { %8345 = vpow2.f32 %v6777_v47 }
0x145d   : > { %v6762_v21 = vpop.xlane.xlu0 %6761 }
0x145e   : > { %v6770_v41 = vsub.f32 %v6754_v16, %v6762_v21 }
0x1460   : > { %v8344_v50 = vpop.eup %8343  ;;  %v6775_v10 = vmul.f32 1.442695, %v6770_v41 }
0x1461   : > { %v6781_v20 = vsel %vm1470_vm2, %v8344_v50, 0.0  ;;  %v8346_v37 = vpop.eup %8345 }
0x1462   : > { %8347 = vpow2.f32 %v6775_v10  ;;  %6782 = vadd.xlane.f32.xlu1 %v6781_v20  ;;  %v6787_v3 = vsel %vm1470_vm2, %v8346_v37, 0.0 }
0x1463   : > { %8349 = vpow2.f32 %v6779_v54 }
0x1468   : > { %v8348_v18 = vpop.eup %8347 }
0x1469   : > { %v6784_v57 = vsel %vm1470_vm2, %v8348_v18, 0.0  ;;  %v8350_v32 = vpop.eup %8349 }
0x146a   : > { %6788 = vadd.xlane.f32.xlu1 %v6787_v3  ;;  %6785 = vadd.xlane.f32.xlu0 %v6784_v57  ;;  %v6790_v9 = vsel %vm1470_vm2, %v8350_v32, 0.0 }
0x146f   : > { %v6808_v8 = vpop.permute.xlu1 %6807 }
0x1470   : > { %v6802_v48 = vpop.permute.xlu0 %6801 }
0x1472   : > { %6791 = vadd.xlane.f32.xlu1 %v6790_v9 }
0x1478   : > { %v6804_v23 = vpop.permute.xlu0 %6803 }
0x1493   : > { %6813 = vxpose.xlu0.b32.start [1/2] (short) (narrow) %v6802_v48, 8 }
0x149b   : > { %6814 = vxpose.xlu0.b32.end [2/2] (short) (narrow) %v6804_v23, 8 }
0x14ac   : > { %6845 = vxpose.xlu1.b32.start [1/2] (short) (narrow) %v6806_v34, 8 }
0x14b4   : > { %6846 = vxpose.xlu1.b32.end [2/2] (short) (narrow) %v6808_v8, 8 }
0x14d5   : > { %v6783_v61 = vpop.xlane.xlu1 %6782 }
0x14dd   : > { %v6789_v38 = vpop.xlane.xlu1 %6788  ;;  %v6786_v33 = vpop.xlane.xlu0 %6785 }
0x14de   : > { %8351 = vrcp.f32 %v6786_v33 }
0x14df   : > { %8353 = vrcp.f32 %v6783_v61 }
0x14e4   : > { %v8352_v59 = vpop.eup %8351 }
0x14e5   : > { %v6792_v44 = vpop.xlane.xlu1 %6791  ;;  %v6798_v5 = vmul.f32 %v8352_v59, %v8348_v18  ;;  %v8354_v40 = vpop.eup %8353 }
0x14e6   : > { %8355 = vrcp.f32 %v6792_v44  ;;  %v6797_v56 = vmul.f32 %v8354_v40, %v8344_v50 }
0x14e7   : > { %8357 = vrcp.f32 %v6789_v38  ;;  %7839 = vmatpush.xpose.msk.msrb.mxu1 %vm1470_vm2, %v6798_v5 }
0x14eb   : > { %7840 = vmatpush.xpose.msk.msrb.mxu1 %vm1470_vm2, %v6797_v56 }
0x14ec   : > { %v8356_v27 = vpop.eup %8355 }
0x14ed   : > { %v6800_v62 = vmul.f32 %v8356_v27, %v8350_v32  ;;  %v8358_v25 = vpop.eup %8357 }
0x14ee   : > { %v6799_v4 = vmul.f32 %v8358_v25, %v8346_v37 }
0x14ef   : > { %7842 = vmatpush.xpose.msk.msrb.mxu2 %vm1470_vm2, %v6800_v62 }
0x14f3   : > { %7843 = vmatpush.xpose.msk.msrb.mxu2 %vm1470_vm2, %v6799_v4 }
0x1537   : > { %v6829_v36 = vpop.trf.xlu0 }
0x1538   : > { %7841 = vmatmul.msk.f32.vlgmr.msrb.gmra.mxu1 %vm1470_vm2, %v6829_v36 }
0x1550   : > { %v6861_v13 = vpop.trf.xlu1 }
0x1551   : > { %7844 = vmatmul.msk.f32.vlgmr.msrb.gmra.mxu2 %vm1470_vm2, %v6861_v13 }
0x15b5   : > { %v6903_v42 = vpop.f32.mrf.mxu1 }
0x15b6   : > { %6935 = vxpose.xlu2.b32.start.end [1/1] (short) (narrow) %v6903_v42, 16 }
0x15d4   : > { %v6932_v24 = vpop.f32.mrf.mxu2 }
0x15d5   : > { %6967 = vxpose.xlu0.b32.start.end [1/1] (short) (narrow) %v6932_v24, 16 }
0x163c   : > { %8174 = vset.pattern.permute.xlu0 %v8892_v26 }
0x164f   : > { %v6951_v53 = vpop.trf.xlu2 }
0x1650   : > { %v6999_v7 = vrot.slane %v6951_v53, 4  ;;  %v7004_v31 = vperm.slane %v6951_v53, %v9546_v17 }
0x1652   : > { %v7000_v49 = vsel %vm2185_vm3, 0.0, %v6999_v7  ;;  %v7021_v39 = vrot.slane %v7004_v31, 4 }
0x1653   : > { %v7008_v2 = vperm.slane %v7000_v49, %v9546_v17 }
0x1655   : > { %v7033_v35 = vrot.slane %v7008_v2, 4 }
0x1657   : > { %v6952_v6 = vpop.trf.xlu2 }
0x1658   : > { %v7051_v30 = vrot.slane %v6952_v6, 4  ;;  %v7056_v46 = vperm.slane %v6952_v6, %v9546_v17 }
0x165a   : > { %v7052_v60 = vsel %vm2185_vm3, 0.0, %v7051_v30  ;;  %v7073_v37 = vrot.slane %v7056_v46, 4 }
0x165b   : > { %v7060_v34 = vperm.slane %v7052_v60, %v9546_v17 }
0x165d   : > { %v7085_v3 = vrot.slane %v7060_v34, 4 }
0x1679   : > { %v6983_v45 = vpop.trf.xlu0 }
0x167a   : > { %v7009_v15 = vrot.slane %v6983_v45, 4  ;;  %v7014_v63 = vperm.slane %v6983_v45, %v9546_v17 }
0x167c   : > { %v7010_v26 = vsel %vm2185_vm3, 0.0, %v7009_v15  ;;  %v7019_v14 = vrot.slane %v7014_v63, 4  ;;  %v7022_v12 = vsel %vm2185_vm3, %v7014_v63, %v7021_v39 }
0x167d   : > { %v7018_v22 = vperm.slane %v7010_v26, %v9546_v17  ;;  %v7030_v16 = vperm.slane %v7022_v12, %v9561_v28 }
0x167e   : > { %v7020_v43 = vsel %vm2185_vm3, %v7019_v14, %v7004_v31 }
0x167f   : > { %v7026_v1 = vperm.slane %v7020_v43, %v9561_v28  ;;  %v7031_v55 = vrot.slane %v7018_v22, 4  ;;  %v7034_v52 = vsel %vm2185_vm3, %v7018_v22, %v7033_v35  ;;  %v7045_v51 = vrot.slane %v7030_v16, 4 }
0x1680   : > { %v7042_v47 = vperm.slane %v7034_v52, %v9561_v28 }
0x1681   : > { %v7032_v58 = vsel %vm2185_vm3, %v7031_v55, %v7008_v2  ;;  %v7043_v21 = vrot.slane %v7026_v1, 4  ;;  %v7046_v41 = vsel %vm2185_vm3, 0.0, %v7045_v51  ;;  %v7103_v50 = vsel %vm2185_vm3, %v7045_v51, %v7026_v1  ;;  %v6984_v29 = vpop.trf.xlu0 }
0x1682   : > { %v7038_v10 = vperm.slane %v7032_v58, %v9561_v28  ;;  %v7049_v20 = vrot.slane %v7042_v47, 4  ;;  %v7108_v54 = vrot.slane %v7046_v41, 4  ;;  %v7061_v57 = vrot.slane %v6984_v29, 4 }
0x1683   : > { %v7044_v18 = vsel %vm2185_vm3, 0.0, %v7043_v21  ;;  %v7066_v32 = vperm.slane %v6984_v29, %v9546_v17  ;;  %v7107_v23 = vperm.slane %v7103_v50, %v9546_v17 }
0x1684   : > { %v7047_v9 = vrot.slane %v7038_v10, 4  ;;  %v7050_v48 = vsel %vm2185_vm3, 0.0, %v7049_v20  ;;  %v7109_v8 = vsel %vm2185_vm3, %v7108_v54, %v7044_v18  ;;  %v7062_v33 = vsel %vm2185_vm3, 0.0, %v7061_v57 }
0x1685   : > { %v7113_v61 = vperm.slane %v7109_v8, %v9546_v17  ;;  %v7119_v38 = vrot.slane %v7050_v48, 4  ;;  %v7071_v59 = vrot.slane %v7066_v32, 4  ;;  %v7070_v5 = vperm.slane %v7062_v33, %v9546_v17  ;;  %v7190_v48 = vld [vmem:[#allocation21 + $0x8] sm:$0xff]  ;;  %v8190_v33 = vld [vmem:[%s11732_s26] ss:$0 sm:$0xff]  ;;  %s1446_s26 = sand.u32 1, %s8809_s15  }
0x1686   : > { %v7048_v44 = vsel %vm2185_vm3, 0.0, %v7047_v9  ;;  %v7074_v40 = vsel %vm2185_vm3, %v7066_v32, %v7073_v37  ;;  %v7114_v56 = vsel %vm2185_vm3, %v7049_v20, %v7038_v10  ;;  %7215 = vmatpush.msra.mxu1 %v7190_v48  ;;  %v8193_v48 = vld [vmem:[%s11736_s1] ss:$0 sm:$0xff]  ;;  %s1447_s1 = scalar_lea.vmem [#allocation24], %s1446_s26  ;;  %s7457_s2 = scalar_lea.sflag [#allocation6], %s1446_s26 }
0x1687   : > { %v7072_v27 = vsel %vm2185_vm3, %v7071_v59, %v7056_v46  ;;  %v7082_v62 = vperm.slane %v7074_v40, %v9561_v28  ;;  %v7120_v25 = vsel %vm2185_vm3, %v7119_v38, %v7048_v44  ;;  %v7125_v4 = vrot.slane %v7113_v61, 4 }
0x1688   : > { %v7078_v36 = vperm.slane %v7072_v27, %v9561_v28  ;;  %v7083_v13 = vrot.slane %v7070_v5, 4  ;;  %v7086_v42 = vsel %vm2185_vm3, %v7070_v5, %v7085_v3  ;;  %v7124_v24 = vperm.slane %v7120_v25, %v9546_v17 }
0x1689   : > { %v7094_v53 = vperm.slane %v7086_v42, %v9561_v28  ;;  %v7097_v7 = vrot.slane %v7082_v62, 4  ;;  %v7118_v49 = vperm.slane %v7114_v56, %v9546_v17  ;;  %v7126_v31 = vsel %vm2185_vm3, %v7125_v4, %v7107_v23  ;;  %v7189_v23 = vld [vmem:[#allocation21] sm:$0xff] }
0x168a   : > { %v7084_v6 = vsel %vm2185_vm3, %v7083_v13, %v7060_v34  ;;  %v7095_v2 = vrot.slane %v7078_v36, 4  ;;  %v7130_v30 = vperm.slane %v7126_v31, %v9561_v28  ;;  %v7131_v39 = vrot.slane %v7124_v24, 4  ;;  %7216 = vmatpush.msra.mxu1 %v7189_v23  ;;  %v7283_v31 = vld [vmem:[#allocation22 + $0x8] sm:$0xff] }
0x168b   : > { %v7090_v45 = vperm.slane %v7084_v6, %v9561_v28  ;;  %v7098_v15 = vsel %vm2185_vm3, 0.0, %v7097_v7  ;;  %v7101_v63 = vrot.slane %v7094_v53, 4  ;;  %v7141_v60 = vsel %vm2185_vm3, %v7097_v7, %v7078_v36  ;;  %v7282_v6 = vld [vmem:[#allocation22] sm:$0xff]  ;;  %7308 = vmatpush.msra.mxu2 %v7283_v31 }
0x168c   : > { %v7096_v35 = vsel %vm2185_vm3, 0.0, %v7095_v2  ;;  %v7146_v26 = vrot.slane %v7098_v15, 4  ;;  %v7132_v14 = vsel %vm2185_vm3, %v7131_v39, %v7118_v49  ;;  %v7139_v43 = vrot.slane %v7130_v30, 4  ;;  %v7325_v15 = vld [vmem:[%s11733_s25 + $0x30] sm:$0xff] }
0x168d   : > { %v7099_v12 = vrot.slane %v7090_v45, 4  ;;  %v7102_v22 = vsel %vm2185_vm3, 0.0, %v7101_v63  ;;  %v7136_v16 = vperm.slane %v7132_v14, %v9561_v28  ;;  %v7152_v1 = vsel %vm2185_vm3, %v7101_v63, %v7090_v45  ;;  %7309 = vmatpush.msra.mxu2 %v7282_v6  ;;  %v7326_v45 = vld [vmem:[%s11733_s25 + $0x38] sm:$0xff]  ;;  %v7324_v63 = vld [vmem:[%s11733_s25 + $0x28] sm:$0xff] }
0x168e   : > { %v7147_v46 = vsel %vm2185_vm3, %v7146_v26, %v7096_v35  ;;  %v7157_v34 = vrot.slane %v7102_v22, 4  ;;  %v7145_v52 = vperm.slane %v7141_v60, %v9546_v17  ;;  %v7156_v21 = vperm.slane %v7152_v1, %v9546_v17  ;;  %7345 = vmatpush.msra.mxu3 %v7326_v45  ;;  %v7323_v26 = vld [vmem:[%s11733_s25 + $0x20] sm:$0xff]  ;;  %v7322_v22 = vld [vmem:[%s11733_s25 + $0x18] sm:$0xff] }
0x168f   : > { %v7100_v55 = vsel %vm2185_vm3, 0.0, %v7099_v12  ;;  %v7151_v51 = vperm.slane %v7147_v46, %v9546_v17  ;;  %v7140_v47 = vsel %vm2185_vm3, %v7136_v16, %v7139_v43  ;;  %v7137_v57 = vrot.slane %v7136_v16, 4 }
0x1690   : > { %7181 = vrot.lane.b32.xlu0 %v7140_v47, %s11671_s18  ;;  %v7158_v58 = vsel %vm2185_vm3, %v7157_v34, %v7100_v55  ;;  %7346 = vmatpush.msra.mxu3 %v7325_v15 }
0x1691   : > { %v7162_v41 = vperm.slane %v7158_v58, %v9546_v17  ;;  %v7163_v50 = vrot.slane %v7151_v51, 4  ;;  %v7138_v32 = vsel %vm2185_vm3, %v7137_v57, %v7130_v30  ;;  %v8191_v51 = vld [vmem:[%s11734_s23] ss:$0 sm:$0xff]  ;;  %s7465_s23 = scalar_lea.hbm %s11739_s11, %s9133_s0  ;;  %s8747_s0 = scalar_lea.hbm %s11739_s11, 2 }
0x1692   : > { %7347 = vmatpush.msra.mxu3 %v7324_v63 }
0x1693   : > { %v7164_v29 = vsel %vm2185_vm3, %v7163_v50, %v7145_v52  ;;  %v7169_v10 = vrot.slane %v7162_v41, 4 }
0x1694   : > { %v7168_v20 = vperm.slane %v7164_v29, %v9561_v28  ;;  %7348 = vmatpush.msra.mxu3 %v7323_v26  ;;  %v7429_v26 = vld [vmem:[%s9100_s27 + $0x8] sm:$0xff] }
0x1695   : > { %v7170_v54 = vsel %vm2185_vm3, %v7169_v10, %v7156_v21  ;;  %7448 = vmatpush.msrb.mxu0 %v7429_v26 }
0x1696   : > { %v7174_v37 = vperm.slane %v7170_v54, %v9561_v28  ;;  %v7177_v18 = vrot.slane %v7168_v20, 4  ;;  %7349 = vmatpush.msra.mxu3 %v7322_v22 }
0x1698   : > { %v7178_v3 = vsel %vm2185_vm3, %v7174_v37, %v7177_v18  ;;  %v7175_v17 = vrot.slane %v7174_v37, 4 }
0x1699   : > { %7183 = vrot.lane.b32.xlu2 %v7178_v3, %s11671_s18  ;;  %s11735_s18 = sld [smem:[#allocation56_spill]] }
0x169a   : > { %v7176_v9 = vsel %vm2185_vm3, %v7175_v17, %v7168_v20  ;;  %v7320_v17 = vld [vmem:[%s11733_s25 + $0x8] sm:$0xff] }
0x169f   : > { %v8192_v21 = vld [vmem:[%s11735_s18] ss:$0 sm:$0xff] }
0x16f3   : > { %v7184_v28 = vpop.permute.xlu2 %7183 }
0x16f4   : > { %v7188_v38 = vsel %vm3779_vm4, %v7176_v9, %v7184_v28  ;;  %v7319_v9 = vld [vmem:[%s11733_s25] sm:$0xff] }
0x1702   : > { %v7182_v8 = vpop.permute.xlu0 %7181 }
0x1703   : > { %v7187_v61 = vsel %vm3779_vm4, %v7138_v32, %v7182_v8  ;;  %v7321_v32 = vld [vmem:[%s11733_s25 + $0x10] sm:$0xff] }
0x1704   : > { %7845 = vmatmul.msk.f32.vlgmr.msra.gmra.mxu1 %vm1470_vm2, %v7187_v61  ;;  %7350 = vmatpush.msra.mxu3 %v7321_v32 }
0x1706   : > { %7351 = vmatpush.msra.mxu3 %v7320_v17 }
0x1708   : > { %7352 = vmatpush.msra.mxu3 %v7319_v9 }
0x170c   : > { %7846 = vmatmul.msk.f32.gmra.mxu1 %vm1470_vm2, %v7188_v38 }
0x1781   : > { %v7218_v59 = vpop.f32.mrf.mxu1 }
0x1782   : > { %v7219_v44 = vadd.f32 %v8190_v33, %v7218_v59  ;;  %v8194_v59 = vld [vmem:[%s11737_s22] ss:$0 sm:$0xff]  ;;  %s7467_s22 = sshll.u32 %s1447_s1, 4  ;;  %s7468_s22 = int_to_ptr.vmem [resolvable:$true] %s7467_s22 }
0x1784   : > { %v7224_v5 = vadd.f32 %v7219_v44, %v11363_v0 }
0x1786   : > { %v7228_v40 = vsel %vm1470_vm2, %v7224_v5, 0.0 }
0x1787   : > { %7229 = vadd.xlane.f32.xlu1 %v7228_v40 }
0x1789   : > { %v7221_v56 = vpop.f32.mrf.mxu1 }
0x178a   : > { %v7222_v27 = vadd.f32 %v8190_v33, %v7221_v56 }
0x178c   : > { %v7225_v62 = vadd.f32 %v7222_v27, %v11368_v19 }
0x178e   : > { %v7231_v25 = vsel %vm1470_vm2, %v7225_v62, 0.0 }
0x178f   : > { %7232 = vadd.xlane.f32.xlu1 %v7231_v25 }
0x17fa   : > { %v7230_v4 = vpop.xlane.xlu1 %7229 }
0x17fb   : > { %v7234_v36 = vmul.f32 %v7230_v4, %v11332_v11 }
0x17fd   : > { %v7236_v13 = vsub.f32 %v7224_v5, %v7234_v36 }
0x17ff   : > { %v7238_v42 = vmul.f32 %v7236_v13, %v7236_v13 }
0x1801   : > { %v7240_v24 = vsel %vm1470_vm2, %v7238_v42, 0.0 }
0x1802   : > { %7241 = vadd.xlane.f32.xlu1 %v7240_v24  ;;  %v7233_v0 = vpop.xlane.xlu1 %7232 }
0x1803   : > { %v7235_v53 = vmul.f32 %v7233_v0, %v11332_v11 }
0x1805   : > { %v7237_v7 = vsub.f32 %v7225_v62, %v7235_v53 }
0x1807   : > { %v7239_v49 = vmul.f32 %v7237_v7, %v7237_v7 }
0x1809   : > { %v7243_v19 = vsel %vm1470_vm2, %v7239_v49, 0.0 }
0x180a   : > { %7244 = vadd.xlane.f32.xlu0 %v7243_v19 }
0x1875   : > { %v7242_v2 = vpop.xlane.xlu1 %7241 }
0x1876   : > { %v7246_v30 = vmul.f32 %v7242_v2, %v11332_v11 }
0x1878   : > { %v7248_v39 = vadd.f32 1e-05, %v7246_v30 }
0x187a   : > { %8359 = vrsqrt.f32 %v7248_v39  ;;  %vm7256_vm4 = vweird.f32 %v7248_v39 }
0x187d   : > { %v7245_v35 = vpop.xlane.xlu0 %7244 }
0x187e   : > { %v7247_v60 = vmul.f32 %v7245_v35, %v11332_v11 }
0x1880   : > { %v8360_v14 = vpop.eup %8359  ;;  %v7249_v12 = vadd.f32 1e-05, %v7247_v60 }
0x1881   : > { %v7251_v16 = vmul.f32 %v8360_v14, %v7248_v39  ;;  %vm7257_vm3 = vweird.f32 %v8360_v14 }
0x1882   : > { %8361 = vrsqrt.f32 %v7249_v12  ;;  %vm7258_vm8 = vmor %vm7256_vm4, %vm7257_vm3  ;;  %vm7266_vm11 = vweird.f32 %v7249_v12 }
0x1883   : > { %v7252_v43 = vmul.f32 %v8360_v14, %v7251_v16 }
0x1885   : > { %v7253_v46 = vmul.f32 0.5, %v7252_v43 }
0x1887   : > { %v7254_v34 = vsub.f32 1.5, %v7253_v46 }
0x1888   : > { %v8362_v1 = vpop.eup %8361 }
0x1889   : > { %v7255_v55 = vmul.f32 %v8360_v14, %v7254_v34  ;;  %v7261_v52 = vmul.f32 %v8362_v1, %v7249_v12  ;;  %vm7267_vm9 = vweird.f32 %v8362_v1 }
0x188a   : > { %vm7268_vm12 = vmor %vm7266_vm11, %vm7267_vm9 }
0x188b   : > { %v7259_v47 = vsel %vm7258_vm8, %v8360_v14, %v7255_v55  ;;  %v7262_v58 = vmul.f32 %v8362_v1, %v7261_v52  ;;  %v7428_v14 = vld [vmem:[%s9100_s27] sm:$0xff] }
0x188c   : > { %v7270_v41 = vmul.f32 %v7259_v47, %v7236_v13  ;;  %7449 = vmatpush.msrb.mxu0 %v7428_v14  ;;  %v8195_v52 = vld [vmem:[%s11738_s20] ss:$0 sm:$0xff]  ;;  %s7469_s20 = sshll.u32 %s7465_s23, 4  ;;  %s7470_s20 = int_to_ptr.hbm [resolvable:$true] %s7469_s20 }
0x188d   : > { %v7263_v50 = vmul.f32 0.5, %v7262_v58  ;;  %s8741_s3 = sshra.s32 %s7470_s20, 4  ;;  %s8742_s3 = int_to_ptr.hbm [resolvable:$true] %s8741_s3 }
0x188e   : > { %v7275_v29 = vmul.f32 %v8191_v51, %v7270_v41  ;;  %s8743_s4 = scalar_lea.hbm %s8742_s3, 1  ;;  %p8748_p4 = scmp.lt.s32.totalorder %s8742_s3, %s11739_s11 }
0x188f   : > { %v7264_v10 = vsub.f32 1.5, %v7263_v50  ;;  %p8744_p9 = scmp.ne.s32.totalorder %s8742_s3, %s8743_s4  ;;  %p8749_p7 = scmp.lt.s32.totalorder %s8747_s0, %s8743_s4 }
0x1890   : > { %v7280_v20 = vadd.f32 %v8192_v21, %v7275_v29 }
0x1891   : > { %v7265_v54 = vmul.f32 %v8362_v1, %v7264_v10  ;;  %p8745_p12 = pnand %p8744_p9, %p9150_p5  ;;  %p8750_p8 = por %p8749_p7, %p8748_p4 }
0x1892   : > { %7847 = vmatmul.msk.f32.vlgmr.msra.gmra.mxu2 %vm1470_vm2, %v7280_v20 }
0x1893   : > { %v7269_v37 = vsel %vm7268_vm12, %v8362_v1, %v7265_v54  ;;  %p8746_p0 = pneg %p8745_p12 }
0x1894   : > { %v7271_v18 = vmul.f32 %v7269_v37, %v7237_v7 }
0x1895   : > { %p8751_p11 = pnand %p8750_p8, %p8746_p0 }
0x1896   : > { %v7276_v3 = vmul.f32 %v8191_v51, %v7271_v18 }
0x1898   : > { %v7281_v57 = vadd.f32 %v8192_v21, %v7276_v3  ;;  %v8196_v21 = vld [vmem:[%s9095_s14] ss:$0 sm:$0xff] }
0x189a   : > { %7848 = vmatmul.msk.f32.gmra.mxu2 %vm1470_vm2, %v7281_v57 }
0x1915   : > { %v7311_v23 = vpop.f32.mrf.mxu2 }
0x1916   : > { %v7312_v8 = vadd.f32 %v8193_v48, %v7311_v23 }
0x1918   : > { %v7317_v61 = vmax.f32 %v7312_v8, 0.0 }
0x191a   : > { %7849 = vmatmul.msk.f32.vlgmr.msra.gmra.mxu3 %vm5654_vm10, %v7317_v61  ;;  %v7430_v61 = vld [vmem:[%s11740_s6] sm:$0x1] }
0x191d   : > { %v7314_v28 = vpop.f32.mrf.mxu2 }
0x191e   : > { %v7315_v38 = vadd.f32 %v8193_v48, %v7314_v28 }
0x1920   : > { %v7318_v33 = vmax.f32 %v7315_v38, 0.0 }
0x1922   : > { %7850 = vmatmul.msk.f32.gmra.mxu3 %vm5654_vm10, %v7318_v33 }
0x199d   : > { %v7354_v44 = vpop.f32.mrf.mxu3 }
0x199e   : > { %v7355_v5 = vadd.f32 %v8194_v59, %v7354_v44 }
0x19a0   : > { %v7360_v40 = vadd.f32 %v7355_v5, %v7280_v20 }
0x19a2   : > { %v7364_v56 = vsel %vm1470_vm2, %v7360_v40, 0.0 }
0x19a3   : > { %7365 = vadd.xlane.f32.xlu2 %v7364_v56 }
0x19a5   : > { %v7357_v27 = vpop.f32.mrf.mxu3 }
0x19a6   : > { %v7358_v62 = vadd.f32 %v8194_v59, %v7357_v27 }
0x19a8   : > { %v7361_v25 = vadd.f32 %v7358_v62, %v7281_v57 }
0x19aa   : > { %v7367_v4 = vsel %vm1470_vm2, %v7361_v25, 0.0 }
0x19ab   : > { %7368 = vadd.xlane.f32.xlu1 %v7367_v4 }
0x1a16   : > { %v7366_v36 = vpop.xlane.xlu2 %7365 }
0x1a17   : > { %v7370_v13 = vmul.f32 %v7366_v36, %v11332_v11 }
0x1a19   : > { %v7372_v42 = vsub.f32 %v7360_v40, %v7370_v13 }
0x1a1b   : > { %v7374_v24 = vmul.f32 %v7372_v42, %v7372_v42 }
0x1a1d   : > { %v7376_v0 = vsel %vm1470_vm2, %v7374_v24, 0.0 }
0x1a1e   : > { %v7369_v53 = vpop.xlane.xlu1 %7368  ;;  %7377 = vadd.xlane.f32.xlu1 %v7376_v0 }
0x1a1f   : > { %v7371_v7 = vmul.f32 %v7369_v53, %v11332_v11 }
0x1a21   : > { %v7373_v49 = vsub.f32 %v7361_v25, %v7371_v7 }
0x1a23   : > { %v7375_v19 = vmul.f32 %v7373_v49, %v7373_v49 }
0x1a25   : > { %v7379_v31 = vsel %vm1470_vm2, %v7375_v19, 0.0 }
0x1a26   : > { %7380 = vadd.xlane.f32.xlu1 %v7379_v31 }
0x1a91   : > { %v7378_v6 = vpop.xlane.xlu1 %7377 }
0x1a92   : > { %v7382_v2 = vmul.f32 %v7378_v6, %v11332_v11 }
0x1a94   : > { %v7384_v30 = vadd.f32 1e-05, %v7382_v2 }
0x1a96   : > { %8363 = vrsqrt.f32 %v7384_v30  ;;  %vm7392_vm13 = vweird.f32 %v7384_v30 }
0x1a99   : > { %v7381_v39 = vpop.xlane.xlu1 %7380 }
0x1a9a   : > { %v7383_v45 = vmul.f32 %v7381_v39, %v11332_v11 }
0x1a9c   : > { %v8364_v15 = vpop.eup %8363  ;;  %v7385_v63 = vadd.f32 1e-05, %v7383_v45 }
0x1a9d   : > { %v7387_v35 = vmul.f32 %v8364_v15, %v7384_v30  ;;  %vm7393_vm10 = vweird.f32 %v8364_v15 }
0x1a9e   : > { %8365 = vrsqrt.f32 %v7385_v63  ;;  %vm7394_vm14 = vmor %vm7392_vm13, %vm7393_vm10  ;;  %vm7402_vm0 = vweird.f32 %v7385_v63 }
0x1a9f   : > { %v7388_v60 = vmul.f32 %v8364_v15, %v7387_v35 }
0x1aa1   : > { %v7389_v12 = vmul.f32 0.5, %v7388_v60 }
0x1aa3   : > { %v7390_v22 = vsub.f32 1.5, %v7389_v12 }
0x1aa4   : > { %v8366_v16 = vpop.eup %8365 }
0x1aa5   : > { %v7391_v43 = vmul.f32 %v8364_v15, %v7390_v22  ;;  %v7397_v46 = vmul.f32 %v8366_v16, %v7385_v63  ;;  %vm7403_vm15 = vweird.f32 %v8366_v16 }
0x1aa6   : > { %vm7404_vm1 = vmor %vm7402_vm0, %vm7403_vm15 }
0x1aa7   : > { %v7395_v34 = vsel %vm7394_vm14, %v8364_v15, %v7391_v43  ;;  %v7398_v1 = vmul.f32 %v8366_v16, %v7397_v46 }
0x1aa8   : > { %v7406_v51 = vmul.f32 %v7395_v34, %v7372_v42 }
0x1aa9   : > { %v7399_v55 = vmul.f32 0.5, %v7398_v1 }
0x1aaa   : > { %v7411_v41 = vmul.f32 %v8195_v52, %v7406_v51 }
0x1aab   : > { %v7400_v47 = vsub.f32 1.5, %v7399_v55 }
0x1aac   : > { %v7416_v10 = vadd.f32 %v8196_v21, %v7411_v41 }
0x1aad   : > { %v7401_v58 = vmul.f32 %v8366_v16, %v7400_v47 }
0x1aae   : > { %v7418_v37 = vsel %vm1470_vm2, %v7416_v10, 0.0 }
0x1aaf   : > { %v7405_v50 = vsel %vm7404_vm1, %v8366_v16, %v7401_v58 }
0x1ab0   : > { %v7407_v29 = vmul.f32 %v7405_v50, %v7373_v49 }
0x1ab2   : > { %v7412_v20 = vmul.f32 %v8195_v52, %v7407_v29 }
0x1ab4   : > { %v7417_v54 = vadd.f32 %v8196_v21, %v7412_v20 }
0x1ab6   : > { %v7419_v18 = vsel %vm1470_vm2, %v7417_v54, 0.0 }
0x1ab7   : > { %v7420_v3 = vadd.f32 %v7419_v18, %v7418_v37 }
0x1ab9   : > { %v7421_v57 = vrot.slane %v7420_v3, 4 }
0x1abb   : > { %v7422_v32 = vadd.f32 %v7421_v57, %v7420_v3 }
0x1abd   : > { %v7423_v17 = vrot.slane %v7422_v32, 2 }
0x1abf   : > { %v7424_v9 = vadd.f32 %v7423_v17, %v7422_v32 }
0x1ac1   : > { %v7425_v48 = vrot.slane %v7424_v9, 1 }
0x1ac3   : > { %v7426_v23 = vadd.f32 %v7425_v48, %v7424_v9 }
0x1ac5   : > { %v7427_v8 = vmul.f32 %v7426_v23, %v11332_v11 }
0x1ac7   : > { %7851 = vmatmul.msk.f32.vlgmr.msrb.gmra.mxu0 %vm1470_vm2, %v7427_v8 }
0x1b44   : > { %v7451_v28 = vpop.f32.mrf.mxu0 }
0x1b45   : > { %v7452_v38 = vadd.f32 %v7451_v28, %v7430_v61 }
0x1b47   : > { %7455 = vst.msk [vmem:[%s1447_s1] sm:$0x1] %vm7454_vm5, %v7452_v38 }
0x1b48   : > { %8754 = shalt.err (!%p8751_p11)
}
0x1b49   : > { %7903 = dma.vmem_to_hbm [thread:$0]  (%p9150_p5), %s7468_s22, 16, %s7470_s20, %s7457_s2  }
0x1b4a PF: > { %s11742_s6 = sld [smem:[#allocation65_spill]] }
0x1b4b   : > { %s11743_s23 = sld [smem:[#allocation63_spill]] }
0x1b50   : > { %p7970_p13 = scmp.ge.s32.totalorder %s11742_s6, 2 }
0x1b51   : > { %s7481_s1 = sand.u32 1, %s11743_s23  }
0x1b52   : > { %p7943_p1 = pnand %p7970_p13, %p9154_p6  ;;  %s7482_s5 = scalar_lea.sflag [#allocation6], %s7481_s1 }
0x1b54   : > { %p7944_p2 = pneg %p7943_p1 }
0x1b56   : > { %8800 = dma.done.wait (%p7944_p2), %s7482_s5, 16  }
0x1b57   : > { %8802 = vsyncadd (%p7944_p2), %s7482_s5, 4294967280  ;;  %s11745_s20 = sld [smem:[#allocation66_spill]]  ;;  %s11748_s23 = smov %s8809_s15 }
0x1b58   : > { %s11746_s3 = sld [smem:[#allocation64_spill]] }
0x1b59   : > { %s11747_s18 = sld [smem:[#allocation67_spill]] }
0x1b5d   : > { %p104_p3 = scmp.ge.s32.totalorder %s11745_s20, 4  }
0x1b5e   : > { %s11749_s15 = smov %s11746_s3 }
0x1b5f   :  { %106 = sbr.rel (!%p104_p3) target bundleno = 88 (0x58), region = 322 }
0x1b64   :  { %7487 = vsyncpa [#allocation5], 1 }
0x1b65   :  { %7489 = vsyncpa [#allocation5 + $0x1], 1 }
0x1b66   :  { %7490 = vsyncpa [#allocation8], 1 }
0x1b67   :  { %7491 = vsyncpa [#allocation11], 1 }
0x1b68   :  { %7492 = vsyncpa [#allocation14], 1 }
0x1b69   :  { %7493 = vsyncpa [#allocation17], 1 }
0x1b6a   :  { %7494 = vsyncpa [#allocation20], 1 }
0x1b6b   :  { %7495 = vsyncpa [#allocation23], 1 }
0x1b6c   :  { %7496 = vsyncpa [#allocation6], 1 }
0x1b6d   :  { %7498 = vsyncpa [#allocation6 + $0x1], 1 }

</bundles_post_ra>
